<compile_context>
chip_gen: v6e
topology: v6e:2x2x1
jax: 0.10.0
libtpu: 0.0.40
codegen_flags: <defaults>
</compile_context>

<pallas_src>
import functools

import jax
import jax.numpy as jnp
from jax.experimental import pallas as pl
from jax.experimental.pallas import tpu as pltpu


# ----------------------------------------------------------------------------
# Fused backbone kernel
# ----------------------------------------------------------------------------
def _layernorm(x, eps=1e-5):
    # Affine (gamma/beta) is folded into the following matmul at init time.
    x = x.astype(jnp.float32)
    mu = jnp.mean(x, axis=-1, keepdims=True)
    var = jnp.mean(jnp.square(x - mu), axis=-1, keepdims=True)
    return (x - mu) * jax.lax.rsqrt(var + eps)


def _backbone_kernel(*args, depth, heads, head_dim, hidden, groups, tokens,
                     sig_cols):
    """Whole backbone for `groups` batch elements, fully resident in VMEM/vregs.

    args = [tok, pos, embed_w, embed_b]
           + depth * [qkv_w, qkv_b, proj_w, proj_b, mlp1_w, mlp1_b, mlp2_w, mlp2_b]
           + [out_w, out_b]
           + [out_ref]            (pallas output)
    """
    n_in = 4 + 8 * depth + 2
    in_refs = args[:n_in]
    out_ref = args[n_in]

    f32 = jnp.float32
    bf16 = jnp.bfloat16
    D = hidden
    hd = head_dim
    T = tokens
    G = groups

    tok_ref, pos_ref, ew_ref, eb_ref = in_refs[:4]

    # Patch embedding with positional embedding fused into the epilogue.
    x = tok_ref[...].astype(ew_ref.dtype)
    tok = jnp.dot(x, ew_ref[...], preferred_element_type=f32) + eb_ref[...]
    pos = pos_ref[...]
    if G > 1:
        pos = jnp.concatenate([pos] * G, axis=0)           # sublane tile, cheap
    tok = tok + pos

    lidx = 4
    for _ in range(depth):
        (qkv_w, qkv_b, proj_w, proj_b,
         m1_w, m1_b, m2_w, m2_b) = in_refs[lidx:lidx + 8]
        lidx += 8

        # ---- attention block (LN affine + q-scale pre-folded into qkv_w) ----
        y = _layernorm(tok)
        qkv = (jnp.dot(y.astype(qkv_w.dtype), qkv_w[...],
                       preferred_element_type=f32) + qkv_b[...]).astype(bf16)

        # Per-batch-element, per-head attention; everything stays in vregs,
        # head outputs merged with a single concatenate (no masked stores).
        batch_outs = []
        for g in range(G):
            qkv_g = qkv[g * T:(g + 1) * T, :]               # sublane-aligned
            head_outs = []
            for h in range(heads):
                q = qkv_g[:, h * hd:(h + 1) * hd]
                k = qkv_g[:, D + h * hd:D + (h + 1) * hd]
                v = qkv_g[:, 2 * D + h * hd:2 * D + (h + 1) * hd]
                s = jax.lax.dot_general(q, k, (((1,), (1,)), ((), ())),
                                        preferred_element_type=f32)
                s = s - jnp.max(s, axis=-1, keepdims=True)
                p = jnp.exp(s)
                p = p * pl.reciprocal(jnp.sum(p, axis=-1, keepdims=True),
                                      approx=True)
                head_outs.append(jnp.dot(p.astype(bf16), v,
                                         preferred_element_type=f32))
            batch_outs.append(jnp.concatenate(head_outs, axis=-1))
        attn = (jnp.concatenate(batch_outs, axis=0) if G > 1 else batch_outs[0])

        attn = jnp.dot(attn.astype(proj_w.dtype), proj_w[...],
                       preferred_element_type=f32) + proj_b[...]
        tok = tok + attn                      # residual fused in-kernel

        # ---- MLP block (LN affine pre-folded into mlp1_w) ----
        y = _layernorm(tok)
        y = jnp.dot(y.astype(m1_w.dtype), m1_w[...],
                    preferred_element_type=f32) + m1_b[...]
        y = jax.nn.gelu(y)
        y = jnp.dot(y.astype(m2_w.dtype), m2_w[...],
                    preferred_element_type=f32) + m2_b[...]
        tok = tok + y                         # residual fused in-kernel

    ow_ref, ob_ref = in_refs[lidx:lidx + 2]
    tok = _layernorm(tok)                     # final LN affine folded into out_w
    out = jnp.dot(tok.astype(ow_ref.dtype), ow_ref[...],
                  preferred_element_type=f32) + ob_ref[...]

    # Fused regression-head sigmoid: token columns [0, sig_cols) correspond to
    # the heatmap channels (channel index == column // patch**2), so masking
    # on the lane index applies sigmoid to exactly x[:, :n_classes] after
    # de-patchification.  Lane-padding columns (>= Od) are zero and untouched.
    col = jax.lax.broadcasted_iota(jnp.int32, out.shape, 1)
    out = jnp.where(col < sig_cols, jax.nn.sigmoid(out), out)
    out_ref[...] = out.astype(out_ref.dtype)


# ----------------------------------------------------------------------------
# Model: parameter init + thin glue around the single fused Pallas kernel
# ----------------------------------------------------------------------------
def _fold_ln_affine(gamma, beta, w, bias):
    """Fold y = LN0(x)*g + b followed by y@W + bias into LN0(x)@W' + bias'."""
    w_f = w * gamma.reshape(-1, 1)
    bias_f = bias + beta.reshape(1, -1) @ w
    return w_f, bias_f


class UNETRPallas:
    def __init__(self, in_channels, n_classes, img_size, *, regression=True,
                 patch=4, hidden=64, heads=4, mlp_dim=128, depth=2, seed=0):
        self.regression = regression
        self.n_classes = n_classes
        self.in_channels = in_channels
        self.img_size = tuple(img_size)
        self.patch = patch
        self.hidden = hidden
        self.heads = heads
        assert hidden % heads == 0
        self.head_dim = hidden // heads
        self.mlp_dim = mlp_dim
        self.depth = depth
        self.final_channel = n_classes * 3 if regression else n_classes

        H, W = self.img_size
        assert H % patch == 0 and W % patch == 0
        self.grid_hw = (H // patch, W // patch)
        self.tokens = self.grid_hw[0] * self.grid_hw[1]
        assert self.tokens % 8 == 0, "token count must be sublane-aligned"
        self.patch_dim = in_channels * patch * patch
        self.out_dim = self.final_channel * patch * patch
        # Lane-dense output: pad the de-projection to a multiple of 128 lanes.
        self.out_dim_pad = max(128, ((self.out_dim + 127) // 128) * 128)

        key = jax.random.PRNGKey(seed)
        counter = [0]

        def init(shape, scale=0.02):
            counter[0] += 1                               # deterministic
            k = jax.random.fold_in(key, counter[0])
            return scale * jax.random.normal(k, shape, dtype=jnp.float32)

        D, M = hidden, mlp_dim
        att_scale = 1.0 / (self.head_dim ** 0.5)
        wdt = jnp.bfloat16   # matmul weights bf16 (MXU-native, half the DMA)
        p = {}
        p["embed_w"] = init((self.patch_dim, D)).astype(wdt)
        p["embed_b"] = jnp.zeros((1, D), jnp.float32)
        p["pos"] = init((self.tokens, D))
        for l in range(depth):
            ln1_g = jnp.ones((D,), jnp.float32)
            ln1_b = jnp.zeros((D,), jnp.float32)
            ln2_g = jnp.ones((D,), jnp.float32)
            ln2_b = jnp.zeros((D,), jnp.float32)

            qkv_w = init((D, 3 * D))
            qkv_b = jnp.zeros((1, 3 * D), jnp.float32)
            qkv_w, qkv_b = _fold_ln_affine(ln1_g, ln1_b, qkv_w, qkv_b)
            # Fold 1/sqrt(head_dim) into the Q columns (drop the (T,T) scale).
            qkv_w = qkv_w.at[:, :D].multiply(att_scale)
            qkv_b = qkv_b.at[:, :D].multiply(att_scale)

            m1_w = init((D, M))
            m1_b = jnp.zeros((1, M), jnp.float32)
            m1_w, m1_b = _fold_ln_affine(ln2_g, ln2_b, m1_w, m1_b)

            p[f"qkv_w_{l}"] = qkv_w.astype(wdt)
            p[f"qkv_b_{l}"] = qkv_b
            p[f"proj_w_{l}"] = init((D, D)).astype(wdt)
            p[f"proj_b_{l}"] = jnp.zeros((1, D), jnp.float32)
            p[f"mlp1_w_{l}"] = m1_w.astype(wdt)
            p[f"mlp1_b_{l}"] = m1_b
            p[f"mlp2_w_{l}"] = init((M, D)).astype(wdt)
            p[f"mlp2_b_{l}"] = jnp.zeros((1, D), jnp.float32)

        lnf_g = jnp.ones((D,), jnp.float32)
        lnf_b = jnp.zeros((D,), jnp.float32)
        out_w = init((D, self.out_dim))
        out_b = jnp.zeros((1, self.out_dim), jnp.float32)
        out_w, out_b = _fold_ln_affine(lnf_g, lnf_b, out_w, out_b)
        pad = self.out_dim_pad - self.out_dim
        out_w = jnp.pad(out_w, ((0, 0), (0, pad)))
        out_b = jnp.pad(out_b, ((0, 0), (0, pad)))
        p["out_w"] = out_w.astype(wdt)
        p["out_b"] = out_b
        self.params = p

    # ---- layout glue (pure reshapes/transposes, no compute) ----
    def _patchify(self, x):
        B, C, H, W = x.shape
        ph = pw = self.patch
        Hp, Wp = self.grid_hw
        x = x.reshape(B, C, Hp, ph, Wp, pw)
        x = jnp.transpose(x, (0, 2, 4, 1, 3, 5))           # (B, Hp, Wp, C, ph, pw)
        return x.reshape(B * Hp * Wp, C * ph * pw)

    def _depatchify(self, tokens, B, C):
        ph = pw = self.patch
        Hp, Wp = self.grid_hw
        x = tokens.reshape(B, Hp, Wp, C, ph, pw)
        x = jnp.transpose(x, (0, 3, 1, 4, 2, 5))           # (B, C, Hp, ph, Wp, pw)
        return x.reshape(B, C, Hp * ph, Wp * pw)

    def backbone(self, x):
        p = self.params
        B = x.shape[0]
        T, D = self.tokens, self.hidden
        Pd, Od, Od_pad = self.patch_dim, self.out_dim, self.out_dim_pad

        # Grid over batch *groups*: whole batch in one step when the per-step
        # row count would otherwise drop below 128; two steps (one per v7x
        # TensorCore) when the batch is big enough to keep M >= 128 per step.
        num_steps = 2 if (B % 2 == 0 and (B // 2) * T >= 128) else 1
        G = B // num_steps

        tok = self._patchify(x)                            # (B*T, Pd)

        weights = [p["pos"], p["embed_w"], p["embed_b"]]
        for l in range(self.depth):
            weights += [p[f"qkv_w_{l}"], p[f"qkv_b_{l}"],
                        p[f"proj_w_{l}"], p[f"proj_b_{l}"],
                        p[f"mlp1_w_{l}"], p[f"mlp1_b_{l}"],
                        p[f"mlp2_w_{l}"], p[f"mlp2_b_{l}"]]
        weights += [p["out_w"], p["out_b"]]

        sig_cols = (self.n_classes if self.regression else self.final_channel)
        sig_cols *= self.patch * self.patch

        kernel = functools.partial(
            _backbone_kernel, depth=self.depth, heads=self.heads,
            head_dim=self.head_dim, hidden=D, groups=G, tokens=T,
            sig_cols=sig_cols)

        w_specs = [pl.BlockSpec(w.shape, lambda s: (0, 0)) for w in weights]
        out_tok = pl.pallas_call(
            kernel,
            out_shape=jax.ShapeDtypeStruct((B * T, Od_pad), jnp.float32),
            grid=(num_steps,),
            in_specs=[pl.BlockSpec((G * T, Pd), lambda s: (s, 0))] + w_specs,
            out_specs=pl.BlockSpec((G * T, Od_pad), lambda s: (s, 0)),
            compiler_params=pltpu.CompilerParams(
                dimension_semantics=("parallel",),          # batch groups -> TCs
                vmem_limit_bytes=64 * 1024 * 1024),
        )(tok, *weights)

        out_tok = out_tok[:, :Od]                          # drop lane padding (free)
        return self._depatchify(out_tok, B, self.final_channel)   # (B, Cf, H, W)

    def __call__(self, x):
        feats = self.backbone(x)      # heatmap-channel sigmoid already fused in-kernel
        if not self.regression:
            return feats
        n = self.n_classes
        heatmap = feats[:, :n]                    # sigmoid(x[:, :n]) from the kernel
        regression_x = feats[:, n:2 * n]
        regression_y = feats[:, 2 * n:]
        return heatmap, regression_y, regression_x


# ----------------------------------------------------------------------------
if __name__ == "__main__":
    B, Cin, H, W = 2, 3, 32, 32
    n_classes = 2

    model = UNETRPallas(in_channels=Cin, n_classes=n_classes,
                        img_size=[H, W], regression=True, seed=0)

    key = jax.random.PRNGKey(0)
    x = jax.random.normal(key, (B, Cin, H, W), dtype=jnp.float32)

    fwd = jax.jit(lambda inp: model(inp))
    heatmap, reg_y, reg_x = fwd(x)
    jax.block_until_ready((heatmap, reg_y, reg_x))

    assert heatmap.shape == (B, n_classes, H, W)
    assert reg_y.shape == (B, n_classes, H, W)
    assert reg_x.shape == (B, n_classes, H, W)
    assert bool(jnp.all((heatmap >= 0.0) & (heatmap <= 1.0)))
    assert bool(jnp.all(jnp.isfinite(reg_y))) and bool(jnp.all(jnp.isfinite(reg_x)))

    print("KERNEL_OK")
</pallas_src>

<mosaic_0001>
module attributes {stable_mosaic.version = 11 : i64} {
  func.func @_backbone_kernel(%arg0: i32, %arg1: memref<128x48xf32, #tpu.memory_space<vmem>>, %arg2: memref<64x64xf32, #tpu.memory_space<vmem>>, %arg3: memref<48x64xbf16, #tpu.memory_space<vmem>>, %arg4: memref<1x64xf32, #tpu.memory_space<vmem>>, %arg5: memref<64x192xbf16, #tpu.memory_space<vmem>>, %arg6: memref<1x192xf32, #tpu.memory_space<vmem>>, %arg7: memref<64x64xbf16, #tpu.memory_space<vmem>>, %arg8: memref<1x64xf32, #tpu.memory_space<vmem>>, %arg9: memref<64x128xbf16, #tpu.memory_space<vmem>>, %arg10: memref<1x128xf32, #tpu.memory_space<vmem>>, %arg11: memref<128x64xbf16, #tpu.memory_space<vmem>>, %arg12: memref<1x64xf32, #tpu.memory_space<vmem>>, %arg13: memref<64x192xbf16, #tpu.memory_space<vmem>>, %arg14: memref<1x192xf32, #tpu.memory_space<vmem>>, %arg15: memref<64x64xbf16, #tpu.memory_space<vmem>>, %arg16: memref<1x64xf32, #tpu.memory_space<vmem>>, %arg17: memref<64x128xbf16, #tpu.memory_space<vmem>>, %arg18: memref<1x128xf32, #tpu.memory_space<vmem>>, %arg19: memref<128x64xbf16, #tpu.memory_space<vmem>>, %arg20: memref<1x64xf32, #tpu.memory_space<vmem>>, %arg21: memref<64x128xbf16, #tpu.memory_space<vmem>>, %arg22: memref<1x128xf32, #tpu.memory_space<vmem>>, %arg23: memref<128x128xf32, #tpu.memory_space<vmem>>) attributes {dimension_semantics = [#tpu.dimension_semantics<parallel>], iteration_bounds = array<i64: 1>, scalar_prefetch = 0 : i64, scratch_operands = 0 : i64, tpu.core_type = #tpu.core_type<tc>, window_params = [{transform_indices = @transform_0, window_bounds = array<i64: 128, 48>}, {pipeline_mode = #tpu.pipeline_mode<synchronous>, transform_indices = @transform_1, window_bounds = array<i64: 64, 64>}, {pipeline_mode = #tpu.pipeline_mode<synchronous>, transform_indices = @transform_2, window_bounds = array<i64: 48, 64>}, {pipeline_mode = #tpu.pipeline_mode<synchronous>, transform_indices = @transform_3, window_bounds = array<i64: 1, 64>}, {pipeline_mode = #tpu.pipeline_mode<synchronous>, transform_indices = @transform_4, window_bounds = array<i64: 64, 192>}, {pipeline_mode = #tpu.pipeline_mode<synchronous>, transform_indices = @transform_5, window_bounds = array<i64: 1, 192>}, {pipeline_mode = #tpu.pipeline_mode<synchronous>, transform_indices = @transform_6, window_bounds = array<i64: 64, 64>}, {pipeline_mode = #tpu.pipeline_mode<synchronous>, transform_indices = @transform_7, window_bounds = array<i64: 1, 64>}, {pipeline_mode = #tpu.pipeline_mode<synchronous>, transform_indices = @transform_8, window_bounds = array<i64: 64, 128>}, {pipeline_mode = #tpu.pipeline_mode<synchronous>, transform_indices = @transform_9, window_bounds = array<i64: 1, 128>}, {pipeline_mode = #tpu.pipeline_mode<synchronous>, transform_indices = @transform_10, window_bounds = array<i64: 128, 64>}, {pipeline_mode = #tpu.pipeline_mode<synchronous>, transform_indices = @transform_11, window_bounds = array<i64: 1, 64>}, {pipeline_mode = #tpu.pipeline_mode<synchronous>, transform_indices = @transform_12, window_bounds = array<i64: 64, 192>}, {pipeline_mode = #tpu.pipeline_mode<synchronous>, transform_indices = @transform_13, window_bounds = array<i64: 1, 192>}, {pipeline_mode = #tpu.pipeline_mode<synchronous>, transform_indices = @transform_14, window_bounds = array<i64: 64, 64>}, {pipeline_mode = #tpu.pipeline_mode<synchronous>, transform_indices = @transform_15, window_bounds = array<i64: 1, 64>}, {pipeline_mode = #tpu.pipeline_mode<synchronous>, transform_indices = @transform_16, window_bounds = array<i64: 64, 128>}, {pipeline_mode = #tpu.pipeline_mode<synchronous>, transform_indices = @transform_17, window_bounds = array<i64: 1, 128>}, {pipeline_mode = #tpu.pipeline_mode<synchronous>, transform_indices = @transform_18, window_bounds = array<i64: 128, 64>}, {pipeline_mode = #tpu.pipeline_mode<synchronous>, transform_indices = @transform_19, window_bounds = array<i64: 1, 64>}, {pipeline_mode = #tpu.pipeline_mode<synchronous>, transform_indices = @transform_20, window_bounds = array<i64: 64, 128>}, {pipeline_mode = #tpu.pipeline_mode<synchronous>, transform_indices = @transform_21, window_bounds = array<i64: 1, 128>}, {transform_indices = @transform_22, window_bounds = array<i64: 128, 128>}]} {
    %c0 = arith.constant 0 : index
    %c0_0 = arith.constant 0 : index
    %0 = vector.load %arg1[%c0, %c0_0] : memref<128x48xf32, #tpu.memory_space<vmem>>, vector<128x48xf32>
    %1 = arith.truncf %0 : vector<128x48xf32> to vector<128x48xbf16>
    %c0_1 = arith.constant 0 : index
    %c0_2 = arith.constant 0 : index
    %2 = vector.load %arg3[%c0_1, %c0_2] : memref<48x64xbf16, #tpu.memory_space<vmem>>, vector<48x64xbf16>
    %cst = arith.constant dense<0.000000e+00> : vector<128x64xf32>
    %3 = tpu.matmul %1, %2, %cst {dimension_numbers = #tpu.dot_dimension_numbers<[1], [0], [0], [1], [0, 0, 1, 1], [], []>} : vector<128x48xbf16>, vector<48x64xbf16>, vector<128x64xf32> -> vector<128x64xf32>
    %c0_3 = arith.constant 0 : index
    %c0_4 = arith.constant 0 : index
    %4 = vector.load %arg4[%c0_3, %c0_4] : memref<1x64xf32, #tpu.memory_space<vmem>>, vector<1x64xf32>
    %5 = vector.broadcast %4 : vector<1x64xf32> to vector<128x64xf32>
    %6 = arith.addf %3, %5 : vector<128x64xf32>
    %c0_5 = arith.constant 0 : index
    %c0_6 = arith.constant 0 : index
    %7 = vector.load %arg2[%c0_5, %c0_6] : memref<64x64xf32, #tpu.memory_space<vmem>>, vector<64x64xf32>
    %8 = tpu.concatenate %7, %7 in 0 : vector<64x64xf32>, vector<64x64xf32> -> vector<128x64xf32>
    %9 = arith.addf %6, %8 : vector<128x64xf32>
    %cst_7 = arith.constant dense<0.000000e+00> : vector<128xf32>
    %10 = vector.multi_reduction <add>, %9, %cst_7 [1] : vector<128x64xf32> to vector<128xf32>
    %11 = vector.shape_cast %10 : vector<128xf32> to vector<128x1xf32>
    %cst_8 = arith.constant 6.400000e+01 : f32
    %12 = vector.broadcast %cst_8 : f32 to vector<128x1xf32>
    %13 = arith.divf %11, %12 : vector<128x1xf32>
    %14 = vector.broadcast %13 : vector<128x1xf32> to vector<128x64xf32>
    %15 = arith.subf %9, %14 : vector<128x64xf32>
    %16 = arith.mulf %15, %15 : vector<128x64xf32>
    %cst_9 = arith.constant dense<0.000000e+00> : vector<128xf32>
    %17 = vector.multi_reduction <add>, %16, %cst_9 [1] : vector<128x64xf32> to vector<128xf32>
    %18 = vector.shape_cast %17 : vector<128xf32> to vector<128x1xf32>
    %cst_10 = arith.constant 6.400000e+01 : f32
    %19 = vector.broadcast %cst_10 : f32 to vector<128x1xf32>
    %20 = arith.divf %18, %19 : vector<128x1xf32>
    %21 = vector.broadcast %13 : vector<128x1xf32> to vector<128x64xf32>
    %22 = arith.subf %9, %21 : vector<128x64xf32>
    %cst_11 = arith.constant 9.99999974E-6 : f32
    %23 = vector.broadcast %cst_11 : f32 to vector<128x1xf32>
    %24 = arith.addf %20, %23 : vector<128x1xf32>
    %25 = math.rsqrt %24 : vector<128x1xf32>
    %26 = vector.broadcast %25 : vector<128x1xf32> to vector<128x64xf32>
    %27 = arith.mulf %22, %26 : vector<128x64xf32>
    %28 = arith.truncf %27 : vector<128x64xf32> to vector<128x64xbf16>
    %c0_12 = arith.constant 0 : index
    %c0_13 = arith.constant 0 : index
    %29 = vector.load %arg5[%c0_12, %c0_13] : memref<64x192xbf16, #tpu.memory_space<vmem>>, vector<64x192xbf16>
    %cst_14 = arith.constant dense<0.000000e+00> : vector<128x192xf32>
    %30 = tpu.matmul %28, %29, %cst_14 {dimension_numbers = #tpu.dot_dimension_numbers<[1], [0], [0], [1], [0, 0, 1, 1], [], []>} : vector<128x64xbf16>, vector<64x192xbf16>, vector<128x192xf32> -> vector<128x192xf32>
    %c0_15 = arith.constant 0 : index
    %c0_16 = arith.constant 0 : index
    %31 = vector.load %arg6[%c0_15, %c0_16] : memref<1x192xf32, #tpu.memory_space<vmem>>, vector<1x192xf32>
    %32 = vector.broadcast %31 : vector<1x192xf32> to vector<128x192xf32>
    %33 = arith.addf %30, %32 : vector<128x192xf32>
    %34 = arith.truncf %33 : vector<128x192xf32> to vector<128x192xbf16>
    %35 = vector.extract_strided_slice %34 {offsets = [0, 0], sizes = [64, 192], strides = [1, 1]} : vector<128x192xbf16> to vector<64x192xbf16>
    %36 = vector.extract_strided_slice %35 {offsets = [0, 0], sizes = [64, 16], strides = [1, 1]} : vector<64x192xbf16> to vector<64x16xbf16>
    %37 = vector.extract_strided_slice %35 {offsets = [0, 64], sizes = [64, 16], strides = [1, 1]} : vector<64x192xbf16> to vector<64x16xbf16>
    %38 = vector.extract_strided_slice %35 {offsets = [0, 128], sizes = [64, 16], strides = [1, 1]} : vector<64x192xbf16> to vector<64x16xbf16>
    %cst_17 = arith.constant dense<0.000000e+00> : vector<64x64xf32>
    %39 = tpu.matmul %36, %37, %cst_17 {dimension_numbers = #tpu.dot_dimension_numbers<[1], [1], [0], [0], [0, 0, 1, 0], [], []>} : vector<64x16xbf16>, vector<64x16xbf16>, vector<64x64xf32> -> vector<64x64xf32>
    %cst_18 = arith.constant dense<0xFF800000> : vector<64xf32>
    %40 = vector.multi_reduction <maximumf>, %39, %cst_18 [1] : vector<64x64xf32> to vector<64xf32>
    %41 = vector.shape_cast %40 : vector<64xf32> to vector<64x1xf32>
    %42 = vector.broadcast %41 : vector<64x1xf32> to vector<64x64xf32>
    %43 = arith.subf %39, %42 : vector<64x64xf32>
    %44 = math.exp %43 : vector<64x64xf32>
    %cst_19 = arith.constant dense<0.000000e+00> : vector<64xf32>
    %45 = vector.multi_reduction <add>, %44, %cst_19 [1] : vector<64x64xf32> to vector<64xf32>
    %46 = vector.shape_cast %45 : vector<64xf32> to vector<64x1xf32>
    %47 = tpu.reciprocal %46 {approx = true} : vector<64x1xf32> -> vector<64x1xf32>
    %48 = vector.broadcast %47 : vector<64x1xf32> to vector<64x64xf32>
    %49 = arith.mulf %44, %48 : vector<64x64xf32>
    %50 = arith.truncf %49 : vector<64x64xf32> to vector<64x64xbf16>
    %cst_20 = arith.constant dense<0.000000e+00> : vector<64x16xf32>
    %51 = tpu.matmul %50, %38, %cst_20 {dimension_numbers = #tpu.dot_dimension_numbers<[1], [0], [0], [1], [0, 0, 1, 1], [], []>} : vector<64x64xbf16>, vector<64x16xbf16>, vector<64x16xf32> -> vector<64x16xf32>
    %52 = vector.extract_strided_slice %35 {offsets = [0, 16], sizes = [64, 16], strides = [1, 1]} : vector<64x192xbf16> to vector<64x16xbf16>
    %53 = vector.extract_strided_slice %35 {offsets = [0, 80], sizes = [64, 16], strides = [1, 1]} : vector<64x192xbf16> to vector<64x16xbf16>
    %54 = vector.extract_strided_slice %35 {offsets = [0, 144], sizes = [64, 16], strides = [1, 1]} : vector<64x192xbf16> to vector<64x16xbf16>
    %cst_21 = arith.constant dense<0.000000e+00> : vector<64x64xf32>
    %55 = tpu.matmul %52, %53, %cst_21 {dimension_numbers = #tpu.dot_dimension_numbers<[1], [1], [0], [0], [0, 0, 1, 0], [], []>} : vector<64x16xbf16>, vector<64x16xbf16>, vector<64x64xf32> -> vector<64x64xf32>
    %cst_22 = arith.constant dense<0xFF800000> : vector<64xf32>
    %56 = vector.multi_reduction <maximumf>, %55, %cst_22 [1] : vector<64x64xf32> to vector<64xf32>
    %57 = vector.shape_cast %56 : vector<64xf32> to vector<64x1xf32>
    %58 = vector.broadcast %57 : vector<64x1xf32> to vector<64x64xf32>
    %59 = arith.subf %55, %58 : vector<64x64xf32>
    %60 = math.exp %59 : vector<64x64xf32>
    %cst_23 = arith.constant dense<0.000000e+00> : vector<64xf32>
    %61 = vector.multi_reduction <add>, %60, %cst_23 [1] : vector<64x64xf32> to vector<64xf32>
    %62 = vector.shape_cast %61 : vector<64xf32> to vector<64x1xf32>
    %63 = tpu.reciprocal %62 {approx = true} : vector<64x1xf32> -> vector<64x1xf32>
    %64 = vector.broadcast %63 : vector<64x1xf32> to vector<64x64xf32>
    %65 = arith.mulf %60, %64 : vector<64x64xf32>
    %66 = arith.truncf %65 : vector<64x64xf32> to vector<64x64xbf16>
    %cst_24 = arith.constant dense<0.000000e+00> : vector<64x16xf32>
    %67 = tpu.matmul %66, %54, %cst_24 {dimension_numbers = #tpu.dot_dimension_numbers<[1], [0], [0], [1], [0, 0, 1, 1], [], []>} : vector<64x64xbf16>, vector<64x16xbf16>, vector<64x16xf32> -> vector<64x16xf32>
    %68 = vector.extract_strided_slice %35 {offsets = [0, 32], sizes = [64, 16], strides = [1, 1]} : vector<64x192xbf16> to vector<64x16xbf16>
    %69 = vector.extract_strided_slice %35 {offsets = [0, 96], sizes = [64, 16], strides = [1, 1]} : vector<64x192xbf16> to vector<64x16xbf16>
    %70 = vector.extract_strided_slice %35 {offsets = [0, 160], sizes = [64, 16], strides = [1, 1]} : vector<64x192xbf16> to vector<64x16xbf16>
    %cst_25 = arith.constant dense<0.000000e+00> : vector<64x64xf32>
    %71 = tpu.matmul %68, %69, %cst_25 {dimension_numbers = #tpu.dot_dimension_numbers<[1], [1], [0], [0], [0, 0, 1, 0], [], []>} : vector<64x16xbf16>, vector<64x16xbf16>, vector<64x64xf32> -> vector<64x64xf32>
    %cst_26 = arith.constant dense<0xFF800000> : vector<64xf32>
    %72 = vector.multi_reduction <maximumf>, %71, %cst_26 [1] : vector<64x64xf32> to vector<64xf32>
    %73 = vector.shape_cast %72 : vector<64xf32> to vector<64x1xf32>
    %74 = vector.broadcast %73 : vector<64x1xf32> to vector<64x64xf32>
    %75 = arith.subf %71, %74 : vector<64x64xf32>
    %76 = math.exp %75 : vector<64x64xf32>
    %cst_27 = arith.constant dense<0.000000e+00> : vector<64xf32>
    %77 = vector.multi_reduction <add>, %76, %cst_27 [1] : vector<64x64xf32> to vector<64xf32>
    %78 = vector.shape_cast %77 : vector<64xf32> to vector<64x1xf32>
    %79 = tpu.reciprocal %78 {approx = true} : vector<64x1xf32> -> vector<64x1xf32>
    %80 = vector.broadcast %79 : vector<64x1xf32> to vector<64x64xf32>
    %81 = arith.mulf %76, %80 : vector<64x64xf32>
    %82 = arith.truncf %81 : vector<64x64xf32> to vector<64x64xbf16>
    %cst_28 = arith.constant dense<0.000000e+00> : vector<64x16xf32>
    %83 = tpu.matmul %82, %70, %cst_28 {dimension_numbers = #tpu.dot_dimension_numbers<[1], [0], [0], [1], [0, 0, 1, 1], [], []>} : vector<64x64xbf16>, vector<64x16xbf16>, vector<64x16xf32> -> vector<64x16xf32>
    %84 = vector.extract_strided_slice %35 {offsets = [0, 48], sizes = [64, 16], strides = [1, 1]} : vector<64x192xbf16> to vector<64x16xbf16>
    %85 = vector.extract_strided_slice %35 {offsets = [0, 112], sizes = [64, 16], strides = [1, 1]} : vector<64x192xbf16> to vector<64x16xbf16>
    %86 = vector.extract_strided_slice %35 {offsets = [0, 176], sizes = [64, 16], strides = [1, 1]} : vector<64x192xbf16> to vector<64x16xbf16>
    %cst_29 = arith.constant dense<0.000000e+00> : vector<64x64xf32>
    %87 = tpu.matmul %84, %85, %cst_29 {dimension_numbers = #tpu.dot_dimension_numbers<[1], [1], [0], [0], [0, 0, 1, 0], [], []>} : vector<64x16xbf16>, vector<64x16xbf16>, vector<64x64xf32> -> vector<64x64xf32>
    %cst_30 = arith.constant dense<0xFF800000> : vector<64xf32>
    %88 = vector.multi_reduction <maximumf>, %87, %cst_30 [1] : vector<64x64xf32> to vector<64xf32>
    %89 = vector.shape_cast %88 : vector<64xf32> to vector<64x1xf32>
    %90 = vector.broadcast %89 : vector<64x1xf32> to vector<64x64xf32>
    %91 = arith.subf %87, %90 : vector<64x64xf32>
    %92 = math.exp %91 : vector<64x64xf32>
    %cst_31 = arith.constant dense<0.000000e+00> : vector<64xf32>
    %93 = vector.multi_reduction <add>, %92, %cst_31 [1] : vector<64x64xf32> to vector<64xf32>
    %94 = vector.shape_cast %93 : vector<64xf32> to vector<64x1xf32>
    %95 = tpu.reciprocal %94 {approx = true} : vector<64x1xf32> -> vector<64x1xf32>
    %96 = vector.broadcast %95 : vector<64x1xf32> to vector<64x64xf32>
    %97 = arith.mulf %92, %96 : vector<64x64xf32>
    %98 = arith.truncf %97 : vector<64x64xf32> to vector<64x64xbf16>
    %cst_32 = arith.constant dense<0.000000e+00> : vector<64x16xf32>
    %99 = tpu.matmul %98, %86, %cst_32 {dimension_numbers = #tpu.dot_dimension_numbers<[1], [0], [0], [1], [0, 0, 1, 1], [], []>} : vector<64x64xbf16>, vector<64x16xbf16>, vector<64x16xf32> -> vector<64x16xf32>
    %100 = tpu.concatenate %51, %67, %83, %99 in 1 : vector<64x16xf32>, vector<64x16xf32>, vector<64x16xf32>, vector<64x16xf32> -> vector<64x64xf32>
    %101 = vector.extract_strided_slice %34 {offsets = [64, 0], sizes = [64, 192], strides = [1, 1]} : vector<128x192xbf16> to vector<64x192xbf16>
    %102 = vector.extract_strided_slice %101 {offsets = [0, 0], sizes = [64, 16], strides = [1, 1]} : vector<64x192xbf16> to vector<64x16xbf16>
    %103 = vector.extract_strided_slice %101 {offsets = [0, 64], sizes = [64, 16], strides = [1, 1]} : vector<64x192xbf16> to vector<64x16xbf16>
    %104 = vector.extract_strided_slice %101 {offsets = [0, 128], sizes = [64, 16], strides = [1, 1]} : vector<64x192xbf16> to vector<64x16xbf16>
    %cst_33 = arith.constant dense<0.000000e+00> : vector<64x64xf32>
    %105 = tpu.matmul %102, %103, %cst_33 {dimension_numbers = #tpu.dot_dimension_numbers<[1], [1], [0], [0], [0, 0, 1, 0], [], []>} : vector<64x16xbf16>, vector<64x16xbf16>, vector<64x64xf32> -> vector<64x64xf32>
    %cst_34 = arith.constant dense<0xFF800000> : vector<64xf32>
    %106 = vector.multi_reduction <maximumf>, %105, %cst_34 [1] : vector<64x64xf32> to vector<64xf32>
    %107 = vector.shape_cast %106 : vector<64xf32> to vector<64x1xf32>
    %108 = vector.broadcast %107 : vector<64x1xf32> to vector<64x64xf32>
    %109 = arith.subf %105, %108 : vector<64x64xf32>
    %110 = math.exp %109 : vector<64x64xf32>
    %cst_35 = arith.constant dense<0.000000e+00> : vector<64xf32>
    %111 = vector.multi_reduction <add>, %110, %cst_35 [1] : vector<64x64xf32> to vector<64xf32>
    %112 = vector.shape_cast %111 : vector<64xf32> to vector<64x1xf32>
    %113 = tpu.reciprocal %112 {approx = true} : vector<64x1xf32> -> vector<64x1xf32>
    %114 = vector.broadcast %113 : vector<64x1xf32> to vector<64x64xf32>
    %115 = arith.mulf %110, %114 : vector<64x64xf32>
    %116 = arith.truncf %115 : vector<64x64xf32> to vector<64x64xbf16>
    %cst_36 = arith.constant dense<0.000000e+00> : vector<64x16xf32>
    %117 = tpu.matmul %116, %104, %cst_36 {dimension_numbers = #tpu.dot_dimension_numbers<[1], [0], [0], [1], [0, 0, 1, 1], [], []>} : vector<64x64xbf16>, vector<64x16xbf16>, vector<64x16xf32> -> vector<64x16xf32>
    %118 = vector.extract_strided_slice %101 {offsets = [0, 16], sizes = [64, 16], strides = [1, 1]} : vector<64x192xbf16> to vector<64x16xbf16>
    %119 = vector.extract_strided_slice %101 {offsets = [0, 80], sizes = [64, 16], strides = [1, 1]} : vector<64x192xbf16> to vector<64x16xbf16>
    %120 = vector.extract_strided_slice %101 {offsets = [0, 144], sizes = [64, 16], strides = [1, 1]} : vector<64x192xbf16> to vector<64x16xbf16>
    %cst_37 = arith.constant dense<0.000000e+00> : vector<64x64xf32>
    %121 = tpu.matmul %118, %119, %cst_37 {dimension_numbers = #tpu.dot_dimension_numbers<[1], [1], [0], [0], [0, 0, 1, 0], [], []>} : vector<64x16xbf16>, vector<64x16xbf16>, vector<64x64xf32> -> vector<64x64xf32>
    %cst_38 = arith.constant dense<0xFF800000> : vector<64xf32>
    %122 = vector.multi_reduction <maximumf>, %121, %cst_38 [1] : vector<64x64xf32> to vector<64xf32>
    %123 = vector.shape_cast %122 : vector<64xf32> to vector<64x1xf32>
    %124 = vector.broadcast %123 : vector<64x1xf32> to vector<64x64xf32>
    %125 = arith.subf %121, %124 : vector<64x64xf32>
    %126 = math.exp %125 : vector<64x64xf32>
    %cst_39 = arith.constant dense<0.000000e+00> : vector<64xf32>
    %127 = vector.multi_reduction <add>, %126, %cst_39 [1] : vector<64x64xf32> to vector<64xf32>
    %128 = vector.shape_cast %127 : vector<64xf32> to vector<64x1xf32>
    %129 = tpu.reciprocal %128 {approx = true} : vector<64x1xf32> -> vector<64x1xf32>
    %130 = vector.broadcast %129 : vector<64x1xf32> to vector<64x64xf32>
    %131 = arith.mulf %126, %130 : vector<64x64xf32>
    %132 = arith.truncf %131 : vector<64x64xf32> to vector<64x64xbf16>
    %cst_40 = arith.constant dense<0.000000e+00> : vector<64x16xf32>
    %133 = tpu.matmul %132, %120, %cst_40 {dimension_numbers = #tpu.dot_dimension_numbers<[1], [0], [0], [1], [0, 0, 1, 1], [], []>} : vector<64x64xbf16>, vector<64x16xbf16>, vector<64x16xf32> -> vector<64x16xf32>
    %134 = vector.extract_strided_slice %101 {offsets = [0, 32], sizes = [64, 16], strides = [1, 1]} : vector<64x192xbf16> to vector<64x16xbf16>
    %135 = vector.extract_strided_slice %101 {offsets = [0, 96], sizes = [64, 16], strides = [1, 1]} : vector<64x192xbf16> to vector<64x16xbf16>
    %136 = vector.extract_strided_slice %101 {offsets = [0, 160], sizes = [64, 16], strides = [1, 1]} : vector<64x192xbf16> to vector<64x16xbf16>
    %cst_41 = arith.constant dense<0.000000e+00> : vector<64x64xf32>
    %137 = tpu.matmul %134, %135, %cst_41 {dimension_numbers = #tpu.dot_dimension_numbers<[1], [1], [0], [0], [0, 0, 1, 0], [], []>} : vector<64x16xbf16>, vector<64x16xbf16>, vector<64x64xf32> -> vector<64x64xf32>
    %cst_42 = arith.constant dense<0xFF800000> : vector<64xf32>
    %138 = vector.multi_reduction <maximumf>, %137, %cst_42 [1] : vector<64x64xf32> to vector<64xf32>
    %139 = vector.shape_cast %138 : vector<64xf32> to vector<64x1xf32>
    %140 = vector.broadcast %139 : vector<64x1xf32> to vector<64x64xf32>
    %141 = arith.subf %137, %140 : vector<64x64xf32>
    %142 = math.exp %141 : vector<64x64xf32>
    %cst_43 = arith.constant dense<0.000000e+00> : vector<64xf32>
    %143 = vector.multi_reduction <add>, %142, %cst_43 [1] : vector<64x64xf32> to vector<64xf32>
    %144 = vector.shape_cast %143 : vector<64xf32> to vector<64x1xf32>
    %145 = tpu.reciprocal %144 {approx = true} : vector<64x1xf32> -> vector<64x1xf32>
    %146 = vector.broadcast %145 : vector<64x1xf32> to vector<64x64xf32>
    %147 = arith.mulf %142, %146 : vector<64x64xf32>
    %148 = arith.truncf %147 : vector<64x64xf32> to vector<64x64xbf16>
    %cst_44 = arith.constant dense<0.000000e+00> : vector<64x16xf32>
    %149 = tpu.matmul %148, %136, %cst_44 {dimension_numbers = #tpu.dot_dimension_numbers<[1], [0], [0], [1], [0, 0, 1, 1], [], []>} : vector<64x64xbf16>, vector<64x16xbf16>, vector<64x16xf32> -> vector<64x16xf32>
    %150 = vector.extract_strided_slice %101 {offsets = [0, 48], sizes = [64, 16], strides = [1, 1]} : vector<64x192xbf16> to vector<64x16xbf16>
    %151 = vector.extract_strided_slice %101 {offsets = [0, 112], sizes = [64, 16], strides = [1, 1]} : vector<64x192xbf16> to vector<64x16xbf16>
    %152 = vector.extract_strided_slice %101 {offsets = [0, 176], sizes = [64, 16], strides = [1, 1]} : vector<64x192xbf16> to vector<64x16xbf16>
    %cst_45 = arith.constant dense<0.000000e+00> : vector<64x64xf32>
    %153 = tpu.matmul %150, %151, %cst_45 {dimension_numbers = #tpu.dot_dimension_numbers<[1], [1], [0], [0], [0, 0, 1, 0], [], []>} : vector<64x16xbf16>, vector<64x16xbf16>, vector<64x64xf32> -> vector<64x64xf32>
    %cst_46 = arith.constant dense<0xFF800000> : vector<64xf32>
    %154 = vector.multi_reduction <maximumf>, %153, %cst_46 [1] : vector<64x64xf32> to vector<64xf32>
    %155 = vector.shape_cast %154 : vector<64xf32> to vector<64x1xf32>
    %156 = vector.broadcast %155 : vector<64x1xf32> to vector<64x64xf32>
    %157 = arith.subf %153, %156 : vector<64x64xf32>
    %158 = math.exp %157 : vector<64x64xf32>
    %cst_47 = arith.constant dense<0.000000e+00> : vector<64xf32>
    %159 = vector.multi_reduction <add>, %158, %cst_47 [1] : vector<64x64xf32> to vector<64xf32>
    %160 = vector.shape_cast %159 : vector<64xf32> to vector<64x1xf32>
    %161 = tpu.reciprocal %160 {approx = true} : vector<64x1xf32> -> vector<64x1xf32>
    %162 = vector.broadcast %161 : vector<64x1xf32> to vector<64x64xf32>
    %163 = arith.mulf %158, %162 : vector<64x64xf32>
    %164 = arith.truncf %163 : vector<64x64xf32> to vector<64x64xbf16>
    %cst_48 = arith.constant dense<0.000000e+00> : vector<64x16xf32>
    %165 = tpu.matmul %164, %152, %cst_48 {dimension_numbers = #tpu.dot_dimension_numbers<[1], [0], [0], [1], [0, 0, 1, 1], [], []>} : vector<64x64xbf16>, vector<64x16xbf16>, vector<64x16xf32> -> vector<64x16xf32>
    %166 = tpu.concatenate %117, %133, %149, %165 in 1 : vector<64x16xf32>, vector<64x16xf32>, vector<64x16xf32>, vector<64x16xf32> -> vector<64x64xf32>
    %167 = tpu.concatenate %100, %166 in 0 : vector<64x64xf32>, vector<64x64xf32> -> vector<128x64xf32>
    %168 = arith.truncf %167 : vector<128x64xf32> to vector<128x64xbf16>
    %c0_49 = arith.constant 0 : index
    %c0_50 = arith.constant 0 : index
    %169 = vector.load %arg7[%c0_49, %c0_50] : memref<64x64xbf16, #tpu.memory_space<vmem>>, vector<64x64xbf16>
    %cst_51 = arith.constant dense<0.000000e+00> : vector<128x64xf32>
    %170 = tpu.matmul %168, %169, %cst_51 {dimension_numbers = #tpu.dot_dimension_numbers<[1], [0], [0], [1], [0, 0, 1, 1], [], []>} : vector<128x64xbf16>, vector<64x64xbf16>, vector<128x64xf32> -> vector<128x64xf32>
    %c0_52 = arith.constant 0 : index
    %c0_53 = arith.constant 0 : index
    %171 = vector.load %arg8[%c0_52, %c0_53] : memref<1x64xf32, #tpu.memory_space<vmem>>, vector<1x64xf32>
    %172 = vector.broadcast %171 : vector<1x64xf32> to vector<128x64xf32>
    %173 = arith.addf %170, %172 : vector<128x64xf32>
    %174 = arith.addf %9, %173 : vector<128x64xf32>
    %cst_54 = arith.constant dense<0.000000e+00> : vector<128xf32>
    %175 = vector.multi_reduction <add>, %174, %cst_54 [1] : vector<128x64xf32> to vector<128xf32>
    %176 = vector.shape_cast %175 : vector<128xf32> to vector<128x1xf32>
    %cst_55 = arith.constant 6.400000e+01 : f32
    %177 = vector.broadcast %cst_55 : f32 to vector<128x1xf32>
    %178 = arith.divf %176, %177 : vector<128x1xf32>
    %179 = vector.broadcast %178 : vector<128x1xf32> to vector<128x64xf32>
    %180 = arith.subf %174, %179 : vector<128x64xf32>
    %181 = arith.mulf %180, %180 : vector<128x64xf32>
    %cst_56 = arith.constant dense<0.000000e+00> : vector<128xf32>
    %182 = vector.multi_reduction <add>, %181, %cst_56 [1] : vector<128x64xf32> to vector<128xf32>
    %183 = vector.shape_cast %182 : vector<128xf32> to vector<128x1xf32>
    %cst_57 = arith.constant 6.400000e+01 : f32
    %184 = vector.broadcast %cst_57 : f32 to vector<128x1xf32>
    %185 = arith.divf %183, %184 : vector<128x1xf32>
    %186 = vector.broadcast %178 : vector<128x1xf32> to vector<128x64xf32>
    %187 = arith.subf %174, %186 : vector<128x64xf32>
    %cst_58 = arith.constant 9.99999974E-6 : f32
    %188 = vector.broadcast %cst_58 : f32 to vector<128x1xf32>
    %189 = arith.addf %185, %188 : vector<128x1xf32>
    %190 = math.rsqrt %189 : vector<128x1xf32>
    %191 = vector.broadcast %190 : vector<128x1xf32> to vector<128x64xf32>
    %192 = arith.mulf %187, %191 : vector<128x64xf32>
    %193 = arith.truncf %192 : vector<128x64xf32> to vector<128x64xbf16>
    %c0_59 = arith.constant 0 : index
    %c0_60 = arith.constant 0 : index
    %194 = vector.load %arg9[%c0_59, %c0_60] : memref<64x128xbf16, #tpu.memory_space<vmem>>, vector<64x128xbf16>
    %cst_61 = arith.constant dense<0.000000e+00> : vector<128x128xf32>
    %195 = tpu.matmul %193, %194, %cst_61 {dimension_numbers = #tpu.dot_dimension_numbers<[1], [0], [0], [1], [0, 0, 1, 1], [], []>} : vector<128x64xbf16>, vector<64x128xbf16>, vector<128x128xf32> -> vector<128x128xf32>
    %c0_62 = arith.constant 0 : index
    %c0_63 = arith.constant 0 : index
    %196 = vector.load %arg10[%c0_62, %c0_63] : memref<1x128xf32, #tpu.memory_space<vmem>>, vector<1x128xf32>
    %197 = vector.broadcast %196 : vector<1x128xf32> to vector<128x128xf32>
    %198 = arith.addf %195, %197 : vector<128x128xf32>
    %199 = arith.mulf %198, %198 : vector<128x128xf32>
    %200 = arith.mulf %198, %199 : vector<128x128xf32>
    %cst_64 = arith.constant 4.471500e-02 : f32
    %201 = vector.broadcast %cst_64 : f32 to vector<128x128xf32>
    %202 = arith.mulf %201, %200 : vector<128x128xf32>
    %203 = arith.addf %198, %202 : vector<128x128xf32>
    %cst_65 = arith.constant 0.797884583 : f32
    %204 = vector.broadcast %cst_65 : f32 to vector<128x128xf32>
    %205 = arith.mulf %204, %203 : vector<128x128xf32>
    %206 = math.tanh %205 : vector<128x128xf32>
    %cst_66 = arith.constant 1.000000e+00 : f32
    %207 = vector.broadcast %cst_66 : f32 to vector<128x128xf32>
    %208 = arith.addf %207, %206 : vector<128x128xf32>
    %cst_67 = arith.constant 5.000000e-01 : f32
    %209 = vector.broadcast %cst_67 : f32 to vector<128x128xf32>
    %210 = arith.mulf %209, %208 : vector<128x128xf32>
    %211 = arith.mulf %198, %210 : vector<128x128xf32>
    %212 = arith.truncf %211 : vector<128x128xf32> to vector<128x128xbf16>
    %c0_68 = arith.constant 0 : index
    %c0_69 = arith.constant 0 : index
    %213 = vector.load %arg11[%c0_68, %c0_69] : memref<128x64xbf16, #tpu.memory_space<vmem>>, vector<128x64xbf16>
    %cst_70 = arith.constant dense<0.000000e+00> : vector<128x64xf32>
    %214 = tpu.matmul %212, %213, %cst_70 {dimension_numbers = #tpu.dot_dimension_numbers<[1], [0], [0], [1], [0, 0, 1, 1], [], []>} : vector<128x128xbf16>, vector<128x64xbf16>, vector<128x64xf32> -> vector<128x64xf32>
    %c0_71 = arith.constant 0 : index
    %c0_72 = arith.constant 0 : index
    %215 = vector.load %arg12[%c0_71, %c0_72] : memref<1x64xf32, #tpu.memory_space<vmem>>, vector<1x64xf32>
    %216 = vector.broadcast %215 : vector<1x64xf32> to vector<128x64xf32>
    %217 = arith.addf %214, %216 : vector<128x64xf32>
    %218 = arith.addf %174, %217 : vector<128x64xf32>
    %cst_73 = arith.constant dense<0.000000e+00> : vector<128xf32>
    %219 = vector.multi_reduction <add>, %218, %cst_73 [1] : vector<128x64xf32> to vector<128xf32>
    %220 = vector.shape_cast %219 : vector<128xf32> to vector<128x1xf32>
    %cst_74 = arith.constant 6.400000e+01 : f32
    %221 = vector.broadcast %cst_74 : f32 to vector<128x1xf32>
    %222 = arith.divf %220, %221 : vector<128x1xf32>
    %223 = vector.broadcast %222 : vector<128x1xf32> to vector<128x64xf32>
    %224 = arith.subf %218, %223 : vector<128x64xf32>
    %225 = arith.mulf %224, %224 : vector<128x64xf32>
    %cst_75 = arith.constant dense<0.000000e+00> : vector<128xf32>
    %226 = vector.multi_reduction <add>, %225, %cst_75 [1] : vector<128x64xf32> to vector<128xf32>
    %227 = vector.shape_cast %226 : vector<128xf32> to vector<128x1xf32>
    %cst_76 = arith.constant 6.400000e+01 : f32
    %228 = vector.broadcast %cst_76 : f32 to vector<128x1xf32>
    %229 = arith.divf %227, %228 : vector<128x1xf32>
    %230 = vector.broadcast %222 : vector<128x1xf32> to vector<128x64xf32>
    %231 = arith.subf %218, %230 : vector<128x64xf32>
    %cst_77 = arith.constant 9.99999974E-6 : f32
    %232 = vector.broadcast %cst_77 : f32 to vector<128x1xf32>
    %233 = arith.addf %229, %232 : vector<128x1xf32>
    %234 = math.rsqrt %233 : vector<128x1xf32>
    %235 = vector.broadcast %234 : vector<128x1xf32> to vector<128x64xf32>
    %236 = arith.mulf %231, %235 : vector<128x64xf32>
    %237 = arith.truncf %236 : vector<128x64xf32> to vector<128x64xbf16>
    %c0_78 = arith.constant 0 : index
    %c0_79 = arith.constant 0 : index
    %238 = vector.load %arg13[%c0_78, %c0_79] : memref<64x192xbf16, #tpu.memory_space<vmem>>, vector<64x192xbf16>
    %cst_80 = arith.constant dense<0.000000e+00> : vector<128x192xf32>
    %239 = tpu.matmul %237, %238, %cst_80 {dimension_numbers = #tpu.dot_dimension_numbers<[1], [0], [0], [1], [0, 0, 1, 1], [], []>} : vector<128x64xbf16>, vector<64x192xbf16>, vector<128x192xf32> -> vector<128x192xf32>
    %c0_81 = arith.constant 0 : index
    %c0_82 = arith.constant 0 : index
    %240 = vector.load %arg14[%c0_81, %c0_82] : memref<1x192xf32, #tpu.memory_space<vmem>>, vector<1x192xf32>
    %241 = vector.broadcast %240 : vector<1x192xf32> to vector<128x192xf32>
    %242 = arith.addf %239, %241 : vector<128x192xf32>
    %243 = arith.truncf %242 : vector<128x192xf32> to vector<128x192xbf16>
    %244 = vector.extract_strided_slice %243 {offsets = [0, 0], sizes = [64, 192], strides = [1, 1]} : vector<128x192xbf16> to vector<64x192xbf16>
    %245 = vector.extract_strided_slice %244 {offsets = [0, 0], sizes = [64, 16], strides = [1, 1]} : vector<64x192xbf16> to vector<64x16xbf16>
    %246 = vector.extract_strided_slice %244 {offsets = [0, 64], sizes = [64, 16], strides = [1, 1]} : vector<64x192xbf16> to vector<64x16xbf16>
    %247 = vector.extract_strided_slice %244 {offsets = [0, 128], sizes = [64, 16], strides = [1, 1]} : vector<64x192xbf16> to vector<64x16xbf16>
    %cst_83 = arith.constant dense<0.000000e+00> : vector<64x64xf32>
    %248 = tpu.matmul %245, %246, %cst_83 {dimension_numbers = #tpu.dot_dimension_numbers<[1], [1], [0], [0], [0, 0, 1, 0], [], []>} : vector<64x16xbf16>, vector<64x16xbf16>, vector<64x64xf32> -> vector<64x64xf32>
    %cst_84 = arith.constant dense<0xFF800000> : vector<64xf32>
    %249 = vector.multi_reduction <maximumf>, %248, %cst_84 [1] : vector<64x64xf32> to vector<64xf32>
    %250 = vector.shape_cast %249 : vector<64xf32> to vector<64x1xf32>
    %251 = vector.broadcast %250 : vector<64x1xf32> to vector<64x64xf32>
    %252 = arith.subf %248, %251 : vector<64x64xf32>
    %253 = math.exp %252 : vector<64x64xf32>
    %cst_85 = arith.constant dense<0.000000e+00> : vector<64xf32>
    %254 = vector.multi_reduction <add>, %253, %cst_85 [1] : vector<64x64xf32> to vector<64xf32>
    %255 = vector.shape_cast %254 : vector<64xf32> to vector<64x1xf32>
    %256 = tpu.reciprocal %255 {approx = true} : vector<64x1xf32> -> vector<64x1xf32>
    %257 = vector.broadcast %256 : vector<64x1xf32> to vector<64x64xf32>
    %258 = arith.mulf %253, %257 : vector<64x64xf32>
    %259 = arith.truncf %258 : vector<64x64xf32> to vector<64x64xbf16>
    %cst_86 = arith.constant dense<0.000000e+00> : vector<64x16xf32>
    %260 = tpu.matmul %259, %247, %cst_86 {dimension_numbers = #tpu.dot_dimension_numbers<[1], [0], [0], [1], [0, 0, 1, 1], [], []>} : vector<64x64xbf16>, vector<64x16xbf16>, vector<64x16xf32> -> vector<64x16xf32>
    %261 = vector.extract_strided_slice %244 {offsets = [0, 16], sizes = [64, 16], strides = [1, 1]} : vector<64x192xbf16> to vector<64x16xbf16>
    %262 = vector.extract_strided_slice %244 {offsets = [0, 80], sizes = [64, 16], strides = [1, 1]} : vector<64x192xbf16> to vector<64x16xbf16>
    %263 = vector.extract_strided_slice %244 {offsets = [0, 144], sizes = [64, 16], strides = [1, 1]} : vector<64x192xbf16> to vector<64x16xbf16>
    %cst_87 = arith.constant dense<0.000000e+00> : vector<64x64xf32>
    %264 = tpu.matmul %261, %262, %cst_87 {dimension_numbers = #tpu.dot_dimension_numbers<[1], [1], [0], [0], [0, 0, 1, 0], [], []>} : vector<64x16xbf16>, vector<64x16xbf16>, vector<64x64xf32> -> vector<64x64xf32>
    %cst_88 = arith.constant dense<0xFF800000> : vector<64xf32>
    %265 = vector.multi_reduction <maximumf>, %264, %cst_88 [1] : vector<64x64xf32> to vector<64xf32>
    %266 = vector.shape_cast %265 : vector<64xf32> to vector<64x1xf32>
    %267 = vector.broadcast %266 : vector<64x1xf32> to vector<64x64xf32>
    %268 = arith.subf %264, %267 : vector<64x64xf32>
    %269 = math.exp %268 : vector<64x64xf32>
    %cst_89 = arith.constant dense<0.000000e+00> : vector<64xf32>
    %270 = vector.multi_reduction <add>, %269, %cst_89 [1] : vector<64x64xf32> to vector<64xf32>
    %271 = vector.shape_cast %270 : vector<64xf32> to vector<64x1xf32>
    %272 = tpu.reciprocal %271 {approx = true} : vector<64x1xf32> -> vector<64x1xf32>
    %273 = vector.broadcast %272 : vector<64x1xf32> to vector<64x64xf32>
    %274 = arith.mulf %269, %273 : vector<64x64xf32>
    %275 = arith.truncf %274 : vector<64x64xf32> to vector<64x64xbf16>
    %cst_90 = arith.constant dense<0.000000e+00> : vector<64x16xf32>
    %276 = tpu.matmul %275, %263, %cst_90 {dimension_numbers = #tpu.dot_dimension_numbers<[1], [0], [0], [1], [0, 0, 1, 1], [], []>} : vector<64x64xbf16>, vector<64x16xbf16>, vector<64x16xf32> -> vector<64x16xf32>
    %277 = vector.extract_strided_slice %244 {offsets = [0, 32], sizes = [64, 16], strides = [1, 1]} : vector<64x192xbf16> to vector<64x16xbf16>
    %278 = vector.extract_strided_slice %244 {offsets = [0, 96], sizes = [64, 16], strides = [1, 1]} : vector<64x192xbf16> to vector<64x16xbf16>
    %279 = vector.extract_strided_slice %244 {offsets = [0, 160], sizes = [64, 16], strides = [1, 1]} : vector<64x192xbf16> to vector<64x16xbf16>
    %cst_91 = arith.constant dense<0.000000e+00> : vector<64x64xf32>
    %280 = tpu.matmul %277, %278, %cst_91 {dimension_numbers = #tpu.dot_dimension_numbers<[1], [1], [0], [0], [0, 0, 1, 0], [], []>} : vector<64x16xbf16>, vector<64x16xbf16>, vector<64x64xf32> -> vector<64x64xf32>
    %cst_92 = arith.constant dense<0xFF800000> : vector<64xf32>
    %281 = vector.multi_reduction <maximumf>, %280, %cst_92 [1] : vector<64x64xf32> to vector<64xf32>
    %282 = vector.shape_cast %281 : vector<64xf32> to vector<64x1xf32>
    %283 = vector.broadcast %282 : vector<64x1xf32> to vector<64x64xf32>
    %284 = arith.subf %280, %283 : vector<64x64xf32>
    %285 = math.exp %284 : vector<64x64xf32>
    %cst_93 = arith.constant dense<0.000000e+00> : vector<64xf32>
    %286 = vector.multi_reduction <add>, %285, %cst_93 [1] : vector<64x64xf32> to vector<64xf32>
    %287 = vector.shape_cast %286 : vector<64xf32> to vector<64x1xf32>
    %288 = tpu.reciprocal %287 {approx = true} : vector<64x1xf32> -> vector<64x1xf32>
    %289 = vector.broadcast %288 : vector<64x1xf32> to vector<64x64xf32>
    %290 = arith.mulf %285, %289 : vector<64x64xf32>
    %291 = arith.truncf %290 : vector<64x64xf32> to vector<64x64xbf16>
    %cst_94 = arith.constant dense<0.000000e+00> : vector<64x16xf32>
    %292 = tpu.matmul %291, %279, %cst_94 {dimension_numbers = #tpu.dot_dimension_numbers<[1], [0], [0], [1], [0, 0, 1, 1], [], []>} : vector<64x64xbf16>, vector<64x16xbf16>, vector<64x16xf32> -> vector<64x16xf32>
    %293 = vector.extract_strided_slice %244 {offsets = [0, 48], sizes = [64, 16], strides = [1, 1]} : vector<64x192xbf16> to vector<64x16xbf16>
    %294 = vector.extract_strided_slice %244 {offsets = [0, 112], sizes = [64, 16], strides = [1, 1]} : vector<64x192xbf16> to vector<64x16xbf16>
    %295 = vector.extract_strided_slice %244 {offsets = [0, 176], sizes = [64, 16], strides = [1, 1]} : vector<64x192xbf16> to vector<64x16xbf16>
    %cst_95 = arith.constant dense<0.000000e+00> : vector<64x64xf32>
    %296 = tpu.matmul %293, %294, %cst_95 {dimension_numbers = #tpu.dot_dimension_numbers<[1], [1], [0], [0], [0, 0, 1, 0], [], []>} : vector<64x16xbf16>, vector<64x16xbf16>, vector<64x64xf32> -> vector<64x64xf32>
    %cst_96 = arith.constant dense<0xFF800000> : vector<64xf32>
    %297 = vector.multi_reduction <maximumf>, %296, %cst_96 [1] : vector<64x64xf32> to vector<64xf32>
    %298 = vector.shape_cast %297 : vector<64xf32> to vector<64x1xf32>
    %299 = vector.broadcast %298 : vector<64x1xf32> to vector<64x64xf32>
    %300 = arith.subf %296, %299 : vector<64x64xf32>
    %301 = math.exp %300 : vector<64x64xf32>
    %cst_97 = arith.constant dense<0.000000e+00> : vector<64xf32>
    %302 = vector.multi_reduction <add>, %301, %cst_97 [1] : vector<64x64xf32> to vector<64xf32>
    %303 = vector.shape_cast %302 : vector<64xf32> to vector<64x1xf32>
    %304 = tpu.reciprocal %303 {approx = true} : vector<64x1xf32> -> vector<64x1xf32>
    %305 = vector.broadcast %304 : vector<64x1xf32> to vector<64x64xf32>
    %306 = arith.mulf %301, %305 : vector<64x64xf32>
    %307 = arith.truncf %306 : vector<64x64xf32> to vector<64x64xbf16>
    %cst_98 = arith.constant dense<0.000000e+00> : vector<64x16xf32>
    %308 = tpu.matmul %307, %295, %cst_98 {dimension_numbers = #tpu.dot_dimension_numbers<[1], [0], [0], [1], [0, 0, 1, 1], [], []>} : vector<64x64xbf16>, vector<64x16xbf16>, vector<64x16xf32> -> vector<64x16xf32>
    %309 = tpu.concatenate %260, %276, %292, %308 in 1 : vector<64x16xf32>, vector<64x16xf32>, vector<64x16xf32>, vector<64x16xf32> -> vector<64x64xf32>
    %310 = vector.extract_strided_slice %243 {offsets = [64, 0], sizes = [64, 192], strides = [1, 1]} : vector<128x192xbf16> to vector<64x192xbf16>
    %311 = vector.extract_strided_slice %310 {offsets = [0, 0], sizes = [64, 16], strides = [1, 1]} : vector<64x192xbf16> to vector<64x16xbf16>
    %312 = vector.extract_strided_slice %310 {offsets = [0, 64], sizes = [64, 16], strides = [1, 1]} : vector<64x192xbf16> to vector<64x16xbf16>
    %313 = vector.extract_strided_slice %310 {offsets = [0, 128], sizes = [64, 16], strides = [1, 1]} : vector<64x192xbf16> to vector<64x16xbf16>
    %cst_99 = arith.constant dense<0.000000e+00> : vector<64x64xf32>
    %314 = tpu.matmul %311, %312, %cst_99 {dimension_numbers = #tpu.dot_dimension_numbers<[1], [1], [0], [0], [0, 0, 1, 0], [], []>} : vector<64x16xbf16>, vector<64x16xbf16>, vector<64x64xf32> -> vector<64x64xf32>
    %cst_100 = arith.constant dense<0xFF800000> : vector<64xf32>
    %315 = vector.multi_reduction <maximumf>, %314, %cst_100 [1] : vector<64x64xf32> to vector<64xf32>
    %316 = vector.shape_cast %315 : vector<64xf32> to vector<64x1xf32>
    %317 = vector.broadcast %316 : vector<64x1xf32> to vector<64x64xf32>
    %318 = arith.subf %314, %317 : vector<64x64xf32>
    %319 = math.exp %318 : vector<64x64xf32>
    %cst_101 = arith.constant dense<0.000000e+00> : vector<64xf32>
    %320 = vector.multi_reduction <add>, %319, %cst_101 [1] : vector<64x64xf32> to vector<64xf32>
    %321 = vector.shape_cast %320 : vector<64xf32> to vector<64x1xf32>
    %322 = tpu.reciprocal %321 {approx = true} : vector<64x1xf32> -> vector<64x1xf32>
    %323 = vector.broadcast %322 : vector<64x1xf32> to vector<64x64xf32>
    %324 = arith.mulf %319, %323 : vector<64x64xf32>
    %325 = arith.truncf %324 : vector<64x64xf32> to vector<64x64xbf16>
    %cst_102 = arith.constant dense<0.000000e+00> : vector<64x16xf32>
    %326 = tpu.matmul %325, %313, %cst_102 {dimension_numbers = #tpu.dot_dimension_numbers<[1], [0], [0], [1], [0, 0, 1, 1], [], []>} : vector<64x64xbf16>, vector<64x16xbf16>, vector<64x16xf32> -> vector<64x16xf32>
    %327 = vector.extract_strided_slice %310 {offsets = [0, 16], sizes = [64, 16], strides = [1, 1]} : vector<64x192xbf16> to vector<64x16xbf16>
    %328 = vector.extract_strided_slice %310 {offsets = [0, 80], sizes = [64, 16], strides = [1, 1]} : vector<64x192xbf16> to vector<64x16xbf16>
    %329 = vector.extract_strided_slice %310 {offsets = [0, 144], sizes = [64, 16], strides = [1, 1]} : vector<64x192xbf16> to vector<64x16xbf16>
    %cst_103 = arith.constant dense<0.000000e+00> : vector<64x64xf32>
    %330 = tpu.matmul %327, %328, %cst_103 {dimension_numbers = #tpu.dot_dimension_numbers<[1], [1], [0], [0], [0, 0, 1, 0], [], []>} : vector<64x16xbf16>, vector<64x16xbf16>, vector<64x64xf32> -> vector<64x64xf32>
    %cst_104 = arith.constant dense<0xFF800000> : vector<64xf32>
    %331 = vector.multi_reduction <maximumf>, %330, %cst_104 [1] : vector<64x64xf32> to vector<64xf32>
    %332 = vector.shape_cast %331 : vector<64xf32> to vector<64x1xf32>
    %333 = vector.broadcast %332 : vector<64x1xf32> to vector<64x64xf32>
    %334 = arith.subf %330, %333 : vector<64x64xf32>
    %335 = math.exp %334 : vector<64x64xf32>
    %cst_105 = arith.constant dense<0.000000e+00> : vector<64xf32>
    %336 = vector.multi_reduction <add>, %335, %cst_105 [1] : vector<64x64xf32> to vector<64xf32>
    %337 = vector.shape_cast %336 : vector<64xf32> to vector<64x1xf32>
    %338 = tpu.reciprocal %337 {approx = true} : vector<64x1xf32> -> vector<64x1xf32>
    %339 = vector.broadcast %338 : vector<64x1xf32> to vector<64x64xf32>
    %340 = arith.mulf %335, %339 : vector<64x64xf32>
    %341 = arith.truncf %340 : vector<64x64xf32> to vector<64x64xbf16>
    %cst_106 = arith.constant dense<0.000000e+00> : vector<64x16xf32>
    %342 = tpu.matmul %341, %329, %cst_106 {dimension_numbers = #tpu.dot_dimension_numbers<[1], [0], [0], [1], [0, 0, 1, 1], [], []>} : vector<64x64xbf16>, vector<64x16xbf16>, vector<64x16xf32> -> vector<64x16xf32>
    %343 = vector.extract_strided_slice %310 {offsets = [0, 32], sizes = [64, 16], strides = [1, 1]} : vector<64x192xbf16> to vector<64x16xbf16>
    %344 = vector.extract_strided_slice %310 {offsets = [0, 96], sizes = [64, 16], strides = [1, 1]} : vector<64x192xbf16> to vector<64x16xbf16>
    %345 = vector.extract_strided_slice %310 {offsets = [0, 160], sizes = [64, 16], strides = [1, 1]} : vector<64x192xbf16> to vector<64x16xbf16>
    %cst_107 = arith.constant dense<0.000000e+00> : vector<64x64xf32>
    %346 = tpu.matmul %343, %344, %cst_107 {dimension_numbers = #tpu.dot_dimension_numbers<[1], [1], [0], [0], [0, 0, 1, 0], [], []>} : vector<64x16xbf16>, vector<64x16xbf16>, vector<64x64xf32> -> vector<64x64xf32>
    %cst_108 = arith.constant dense<0xFF800000> : vector<64xf32>
    %347 = vector.multi_reduction <maximumf>, %346, %cst_108 [1] : vector<64x64xf32> to vector<64xf32>
    %348 = vector.shape_cast %347 : vector<64xf32> to vector<64x1xf32>
    %349 = vector.broadcast %348 : vector<64x1xf32> to vector<64x64xf32>
    %350 = arith.subf %346, %349 : vector<64x64xf32>
    %351 = math.exp %350 : vector<64x64xf32>
    %cst_109 = arith.constant dense<0.000000e+00> : vector<64xf32>
    %352 = vector.multi_reduction <add>, %351, %cst_109 [1] : vector<64x64xf32> to vector<64xf32>
    %353 = vector.shape_cast %352 : vector<64xf32> to vector<64x1xf32>
    %354 = tpu.reciprocal %353 {approx = true} : vector<64x1xf32> -> vector<64x1xf32>
    %355 = vector.broadcast %354 : vector<64x1xf32> to vector<64x64xf32>
    %356 = arith.mulf %351, %355 : vector<64x64xf32>
    %357 = arith.truncf %356 : vector<64x64xf32> to vector<64x64xbf16>
    %cst_110 = arith.constant dense<0.000000e+00> : vector<64x16xf32>
    %358 = tpu.matmul %357, %345, %cst_110 {dimension_numbers = #tpu.dot_dimension_numbers<[1], [0], [0], [1], [0, 0, 1, 1], [], []>} : vector<64x64xbf16>, vector<64x16xbf16>, vector<64x16xf32> -> vector<64x16xf32>
    %359 = vector.extract_strided_slice %310 {offsets = [0, 48], sizes = [64, 16], strides = [1, 1]} : vector<64x192xbf16> to vector<64x16xbf16>
    %360 = vector.extract_strided_slice %310 {offsets = [0, 112], sizes = [64, 16], strides = [1, 1]} : vector<64x192xbf16> to vector<64x16xbf16>
    %361 = vector.extract_strided_slice %310 {offsets = [0, 176], sizes = [64, 16], strides = [1, 1]} : vector<64x192xbf16> to vector<64x16xbf16>
    %cst_111 = arith.constant dense<0.000000e+00> : vector<64x64xf32>
    %362 = tpu.matmul %359, %360, %cst_111 {dimension_numbers = #tpu.dot_dimension_numbers<[1], [1], [0], [0], [0, 0, 1, 0], [], []>} : vector<64x16xbf16>, vector<64x16xbf16>, vector<64x64xf32> -> vector<64x64xf32>
    %cst_112 = arith.constant dense<0xFF800000> : vector<64xf32>
    %363 = vector.multi_reduction <maximumf>, %362, %cst_112 [1] : vector<64x64xf32> to vector<64xf32>
    %364 = vector.shape_cast %363 : vector<64xf32> to vector<64x1xf32>
    %365 = vector.broadcast %364 : vector<64x1xf32> to vector<64x64xf32>
    %366 = arith.subf %362, %365 : vector<64x64xf32>
    %367 = math.exp %366 : vector<64x64xf32>
    %cst_113 = arith.constant dense<0.000000e+00> : vector<64xf32>
    %368 = vector.multi_reduction <add>, %367, %cst_113 [1] : vector<64x64xf32> to vector<64xf32>
    %369 = vector.shape_cast %368 : vector<64xf32> to vector<64x1xf32>
    %370 = tpu.reciprocal %369 {approx = true} : vector<64x1xf32> -> vector<64x1xf32>
    %371 = vector.broadcast %370 : vector<64x1xf32> to vector<64x64xf32>
    %372 = arith.mulf %367, %371 : vector<64x64xf32>
    %373 = arith.truncf %372 : vector<64x64xf32> to vector<64x64xbf16>
    %cst_114 = arith.constant dense<0.000000e+00> : vector<64x16xf32>
    %374 = tpu.matmul %373, %361, %cst_114 {dimension_numbers = #tpu.dot_dimension_numbers<[1], [0], [0], [1], [0, 0, 1, 1], [], []>} : vector<64x64xbf16>, vector<64x16xbf16>, vector<64x16xf32> -> vector<64x16xf32>
    %375 = tpu.concatenate %326, %342, %358, %374 in 1 : vector<64x16xf32>, vector<64x16xf32>, vector<64x16xf32>, vector<64x16xf32> -> vector<64x64xf32>
    %376 = tpu.concatenate %309, %375 in 0 : vector<64x64xf32>, vector<64x64xf32> -> vector<128x64xf32>
    %377 = arith.truncf %376 : vector<128x64xf32> to vector<128x64xbf16>
    %c0_115 = arith.constant 0 : index
    %c0_116 = arith.constant 0 : index
    %378 = vector.load %arg15[%c0_115, %c0_116] : memref<64x64xbf16, #tpu.memory_space<vmem>>, vector<64x64xbf16>
    %cst_117 = arith.constant dense<0.000000e+00> : vector<128x64xf32>
    %379 = tpu.matmul %377, %378, %cst_117 {dimension_numbers = #tpu.dot_dimension_numbers<[1], [0], [0], [1], [0, 0, 1, 1], [], []>} : vector<128x64xbf16>, vector<64x64xbf16>, vector<128x64xf32> -> vector<128x64xf32>
    %c0_118 = arith.constant 0 : index
    %c0_119 = arith.constant 0 : index
    %380 = vector.load %arg16[%c0_118, %c0_119] : memref<1x64xf32, #tpu.memory_space<vmem>>, vector<1x64xf32>
    %381 = vector.broadcast %380 : vector<1x64xf32> to vector<128x64xf32>
    %382 = arith.addf %379, %381 : vector<128x64xf32>
    %383 = arith.addf %218, %382 : vector<128x64xf32>
    %cst_120 = arith.constant dense<0.000000e+00> : vector<128xf32>
    %384 = vector.multi_reduction <add>, %383, %cst_120 [1] : vector<128x64xf32> to vector<128xf32>
    %385 = vector.shape_cast %384 : vector<128xf32> to vector<128x1xf32>
    %cst_121 = arith.constant 6.400000e+01 : f32
    %386 = vector.broadcast %cst_121 : f32 to vector<128x1xf32>
    %387 = arith.divf %385, %386 : vector<128x1xf32>
    %388 = vector.broadcast %387 : vector<128x1xf32> to vector<128x64xf32>
    %389 = arith.subf %383, %388 : vector<128x64xf32>
    %390 = arith.mulf %389, %389 : vector<128x64xf32>
    %cst_122 = arith.constant dense<0.000000e+00> : vector<128xf32>
    %391 = vector.multi_reduction <add>, %390, %cst_122 [1] : vector<128x64xf32> to vector<128xf32>
    %392 = vector.shape_cast %391 : vector<128xf32> to vector<128x1xf32>
    %cst_123 = arith.constant 6.400000e+01 : f32
    %393 = vector.broadcast %cst_123 : f32 to vector<128x1xf32>
    %394 = arith.divf %392, %393 : vector<128x1xf32>
    %395 = vector.broadcast %387 : vector<128x1xf32> to vector<128x64xf32>
    %396 = arith.subf %383, %395 : vector<128x64xf32>
    %cst_124 = arith.constant 9.99999974E-6 : f32
    %397 = vector.broadcast %cst_124 : f32 to vector<128x1xf32>
    %398 = arith.addf %394, %397 : vector<128x1xf32>
    %399 = math.rsqrt %398 : vector<128x1xf32>
    %400 = vector.broadcast %399 : vector<128x1xf32> to vector<128x64xf32>
    %401 = arith.mulf %396, %400 : vector<128x64xf32>
    %402 = arith.truncf %401 : vector<128x64xf32> to vector<128x64xbf16>
    %c0_125 = arith.constant 0 : index
    %c0_126 = arith.constant 0 : index
    %403 = vector.load %arg17[%c0_125, %c0_126] : memref<64x128xbf16, #tpu.memory_space<vmem>>, vector<64x128xbf16>
    %cst_127 = arith.constant dense<0.000000e+00> : vector<128x128xf32>
    %404 = tpu.matmul %402, %403, %cst_127 {dimension_numbers = #tpu.dot_dimension_numbers<[1], [0], [0], [1], [0, 0, 1, 1], [], []>} : vector<128x64xbf16>, vector<64x128xbf16>, vector<128x128xf32> -> vector<128x128xf32>
    %c0_128 = arith.constant 0 : index
    %c0_129 = arith.constant 0 : index
    %405 = vector.load %arg18[%c0_128, %c0_129] : memref<1x128xf32, #tpu.memory_space<vmem>>, vector<1x128xf32>
    %406 = vector.broadcast %405 : vector<1x128xf32> to vector<128x128xf32>
    %407 = arith.addf %404, %406 : vector<128x128xf32>
    %408 = arith.mulf %407, %407 : vector<128x128xf32>
    %409 = arith.mulf %407, %408 : vector<128x128xf32>
    %cst_130 = arith.constant 4.471500e-02 : f32
    %410 = vector.broadcast %cst_130 : f32 to vector<128x128xf32>
    %411 = arith.mulf %410, %409 : vector<128x128xf32>
    %412 = arith.addf %407, %411 : vector<128x128xf32>
    %cst_131 = arith.constant 0.797884583 : f32
    %413 = vector.broadcast %cst_131 : f32 to vector<128x128xf32>
    %414 = arith.mulf %413, %412 : vector<128x128xf32>
    %415 = math.tanh %414 : vector<128x128xf32>
    %cst_132 = arith.constant 1.000000e+00 : f32
    %416 = vector.broadcast %cst_132 : f32 to vector<128x128xf32>
    %417 = arith.addf %416, %415 : vector<128x128xf32>
    %cst_133 = arith.constant 5.000000e-01 : f32
    %418 = vector.broadcast %cst_133 : f32 to vector<128x128xf32>
    %419 = arith.mulf %418, %417 : vector<128x128xf32>
    %420 = arith.mulf %407, %419 : vector<128x128xf32>
    %421 = arith.truncf %420 : vector<128x128xf32> to vector<128x128xbf16>
    %c0_134 = arith.constant 0 : index
    %c0_135 = arith.constant 0 : index
    %422 = vector.load %arg19[%c0_134, %c0_135] : memref<128x64xbf16, #tpu.memory_space<vmem>>, vector<128x64xbf16>
    %cst_136 = arith.constant dense<0.000000e+00> : vector<128x64xf32>
    %423 = tpu.matmul %421, %422, %cst_136 {dimension_numbers = #tpu.dot_dimension_numbers<[1], [0], [0], [1], [0, 0, 1, 1], [], []>} : vector<128x128xbf16>, vector<128x64xbf16>, vector<128x64xf32> -> vector<128x64xf32>
    %c0_137 = arith.constant 0 : index
    %c0_138 = arith.constant 0 : index
    %424 = vector.load %arg20[%c0_137, %c0_138] : memref<1x64xf32, #tpu.memory_space<vmem>>, vector<1x64xf32>
    %425 = vector.broadcast %424 : vector<1x64xf32> to vector<128x64xf32>
    %426 = arith.addf %423, %425 : vector<128x64xf32>
    %427 = arith.addf %383, %426 : vector<128x64xf32>
    %cst_139 = arith.constant dense<0.000000e+00> : vector<128xf32>
    %428 = vector.multi_reduction <add>, %427, %cst_139 [1] : vector<128x64xf32> to vector<128xf32>
    %429 = vector.shape_cast %428 : vector<128xf32> to vector<128x1xf32>
    %cst_140 = arith.constant 6.400000e+01 : f32
    %430 = vector.broadcast %cst_140 : f32 to vector<128x1xf32>
    %431 = arith.divf %429, %430 : vector<128x1xf32>
    %432 = vector.broadcast %431 : vector<128x1xf32> to vector<128x64xf32>
    %433 = arith.subf %427, %432 : vector<128x64xf32>
    %434 = arith.mulf %433, %433 : vector<128x64xf32>
    %cst_141 = arith.constant dense<0.000000e+00> : vector<128xf32>
    %435 = vector.multi_reduction <add>, %434, %cst_141 [1] : vector<128x64xf32> to vector<128xf32>
    %436 = vector.shape_cast %435 : vector<128xf32> to vector<128x1xf32>
    %cst_142 = arith.constant 6.400000e+01 : f32
    %437 = vector.broadcast %cst_142 : f32 to vector<128x1xf32>
    %438 = arith.divf %436, %437 : vector<128x1xf32>
    %439 = vector.broadcast %431 : vector<128x1xf32> to vector<128x64xf32>
    %440 = arith.subf %427, %439 : vector<128x64xf32>
    %cst_143 = arith.constant 9.99999974E-6 : f32
    %441 = vector.broadcast %cst_143 : f32 to vector<128x1xf32>
    %442 = arith.addf %438, %441 : vector<128x1xf32>
    %443 = math.rsqrt %442 : vector<128x1xf32>
    %444 = vector.broadcast %443 : vector<128x1xf32> to vector<128x64xf32>
    %445 = arith.mulf %440, %444 : vector<128x64xf32>
    %446 = arith.truncf %445 : vector<128x64xf32> to vector<128x64xbf16>
    %c0_144 = arith.constant 0 : index
    %c0_145 = arith.constant 0 : index
    %447 = vector.load %arg21[%c0_144, %c0_145] : memref<64x128xbf16, #tpu.memory_space<vmem>>, vector<64x128xbf16>
    %cst_146 = arith.constant dense<0.000000e+00> : vector<128x128xf32>
    %448 = tpu.matmul %446, %447, %cst_146 {dimension_numbers = #tpu.dot_dimension_numbers<[1], [0], [0], [1], [0, 0, 1, 1], [], []>} : vector<128x64xbf16>, vector<64x128xbf16>, vector<128x128xf32> -> vector<128x128xf32>
    %c0_147 = arith.constant 0 : index
    %c0_148 = arith.constant 0 : index
    %449 = vector.load %arg22[%c0_147, %c0_148] : memref<1x128xf32, #tpu.memory_space<vmem>>, vector<1x128xf32>
    %450 = vector.broadcast %449 : vector<1x128xf32> to vector<128x128xf32>
    %451 = arith.addf %448, %450 : vector<128x128xf32>
    %452 = tpu.iota {dimensions = array<i32: 1>} : vector<128x128xi32>
    %c32_i32 = arith.constant 32 : i32
    %453 = vector.broadcast %c32_i32 : i32 to vector<128x128xi32>
    %454 = arith.cmpi slt, %452, %453 : vector<128x128xi32>
    %455 = arith.negf %451 : vector<128x128xf32>
    %456 = math.exp %455 : vector<128x128xf32>
    %cst_149 = arith.constant 1.000000e+00 : f32
    %457 = vector.broadcast %cst_149 : f32 to vector<128x128xf32>
    %458 = arith.addf %457, %456 : vector<128x128xf32>
    %459 = arith.divf %457, %458 : vector<128x128xf32>
    %460 = arith.select %454, %459, %451 : vector<128x128xi1>, vector<128x128xf32>
    %c0_150 = arith.constant 0 : index
    %c0_151 = arith.constant 0 : index
    %461 = vector.load %arg23[%c0_150, %c0_151] : memref<128x128xf32, #tpu.memory_space<vmem>>, vector<128x128xf32>
    tpu.vector_store %arg23[%c0_150, %c0_151], %460 {strides = array<i32>} : memref<128x128xf32, #tpu.memory_space<vmem>>, vector<128x128xf32>,
    return
  }
  func.func @transform_0(%arg0: i32) -> (i32, i32) {
    %c0_i32 = arith.constant 0 : i32
    %c0_i32_0 = arith.constant 0 : i32
    return %arg0, %c0_i32 : i32, i32
  }
  func.func @transform_1(%arg0: i32) -> (i32, i32) {
    %c0_i32 = arith.constant 0 : i32
    %c0_i32_0 = arith.constant 0 : i32
    %c0_i32_1 = arith.constant 0 : i32
    return %c0_i32, %c0_i32_0 : i32, i32
  }
  func.func @transform_2(%arg0: i32) -> (i32, i32) {
    %c0_i32 = arith.constant 0 : i32
    %c0_i32_0 = arith.constant 0 : i32
    %c0_i32_1 = arith.constant 0 : i32
    return %c0_i32, %c0_i32_0 : i32, i32
  }
  func.func @transform_3(%arg0: i32) -> (i32, i32) {
    %c0_i32 = arith.constant 0 : i32
    %c0_i32_0 = arith.constant 0 : i32
    %c0_i32_1 = arith.constant 0 : i32
    return %c0_i32, %c0_i32_0 : i32, i32
  }
  func.func @transform_4(%arg0: i32) -> (i32, i32) {
    %c0_i32 = arith.constant 0 : i32
    %c0_i32_0 = arith.constant 0 : i32
    %c0_i32_1 = arith.constant 0 : i32
    return %c0_i32, %c0_i32_0 : i32, i32
  }
  func.func @transform_5(%arg0: i32) -> (i32, i32) {
    %c0_i32 = arith.constant 0 : i32
    %c0_i32_0 = arith.constant 0 : i32
    %c0_i32_1 = arith.constant 0 : i32
    return %c0_i32, %c0_i32_0 : i32, i32
  }
  func.func @transform_6(%arg0: i32) -> (i32, i32) {
    %c0_i32 = arith.constant 0 : i32
    %c0_i32_0 = arith.constant 0 : i32
    %c0_i32_1 = arith.constant 0 : i32
    return %c0_i32, %c0_i32_0 : i32, i32
  }
  func.func @transform_7(%arg0: i32) -> (i32, i32) {
    %c0_i32 = arith.constant 0 : i32
    %c0_i32_0 = arith.constant 0 : i32
    %c0_i32_1 = arith.constant 0 : i32
    return %c0_i32, %c0_i32_0 : i32, i32
  }
  func.func @transform_8(%arg0: i32) -> (i32, i32) {
    %c0_i32 = arith.constant 0 : i32
    %c0_i32_0 = arith.constant 0 : i32
    %c0_i32_1 = arith.constant 0 : i32
    return %c0_i32, %c0_i32_0 : i32, i32
  }
  func.func @transform_9(%arg0: i32) -> (i32, i32) {
    %c0_i32 = arith.constant 0 : i32
    %c0_i32_0 = arith.constant 0 : i32
    %c0_i32_1 = arith.constant 0 : i32
    return %c0_i32, %c0_i32_0 : i32, i32
  }
  func.func @transform_10(%arg0: i32) -> (i32, i32) {
    %c0_i32 = arith.constant 0 : i32
    %c0_i32_0 = arith.constant 0 : i32
    %c0_i32_1 = arith.constant 0 : i32
    return %c0_i32, %c0_i32_0 : i32, i32
  }
  func.func @transform_11(%arg0: i32) -> (i32, i32) {
    %c0_i32 = arith.constant 0 : i32
    %c0_i32_0 = arith.constant 0 : i32
    %c0_i32_1 = arith.constant 0 : i32
    return %c0_i32, %c0_i32_0 : i32, i32
  }
  func.func @transform_12(%arg0: i32) -> (i32, i32) {
    %c0_i32 = arith.constant 0 : i32
    %c0_i32_0 = arith.constant 0 : i32
    %c0_i32_1 = arith.constant 0 : i32
    return %c0_i32, %c0_i32_0 : i32, i32
  }
  func.func @transform_13(%arg0: i32) -> (i32, i32) {
    %c0_i32 = arith.constant 0 : i32
    %c0_i32_0 = arith.constant 0 : i32
    %c0_i32_1 = arith.constant 0 : i32
    return %c0_i32, %c0_i32_0 : i32, i32
  }
  func.func @transform_14(%arg0: i32) -> (i32, i32) {
    %c0_i32 = arith.constant 0 : i32
    %c0_i32_0 = arith.constant 0 : i32
    %c0_i32_1 = arith.constant 0 : i32
    return %c0_i32, %c0_i32_0 : i32, i32
  }
  func.func @transform_15(%arg0: i32) -> (i32, i32) {
    %c0_i32 = arith.constant 0 : i32
    %c0_i32_0 = arith.constant 0 : i32
    %c0_i32_1 = arith.constant 0 : i32
    return %c0_i32, %c0_i32_0 : i32, i32
  }
  func.func @transform_16(%arg0: i32) -> (i32, i32) {
    %c0_i32 = arith.constant 0 : i32
    %c0_i32_0 = arith.constant 0 : i32
    %c0_i32_1 = arith.constant 0 : i32
    return %c0_i32, %c0_i32_0 : i32, i32
  }
  func.func @transform_17(%arg0: i32) -> (i32, i32) {
    %c0_i32 = arith.constant 0 : i32
    %c0_i32_0 = arith.constant 0 : i32
    %c0_i32_1 = arith.constant 0 : i32
    return %c0_i32, %c0_i32_0 : i32, i32
  }
  func.func @transform_18(%arg0: i32) -> (i32, i32) {
    %c0_i32 = arith.constant 0 : i32
    %c0_i32_0 = arith.constant 0 : i32
    %c0_i32_1 = arith.constant 0 : i32
    return %c0_i32, %c0_i32_0 : i32, i32
  }
  func.func @transform_19(%arg0: i32) -> (i32, i32) {
    %c0_i32 = arith.constant 0 : i32
    %c0_i32_0 = arith.constant 0 : i32
    %c0_i32_1 = arith.constant 0 : i32
    return %c0_i32, %c0_i32_0 : i32, i32
  }
  func.func @transform_20(%arg0: i32) -> (i32, i32) {
    %c0_i32 = arith.constant 0 : i32
    %c0_i32_0 = arith.constant 0 : i32
    %c0_i32_1 = arith.constant 0 : i32
    return %c0_i32, %c0_i32_0 : i32, i32
  }
  func.func @transform_21(%arg0: i32) -> (i32, i32) {
    %c0_i32 = arith.constant 0 : i32
    %c0_i32_0 = arith.constant 0 : i32
    %c0_i32_1 = arith.constant 0 : i32
    return %c0_i32, %c0_i32_0 : i32, i32
  }
  func.func @transform_22(%arg0: i32) -> (i32, i32) {
    %c0_i32 = arith.constant 0 : i32
    %c0_i32_0 = arith.constant 0 : i32
    return %arg0, %c0_i32 : i32, i32
  }
}

</mosaic_0001>

<bundles_post_ra>
// kernel: _lambda_.1
= control target key start
LH: loop header
LB: loop body
LE: loop exit
PB: predicated region body
PF: predicated region fallthrough
CT: control target
= control target key end

     0   :  { %vm127_vm0 = vcmask 392192   ;;  %vm273_vm1 = vcmask 523264   ;;  %vm716_vm2 = vcmask 130048   ;;  %s10970_s23 = smov 64   ;;  %s10972_s24 = smov 112   ;;  %vm1941_vm3 = vcmask 261120   ;;  %s14792_s2 = inlined_call_operand.vmem [shape: bf16[48,64], index: 2, kind: input, shape index: {}]   ;;  %s14793_s0 = inlined_call_operand.vmem [shape: f32[128,48], index: 0, kind: input, shape index: {}]   ;;  %s14794_s3 = inlined_call_operand.vmem [shape: f32[1,64], index: 3, kind: input, shape index: {}, may-alias: {3,7,11,15,19}]   ;;  %s14795_s1 = inlined_call_operand.vmem [shape: f32[64,64], index: 1, kind: input, shape index: {}]   ;;  %s14796_s4 = inlined_call_operand.vmem [shape: bf16[64,192], index: 4, kind: input, shape index: {}]   ;;  %s14797_s5 = inlined_call_operand.vmem [shape: f32[1,192], index: 5, kind: input, shape index: {}, may-alias: {5,13}]   ;;  %s14798_s6 = inlined_call_operand.vmem [shape: bf16[64,64], index: 6, kind: input, shape index: {}]   ;;  %s14799_s7 = inlined_call_operand.vmem [shape: f32[1,64], index: 7, kind: input, shape index: {}, may-alias: {3,7,11,15,19}]   ;;  %s14800_s8 = inlined_call_operand.vmem [shape: bf16[64,128], index: 8, kind: input, shape index: {}]   ;;  %s14801_s10 = inlined_call_operand.vmem [shape: bf16[128,64], index: 10, kind: input, shape index: {}]   ;;  %s14802_s9 = inlined_call_operand.vmem [shape: f32[1,128], index: 9, kind: input, shape index: {}, may-alias: {9,17,21}]   ;;  %s14803_s11 = inlined_call_operand.vmem [shape: f32[1,64], index: 11, kind: input, shape index: {}, may-alias: {3,7,11,15,19}]   ;;  %s14804_s12 = inlined_call_operand.vmem [shape: bf16[64,192], index: 12, kind: input, shape index: {}]   ;;  %s14805_s13 = inlined_call_operand.vmem [shape: f32[1,192], index: 13, kind: input, shape index: {}, may-alias: {5,13}]   ;;  %s14806_s14 = inlined_call_operand.vmem [shape: bf16[64,64], index: 14, kind: input, shape index: {}]   ;;  %s14807_s15 = inlined_call_operand.vmem [shape: f32[1,64], index: 15, kind: input, shape index: {}, may-alias: {3,7,11,15,19}]   ;;  %s14808_s16 = inlined_call_operand.vmem [shape: bf16[64,128], index: 16, kind: input, shape index: {}]   ;;  %s14809_s18 = inlined_call_operand.vmem [shape: bf16[128,64], index: 18, kind: input, shape index: {}]   ;;  %s14810_s17 = inlined_call_operand.vmem [shape: f32[1,128], index: 17, kind: input, shape index: {}, may-alias: {9,17,21}]   ;;  %s14811_s19 = inlined_call_operand.vmem [shape: f32[1,64], index: 19, kind: input, shape index: {}, may-alias: {3,7,11,15,19}]   ;;  %s14812_s20 = inlined_call_operand.vmem [shape: bf16[64,128], index: 20, kind: input, shape index: {}]   ;;  %s14813_s21 = inlined_call_operand.vmem [shape: f32[1,128], index: 21, kind: input, shape index: {}, may-alias: {9,17,21}]   ;;  %s14814_s22 = inlined_call_operand.vmem [shape: f32[128,128], index: 22, kind: output, shape index: {}]  }
   0x1   :  { %14866 = sst [smem:[#allocation39_spill]] %s14792_s2  ;;  %s10974_s25 = smov 96  }
   0x2   :  { %14867 = sst [smem:[#allocation40_spill]] %s14793_s0  ;;  %s10975_s26 = smov 16  }
   0x3   :  { %14868 = sst [smem:[#allocation41_spill]] %s14794_s3  ;;  %s10976_s3 = smov 80  }
   0x4   :  { %14869 = sst [smem:[#allocation42_spill]] %s14795_s1 }
   0x5   :  { %14870 = sst [smem:[#allocation43_spill]] %s14796_s4 }
   0x6   :  { %14871 = sst [smem:[#allocation44_spill]] %s14797_s5  ;;  %s10971_s5 = smov 48  }
   0x7   :  { %14872 = sst [smem:[#allocation45_spill]] %s14798_s6  ;;  %s10973_s6 = smov 32  }
   0x8   :  { %s14873_s29 = sld [smem:[#allocation39_spill]] }
   0x9   :  { %s14874_s0 = sld [smem:[#allocation40_spill]] }
   0xa   :  { %s14875_s27 = sld [smem:[#allocation41_spill]] }
   0xb   :  { %s14876_s30 = sld [smem:[#allocation42_spill]] }
   0xc   :  { %s14893_s2 = sld [smem:[#allocation43_spill]] }
   0xd   :  { %s14917_s28 = sld [smem:[#allocation45_spill]] }
   0xe   :  { %v10106_v0 = vld [vmem:[%s14873_s29 + $0x10] sm:$0xff]   ;;  %v10107_v1 = vld [vmem:[%s14873_s29 + $0x8] sm:$0xff]   ;;  %v10108_v4 = vld [vmem:[%s14873_s29] sm:$0xff]   ;;  %s14895_s29 = sld [smem:[#allocation44_spill]] }
   0xf   :  { %9076 = vmatprep.subr.bf16.mxu0 %v10106_v0  ;;  %v72_v2 = vld [vmem:[%s14874_s0] sm:$0xff]  ;;  %v73_v3 = vld [vmem:[%s14874_s0 + $0x8] sm:$0xff]  ;;  %v74_v6 = vld [vmem:[%s14874_s0 + $0x10] sm:$0xff] }
  0x10   :  { %9077 = vmatpush3.bf16.msra.mxu0 %v10106_v0  ;;  %v88_v5 = vpack.c.bf16 %v73_v3, %v72_v2  ;;  %v75_v7 = vld [vmem:[%s14874_s0 + $0x18] sm:$0xff]  ;;  %v76_v8 = vld [vmem:[%s14874_s0 + $0x20] sm:$0xff]  ;;  %v77_v9 = vld [vmem:[%s14874_s0 + $0x28] sm:$0xff] }
  0x11   :  { %9078 = vmatprep.subr.bf16.mxu0 %v10107_v1  ;;  %v89_v10 = vpack.c.bf16 %v75_v7, %v74_v6  ;;  %v90_v11 = vpack.c.bf16 %v77_v9, %v76_v8  ;;  %v78_v12 = vld [vmem:[%s14874_s0 + $0x30] sm:$0xff]  ;;  %v79_v13 = vld [vmem:[%s14874_s0 + $0x38] sm:$0xff]  ;;  %v80_v14 = vld [vmem:[%s14874_s0 + $0x40] sm:$0xff] }
  0x12   :  { %9082 = vmatprep.mubr.msk.bf16.mxu0 %vm127_vm0, %v88_v5  ;;  %v81_v15 = vld [vmem:[%s14874_s0 + $0x48] sm:$0xff]  ;;  %v91_v16 = vpack.c.bf16 %v79_v13, %v78_v12  ;;  %v82_v18 = vld [vmem:[%s14874_s0 + $0x50] sm:$0xff]  ;;  %v83_v19 = vld [vmem:[%s14874_s0 + $0x58] sm:$0xff] }
  0x13   :  { %v92_v17 = vpack.c.bf16 %v81_v15, %v80_v14  ;;  %v84_v20 = vld [vmem:[%s14874_s0 + $0x60] sm:$0xff]  ;;  %v85_v21 = vld [vmem:[%s14874_s0 + $0x68] sm:$0xff]  ;;  %v93_v22 = vpack.c.bf16 %v83_v19, %v82_v18  ;;  %v86_v24 = vld [vmem:[%s14874_s0 + $0x70] sm:$0xff] }
  0x14   :  { %9079 = vmatpush3.bf16.msra.mxu0 %v10107_v1  ;;  %v94_v23 = vpack.c.bf16 %v85_v21, %v84_v20  ;;  %v87_v25 = vld [vmem:[%s14874_s0 + $0x78] sm:$0xff]  ;;  %v11160_v27 = vld [vmem:[%s14875_s27] ss:$0 sm:$0xff]  ;;  %v251_v29 = vld [vmem:[%s14876_s30 + $0x10] sm:$0xff] }
  0x15   :  { %9080 = vmatprep.subr.bf16.mxu0 %v10108_v4  ;;  %v95_v26 = vpack.c.bf16 %v87_v25, %v86_v24  ;;  %v249_v32 = vld [vmem:[%s14876_s30] sm:$0xff]  ;;  %v252_v36 = vld [vmem:[%s14876_s30 + $0x18] sm:$0xff]  ;;  %v250_v41 = vld [vmem:[%s14876_s30 + $0x8] sm:$0xff] }
  0x16   :  { %v255_v49 = vld [vmem:[%s14876_s30 + $0x30] sm:$0xff]  ;;  %v253_v51 = vld [vmem:[%s14876_s30 + $0x20] sm:$0xff]  ;;  %v254_v58 = vld [vmem:[%s14876_s30 + $0x28] sm:$0xff] }
  0x17   :  { %v256_v62 = vld [vmem:[%s14876_s30 + $0x38] sm:$0xff] }
  0x18   :  { %9081 = vmatpush3.bf16.msra.mxu0 %v10108_v4 }
  0x1b   :  { %9083 = vmatmul.mubr.msk.bf16.vlgmr.msra.gmra.mxu0 %vm127_vm0, %v89_v10 }
  0x1c   :  { %9086 = vmatprep.mubr.msk.bf16.mxu0 %vm127_vm0, %v90_v11 }
  0x23   :  { %9087 = vmatmul.mubr.msk.bf16.gmra.mxu0 %vm127_vm0, %v91_v16 }
  0x24   :  { %9090 = vmatprep.mubr.msk.bf16.mxu0 %vm127_vm0, %v92_v17 }
  0x2b   :  { %9091 = vmatmul.mubr.msk.bf16.gmra.mxu0 %vm127_vm0, %v93_v22 }
  0x2c   :  { %9094 = vmatprep.mubr.msk.bf16.mxu0 %vm127_vm0, %v94_v23 }
  0x33   :  { %9095 = vmatmul.mubr.msk.bf16.gmra.mxu0 %vm127_vm0, %v95_v26 }
  0xdb   :  { %v9084_v28 = vpop.f32.mrf.mxu0 }
  0xdc   :  { %v195_v30 = vadd.f32 %v9084_v28, %v11160_v27 }
  0xdd   :  { %v186_v31 = vpop.f32.mrf.mxu0 }
  0xde   :  { %v11169_v33 = vadd.f32 %v251_v29, %v195_v30  ;;  %v187_v34 = vadd.f32 %v11160_v27, %v186_v31 }
  0xdf   :  { %v9085_v35 = vpop.f32.mrf.mxu0 }
  0xe0   :  { %14877 = vst [vmem:[#allocation2_spill] sm:$0xff] %v11169_v33  ;;  %v11175_v37 = vadd.f32 %v249_v32, %v187_v34  ;;  %v198_v38 = vadd.f32 %v9085_v35, %v11160_v27  ;;  %v280_v39 = vsel %vm273_vm1, %v11169_v33, 0.0 }
  0xe1   :  { %281 = vadd.xlane.f32.xlu1 %v280_v39  ;;  %v189_v40 = vpop.f32.mrf.mxu0 }
  0xe2   :  { %14878 = vst [vmem:[#allocation3_spill] sm:$0xff] %v11175_v37  ;;  %v11183_v42 = vadd.f32 %v252_v36, %v198_v38  ;;  %v190_v43 = vadd.f32 %v11160_v27, %v189_v40  ;;  %v274_v44 = vsel %vm273_vm1, %v11175_v37, 0.0 }
  0xe3   :  { %v9088_v45 = vpop.f32.mrf.mxu0  ;;  %275 = vadd.xlane.f32.xlu0 %v274_v44 }
  0xe4   :  { %14879 = vst [vmem:[#allocation4_spill] sm:$0xff] %v11183_v42  ;;  %v11188_v46 = vadd.f32 %v250_v41, %v190_v43  ;;  %v211_v47 = vadd.f32 %v9088_v45, %v11160_v27  ;;  %v283_v48 = vsel %vm273_vm1, %v11183_v42, 0.0 }
  0xe5   :  { %284 = vadd.xlane.f32.xlu1 %v283_v48  ;;  %v202_v50 = vpop.f32.mrf.mxu0 }
  0xe6   :  { %14880 = vst [vmem:[#allocation5_spill] sm:$0xff] %v11188_v46  ;;  %v203_v52 = vadd.f32 %v11160_v27, %v202_v50  ;;  %v277_v53 = vsel %vm273_vm1, %v11188_v46, 0.0  ;;  %v11202_v55 = vadd.f32 %v255_v49, %v211_v47 }
  0xe7   :  { %v9089_v54 = vpop.f32.mrf.mxu0  ;;  %278 = vadd.xlane.f32.xlu0 %v277_v53 }
  0xe8   :  { %14881 = vst [vmem:[#allocation6_spill] sm:$0xff] %v11202_v55  ;;  %v11204_v56 = vadd.f32 %v253_v51, %v203_v52  ;;  %v214_v59 = vadd.f32 %v9089_v54, %v11160_v27  ;;  %v292_v0 = vsel %vm273_vm1, %v11202_v55, 0.0 }
  0xe9   :  { %v205_v57 = vpop.f32.mrf.mxu0 }
  0xea   :  { %14882 = vst [vmem:[#allocation7_spill] sm:$0xff] %v11204_v56  ;;  %v206_v60 = vadd.f32 %v11160_v27, %v205_v57  ;;  %v286_v61 = vsel %vm273_vm1, %v11204_v56, 0.0  ;;  %v11220_v1 = vadd.f32 %v256_v62, %v214_v59 }
  0xeb   :  { %287 = vadd.xlane.f32.xlu0 %v286_v61  ;;  %v9092_v4 = vpop.f32.mrf.mxu0 }
  0xec   :  { %v11216_v63 = vadd.f32 %v254_v58, %v206_v60  ;;  %14884 = vst [vmem:[#allocation9_spill] sm:$0xff] %v11220_v1  ;;  %v295_v3 = vsel %vm273_vm1, %v11220_v1, 0.0  ;;  %v227_v5 = vadd.f32 %v9092_v4, %v11160_v27 }
  0xed   :  { %v218_v7 = vpop.f32.mrf.mxu0 }
  0xee   :  { %14883 = vst [vmem:[#allocation8_spill] sm:$0xff] %v11216_v63  ;;  %v289_v2 = vsel %vm273_vm1, %v11216_v63, 0.0  ;;  %v11227_v6 = vadd.f32 %v251_v29, %v227_v5  ;;  %v219_v8 = vadd.f32 %v11160_v27, %v218_v7 }
  0xef   :  { %290 = vadd.xlane.f32.xlu1 %v289_v2  ;;  %293 = vadd.xlane.f32.xlu0 %v292_v0  ;;  %v9093_v9 = vpop.f32.mrf.mxu0 }
  0xf0   :  { %14885 = vst [vmem:[#allocation10_spill] sm:$0xff] %v11227_v6  ;;  %v11230_v10 = vadd.f32 %v249_v32, %v219_v8  ;;  %v230_v11 = vadd.f32 %v9093_v9, %v11160_v27 }
  0xf1   :  { %v221_v12 = vpop.f32.mrf.mxu0 }
  0xf2   :  { %14886 = vst [vmem:[#allocation11_spill] sm:$0xff] %v11230_v10  ;;  %v11233_v13 = vadd.f32 %v252_v36, %v230_v11  ;;  %v222_v14 = vadd.f32 %v11160_v27, %v221_v12 }
  0xf3   :  { %296 = vadd.xlane.f32.xlu1 %v295_v3  ;;  %v9096_v15 = vpop.f32.mrf.mxu0 }
  0xf4   :  { %14887 = vst [vmem:[#allocation12_spill] sm:$0xff] %v11233_v13  ;;  %v11236_v16 = vadd.f32 %v250_v41, %v222_v14  ;;  %v243_v17 = vadd.f32 %v9096_v15, %v11160_v27  ;;  %v298_v14 = vsel %vm273_vm1, %v11230_v10, 0.0 }
  0xf5   :  { %v234_v19 = vpop.f32.mrf.mxu0 }
  0xf6   :  { %14888 = vst [vmem:[#allocation13_spill] sm:$0xff] %v11236_v16  ;;  %v11239_v18 = vadd.f32 %v255_v49, %v243_v17  ;;  %v235_v20 = vadd.f32 %v11160_v27, %v234_v19  ;;  %v301_v17 = vsel %vm273_vm1, %v11236_v16, 0.0  ;;  %v304_v19 = vsel %vm273_vm1, %v11227_v6, 0.0 }
  0xf7   :  { %v9097_v21 = vpop.f32.mrf.mxu0 }
  0xf8   :  { %14889 = vst [vmem:[#allocation14_spill] sm:$0xff] %v11239_v18  ;;  %v11242_v22 = vadd.f32 %v253_v51, %v235_v20  ;;  %v246_v23 = vadd.f32 %v9097_v21, %v11160_v27  ;;  %v10109_v20 = vld [vmem:[%s14893_s2 + $0x34] ss:$8 sps:$4 sm:$0xff]   ;;  %v10111_v21 = vld [vmem:[%s14893_s2 + $0x30] ss:$8 sps:$4 sm:$0xff]  }
  0xf9   :  { %v237_v24 = vpop.f32.mrf.mxu0  ;;  %583 = vmatprep.subr.bf16.mxu1 %v10109_v20 }
  0xfa   :  { %14890 = vst [vmem:[#allocation15_spill] sm:$0xff] %v11242_v22  ;;  %v11245_v25 = vadd.f32 %v256_v62, %v246_v23  ;;  %v238_v26 = vadd.f32 %v11160_v27, %v237_v24  ;;  %v307_v23 = vsel %vm273_vm1, %v11233_v13, 0.0  ;;  %v310_v24 = vsel %vm273_vm1, %v11242_v22, 0.0  ;;  %584 = vmatpush1.bf16.msra.mxu1 %v10111_v21 }
  0xfc   :  { %14891 = vst [vmem:[#allocation16_spill] sm:$0xff] %v11245_v25  ;;  %v11248_v28 = vadd.f32 %v254_v58, %v238_v26  ;;  %v10112_v26 = vld [vmem:[%s14893_s2 + $0x24] ss:$8 sps:$4 sm:$0xff]  }
  0xfd   :  { %585 = vmatprep.subr.bf16.mxu1 %v10112_v26 }
  0xfe   :  { %14892 = vst [vmem:[#allocation17_spill] sm:$0xff] %v11248_v28 }
 0x16a   :  { %v282_v29 = vpop.xlane.xlu1 %281 }
 0x16b   :  { %v325_v30 = vmul.f32 0.015625, %v282_v29  ;;  %v10114_v29 = vld [vmem:[%s14893_s2 + $0x20] ss:$8 sps:$4 sm:$0xff]  }
 0x16c   :  { %v276_v31 = vpop.xlane.xlu0 %275  ;;  %586 = vmatpush1.bf16.msra.mxu1 %v10114_v29 }
 0x16d   :  { %v323_v32 = vmul.f32 0.015625, %v276_v31  ;;  %v11251_v35 = vsub.f32 %v11169_v33, %v325_v30  ;;  %v313_v30 = vsel %vm273_vm1, %v11248_v28, 0.0  ;;  %v316_v31 = vsel %vm273_vm1, %v11239_v18, 0.0 }
 0x16e   :  { %v285_v34 = vpop.xlane.xlu1 %284 }
 0x16f   :  { %v11254_v36 = vsub.f32 %v11175_v37, %v323_v32  ;;  %v326_v38 = vmul.f32 0.015625, %v285_v34  ;;  %v357_v45 = vmul.f32 %v11251_v35, %v11251_v35  ;;  %v10115_v32 = vld [vmem:[%s14893_s2 + $0x14] ss:$8 sps:$4 sm:$0xff]   ;;  %v10117_v34 = vld [vmem:[%s14893_s2 + $0x10] ss:$8 sps:$4 sm:$0xff]  }
 0x170   :  { %v279_v39 = vpop.xlane.xlu0 %278  ;;  %587 = vmatprep.subr.bf16.mxu1 %v10115_v32 }
 0x171   :  { %v324_v40 = vmul.f32 0.015625, %v279_v39  ;;  %v355_v41 = vmul.f32 %v11254_v36, %v11254_v36  ;;  %v11259_v27 = vsub.f32 %v11183_v42, %v326_v38  ;;  %v377_v51 = vsel %vm273_vm1, %v357_v45, 0.0  ;;  %588 = vmatpush1.bf16.msra.mxu1 %v10117_v34  ;;  %v10118_v39 = vld [vmem:[%s14893_s2 + $0x4] ss:$8 sps:$4 sm:$0xff]  }
 0x172   :  { %v319_v38 = vsel %vm273_vm1, %v11245_v25, 0.0  ;;  %589 = vmatprep.subr.bf16.mxu1 %v10118_v39 }
 0x173   :  { %v11262_v43 = vsub.f32 %v11188_v46, %v324_v40  ;;  %v371_v44 = vsel %vm273_vm1, %v355_v41, 0.0  ;;  %v358_v53 = vmul.f32 %v11259_v27, %v11259_v27  ;;  %v10120_v40 = vld [vmem:[%s14893_s2] ss:$8 sps:$4 sm:$0xff]   ;;  %v14823_v41 = vmov 0  }
 0x174   :  { %372 = vadd.xlane.f32.xlu0 %v371_v44  ;;  %v288_v47 = vpop.xlane.xlu0 %287  ;;  %607 = vmatprep.mubr.bf16.mxu1 %v14823_v41 }
 0x175   :  { %v327_v48 = vmul.f32 0.015625, %v288_v47  ;;  %v356_v49 = vmul.f32 %v11262_v43, %v11262_v43  ;;  %v380_v0 = vsel %vm273_vm1, %v358_v53, 0.0  ;;  %590 = vmatpush1.bf16.msra.mxu1 %v10120_v40 }
 0x177   :  { %v11270_v50 = vsub.f32 %v11204_v56, %v327_v48  ;;  %v374_v52 = vsel %vm273_vm1, %v356_v49, 0.0 }
 0x178   :  { %v291_v54 = vpop.xlane.xlu1 %290  ;;  %378 = vadd.xlane.f32.xlu0 %v377_v51  ;;  %375 = vadd.xlane.f32.xlu1 %v374_v52  ;;  %v294_v57 = vpop.xlane.xlu0 %293 }
 0x179   :  { %v328_v58 = vmul.f32 0.015625, %v291_v54  ;;  %v329_v59 = vmul.f32 0.015625, %v294_v57  ;;  %v359_v60 = vmul.f32 %v11270_v50, %v11270_v50 }
 0x17b   :  { %v11279_v61 = vsub.f32 %v11216_v63, %v328_v58  ;;  %v11282_v62 = vsub.f32 %v11202_v55, %v329_v59  ;;  %v383_v2 = vsel %vm273_vm1, %v359_v60, 0.0 }
 0x17c   :  { %v297_v3 = vpop.xlane.xlu1 %296  ;;  %381 = vadd.xlane.f32.xlu1 %v380_v0  ;;  %384 = vadd.xlane.f32.xlu0 %v383_v2 }
 0x17d   :  { %v330_v4 = vmul.f32 0.015625, %v297_v3  ;;  %v360_v5 = vmul.f32 %v11279_v61, %v11279_v61  ;;  %v361_v7 = vmul.f32 %v11282_v62, %v11282_v62 }
 0x17f   :  { %v11291_v8 = vsub.f32 %v11220_v1, %v330_v4  ;;  %v386_v9 = vsel %vm273_vm1, %v360_v5, 0.0  ;;  %v389_v11 = vsel %vm273_vm1, %v361_v7, 0.0 }
 0x180   :  { %387 = vadd.xlane.f32.xlu1 %v386_v9  ;;  %390 = vadd.xlane.f32.xlu0 %v389_v11 }
 0x181   :  { %v362_v12 = vmul.f32 %v11291_v8, %v11291_v8 }
 0x183   :  { %v392_v15 = vsel %vm273_vm1, %v362_v12, 0.0 }
 0x184   :  { %393 = vadd.xlane.f32.xlu1 %v392_v15  ;;  %299 = vadd.xlane.f32.xlu0 %v298_v14 }
 0x188   :  { %302 = vadd.xlane.f32.xlu1 %v301_v17  ;;  %305 = vadd.xlane.f32.xlu0 %v304_v19 }
 0x18c   :  { %308 = vadd.xlane.f32.xlu1 %v307_v23  ;;  %311 = vadd.xlane.f32.xlu0 %v310_v24 }
 0x190   :  { %314 = vadd.xlane.f32.xlu1 %v313_v30  ;;  %317 = vadd.xlane.f32.xlu0 %v316_v31 }
 0x194   :  { %320 = vadd.xlane.f32.xlu1 %v319_v38 }
 0x1fd   :  { %v373_v44 = vpop.xlane.xlu0 %372 }
 0x1fe   :  { %v419_v45 = vmul.f32 0.015625, %v373_v44 }
 0x200   :  { %v435_v47 = vadd.f32 1e-05, %v419_v45 }
 0x201   :  { %v376_v48 = vpop.xlane.xlu1 %375  ;;  %v379_v49 = vpop.xlane.xlu0 %378 }
 0x202   :  { %v420_v51 = vmul.f32 0.015625, %v376_v48  ;;  %v421_v52 = vmul.f32 0.015625, %v379_v49  ;;  %10169 = vrsqrt.f32 %v435_v47 }
 0x204   :  { %v436_v53 = vadd.f32 1e-05, %v420_v51  ;;  %v437_v59 = vadd.f32 1e-05, %v421_v52 }
 0x205   :  { %v382_v54 = vpop.xlane.xlu1 %381  ;;  %v385_v57 = vpop.xlane.xlu0 %384 }
 0x206   :  { %10171 = vrsqrt.f32 %v436_v53  ;;  %v422_v58 = vmul.f32 0.015625, %v382_v54  ;;  %v423_v4 = vmul.f32 0.015625, %v385_v57 }
 0x208   :  { %v438_v60 = vadd.f32 1e-05, %v422_v58  ;;  %v439_v12 = vadd.f32 1e-05, %v423_v4 }
 0x209   :  { %v388_v0 = vpop.xlane.xlu1 %387  ;;  %v391_v2 = vpop.xlane.xlu0 %390 }
 0x20a   :  { %10173 = vrsqrt.f32 %v438_v60  ;;  %v424_v3 = vmul.f32 0.015625, %v388_v0  ;;  %v425_v26 = vmul.f32 0.015625, %v391_v2 }
 0x20b   :  { %10175 = vrsqrt.f32 %v437_v59 }
 0x20c   :  { %v440_v9 = vadd.f32 1e-05, %v424_v3 }
 0x20d   :  { %v394_v5 = vpop.xlane.xlu1 %393  ;;  %v300_v7 = vpop.xlane.xlu0 %299 }
 0x20e   :  { %v331_v11 = vmul.f32 0.015625, %v300_v7  ;;  %v426_v15 = vmul.f32 0.015625, %v394_v5  ;;  %10177 = vrsqrt.f32 %v440_v9 }
 0x20f   :  { %v10170_v14 = vpop.eup %10169  ;;  %10179 = vrsqrt.f32 %v439_v12 }
 0x210   :  { %v11340_v17 = vsub.f32 %v11230_v10, %v331_v11  ;;  %v467_v30 = vmul.f32 %v10170_v14, %v11254_v36  ;;  %v442_v32 = vadd.f32 1e-05, %v426_v15  ;;  %v441_v36 = vadd.f32 1e-05, %v425_v26 }
 0x211   :  { %v303_v19 = vpop.xlane.xlu1 %302  ;;  %v306_v20 = vpop.xlane.xlu0 %305 }
 0x212   :  { %v332_v21 = vmul.f32 0.015625, %v303_v19  ;;  %v333_v23 = vmul.f32 0.015625, %v306_v20  ;;  %v363_v40 = vmul.f32 %v11340_v17, %v11340_v17  ;;  %10181 = vrsqrt.f32 %v442_v32 }
 0x213   :  { %v10172_v24 = vpop.eup %10171  ;;  %10183 = vrsqrt.f32 %v441_v36 }
 0x214   :  { %v11343_v29 = vsub.f32 %v11227_v6, %v333_v23  ;;  %v468_v31 = vmul.f32 %v10172_v24, %v11262_v43  ;;  %v11348_v34 = vsub.f32 %v11236_v16, %v332_v21  ;;  %v395_v2 = vsel %vm273_vm1, %v363_v40, 0.0 }
 0x215   :  { %v309_v38 = vpop.xlane.xlu1 %308  ;;  %v312_v39 = vpop.xlane.xlu0 %311 }
 0x216   :  { %v334_v44 = vmul.f32 0.015625, %v309_v38  ;;  %v483_v45 = vpack.c.bf16 %v468_v31, %v467_v30  ;;  %v365_v47 = vmul.f32 %v11343_v29, %v11343_v29  ;;  %v335_v48 = vmul.f32 0.015625, %v312_v39 }
 0x217   :  { %v10174_v49 = vpop.eup %10173  ;;  %v364_v58 = vmul.f32 %v11348_v34, %v11348_v34 }
 0x218   :  { %v10176_v51 = vpop.eup %10175  ;;  %v11355_v43 = vsub.f32 %v11233_v13, %v334_v44  ;;  %8466 = vmatmul.mubr.msk.bf16.vlgmr.msra.gmra.mxu1 %vm273_vm1, %v483_v45  ;;  %v401_v52 = vsel %vm273_vm1, %v365_v47, 0.0  ;;  %v11360_v53 = vsub.f32 %v11242_v22, %v335_v48  ;;  %v470_v57 = vmul.f32 %v10174_v49, %v11259_v27 }
 0x219   :  { %402 = vadd.xlane.f32.xlu0 %v401_v52  ;;  %v315_v54 = vpop.xlane.xlu1 %314  ;;  %617 = vmatprep.mubr.bf16.mxu1 %v14823_v41  ;;  %v318_v59 = vpop.xlane.xlu0 %317  ;;  %v469_v4 = vmul.f32 %v10176_v51, %v11251_v35  ;;  %v398_v11 = vsel %vm273_vm1, %v364_v58, 0.0 }
 0x21a   :  { %v366_v60 = vmul.f32 %v11355_v43, %v11355_v43  ;;  %v336_v0 = vmul.f32 0.015625, %v315_v54  ;;  %v367_v3 = vmul.f32 %v11360_v53, %v11360_v53  ;;  %v337_v5 = vmul.f32 0.015625, %v318_v59 }
 0x21b   :  { %v484_v9 = vpack.c.bf16 %v470_v57, %v469_v4  ;;  %v10178_v20 = vpop.eup %10177 }
 0x21c   :  { %v404_v7 = vsel %vm273_vm1, %v366_v60, 0.0  ;;  %v11374_v27 = vsub.f32 %v11248_v28, %v336_v0  ;;  %v407_v14 = vsel %vm273_vm1, %v367_v3, 0.0  ;;  %v11379_v15 = vsub.f32 %v11239_v18, %v337_v5  ;;  %v10180_v21 = vpop.eup %10179 }
 0x21d   :  { %405 = vadd.xlane.f32.xlu1 %v404_v7  ;;  %396 = vadd.xlane.f32.xlu0 %v395_v2  ;;  %v321_v12 = vpop.xlane.xlu1 %320  ;;  %v472_v26 = vmul.f32 %v10178_v20, %v11279_v61  ;;  %v471_v31 = vmul.f32 %v10180_v21, %v11270_v50 }
 0x21e   :  { %v368_v35 = vmul.f32 %v11374_v27, %v11374_v27  ;;  %v338_v19 = vmul.f32 0.015625, %v321_v12  ;;  %v369_v30 = vmul.f32 %v11379_v15, %v11379_v15 }
 0x21f   :  { %v10182_v32 = vpop.eup %10181  ;;  %v485_v38 = vpack.c.bf16 %v472_v26, %v471_v31 }
 0x220   :  { %8467 = vmatmul.mubr.msk.bf16.gmra.mxu1 %vm273_vm1, %v484_v9  ;;  %v410_v23 = vsel %vm273_vm1, %v368_v35, 0.0  ;;  %v11386_v24 = vsub.f32 %v11245_v25, %v338_v19  ;;  %v413_v39 = vsel %vm273_vm1, %v369_v30, 0.0  ;;  %v10184_v44 = vpop.eup %10183  ;;  %v474_v45 = vmul.f32 %v10182_v32, %v11291_v8 }
 0x221   :  { %399 = vadd.xlane.f32.xlu1 %v398_v11  ;;  %408 = vadd.xlane.f32.xlu0 %v407_v14  ;;  %v473_v50 = vmul.f32 %v10184_v44, %v11282_v62 }
 0x222   :  { %627 = vmatprep.mubr.bf16.mxu1 %v14823_v41  ;;  %v370_v40 = vmul.f32 %v11386_v24, %v11386_v24 }
 0x223   :  { %v486_v47 = vpack.c.bf16 %v474_v45, %v473_v50  ;;  %v14820_v45 = vlaneseq }
 0x224   :  { %v416_v61 = vsel %vm273_vm1, %v370_v40, 0.0 }
 0x225   :  { %411 = vadd.xlane.f32.xlu1 %v410_v23 }
 0x228   :  { %8468 = vmatmul.mubr.msk.bf16.gmra.mxu1 %vm273_vm1, %v485_v38 }
 0x229   :  { %414 = vadd.xlane.f32.xlu1 %v413_v39  ;;  %637 = vmatprep.mubr.bf16.mxu1 %v14823_v41 }
 0x22d   :  { %417 = vadd.xlane.f32.xlu1 %v416_v61 }
 0x230   :  { %8469 = vmatmul.mubr.msk.bf16.gmra.mxu1 %vm273_vm1, %v486_v47 }
 0x231   :  { %647 = vmatprep.mubr.bf16.mxu1 %v14823_v41 }
 0x2a2   :  { %v403_v48 = vpop.xlane.xlu0 %402 }
 0x2a3   :  { %v429_v59 = vmul.f32 0.015625, %v403_v48 }
 0x2a5   :  { %v445_v62 = vadd.f32 1e-05, %v429_v59 }
 0x2a6   :  { %v406_v49 = vpop.xlane.xlu1 %405  ;;  %v397_v51 = vpop.xlane.xlu0 %396 }
 0x2a7   :  { %v427_v36 = vmul.f32 0.015625, %v397_v51  ;;  %v430_v57 = vmul.f32 0.015625, %v406_v49 }
 0x2a9   :  { %v443_v52 = vadd.f32 1e-05, %v427_v36  ;;  %v446_v0 = vadd.f32 1e-05, %v430_v57 }
 0x2aa   :  { %v400_v54 = vpop.xlane.xlu1 %399  ;;  %v409_v2 = vpop.xlane.xlu0 %408 }
 0x2ab   :  { %v428_v58 = vmul.f32 0.015625, %v400_v54  ;;  %10185 = vrsqrt.f32 %v443_v52  ;;  %v431_v5 = vmul.f32 0.015625, %v409_v2 }
 0x2ad   :  { %v444_v60 = vadd.f32 1e-05, %v428_v58  ;;  %v447_v11 = vadd.f32 1e-05, %v431_v5 }
 0x2ae   :  { %v412_v8 = vpop.xlane.xlu1 %411 }
 0x2af   :  { %10187 = vrsqrt.f32 %v444_v60  ;;  %v432_v4 = vmul.f32 0.015625, %v412_v8 }
 0x2b0   :  { %10189 = vrsqrt.f32 %v446_v0 }
 0x2b1   :  { %10191 = vrsqrt.f32 %v445_v62  ;;  %v448_v7 = vadd.f32 1e-05, %v432_v4 }
 0x2b2   :  { %v415_v3 = vpop.xlane.xlu1 %414 }
 0x2b3   :  { %10193 = vrsqrt.f32 %v448_v7  ;;  %v433_v19 = vmul.f32 0.015625, %v415_v3 }
 0x2b4   :  { %10195 = vrsqrt.f32 %v447_v11 }
 0x2b5   :  { %v449_v31 = vadd.f32 1e-05, %v433_v19 }
 0x2b6   :  { %v418_v9 = vpop.xlane.xlu1 %417 }
 0x2b7   :  { %v434_v14 = vmul.f32 0.015625, %v418_v9 }
 0x2b8   :  { %v10186_v12 = vpop.eup %10185 }
 0x2b9   :  { %v475_v20 = vmul.f32 %v10186_v12, %v11340_v17  ;;  %v450_v23 = vadd.f32 1e-05, %v434_v14 }
 0x2bb   :  { %10197 = vrsqrt.f32 %v450_v23 }
 0x2bc   :  { %v10188_v35 = vpop.eup %10187  ;;  %10199 = vrsqrt.f32 %v449_v31 }
 0x2bd   :  { %v476_v21 = vmul.f32 %v10188_v35, %v11348_v34  ;;  %v10190_v30 = vpop.eup %10189 }
 0x2be   :  { %v10192_v32 = vpop.eup %10191  ;;  %v478_v38 = vmul.f32 %v10190_v30, %v11355_v43  ;;  %v11415_v43 = vshrl.u32 %v14820_v45, 7 }
 0x2bf   :  { %v487_v26 = vpack.c.bf16 %v476_v21, %v475_v20  ;;  %v477_v39 = vmul.f32 %v10192_v32, %v11343_v29 }
 0x2c0   :  { %v10194_v44 = vpop.eup %10193  ;;  %14894 = vst [vmem:[#allocation18_spill] sm:$0xff] %v11415_v43  ;;  %v14822_v49 = vsub.s32 0, %v11415_v43 }
 0x2c1   :  { %8470 = vmatmul.mubr.msk.bf16.gmra.mxu1 %vm273_vm1, %v487_v26  ;;  %v488_v40 = vpack.c.bf16 %v478_v38, %v477_v39  ;;  %v10196_v17 = vpop.eup %10195  ;;  %v480_v34 = vmul.f32 %v10194_v44, %v11374_v27 }
 0x2c2   :  { %657 = vmatprep.mubr.bf16.mxu1 %v14823_v41  ;;  %v479_v61 = vmul.f32 %v10196_v17, %v11360_v53  ;;  %v11424_v53 = vld [vmem:[%s14895_s29] sm:$0x3] }
 0x2c3   :  { %v11429_v52 = vrot.slane %v11424_v53, %v14822_v49 }
 0x2c4   :  { %v489_v50 = vpack.c.bf16 %v480_v34, %v479_v61 }
 0x2c8   :  { %v10198_v47 = vpop.eup %10197 }
 0x2c9   :  { %8471 = vmatmul.mubr.msk.bf16.gmra.mxu1 %vm273_vm1, %v488_v40  ;;  %v10200_v29 = vpop.eup %10199  ;;  %v482_v48 = vmul.f32 %v10198_v47, %v11386_v24 }
 0x2ca   :  { %667 = vmatprep.mubr.bf16.mxu1 %v14823_v41  ;;  %v481_v51 = vmul.f32 %v10200_v29, %v11379_v15  ;;  %v14821_v29 = vsub.s32 1, %v11415_v43 }
 0x2cc   :  { %v490_v27 = vpack.c.bf16 %v482_v48, %v481_v51 }
 0x2d1   :  { %8472 = vmatmul.mubr.msk.bf16.gmra.mxu1 %vm273_vm1, %v489_v50 }
 0x2d2   :  { %677 = vmatprep.mubr.bf16.mxu1 %v14823_v41 }
 0x2d8   :  { %v609_v36 = vpop.f32.mrf.mxu1 }
 0x2d9   :  { %8473 = vmatmul.mubr.msk.bf16.gmra.mxu1 %vm273_vm1, %v490_v27  ;;  %v610_v57 = vadd.f32 %v609_v36, %v11429_v52 }
 0x2da   :  { %v11432_v54 = vpop.f32.mrf.mxu1 }
 0x2dc   :  { %v613_v24 = vpop.f32.mrf.mxu1 }
 0x2dd   :  { %v614_v15 = vadd.f32 %v613_v24, %v11429_v52 }
 0x2de   :  { %v11436_v58 = vpop.f32.mrf.mxu1 }
 0x2df   :  { %v11438_v59 = vpack.c.bf16 %v614_v15, %v610_v57  ;;  %v11503_v57 = vrot.slane %v11424_v53, %v14821_v29 }
 0x2e0   :  { %v619_v60 = vpop.f32.mrf.mxu1 }
 0x2e1   :  { %9106 = vmatprep.mubr.msk.bf16.mxu0 %vm716_vm2, %v11438_v59  ;;  %v620_v26 = vadd.f32 %v619_v60, %v11429_v52 }
 0x2e2   :  { %v11442_v8 = vpop.f32.mrf.mxu1 }
 0x2e4   :  { %v623_v0 = vpop.f32.mrf.mxu1 }
 0x2e5   :  { %v624_v21 = vadd.f32 %v623_v0, %v11429_v52 }
 0x2e6   :  { %v11444_v62 = vpop.f32.mrf.mxu1 }
 0x2e7   :  { %v11466_v30 = vpack.c.bf16 %v624_v21, %v620_v26 }
 0x2e8   :  { %v629_v2 = vpop.f32.mrf.mxu1 }
 0x2e9   :  { %v630_v5 = vadd.f32 %v629_v2, %v11429_v52 }
 0x2ea   :  { %v11446_v3 = vpop.f32.mrf.mxu1 }
 0x2eb   :  { %v632_v26 = vadd.f32 %v11446_v3, %v11503_v57  ;;  %v622_v3 = vadd.f32 %v11442_v8, %v11503_v57  ;;  %v612_v8 = vadd.f32 %v11432_v54, %v11503_v57 }
 0x2ec   :  { %v633_v4 = vpop.f32.mrf.mxu1 }
 0x2ed   :  { %v634_v7 = vadd.f32 %v633_v4, %v11429_v52 }
 0x2ee   :  { %v11450_v9 = vpop.f32.mrf.mxu1 }
 0x2ef   :  { %v11452_v11 = vpack.c.bf16 %v634_v7, %v630_v5 }
 0x2f0   :  { %v639_v12 = vpop.f32.mrf.mxu1 }
 0x2f1   :  { %712 = vrot.lane.b32.xlu1 %v11452_v11, %s10970_s23  ;;  %v640_v19 = vadd.f32 %v639_v12, %v11429_v52 }
 0x2f2   :  { %v641_v14 = vpop.f32.mrf.mxu1 }
 0x2f3   :  { %v642_v0 = vadd.f32 %v641_v14, %v11503_v57  ;;  %v636_v14 = vadd.f32 %v11450_v9, %v11503_v57 }
 0x2f4   :  { %v643_v35 = vpop.f32.mrf.mxu1 }
 0x2f5   :  { %v644_v20 = vadd.f32 %v643_v35, %v11429_v52 }
 0x2f6   :  { %v645_v36 = vpop.f32.mrf.mxu1 }
 0x2f7   :  { %v11459_v23 = vpack.c.bf16 %v644_v20, %v640_v19  ;;  %v646_v15 = vadd.f32 %v645_v36, %v11503_v57 }
 0x2f9   :  { %714 = vrot.lane.b32.xlu0 %v11459_v23, %s10970_s23  ;;  %989 = vrot.lane.b32.xlu1 %v11459_v23, %s10971_s5  ;;  %v11511_v4 = vpack.c.bf16 %v646_v15, %v642_v0 }
 0x2fd   :  { %710 = vrot.lane.b32.xlu0 %v11466_v30, %s10970_s23  ;;  %987 = vrot.lane.b32.xlu1 %v11452_v11, %s10971_s5 }
 0x301   :  { %708 = vrot.lane.b32.xlu0 %v11438_v59, %s10970_s23  ;;  %983 = vrot.lane.b32.xlu1 %v11438_v59, %s10971_s5 }
 0x305   :  { %985 = vrot.lane.b32.xlu0 %v11466_v30, %s10971_s5  ;;  %977 = vrot.lane.b32.xlu1 %v11466_v30, %s10972_s24 }
 0x309   :  { %975 = vrot.lane.b32.xlu0 %v11438_v59, %s10972_s24  ;;  %981 = vrot.lane.b32.xlu1 %v11459_v23, %s10972_s24 }
 0x30d   :  { %979 = vrot.lane.b32.xlu0 %v11452_v11, %s10972_s24 }
 0x363   :  { %v713_v31 = vpop.permute.xlu1 %712 }
 0x364   :  { %v736_v61 = vsel %vm716_vm2, %v713_v31, 0 }
 0x36b   :  { %v990_v32 = vpop.permute.xlu1 %989  ;;  %v715_v38 = vpop.permute.xlu0 %714 }
 0x36c   :  { %9794 = vmatprep.subr.msk.bf16.mxu0 %vm716_vm2, %v715_v38  ;;  %9798 = vmatprep.subr.msk.bf16.mxu1 %vm716_vm2, %v990_v32  ;;  %v739_v39 = vsel %vm716_vm2, %v715_v38, 0  ;;  %v1013_v40 = vsel %vm716_vm2, %v990_v32, 0  ;;  %v626_v38 = vadd.f32 %v11444_v62, %v11503_v57 }
 0x36d   :  { %9099 = vmatpush3.bf16.xpose.msra.mxu0 %v739_v39  ;;  %9131 = vmatpush3.bf16.xpose.msra.mxu1 %v1013_v40  ;;  %v11530_v39 = vpack.c.bf16 %v636_v14, %v632_v26 }
 0x36e   :  { %9795 = vmatprep.subr.msk.bf16.mxu0 %vm716_vm2, %v713_v31 }
 0x36f   :  { %v988_v44 = vpop.permute.xlu1 %987  ;;  %v711_v17 = vpop.permute.xlu0 %710 }
 0x370   :  { %9799 = vmatprep.subr.msk.bf16.mxu1 %vm716_vm2, %v988_v44  ;;  %v1010_v50 = vsel %vm716_vm2, %v988_v44, 0  ;;  %v733_v51 = vsel %vm716_vm2, %v711_v17, 0 }
 0x373   :  { %v709_v34 = vpop.permute.xlu0 %708  ;;  %v984_v24 = vpop.permute.xlu1 %983 }
 0x374   :  { %v730_v5 = vsel %vm716_vm2, %v709_v34, 0  ;;  %v1004_v7 = vsel %vm716_vm2, %v984_v24, 0 }
 0x375   :  { %9101 = vmatpush3.bf16.xpose.msra.mxu0 %v736_v61  ;;  %9133 = vmatpush3.bf16.xpose.msra.mxu1 %v1010_v50  ;;  %v11548_v61 = vpack.c.bf16 %v626_v38, %v622_v3 }
 0x376   :  { %9796 = vmatprep.subr.msk.bf16.mxu0 %vm716_vm2, %v711_v17 }
 0x377   :  { %v986_v47 = vpop.permute.xlu0 %985  ;;  %v978_v31 = vpop.permute.xlu1 %977 }
 0x378   :  { %9800 = vmatprep.subr.msk.bf16.mxu1 %vm716_vm2, %v986_v47  ;;  %v1007_v27 = vsel %vm716_vm2, %v986_v47, 0 }
 0x37b   :  { %v976_v48 = vpop.permute.xlu0 %975 }
 0x37c   :  { %9138 = vmatprep.mubr.msk.bf16.mxu1 %vm716_vm2, %v976_v48  ;;  %v982_v48 = vpop.permute.xlu1 %981 }
 0x37d   :  { %9103 = vmatpush3.bf16.xpose.msra.mxu0 %v733_v51  ;;  %9135 = vmatpush3.bf16.xpose.msra.mxu1 %v1007_v27 }
 0x37e   :  { %9797 = vmatprep.subr.msk.bf16.mxu0 %vm716_vm2, %v709_v34  ;;  %9801 = vmatprep.subr.msk.bf16.mxu1 %vm716_vm2, %v984_v24  ;;  %v616_v34 = vadd.f32 %v11436_v58, %v11503_v57 }
 0x37f   :  { %v980_v9 = vpop.permute.xlu0 %979 }
 0x380   :  { %v11558_v27 = vpack.c.bf16 %v616_v34, %v612_v8 }
 0x381   :  { %v649_v60 = vpop.f32.mrf.mxu1 }
 0x382   :  { %v650_v53 = vadd.f32 %v649_v60, %v11429_v52 }
 0x383   :  { %v11509_v2 = vpop.f32.mrf.mxu1 }
 0x385   :  { %v653_v12 = vpop.f32.mrf.mxu1  ;;  %9105 = vmatpush3.bf16.xpose.msra.mxu0 %v730_v5  ;;  %9137 = vmatpush3.bf16.xpose.msra.mxu1 %v1004_v7 }
 0x386   :  { %v654_v35 = vadd.f32 %v653_v12, %v11429_v52  ;;  %9114 = vmatprep.subr.bf16.mxu0 %v11511_v4 }
 0x387   :  { %v11518_v19 = vpop.f32.mrf.mxu1 }
 0x388   :  { %v11522_v20 = vpack.c.bf16 %v654_v35, %v650_v53 }
 0x389   :  { %v659_v21 = vpop.f32.mrf.mxu1 }
 0x38a   :  { %v660_v44 = vadd.f32 %v659_v21, %v11429_v52 }
 0x38b   :  { %v11526_v32 = vpop.f32.mrf.mxu1 }
 0x38c   :  { %9107 = vmatmul.mubr.msk.bf16.vlgmr.msra.gmra.mxu0 %vm716_vm2, %v11466_v30  ;;  %9139 = vmatmul.mubr.msk.bf16.vlgmr.msra.gmra.mxu1 %vm716_vm2, %v978_v31 }
 0x38d   :  { %v663_v40 = vpop.f32.mrf.mxu1  ;;  %9110 = vmatprep.mubr.msk.bf16.mxu0 %vm716_vm2, %v11452_v11  ;;  %9115 = vmatpush3.bf16.msra.mxu0 %v11511_v4 }
 0x38e   :  { %v664_v62 = vadd.f32 %v663_v40, %v11429_v52  ;;  %9142 = vmatprep.mubr.msk.bf16.mxu1 %vm716_vm2, %v980_v9  ;;  %9116 = vmatprep.subr.bf16.mxu0 %v11530_v39 }
 0x38f   :  { %v11544_v17 = vpop.f32.mrf.mxu1 }
 0x390   :  { %v11550_v50 = vpack.c.bf16 %v664_v62, %v660_v44 }
 0x391   :  { %v669_v47 = vpop.f32.mrf.mxu1  ;;  %9117 = vmatpush3.bf16.msra.mxu0 %v11530_v39 }
 0x392   :  { %9118 = vmatprep.subr.bf16.mxu0 %v11548_v61  ;;  %v670_v36 = vadd.f32 %v669_v47, %v11429_v52 }
 0x393   :  { %v11556_v51 = vpop.f32.mrf.mxu1 }
 0x394   :  { %9111 = vmatmul.mubr.msk.bf16.gmra.mxu0 %vm716_vm2, %v11459_v23  ;;  %9143 = vmatmul.mubr.msk.bf16.gmra.mxu1 %vm716_vm2, %v982_v48 }
 0x395   :  { %v673_v58 = vpop.f32.mrf.mxu1  ;;  %9119 = vmatpush3.bf16.msra.mxu0 %v11548_v61 }
 0x396   :  { %v674_v24 = vadd.f32 %v673_v58, %v11429_v52  ;;  %9120 = vmatprep.subr.bf16.mxu0 %v11558_v27 }
 0x397   :  { %v11567_v54 = vpop.f32.mrf.mxu1 }
 0x398   :  { %v11569_v15 = vpack.c.bf16 %v674_v24, %v670_v36 }
 0x399   :  { %v679_v60 = vpop.f32.mrf.mxu1  ;;  %9121 = vmatpush3.bf16.msra.mxu0 %v11558_v27 }
 0x39a   :  { %v680_v7 = vadd.f32 %v679_v60, %v11429_v52 }
 0x39b   :  { %v11572_v0 = vpop.f32.mrf.mxu1 }
 0x39d   :  { %v683_v5 = vpop.f32.mrf.mxu1 }
 0x39e   :  { %v684_v12 = vadd.f32 %v683_v5, %v11429_v52 }
 0x39f   :  { %v11578_v35 = vpop.f32.mrf.mxu1 }
 0x3a0   :  { %v11576_v53 = vpack.c.bf16 %v684_v12, %v680_v7 }
 0x44c   :  { %v9108_v14 = vpop.f32.mrf.mxu0  ;;  %v11580_v21 = vpop.f32.mrf.mxu1 }
 0x44d   :  { %v812_v26 = vsel %vm273_vm1, %v9108_v14, -inf }
 0x44e   :  { %813 = vmax.xlane.f32.xlu0 %v812_v26  ;;  %v11583_v31 = vpop.f32.mrf.mxu0  ;;  %v11585_v38 = vpop.f32.mrf.mxu1 }
 0x44f   :  { %v806_v3 = vsel %vm273_vm1, %v11583_v31, -inf  ;;  %v1080_v47 = vsel %vm273_vm1, %v11585_v38, -inf }
 0x450   :  { %v9109_v9 = vpop.f32.mrf.mxu0  ;;  %v9141_v40 = vpop.f32.mrf.mxu1 }
 0x451   :  { %v815_v36 = vsel %vm273_vm1, %v9109_v9, -inf  ;;  %v1089_v24 = vsel %vm273_vm1, %v9141_v40, -inf }
 0x452   :  { %807 = vmax.xlane.f32.xlu0 %v806_v3  ;;  %v778_v52 = vpop.f32.mrf.mxu0  ;;  %v11590_v62 = vpop.f32.mrf.mxu1 }
 0x453   :  { %v809_v44 = vsel %vm273_vm1, %v778_v52, -inf  ;;  %v1083_v8 = vsel %vm273_vm1, %v11590_v62, -inf }
 0x454   :  { %810 = vmax.xlane.f32.xlu1 %v809_v44  ;;  %v11592_v34 = vpop.f32.mrf.mxu0  ;;  %v11598_v48 = vpop.f32.mrf.mxu1 }
 0x455   :  { %v824_v7 = vsel %vm273_vm1, %v11592_v34, -inf }
 0x456   :  { %1081 = vmax.xlane.f32.xlu0 %v1080_v47  ;;  %v11600_v58 = vpop.f32.mrf.mxu0  ;;  %v11604_v60 = vpop.f32.mrf.mxu1 }
 0x457   :  { %v818_v3 = vsel %vm273_vm1, %v11600_v58, -inf }
 0x458   :  { %1084 = vmax.xlane.f32.xlu1 %v1083_v8  ;;  %v11606_v5 = vpop.f32.mrf.mxu0  ;;  %v11612_v26 = vpop.f32.mrf.mxu1  ;;  %v1086_v8 = vsel %vm273_vm1, %v11580_v21, -inf }
 0x459   :  { %v827_v12 = vsel %vm273_vm1, %v11606_v5, -inf  ;;  %v1101_v44 = vsel %vm273_vm1, %v11612_v26, -inf }
 0x45a   :  { %816 = vmax.xlane.f32.xlu0 %v815_v36  ;;  %v11618_v47 = vpop.f32.mrf.mxu0 }
 0x45b   :  { %v821_v36 = vsel %vm273_vm1, %v11618_v47, -inf }
 0x45c   :  { %1090 = vmax.xlane.f32.xlu1 %v1089_v24  ;;  %v1098_v24 = vsel %vm273_vm1, %v11598_v48, -inf }
 0x45e   :  { %825 = vmax.xlane.f32.xlu0 %v824_v7  ;;  %v1092_v7 = vsel %vm273_vm1, %v11604_v60, -inf }
 0x460   :  { %828 = vmax.xlane.f32.xlu1 %v827_v12  ;;  %v11632_v12 = vpop.f32.mrf.mxu1 }
 0x462   :  { %819 = vmax.xlane.f32.xlu0 %v818_v3  ;;  %v1095_v3 = vsel %vm273_vm1, %v11632_v12, -inf }
 0x464   :  { %1102 = vmax.xlane.f32.xlu1 %v1101_v44 }
 0x466   :  { %1087 = vmax.xlane.f32.xlu0 %v1086_v8 }
 0x468   :  { %822 = vmax.xlane.f32.xlu1 %v821_v36 }
 0x46a   :  { %1099 = vmax.xlane.f32.xlu0 %v1098_v24 }
 0x46e   :  { %1093 = vmax.xlane.f32.xlu0 %v1092_v7 }
 0x479   :  { %1180 = vrot.lane.b32.xlu1 %v11530_v39, %s10972_s24 }
 0x484   :  { %1182 = vrot.lane.b32.xlu0 %v11511_v4, %s10972_s24 }
 0x49d   :  { %1096 = vmax.xlane.f32.xlu1 %v1095_v3 }
 0x4ae   :  { %1178 = vrot.lane.b32.xlu1 %v11548_v61, %s10972_s24 }
 0x4d7   :  { %v814_v44 = vpop.xlane.xlu0 %813 }
 0x4d8   :  { %v832_v8 = vsub.f32 %v9108_v14, %v814_v44 }
 0x4da   :  { %v842_v36 = vmul.f32 1.442695, %v832_v8 }
 0x4db   :  { %v808_v24 = vpop.xlane.xlu0 %807 }
 0x4dc   :  { %10201 = vpow2.f32 %v842_v36 }
 0x4dd   :  { %v811_v7 = vpop.xlane.xlu1 %810 }
 0x4de   :  { %v831_v25 = vsub.f32 %v778_v52, %v811_v7 }
 0x4df   :  { %v1082_v45 = vpop.xlane.xlu0 %1081 }
 0x4e0   :  { %v840_v16 = vmul.f32 1.442695, %v831_v25 }
 0x4e1   :  { %v1085_v29 = vpop.xlane.xlu1 %1084 }
 0x4e2   :  { %v1105_v14 = vsub.f32 %v11590_v62, %v1085_v29 }
 0x4e3   :  { %v817_v49 = vpop.xlane.xlu0 %816 }
 0x4e4   :  { %v833_v41 = vsub.f32 %v9109_v9, %v817_v49  ;;  %v830_v49 = vsub.f32 %v11583_v31, %v808_v24 }
 0x4e5   :  { %v1091_v43 = vpop.xlane.xlu1 %1090 }
 0x4e6   :  { %v844_v28 = vmul.f32 1.442695, %v833_v41  ;;  %v1107_v18 = vsub.f32 %v9141_v40, %v1091_v43  ;;  %v1114_v41 = vmul.f32 1.442695, %v1105_v14  ;;  %v838_v25 = vmul.f32 1.442695, %v830_v49 }
 0x4e7   :  { %v826_v22 = vpop.xlane.xlu0 %825 }
 0x4e8   :  { %10203 = vpow2.f32 %v844_v28  ;;  %v1118_v3 = vmul.f32 1.442695, %v1107_v18  ;;  %v1104_v28 = vsub.f32 %v11585_v38, %v1082_v45  ;;  %v836_v7 = vsub.f32 %v11592_v34, %v826_v22 }
 0x4e9   :  { %v11638_v13 = vpop.eup %10201  ;;  %v829_v44 = vpop.xlane.xlu1 %828 }
 0x4ea   :  { %10205 = vpow2.f32 %v1118_v3  ;;  %v860_v8 = vsel %vm273_vm1, %v11638_v13, 0.0  ;;  %v1112_v62 = vmul.f32 1.442695, %v1104_v28  ;;  %v850_v3 = vmul.f32 1.442695, %v836_v7 }
 0x4eb   :  { %861 = vadd.xlane.f32.xlu0 %v860_v8  ;;  %v820_v36 = vpop.xlane.xlu0 %819  ;;  %10207 = vpow2.f32 %v840_v16  ;;  %v837_v16 = vsub.f32 %v11606_v5, %v829_v44 }
 0x4ec   :  { %10209 = vpow2.f32 %v1114_v41 }
 0x4ed   :  { %v1103_v9 = vpop.xlane.xlu1 %1102  ;;  %v852_v8 = vmul.f32 1.442695, %v837_v16 }
 0x4ef   :  { %v1088_v43 = vpop.xlane.xlu0 %1087 }
 0x4f0   :  { %v1106_v18 = vsub.f32 %v11580_v21, %v1088_v43 }
 0x4f1   :  { %v823_v31 = vpop.xlane.xlu1 %822 }
 0x4f2   :  { %v1116_v29 = vmul.f32 1.442695, %v1106_v18  ;;  %v835_v14 = vsub.f32 %v11618_v47, %v823_v31 }
 0x4f3   :  { %v1100_v40 = vpop.xlane.xlu0 %1099 }
 0x4f4   :  { %10211 = vpow2.f32 %v1116_v29  ;;  %v1110_v22 = vsub.f32 %v11598_v48, %v1100_v40  ;;  %v848_v41 = vmul.f32 1.442695, %v835_v14 }
 0x4f5   :  { %v11646_v52 = vpop.eup %10203  ;;  %10213 = vpow2.f32 %v838_v25  ;;  %v1111_v25 = vsub.f32 %v11612_v26, %v1103_v9 }
 0x4f6   :  { %v863_v24 = vsel %vm273_vm1, %v11646_v52, 0.0  ;;  %10215 = vpow2.f32 %v1112_v62  ;;  %v1124_v47 = vmul.f32 1.442695, %v1110_v22 }
 0x4f7   :  { %v11652_v21 = vpop.eup %10205  ;;  %864 = vadd.xlane.f32.xlu1 %v863_v24  ;;  %v1094_v45 = vpop.xlane.xlu0 %1093  ;;  %v1126_v62 = vmul.f32 1.442695, %v1111_v25 }
 0x4f8   :  { %v1108_v38 = vsub.f32 %v11604_v60, %v1094_v45  ;;  %v1137_v5 = vsel %vm273_vm1, %v11652_v21, 0.0  ;;  %v11659_v44 = vpop.eup %10207  ;;  %v834_v60 = vsub.f32 %v11600_v58, %v820_v36 }
 0x4f9   :  { %v857_v48 = vsel %vm273_vm1, %v11659_v44, 0.0  ;;  %v11667_v43 = vpop.eup %10209 }
 0x4fa   :  { %v1120_v34 = vmul.f32 1.442695, %v1108_v38  ;;  %v846_v28 = vmul.f32 1.442695, %v834_v60  ;;  %v1131_v29 = vsel %vm273_vm1, %v11667_v43, 0.0 }
 0x4fb   :  { %1138 = vadd.xlane.f32.xlu1 %v1137_v5  ;;  %v11661_v49 = vpop.permute.xlu0 %1182 }
 0x4fc   :  { %10217 = vpow2.f32 %v1120_v34  ;;  %9146 = vmatprep.subr.bf16.mxu0 %v11661_v49 }
 0x4fd   :  { %10219 = vpow2.f32 %v850_v3 }
 0x4fe   :  { %10221 = vpow2.f32 %v852_v8 }
 0x4ff   :  { %858 = vadd.xlane.f32.xlu1 %v857_v48  ;;  %10223 = vpow2.f32 %v848_v41 }
 0x500   :  { %10225 = vpow2.f32 %v1124_v47  ;;  %v1181_v47 = vpop.permute.xlu1 %1180 }
 0x501   :  { %v11669_v18 = vpop.eup %10211  ;;  %10227 = vpow2.f32 %v846_v28 }
 0x502   :  { %v1134_v58 = vsel %vm273_vm1, %v11669_v18, 0.0  ;;  %v11676_v36 = vpop.eup %10213  ;;  %10229 = vpow2.f32 %v1126_v62 }
 0x503   :  { %1132 = vadd.xlane.f32.xlu1 %v1131_v29  ;;  %1135 = vadd.xlane.f32.xlu0 %v1134_v58  ;;  %v11678_v40 = vpop.eup %10215  ;;  %v854_v7 = vsel %vm273_vm1, %v11676_v36, 0.0 }
 0x504   :  { %v1128_v16 = vsel %vm273_vm1, %v11678_v40, 0.0 }
 0x507   :  { %855 = vadd.xlane.f32.xlu0 %v854_v7 }
 0x509   :  { %v11682_v26 = vpop.eup %10217 }
 0x50a   :  { %v11684_v9 = vpop.eup %10219  ;;  %v1140_v31 = vsel %vm273_vm1, %v11682_v26, 0.0 }
 0x50b   :  { %v11690_v24 = vpop.eup %10221  ;;  %1129 = vadd.xlane.f32.xlu0 %v1128_v16  ;;  %1141 = vadd.xlane.f32.xlu1 %v1140_v31  ;;  %v872_v38 = vsel %vm273_vm1, %v11684_v9, 0.0 }
 0x50c   :  { %v11692_v45 = vpop.eup %10223  ;;  %v875_v3 = vsel %vm273_vm1, %v11690_v24, 0.0 }
 0x50d   :  { %v11698_v14 = vpop.eup %10225  ;;  %v869_v22 = vsel %vm273_vm1, %v11692_v45, 0.0 }
 0x50e   :  { %v1146_v8 = vsel %vm273_vm1, %v11698_v14, 0.0  ;;  %v11704_v34 = vpop.eup %10227 }
 0x50f   :  { %873 = vadd.xlane.f32.xlu0 %v872_v38  ;;  %876 = vadd.xlane.f32.xlu1 %v875_v3  ;;  %v866_v5 = vsel %vm273_vm1, %v11704_v34, 0.0  ;;  %v11708_v60 = vpop.eup %10229 }
 0x510   :  { %v1149_v41 = vsel %vm273_vm1, %v11708_v60, 0.0 }
 0x513   :  { %1147 = vadd.xlane.f32.xlu0 %v1146_v8  ;;  %870 = vadd.xlane.f32.xlu1 %v869_v22 }
 0x517   :  { %867 = vadd.xlane.f32.xlu0 %v866_v5 }
 0x51b   :  { %1150 = vadd.xlane.f32.xlu0 %v1149_v41 }
 0x524   :  { %1176 = vrot.lane.b32.xlu1 %v11558_v27, %s10972_s24 }
 0x526   :  { %v1097_v48 = vpop.xlane.xlu1 %1096 }
 0x527   :  { %v1109_v28 = vsub.f32 %v11632_v12, %v1097_v48 }
 0x528   :  { %1277 = vrot.lane.b32.xlu1 %v11452_v11, %s10973_s6 }
 0x529   :  { %v1122_v25 = vmul.f32 1.442695, %v1109_v28 }
 0x52a   :  { %v1179_v58 = vpop.permute.xlu1 %1178 }
 0x52b   :  { %10231 = vpow2.f32 %v1122_v25 }
 0x52c   :  { %1275 = vrot.lane.b32.xlu1 %v11466_v30, %s10973_s6 }
 0x530   :  { %1273 = vrot.lane.b32.xlu1 %v11438_v59, %s10973_s6 }
 0x534   :  { %1267 = vrot.lane.b32.xlu1 %v11466_v30, %s10974_s25 }
 0x538   :  { %v11723_v29 = vpop.eup %10231  ;;  %1271 = vrot.lane.b32.xlu1 %v11459_v23, %s10974_s25 }
 0x539   :  { %v1143_v12 = vsel %vm273_vm1, %v11723_v29, 0.0 }
 0x53a   :  { %1144 = vadd.xlane.f32.xlu0 %v1143_v12 }
 0x550   :  { %1279 = vrot.lane.b32.xlu0 %v11459_v23, %s10973_s6 }
 0x554   :  { %1265 = vrot.lane.b32.xlu0 %v11438_v59, %s10974_s25 }
 0x558   :  { %1269 = vrot.lane.b32.xlu0 %v11452_v11, %s10974_s25 }
 0x574   :  { %v862_v16 = vpop.xlane.xlu0 %861 }
 0x580   :  { %v865_v62 = vpop.xlane.xlu1 %864 }
 0x581   :  { %10233 = vrcp.f32 %v865_v62 }
 0x584   :  { %v1139_v7 = vpop.xlane.xlu1 %1138 }
 0x588   :  { %v859_v31 = vpop.xlane.xlu1 %858 }
 0x589   :  { %10235 = vrcp.f32 %v859_v31 }
 0x58a   :  { %10237 = vrcp.f32 %v862_v16 }
 0x58c   :  { %v1136_v38 = vpop.xlane.xlu0 %1135  ;;  %v1133_v3 = vpop.xlane.xlu1 %1132 }
 0x58e   :  { %v10234_v28 = vpop.eup %10233 }
 0x58f   :  { %v889_v63 = vmul.f32 %v10234_v28, %v11646_v52 }
 0x590   :  { %v856_v8 = vpop.xlane.xlu0 %855 }
 0x591   :  { %10239 = vrcp.f32 %v856_v8 }
 0x594   :  { %v1142_v22 = vpop.xlane.xlu1 %1141  ;;  %v1130_v5 = vpop.xlane.xlu0 %1129 }
 0x595   :  { %10241 = vrcp.f32 %v1130_v5 }
 0x596   :  { %v10236_v25 = vpop.eup %10235 }
 0x597   :  { %v10238_v10 = vpop.eup %10237  ;;  %v887_v16 = vmul.f32 %v10236_v25, %v11659_v44 }
 0x598   :  { %v877_v41 = vpop.xlane.xlu1 %876  ;;  %v874_v48 = vpop.xlane.xlu0 %873  ;;  %v888_v31 = vmul.f32 %v10238_v10, %v11638_v13 }
 0x599   :  { %10243 = vrcp.f32 %v877_v41 }
 0x59a   :  { %10245 = vrcp.f32 %v874_v48  ;;  %v895_v5 = vpack.c.bf16 %v889_v63, %v888_v31 }
 0x59c   :  { %v871_v12 = vpop.xlane.xlu1 %870  ;;  %v1148_v6 = vpop.xlane.xlu0 %1147 }
 0x59d   :  { %10247 = vrcp.f32 %v871_v12 }
 0x59e   :  { %v10240_v56 = vpop.eup %10239  ;;  %10249 = vrcp.f32 %v1133_v3 }
 0x59f   :  { %v886_v62 = vmul.f32 %v10240_v56, %v11676_v36 }
 0x5a0   :  { %v868_v8 = vpop.xlane.xlu0 %867  ;;  %v1177_v36 = vpop.permute.xlu1 %1176 }
 0x5a1   :  { %10251 = vrcp.f32 %v868_v8  ;;  %v894_v55 = vpack.c.bf16 %v887_v16, %v886_v62 }
 0x5a2   :  { %10253 = vrcp.f32 %v1136_v38  ;;  %v10242_v52 = vpop.eup %10241 }
 0x5a3   :  { %9122 = vmatprep.mubr.msk.bf16.mxu0 %vm273_vm1, %v894_v55  ;;  %10255 = vrcp.f32 %v1139_v7  ;;  %v1160_v7 = vmul.f32 %v10242_v52, %v11678_v40 }
 0x5a4   :  { %9123 = vmatmul.mubr.msk.bf16.vlgmr.msra.gmra.mxu0 %vm273_vm1, %v895_v5  ;;  %v1151_v40 = vpop.xlane.xlu0 %1150  ;;  %v1278_v62 = vpop.permute.xlu1 %1277 }
 0x5a5   :  { %9147 = vmatpush3.bf16.msra.mxu0 %v11661_v49  ;;  %10257 = vrcp.f32 %v1151_v40  ;;  %v1300_v31 = vsel %vm716_vm2, %v1278_v62, 0 }
 0x5a6   :  { %9148 = vmatprep.subr.bf16.mxu0 %v1181_v47  ;;  %v10244_v56 = vpop.eup %10243  ;;  %10259 = vrcp.f32 %v1142_v22 }
 0x5a7   :  { %v10246_v44 = vpop.eup %10245  ;;  %v893_v63 = vmul.f32 %v10244_v56, %v11690_v24  ;;  %10261 = vrcp.f32 %v1148_v6 }
 0x5a8   :  { %v892_v55 = vmul.f32 %v10246_v44, %v11684_v9  ;;  %v1276_v5 = vpop.permute.xlu1 %1275 }
 0x5a9   :  { %9149 = vmatpush3.bf16.msra.mxu0 %v1181_v47 }
 0x5aa   :  { %9150 = vmatprep.subr.bf16.mxu0 %v1179_v58  ;;  %v10248_v10 = vpop.eup %10247  ;;  %v897_v48 = vpack.c.bf16 %v893_v63, %v892_v55 }
 0x5ab   :  { %v10250_v13 = vpop.eup %10249  ;;  %v891_v38 = vmul.f32 %v10248_v10, %v11692_v45 }
 0x5ac   :  { %v1161_v41 = vmul.f32 %v10250_v13, %v11667_v43 }
 0x5ad   :  { %9151 = vmatpush3.bf16.msra.mxu0 %v1179_v58 }
 0x5ae   :  { %v10252_v3 = vpop.eup %10251  ;;  %9152 = vmatprep.subr.bf16.mxu0 %v1177_v36  ;;  %v1168_v58 = vpack.c.bf16 %v1161_v41, %v1160_v7 }
 0x5af   :  { %v890_v49 = vmul.f32 %v10252_v3, %v11704_v34  ;;  %v10254_v28 = vpop.eup %10253 }
 0x5b0   :  { %v10256_v9 = vpop.eup %10255  ;;  %v1162_v24 = vmul.f32 %v10254_v28, %v11669_v18 }
 0x5b1   :  { %9153 = vmatpush3.bf16.msra.mxu0 %v1177_v36  ;;  %v896_v47 = vpack.c.bf16 %v891_v38, %v890_v49  ;;  %v1163_v45 = vmul.f32 %v10256_v9, %v11652_v21  ;;  %v1297_v36 = vsel %vm716_vm2, %v1276_v5, 0 }
 0x5b2   :  { %v10258_v18 = vpop.eup %10257 }
 0x5b3   :  { %9126 = vmatprep.mubr.msk.bf16.mxu0 %vm273_vm1, %v896_v47  ;;  %v1169_v34 = vpack.c.bf16 %v1163_v45, %v1162_v24  ;;  %v10260_v21 = vpop.eup %10259  ;;  %v1167_v6 = vmul.f32 %v10258_v18, %v11708_v60  ;;  %v1274_v60 = vpop.permute.xlu1 %1273 }
 0x5b4   :  { %9127 = vmatmul.mubr.msk.bf16.gmra.mxu0 %vm273_vm1, %v897_v48  ;;  %v10262_v16 = vpop.eup %10261  ;;  %v1164_v22 = vmul.f32 %v10260_v21, %v11682_v26  ;;  %v1294_v26 = vsel %vm716_vm2, %v1274_v60, 0 }
 0x5b5   :  { %9154 = vmatprep.mubr.msk.bf16.mxu0 %vm273_vm1, %v1168_v58  ;;  %v1166_v56 = vmul.f32 %v10262_v16, %v11698_v14 }
 0x5b7   :  { %v1171_v10 = vpack.c.bf16 %v1167_v6, %v1166_v56 }
 0x5bc   :  { %9155 = vmatmul.mubr.msk.bf16.vlgmr.msra.gmra.mxu0 %vm273_vm1, %v1169_v34 }
 0x5c3   :  { %v1145_v43 = vpop.xlane.xlu0 %1144 }
 0x5c4   :  { %10263 = vrcp.f32 %v1145_v43 }
 0x5c7   :  { %v1280_v25 = vpop.permute.xlu0 %1279 }
 0x5c8   :  { %9802 = vmatprep.subr.msk.bf16.mxu0 %vm716_vm2, %v1280_v25  ;;  %v1303_v12 = vsel %vm716_vm2, %v1280_v25, 0 }
 0x5c9   :  { %9163 = vmatpush3.bf16.xpose.msra.mxu0 %v1303_v12 }
 0x5ca   :  { %9803 = vmatprep.subr.msk.bf16.mxu0 %vm716_vm2, %v1278_v62 }
 0x5cb   :  { %v1266_v13 = vpop.permute.xlu0 %1265 }
 0x5cf   :  { %v1270_v14 = vpop.permute.xlu0 %1269 }
 0x5d1   :  { %v10264_v8 = vpop.eup %10263  ;;  %9165 = vmatpush3.bf16.xpose.msra.mxu0 %v1300_v31 }
 0x5d2   :  { %9804 = vmatprep.subr.msk.bf16.mxu0 %vm716_vm2, %v1276_v5  ;;  %v1165_v52 = vmul.f32 %v10264_v8, %v11723_v29  ;;  %v1268_v29 = vpop.permute.xlu1 %1267 }
 0x5d4   :  { %v1170_v44 = vpack.c.bf16 %v1165_v52, %v1164_v22 }
 0x5d6   :  { %9158 = vmatprep.mubr.msk.bf16.mxu0 %vm273_vm1, %v1170_v44  ;;  %v1272_v3 = vpop.permute.xlu1 %1271 }
 0x5d7   :  { %9159 = vmatmul.mubr.msk.bf16.gmra.mxu0 %vm273_vm1, %v1171_v10 }
 0x5d8   :  { %9170 = vmatprep.mubr.msk.bf16.mxu0 %vm716_vm2, %v1266_v13 }
 0x5d9   :  { %9167 = vmatpush3.bf16.xpose.msra.mxu0 %v1297_v36 }
 0x5da   :  { %9805 = vmatprep.subr.msk.bf16.mxu0 %vm716_vm2, %v1274_v60 }
 0x5e1   :  { %9169 = vmatpush3.bf16.xpose.msra.mxu0 %v1294_v26 }
 0x5e8   :  { %9171 = vmatmul.mubr.msk.bf16.vlgmr.msra.gmra.mxu0 %vm716_vm2, %v1268_v29 }
 0x5e9   :  { %9174 = vmatprep.mubr.msk.bf16.mxu0 %vm716_vm2, %v1270_v14 }
 0x5f0   :  { %9175 = vmatmul.mubr.msk.bf16.gmra.mxu0 %vm716_vm2, %v1272_v3 }
 0x664   :  { %v11772_v55 = vpop.f32.mrf.mxu0 }
 0x665   :  { %14896 = vst [vmem:[#allocation19_spill] sm:$0xff] %v11772_v55 }
 0x666   :  { %v11774_v63 = vpop.f32.mrf.mxu0 }
 0x668   :  { %v11776_v49 = vpop.f32.mrf.mxu0 }
 0x669   :  { %14897 = vst [vmem:[#allocation20_spill] sm:$0xff] %v11776_v49 }
 0x66a   :  { %v11778_v38 = vpop.f32.mrf.mxu0 }
 0x674   :  { %v11780_v7 = vpop.f32.mrf.mxu0 }
 0x675   :  { %14898 = vst [vmem:[#allocation21_spill] sm:$0xff] %v11780_v7 }
 0x676   :  { %v11782_v47 = vpop.f32.mrf.mxu0 }
 0x677   :  { %14899 = vst [vmem:[#allocation22_spill] sm:$0xff] %v11782_v47 }
 0x678   :  { %v11784_v41 = vpop.f32.mrf.mxu0 }
 0x679   :  { %14900 = vst [vmem:[#allocation23_spill] sm:$0xff] %v11784_v41 }
 0x67a   :  { %v11786_v48 = vpop.f32.mrf.mxu0 }
 0x67b   :  { %14901 = vst [vmem:[#allocation24_spill] sm:$0xff] %v11786_v48 }
 0x67c   :  { %v11788_v28 = vpop.f32.mrf.mxu0 }
 0x67e   :  { %v11790_v58 = vpop.f32.mrf.mxu0 }
 0x680   :  { %v11792_v9 = vpop.f32.mrf.mxu0 }
 0x682   :  { %v11796_v45 = vpop.f32.mrf.mxu0 }
 0x697   :  { %v11798_v34 = vpop.f32.mrf.mxu0 }
 0x699   :  { %v11800_v40 = vpop.f32.mrf.mxu0 }
 0x69b   :  { %v11802_v43 = vpop.f32.mrf.mxu0 }
 0x69d   :  { %v11806_v12 = vpop.f32.mrf.mxu0 }
 0x6a8   :  { %v9172_v62 = vpop.f32.mrf.mxu0 }
 0x6a9   :  { %v1376_v8 = vsel %vm273_vm1, %v9172_v62, -inf }
 0x6aa   :  { %v1339_v18 = vpop.f32.mrf.mxu0 }
 0x6ab   :  { %v1370_v21 = vsel %vm273_vm1, %v1339_v18, -inf }
 0x6ac   :  { %1371 = vmax.xlane.f32.xlu0 %v1370_v21  ;;  %v9173_v16 = vpop.f32.mrf.mxu0 }
 0x6ad   :  { %v1379_v52 = vsel %vm273_vm1, %v9173_v16, -inf }
 0x6ae   :  { %v1342_v31 = vpop.f32.mrf.mxu0 }
 0x6af   :  { %v1373_v5 = vsel %vm273_vm1, %v1342_v31, -inf }
 0x6b0   :  { %1377 = vmax.xlane.f32.xlu0 %v1376_v8  ;;  %1374 = vmax.xlane.f32.xlu1 %v1373_v5  ;;  %v9176_v6 = vpop.f32.mrf.mxu0 }
 0x6b1   :  { %v1388_v13 = vsel %vm273_vm1, %v9176_v6, -inf }
 0x6b2   :  { %v1355_v22 = vpop.f32.mrf.mxu0 }
 0x6b3   :  { %v1382_v60 = vsel %vm273_vm1, %v1355_v22, -inf }
 0x6b4   :  { %1380 = vmax.xlane.f32.xlu0 %v1379_v52  ;;  %v9177_v56 = vpop.f32.mrf.mxu0 }
 0x6b5   :  { %v1391_v44 = vsel %vm273_vm1, %v9177_v56, -inf }
 0x6b6   :  { %1392 = vmax.xlane.f32.xlu1 %v1391_v44  ;;  %v1358_v10 = vpop.f32.mrf.mxu0 }
 0x6b7   :  { %v1385_v36 = vsel %vm273_vm1, %v1358_v10, -inf }
 0x6b8   :  { %1389 = vmax.xlane.f32.xlu0 %v1388_v13 }
 0x6ba   :  { %1386 = vmax.xlane.f32.xlu1 %v1385_v36 }
 0x6bc   :  { %1383 = vmax.xlane.f32.xlu0 %v1382_v60 }
 0x6cb   :  { %1466 = vrot.lane.b32.xlu1 %v11530_v39, %s10974_s25 }
 0x6cf   :  { %1464 = vrot.lane.b32.xlu1 %v11548_v61, %s10974_s25 }
 0x6d2   :  { %1468 = vrot.lane.b32.xlu0 %v11511_v4, %s10974_s25 }
 0x6d3   :  { %1462 = vrot.lane.b32.xlu1 %v11558_v27, %s10974_s25 }
 0x735   :  { %v1372_v26 = vpop.xlane.xlu0 %1371 }
 0x736   :  { %v1394_v29 = vsub.f32 %v1339_v18, %v1372_v26 }
 0x738   :  { %v1402_v52 = vmul.f32 1.442695, %v1394_v29 }
 0x739   :  { %v1375_v14 = vpop.xlane.xlu1 %1374  ;;  %v1378_v3 = vpop.xlane.xlu0 %1377 }
 0x73a   :  { %v1396_v21 = vsub.f32 %v9172_v62, %v1378_v3  ;;  %v1395_v8 = vsub.f32 %v1342_v31, %v1375_v14 }
 0x73c   :  { %v1406_v5 = vmul.f32 1.442695, %v1396_v21  ;;  %v1404_v60 = vmul.f32 1.442695, %v1395_v8 }
 0x73d   :  { %v1381_v44 = vpop.xlane.xlu0 %1380 }
 0x73e   :  { %v1397_v13 = vsub.f32 %v9173_v16, %v1381_v44  ;;  %10265 = vpow2.f32 %v1406_v5 }
 0x73f   :  { %v1393_v36 = vpop.xlane.xlu1 %1392  ;;  %10267 = vpow2.f32 %v1402_v52 }
 0x740   :  { %v1408_v25 = vmul.f32 1.442695, %v1397_v13  ;;  %v1401_v24 = vsub.f32 %v9177_v56, %v1393_v36 }
 0x741   :  { %v1390_v1 = vpop.xlane.xlu0 %1389 }
 0x742   :  { %10269 = vpow2.f32 %v1408_v25  ;;  %v1400_v46 = vsub.f32 %v9176_v6, %v1390_v1  ;;  %v1416_v26 = vmul.f32 1.442695, %v1401_v24 }
 0x743   :  { %v1387_v42 = vpop.xlane.xlu1 %1386  ;;  %10271 = vpow2.f32 %v1404_v60 }
 0x744   :  { %v1414_v18 = vmul.f32 1.442695, %v1400_v46  ;;  %v1399_v37 = vsub.f32 %v1358_v10, %v1387_v42 }
 0x745   :  { %v1384_v62 = vpop.xlane.xlu0 %1383 }
 0x746   :  { %10273 = vpow2.f32 %v1414_v18  ;;  %v1398_v31 = vsub.f32 %v1355_v22, %v1384_v62  ;;  %v1412_v16 = vmul.f32 1.442695, %v1399_v37 }
 0x747   :  { %v1467_v29 = vpop.permute.xlu1 %1466  ;;  %10275 = vpow2.f32 %v1416_v26 }
 0x748   :  { %v1410_v14 = vmul.f32 1.442695, %v1398_v31 }
 0x749   :  { %v1469_v3 = vpop.permute.xlu0 %1468 }
 0x74a   :  { %10277 = vpow2.f32 %v1410_v14  ;;  %9178 = vmatprep.subr.bf16.mxu1 %v1469_v3 }
 0x74b   :  { %9179 = vmatpush3.bf16.msra.mxu1 %v1469_v3  ;;  %v11824_v56 = vpop.eup %10265  ;;  %10279 = vpow2.f32 %v1412_v16  ;;  %v1465_v1 = vpop.permute.xlu1 %1464 }
 0x74c   :  { %9180 = vmatprep.subr.bf16.mxu1 %v1467_v29  ;;  %v1424_v46 = vsel %vm273_vm1, %v11824_v56, 0.0  ;;  %v10268_v42 = vpop.eup %10267 }
 0x74d   :  { %1425 = vadd.xlane.f32.xlu0 %v1424_v46  ;;  %v1418_v6 = vsel %vm273_vm1, %v10268_v42, 0.0 }
 0x74f   :  { %v10270_v24 = vpop.eup %10269  ;;  %9181 = vmatpush3.bf16.msra.mxu1 %v1467_v29  ;;  %v1463_v10 = vpop.permute.xlu1 %1462 }
 0x750   :  { %9182 = vmatprep.subr.bf16.mxu1 %v1465_v1  ;;  %v1427_v25 = vsel %vm273_vm1, %v10270_v24, 0.0  ;;  %v10272_v37 = vpop.eup %10271 }
 0x751   :  { %1428 = vadd.xlane.f32.xlu1 %v1427_v25  ;;  %1419 = vadd.xlane.f32.xlu0 %v1418_v6  ;;  %v1421_v21 = vsel %vm273_vm1, %v10272_v37, 0.0 }
 0x753   :  { %v11830_v22 = vpop.eup %10273  ;;  %9183 = vmatpush3.bf16.msra.mxu1 %v1465_v1 }
 0x754   :  { %9184 = vmatprep.subr.bf16.mxu1 %v1463_v10  ;;  %v1436_v8 = vsel %vm273_vm1, %v11830_v22, 0.0  ;;  %v10276_v5 = vpop.eup %10275 }
 0x755   :  { %1422 = vadd.xlane.f32.xlu1 %v1421_v21  ;;  %1437 = vadd.xlane.f32.xlu0 %v1436_v8  ;;  %v1439_v13 = vsel %vm273_vm1, %v10276_v5, 0.0 }
 0x757   :  { %v10278_v52 = vpop.eup %10277  ;;  %9185 = vmatpush3.bf16.msra.mxu1 %v1463_v10 }
 0x758   :  { %v1430_v44 = vsel %vm273_vm1, %v10278_v52, 0.0  ;;  %v10280_v36 = vpop.eup %10279 }
 0x759   :  { %1431 = vadd.xlane.f32.xlu1 %v1430_v44  ;;  %1440 = vadd.xlane.f32.xlu0 %v1439_v13  ;;  %v1433_v60 = vsel %vm273_vm1, %v10280_v36, 0.0 }
 0x75d   :  { %1434 = vadd.xlane.f32.xlu0 %v1433_v60 }
 0x76a   :  { %1563 = vrot.lane.b32.xlu1 %v11452_v11, %s10975_s26 }
 0x76e   :  { %1561 = vrot.lane.b32.xlu1 %v11466_v30, %s10975_s26 }
 0x772   :  { %1559 = vrot.lane.b32.xlu1 %v11438_v59, %s10975_s26 }
 0x773   :  { %1565 = vrot.lane.b32.xlu0 %v11459_v23, %s10975_s26 }
 0x776   :  { %1553 = vrot.lane.b32.xlu1 %v11466_v30, %s10976_s3 }
 0x777   :  { %1551 = vrot.lane.b32.xlu0 %v11438_v59, %s10976_s3 }
 0x77a   :  { %1557 = vrot.lane.b32.xlu1 %v11459_v23, %s10976_s3 }
 0x77b   :  { %1555 = vrot.lane.b32.xlu0 %v11452_v11, %s10976_s3 }
 0x7d6   :  { %v1426_v18 = vpop.xlane.xlu0 %1425 }
 0x7da   :  { %v1429_v26 = vpop.xlane.xlu1 %1428  ;;  %v1420_v62 = vpop.xlane.xlu0 %1419 }
 0x7db   :  { %10281 = vrcp.f32 %v1429_v26 }
 0x7dc   :  { %10283 = vrcp.f32 %v1420_v62 }
 0x7dd   :  { %10285 = vrcp.f32 %v1426_v18 }
 0x7de   :  { %v1423_v31 = vpop.xlane.xlu1 %1422  ;;  %v1438_v29 = vpop.xlane.xlu0 %1437 }
 0x7df   :  { %10287 = vrcp.f32 %v1423_v31 }
 0x7e2   :  { %v1432_v14 = vpop.xlane.xlu1 %1431  ;;  %v1441_v30 = vpop.xlane.xlu0 %1440 }
 0x7e3   :  { %10289 = vrcp.f32 %v1441_v30 }
 0x7e4   :  { %10291 = vrcp.f32 %v1432_v14 }
 0x7e5   :  { %10293 = vrcp.f32 %v1438_v29 }
 0x7e6   :  { %v1435_v59 = vpop.xlane.xlu0 %1434  ;;  %v1564_v18 = vpop.permute.xlu1 %1563 }
 0x7e7   :  { %10295 = vrcp.f32 %v1435_v59  ;;  %v1586_v30 = vsel %vm716_vm2, %v1564_v18, 0 }
 0x7e8   :  { %v10282_v23 = vpop.eup %10281 }
 0x7e9   :  { %v10284_v16 = vpop.eup %10283  ;;  %v1453_v46 = vmul.f32 %v10282_v23, %v10270_v24 }
 0x7ea   :  { %v10286_v3 = vpop.eup %10285  ;;  %v1566_v11 = vpop.permute.xlu0 %1565  ;;  %v1450_v25 = vmul.f32 %v10284_v16, %v10268_v42 }
 0x7eb   :  { %9806 = vmatprep.subr.msk.bf16.mxu1 %vm716_vm2, %v1566_v11  ;;  %v1452_v10 = vmul.f32 %v10286_v3, %v11824_v56  ;;  %v1589_v13 = vsel %vm716_vm2, %v1566_v11, 0  ;;  %v1562_v59 = vpop.permute.xlu1 %1561  ;;  %v676_v3 = vadd.f32 %v11567_v54, %v11503_v57  ;;  %v672_v11 = vadd.f32 %v11556_v51, %v11503_v57 }
 0x7ec   :  { %v10288_v1 = vpop.eup %10287  ;;  %v656_v51 = vadd.f32 %v11518_v19, %v11503_v57 }
 0x7ed   :  { %v1451_v6 = vmul.f32 %v10288_v1, %v10272_v37  ;;  %v1459_v8 = vpack.c.bf16 %v1453_v46, %v1452_v10  ;;  %v11882_v46 = vpack.c.bf16 %v676_v3, %v672_v11 }
 0x7ee   :  { %v1552_v14 = vpop.permute.xlu0 %1551 }
 0x7ef   :  { %v1458_v21 = vpack.c.bf16 %v1451_v6, %v1450_v25  ;;  %v662_v25 = vadd.f32 %v11526_v32, %v11503_v57 }
 0x7f0   :  { %v10290_v44 = vpop.eup %10289 }
 0x7f1   :  { %9186 = vmatprep.mubr.msk.bf16.mxu1 %vm273_vm1, %v1458_v21  ;;  %v10292_v60 = vpop.eup %10291  ;;  %v1457_v42 = vmul.f32 %v10290_v44, %v10276_v5  ;;  %v1583_v5 = vsel %vm716_vm2, %v1562_v59, 0 }
 0x7f2   :  { %9187 = vmatmul.mubr.msk.bf16.vlgmr.msra.gmra.mxu1 %vm273_vm1, %v1459_v8  ;;  %v10294_v26 = vpop.eup %10293  ;;  %v1454_v37 = vmul.f32 %v10292_v60, %v10278_v52  ;;  %v1560_v52 = vpop.permute.xlu1 %1559 }
 0x7f3   :  { %9195 = vmatpush3.bf16.xpose.msra.mxu1 %v1589_v13  ;;  %v1456_v56 = vmul.f32 %v10294_v26, %v11830_v22  ;;  %v686_v22 = vadd.f32 %v11578_v35, %v11503_v57  ;;  %v1580_v16 = vsel %vm716_vm2, %v1560_v52, 0  ;;  %v666_v35 = vadd.f32 %v11544_v17, %v11503_v57 }
 0x7f4   :  { %9807 = vmatprep.subr.msk.bf16.mxu1 %vm716_vm2, %v1564_v18  ;;  %v10296_v24 = vpop.eup %10295  ;;  %v652_v17 = vadd.f32 %v11509_v2, %v11503_v57 }
 0x7f5   :  { %v1455_v62 = vmul.f32 %v10296_v24, %v10280_v36  ;;  %v1461_v29 = vpack.c.bf16 %v1457_v42, %v1456_v56  ;;  %v682_v36 = vadd.f32 %v11572_v0, %v11503_v57  ;;  %v1556_v0 = vpop.permute.xlu0 %1555  ;;  %v11892_v54 = vpack.c.bf16 %v666_v35, %v662_v25 }
 0x7f6   :  { %v1554_v1 = vpop.permute.xlu1 %1553  ;;  %v11898_v10 = vpack.c.bf16 %v656_v51, %v652_v17 }
 0x7f7   :  { %v1460_v31 = vpack.c.bf16 %v1455_v62, %v1454_v37  ;;  %v11872_v23 = vpack.c.bf16 %v686_v22, %v682_v36 }
 0x7f9   :  { %9190 = vmatprep.mubr.msk.bf16.mxu1 %vm273_vm1, %v1460_v31 }
 0x7fa   :  { %9191 = vmatmul.mubr.msk.bf16.gmra.mxu1 %vm273_vm1, %v1461_v29  ;;  %v1558_v6 = vpop.permute.xlu1 %1557 }
 0x7fb   :  { %9197 = vmatpush3.bf16.xpose.msra.mxu1 %v1586_v30  ;;  %9202 = vmatprep.mubr.msk.bf16.mxu1 %vm716_vm2, %v1552_v14 }
 0x7fc   :  { %9808 = vmatprep.subr.msk.bf16.mxu1 %vm716_vm2, %v1562_v59 }
 0x803   :  { %9199 = vmatpush3.bf16.xpose.msra.mxu1 %v1583_v5 }
 0x804   :  { %9809 = vmatprep.subr.msk.bf16.mxu1 %vm716_vm2, %v1560_v52 }
 0x80b   :  { %9201 = vmatpush3.bf16.xpose.msra.mxu1 %v1580_v16 }
 0x80c   :  { %9242 = vmatprep.subr.bf16.mxu1 %v11872_v23 }
 0x812   :  { %9203 = vmatmul.mubr.msk.bf16.vlgmr.msra.gmra.mxu1 %vm716_vm2, %v1554_v1 }
 0x813   :  { %9206 = vmatprep.mubr.msk.bf16.mxu1 %vm716_vm2, %v1556_v0  ;;  %9243 = vmatpush3.bf16.msra.mxu1 %v11872_v23 }
 0x814   :  { %9244 = vmatprep.subr.bf16.mxu1 %v11882_v46 }
 0x817   :  { %9245 = vmatpush3.bf16.msra.mxu1 %v11882_v46 }
 0x818   :  { %9246 = vmatprep.subr.bf16.mxu1 %v11892_v54 }
 0x81a   :  { %9207 = vmatmul.mubr.msk.bf16.gmra.mxu1 %vm716_vm2, %v1558_v6 }
 0x81b   :  { %9247 = vmatpush3.bf16.msra.mxu1 %v11892_v54 }
 0x81c   :  { %9248 = vmatprep.subr.bf16.mxu1 %v11898_v10 }
 0x81f   :  { %9249 = vmatpush3.bf16.msra.mxu1 %v11898_v10 }
 0x8b2   :  { %v11904_v19 = vpop.f32.mrf.mxu1 }
 0x8b4   :  { %v11906_v32 = vpop.f32.mrf.mxu1 }
 0x8b6   :  { %v11908_v21 = vpop.f32.mrf.mxu1 }
 0x8b8   :  { %v11912_v2 = vpop.f32.mrf.mxu1 }
 0x8ba   :  { %v11914_v8 = vpop.f32.mrf.mxu1 }
 0x8bc   :  { %v11916_v44 = vpop.f32.mrf.mxu1 }
 0x8be   :  { %v11918_v13 = vpop.f32.mrf.mxu1 }
 0x8c0   :  { %v11922_v18 = vpop.f32.mrf.mxu1 }
 0x8d2   :  { %v9204_v26 = vpop.f32.mrf.mxu1 }
 0x8d3   :  { %v1662_v56 = vsel %vm273_vm1, %v9204_v26, -inf }
 0x8d4   :  { %v1625_v24 = vpop.f32.mrf.mxu1 }
 0x8d5   :  { %v1656_v42 = vsel %vm273_vm1, %v1625_v24, -inf }
 0x8d6   :  { %1657 = vmax.xlane.f32.xlu0 %v1656_v42  ;;  %v9205_v37 = vpop.f32.mrf.mxu1 }
 0x8d7   :  { %v1665_v30 = vsel %vm273_vm1, %v9205_v37, -inf }
 0x8d8   :  { %v1628_v62 = vpop.f32.mrf.mxu1 }
 0x8d9   :  { %v1659_v31 = vsel %vm273_vm1, %v1628_v62, -inf }
 0x8da   :  { %1663 = vmax.xlane.f32.xlu0 %v1662_v56  ;;  %1660 = vmax.xlane.f32.xlu1 %v1659_v31  ;;  %v9208_v29 = vpop.f32.mrf.mxu1 }
 0x8db   :  { %v1674_v22 = vsel %vm273_vm1, %v9208_v29, -inf }
 0x8dc   :  { %v1641_v14 = vpop.f32.mrf.mxu1 }
 0x8dd   :  { %v1668_v16 = vsel %vm273_vm1, %v1641_v14, -inf }
 0x8de   :  { %1666 = vmax.xlane.f32.xlu0 %v1665_v30  ;;  %v9209_v59 = vpop.f32.mrf.mxu1 }
 0x8df   :  { %v1677_v5 = vsel %vm273_vm1, %v9209_v59, -inf }
 0x8e0   :  { %1678 = vmax.xlane.f32.xlu1 %v1677_v5  ;;  %v1644_v52 = vpop.f32.mrf.mxu1 }
 0x8e1   :  { %v1671_v36 = vsel %vm273_vm1, %v1644_v52, -inf }
 0x8e2   :  { %1675 = vmax.xlane.f32.xlu0 %v1674_v22 }
 0x8e4   :  { %1672 = vmax.xlane.f32.xlu1 %v1671_v36 }
 0x8e6   :  { %1669 = vmax.xlane.f32.xlu0 %v1668_v16 }
 0x8f5   :  { %1752 = vrot.lane.b32.xlu1 %v11530_v39, %s10976_s3 }
 0x8f9   :  { %1750 = vrot.lane.b32.xlu1 %v11548_v61, %s10976_s3 }
 0x8fc   :  { %1754 = vrot.lane.b32.xlu0 %v11511_v4, %s10976_s3 }
 0x8fd   :  { %1748 = vrot.lane.b32.xlu1 %v11558_v27, %s10976_s3 }
 0x95f   :  { %v1658_v3 = vpop.xlane.xlu0 %1657 }
 0x960   :  { %v1680_v11 = vsub.f32 %v1625_v24, %v1658_v3 }
 0x962   :  { %v1688_v17 = vmul.f32 1.442695, %v1680_v11 }
 0x963   :  { %v1661_v1 = vpop.xlane.xlu1 %1660  ;;  %v1664_v35 = vpop.xlane.xlu0 %1663 }
 0x964   :  { %v1682_v0 = vsub.f32 %v9204_v26, %v1664_v35  ;;  %v1681_v25 = vsub.f32 %v1628_v62, %v1661_v1 }
 0x966   :  { %v1692_v51 = vmul.f32 1.442695, %v1682_v0  ;;  %v1690_v56 = vmul.f32 1.442695, %v1681_v25 }
 0x967   :  { %v1667_v6 = vpop.xlane.xlu0 %1666 }
 0x968   :  { %v1683_v42 = vsub.f32 %v9205_v37, %v1667_v6  ;;  %10297 = vpow2.f32 %v1692_v51 }
 0x969   :  { %v1679_v39 = vpop.xlane.xlu1 %1678  ;;  %10299 = vpow2.f32 %v1688_v17 }
 0x96a   :  { %v1694_v61 = vmul.f32 1.442695, %v1683_v42  ;;  %v1687_v31 = vsub.f32 %v9209_v59, %v1679_v39 }
 0x96b   :  { %v1676_v4 = vpop.xlane.xlu0 %1675 }
 0x96c   :  { %10301 = vpow2.f32 %v1694_v61  ;;  %v1686_v30 = vsub.f32 %v9208_v29, %v1676_v4  ;;  %v1702_v5 = vmul.f32 1.442695, %v1687_v31 }
 0x96d   :  { %v1673_v27 = vpop.xlane.xlu1 %1672  ;;  %10303 = vpow2.f32 %v1690_v56 }
 0x96e   :  { %v1700_v24 = vmul.f32 1.442695, %v1686_v30  ;;  %v1685_v22 = vsub.f32 %v1644_v52, %v1673_v27 }
 0x96f   :  { %v1670_v26 = vpop.xlane.xlu0 %1669 }
 0x970   :  { %10305 = vpow2.f32 %v1700_v24  ;;  %v1684_v62 = vsub.f32 %v1641_v14, %v1670_v26  ;;  %v1698_v37 = vmul.f32 1.442695, %v1685_v22 }
 0x971   :  { %v1753_v36 = vpop.permute.xlu1 %1752  ;;  %10307 = vpow2.f32 %v1702_v5 }
 0x972   :  { %v1696_v16 = vmul.f32 1.442695, %v1684_v62 }
 0x973   :  { %v1755_v3 = vpop.permute.xlu0 %1754 }
 0x974   :  { %10309 = vpow2.f32 %v1696_v16  ;;  %9210 = vmatprep.subr.bf16.mxu0 %v1755_v3 }
 0x975   :  { %9211 = vmatpush3.bf16.msra.mxu0 %v1755_v3  ;;  %v10298_v59 = vpop.eup %10297  ;;  %10311 = vpow2.f32 %v1698_v37  ;;  %v1751_v29 = vpop.permute.xlu1 %1750 }
 0x976   :  { %9212 = vmatprep.subr.bf16.mxu0 %v1753_v36  ;;  %v1710_v11 = vsel %vm273_vm1, %v10298_v59, 0.0  ;;  %v10300_v1 = vpop.eup %10299 }
 0x977   :  { %1711 = vadd.xlane.f32.xlu0 %v1710_v11  ;;  %v1704_v0 = vsel %vm273_vm1, %v10300_v1, 0.0 }
 0x979   :  { %v10302_v52 = vpop.eup %10301  ;;  %9213 = vmatpush3.bf16.msra.mxu0 %v1753_v36  ;;  %v1749_v51 = vpop.permute.xlu1 %1748 }
 0x97a   :  { %9214 = vmatprep.subr.bf16.mxu0 %v1751_v29  ;;  %v1713_v14 = vsel %vm273_vm1, %v10302_v52, 0.0  ;;  %v10304_v35 = vpop.eup %10303 }
 0x97b   :  { %1714 = vadd.xlane.f32.xlu1 %v1713_v14  ;;  %1705 = vadd.xlane.f32.xlu0 %v1704_v0  ;;  %v1707_v17 = vsel %vm273_vm1, %v10304_v35, 0.0 }
 0x97d   :  { %v11943_v25 = vpop.eup %10305  ;;  %9215 = vmatpush3.bf16.msra.mxu0 %v1751_v29 }
 0x97e   :  { %9216 = vmatprep.subr.bf16.mxu0 %v1749_v51  ;;  %v1722_v6 = vsel %vm273_vm1, %v11943_v25, 0.0  ;;  %v10308_v42 = vpop.eup %10307 }
 0x97f   :  { %1708 = vadd.xlane.f32.xlu1 %v1707_v17  ;;  %1723 = vadd.xlane.f32.xlu0 %v1722_v6  ;;  %v1725_v61 = vsel %vm273_vm1, %v10308_v42, 0.0 }
 0x981   :  { %v10310_v39 = vpop.eup %10309  ;;  %9217 = vmatpush3.bf16.msra.mxu0 %v1749_v51 }
 0x982   :  { %v1716_v56 = vsel %vm273_vm1, %v10310_v39, 0.0  ;;  %v10312_v31 = vpop.eup %10311 }
 0x983   :  { %1717 = vadd.xlane.f32.xlu1 %v1716_v56  ;;  %1726 = vadd.xlane.f32.xlu0 %v1725_v61  ;;  %v1719_v4 = vsel %vm273_vm1, %v10312_v31, 0.0 }
 0x987   :  { %1720 = vadd.xlane.f32.xlu0 %v1719_v4 }
 0x994   :  { %1966 = vrot.lane.b32.xlu1 %v11569_v15, %s10970_s23 }
 0x998   :  { %1964 = vrot.lane.b32.xlu1 %v11550_v50, %s10970_s23 }
 0x99c   :  { %1962 = vrot.lane.b32.xlu1 %v11522_v20, %s10970_s23 }
 0x99d   :  { %1968 = vrot.lane.b32.xlu0 %v11576_v53, %s10970_s23 }
 0xa00   :  { %v1712_v30 = vpop.xlane.xlu0 %1711 }
 0xa04   :  { %v1715_v27 = vpop.xlane.xlu1 %1714  ;;  %v1706_v24 = vpop.xlane.xlu0 %1705 }
 0xa05   :  { %10313 = vrcp.f32 %v1715_v27 }
 0xa06   :  { %10315 = vrcp.f32 %v1706_v24 }
 0xa07   :  { %10317 = vrcp.f32 %v1712_v30 }
 0xa08   :  { %v1709_v5 = vpop.xlane.xlu1 %1708  ;;  %v1724_v22 = vpop.xlane.xlu0 %1723 }
 0xa09   :  { %10319 = vrcp.f32 %v1709_v5 }
 0xa0c   :  { %v1718_v26 = vpop.xlane.xlu1 %1717  ;;  %v1727_v62 = vpop.xlane.xlu0 %1726 }
 0xa0d   :  { %10321 = vrcp.f32 %v1727_v62 }
 0xa0e   :  { %10323 = vrcp.f32 %v1718_v26 }
 0xa0f   :  { %10325 = vrcp.f32 %v1724_v22 }
 0xa10   :  { %v1721_v36 = vpop.xlane.xlu0 %1720  ;;  %v1967_v27 = vpop.permute.xlu1 %1966 }
 0xa11   :  { %10327 = vrcp.f32 %v1721_v36  ;;  %v1989_v62 = vsel %vm716_vm2, %v1967_v27, 0 }
 0xa12   :  { %v10314_v16 = vpop.eup %10313 }
 0xa13   :  { %v10316_v37 = vpop.eup %10315  ;;  %v1739_v14 = vmul.f32 %v10314_v16, %v10302_v52 }
 0xa14   :  { %v10318_v3 = vpop.eup %10317  ;;  %v1969_v29 = vpop.permute.xlu0 %1968  ;;  %v1736_v0 = vmul.f32 %v10316_v37, %v10300_v1 }
 0xa15   :  { %9810 = vmatprep.subr.msk.bf16.mxu0 %vm716_vm2, %v1969_v29  ;;  %v1738_v17 = vmul.f32 %v10318_v3, %v10298_v59  ;;  %v1992_v4 = vsel %vm716_vm2, %v1969_v29, 0  ;;  %v1965_v36 = vpop.permute.xlu1 %1964 }
 0xa16   :  { %v10320_v11 = vpop.eup %10319 }
 0xa17   :  { %v1737_v51 = vmul.f32 %v10320_v11, %v10304_v35  ;;  %v1745_v56 = vpack.c.bf16 %v1739_v14, %v1738_v17 }
 0xa19   :  { %v1744_v6 = vpack.c.bf16 %v1737_v51, %v1736_v0 }
 0xa1a   :  { %v10322_v61 = vpop.eup %10321 }
 0xa1b   :  { %9218 = vmatprep.mubr.msk.bf16.mxu0 %vm273_vm1, %v1744_v6  ;;  %v10324_v30 = vpop.eup %10323  ;;  %v1743_v5 = vmul.f32 %v10322_v61, %v10308_v42  ;;  %v1986_v42 = vsel %vm716_vm2, %v1965_v36, 0 }
 0xa1c   :  { %9219 = vmatmul.mubr.msk.bf16.vlgmr.msra.gmra.mxu0 %vm273_vm1, %v1745_v56  ;;  %v10326_v24 = vpop.eup %10325  ;;  %v1740_v1 = vmul.f32 %v10324_v30, %v10310_v39  ;;  %v1963_v39 = vpop.permute.xlu1 %1962 }
 0xa1d   :  { %9227 = vmatpush3.bf16.xpose.msra.mxu0 %v1992_v4  ;;  %v1742_v59 = vmul.f32 %v10326_v24, %v11943_v25  ;;  %v1983_v25 = vsel %vm716_vm2, %v1963_v39, 0 }
 0xa1e   :  { %9811 = vmatprep.subr.msk.bf16.mxu0 %vm716_vm2, %v1967_v27  ;;  %v10328_v52 = vpop.eup %10327 }
 0xa1f   :  { %v1741_v35 = vmul.f32 %v10328_v52, %v10312_v31  ;;  %v1747_v26 = vpack.c.bf16 %v1743_v5, %v1742_v59 }
 0xa21   :  { %v1746_v22 = vpack.c.bf16 %v1741_v35, %v1740_v1 }
 0xa23   :  { %9222 = vmatprep.mubr.msk.bf16.mxu0 %vm273_vm1, %v1746_v22 }
 0xa24   :  { %9223 = vmatmul.mubr.msk.bf16.gmra.mxu0 %vm273_vm1, %v1747_v26 }
 0xa25   :  { %9229 = vmatpush3.bf16.xpose.msra.mxu0 %v1989_v62  ;;  %9234 = vmatprep.mubr.msk.bf16.mxu0 %vm716_vm2, %v11522_v20 }
 0xa26   :  { %9812 = vmatprep.subr.msk.bf16.mxu0 %vm716_vm2, %v1965_v36 }
 0xa2d   :  { %9231 = vmatpush3.bf16.xpose.msra.mxu0 %v1986_v42 }
 0xa2e   :  { %9813 = vmatprep.subr.msk.bf16.mxu0 %vm716_vm2, %v1963_v39 }
 0xa35   :  { %9233 = vmatpush3.bf16.xpose.msra.mxu0 %v1983_v25 }
 0xa3c   :  { %9235 = vmatmul.mubr.msk.bf16.vlgmr.msra.gmra.mxu0 %vm716_vm2, %v11550_v50 }
 0xa3d   :  { %9238 = vmatprep.mubr.msk.bf16.mxu0 %vm716_vm2, %v11569_v15 }
 0xa44   :  { %9239 = vmatmul.mubr.msk.bf16.gmra.mxu0 %vm716_vm2, %v11576_v53 }
 0xadc   :  { %v11980_v31 = vpop.f32.mrf.mxu0 }
 0xade   :  { %v11982_v16 = vpop.f32.mrf.mxu0 }
 0xae0   :  { %v11984_v37 = vpop.f32.mrf.mxu0 }
 0xae2   :  { %v11988_v29 = vpop.f32.mrf.mxu0 }
 0xae4   :  { %v11990_v11 = vpop.f32.mrf.mxu0 }
 0xae6   :  { %v11992_v14 = vpop.f32.mrf.mxu0 }
 0xae8   :  { %v11994_v0 = vpop.f32.mrf.mxu0 }
 0xaea   :  { %v11998_v17 = vpop.f32.mrf.mxu0 }
 0xafc   :  { %v9236_v6 = vpop.f32.mrf.mxu0 }
 0xafd   :  { %v2065_v27 = vsel %vm273_vm1, %v9236_v6, -inf }
 0xafe   :  { %v2028_v56 = vpop.f32.mrf.mxu0 }
 0xaff   :  { %v2059_v61 = vsel %vm273_vm1, %v2028_v56, -inf }
 0xb00   :  { %2060 = vmax.xlane.f32.xlu0 %v2059_v61  ;;  %v9237_v4 = vpop.f32.mrf.mxu0 }
 0xb01   :  { %v2068_v1 = vsel %vm273_vm1, %v9237_v4, -inf }
 0xb02   :  { %v2031_v30 = vpop.f32.mrf.mxu0 }
 0xb03   :  { %v2062_v24 = vsel %vm273_vm1, %v2031_v30, -inf }
 0xb04   :  { %2066 = vmax.xlane.f32.xlu0 %v2065_v27  ;;  %2063 = vmax.xlane.f32.xlu1 %v2062_v24  ;;  %v9240_v52 = vpop.f32.mrf.mxu0 }
 0xb05   :  { %v2077_v62 = vsel %vm273_vm1, %v9240_v52, -inf }
 0xb06   :  { %v2044_v5 = vpop.f32.mrf.mxu0 }
 0xb07   :  { %v2071_v22 = vsel %vm273_vm1, %v2044_v5, -inf }
 0xb08   :  { %2069 = vmax.xlane.f32.xlu0 %v2068_v1  ;;  %v9241_v35 = vpop.f32.mrf.mxu0 }
 0xb09   :  { %v2080_v36 = vsel %vm273_vm1, %v9241_v35, -inf }
 0xb0a   :  { %v2047_v59 = vpop.f32.mrf.mxu0 }
 0xb0b   :  { %v2074_v26 = vsel %vm273_vm1, %v2047_v59, -inf }
 0xb0c   :  { %2072 = vmax.xlane.f32.xlu0 %v2071_v22  ;;  %2075 = vmax.xlane.f32.xlu1 %v2074_v26 }
 0xb10   :  { %2078 = vmax.xlane.f32.xlu0 %v2077_v62  ;;  %2081 = vmax.xlane.f32.xlu1 %v2080_v36 }
 0xb89   :  { %v2061_v42 = vpop.xlane.xlu0 %2060 }
 0xb8a   :  { %v2083_v39 = vsub.f32 %v2028_v56, %v2061_v42 }
 0xb8c   :  { %v2091_v24 = vmul.f32 1.442695, %v2083_v39 }
 0xb8d   :  { %v2067_v25 = vpop.xlane.xlu0 %2066  ;;  %v2064_v61 = vpop.xlane.xlu1 %2063 }
 0xb8e   :  { %v2085_v27 = vsub.f32 %v9236_v6, %v2067_v25  ;;  %v2084_v51 = vsub.f32 %v2031_v30, %v2064_v61 }
 0xb90   :  { %v2095_v1 = vmul.f32 1.442695, %v2085_v27  ;;  %v2093_v22 = vmul.f32 1.442695, %v2084_v51 }
 0xb91   :  { %v2070_v60 = vpop.xlane.xlu0 %2069 }
 0xb92   :  { %10329 = vpow2.f32 %v2095_v1  ;;  %v2086_v3 = vsub.f32 %v9237_v4, %v2070_v60 }
 0xb93   :  { %10331 = vpow2.f32 %v2091_v24 }
 0xb94   :  { %v2097_v26 = vmul.f32 1.442695, %v2086_v3 }
 0xb95   :  { %v2073_v57 = vpop.xlane.xlu0 %2072 }
 0xb96   :  { %10333 = vpow2.f32 %v2097_v26  ;;  %v2087_v33 = vsub.f32 %v2044_v5, %v2073_v57  ;;  %v2076_v5 = vpop.xlane.xlu1 %2075 }
 0xb97   :  { %10335 = vpow2.f32 %v2093_v22  ;;  %v2088_v27 = vsub.f32 %v2047_v59, %v2076_v5 }
 0xb98   :  { %v2099_v7 = vmul.f32 1.442695, %v2087_v33 }
 0xb99   :  { %v2079_v62 = vpop.xlane.xlu0 %2078  ;;  %v2101_v1 = vmul.f32 1.442695, %v2088_v27 }
 0xb9a   :  { %v2089_v36 = vsub.f32 %v9240_v52, %v2079_v62  ;;  %v2082_v25 = vpop.xlane.xlu1 %2081 }
 0xb9b   :  { %v2090_v61 = vsub.f32 %v9241_v35, %v2082_v25 }
 0xb9c   :  { %v2103_v56 = vmul.f32 1.442695, %v2089_v36 }
 0xb9d   :  { %v2105_v24 = vmul.f32 1.442695, %v2090_v61 }
 0xb9e   :  { %10337 = vpow2.f32 %v2103_v56 }
 0xb9f   :  { %v10330_v42 = vpop.eup %10329  ;;  %10339 = vpow2.f32 %v2099_v7 }
 0xba0   :  { %v2113_v6 = vsel %vm273_vm1, %v10330_v42, 0.0  ;;  %v10332_v30 = vpop.eup %10331  ;;  %10341 = vpow2.f32 %v2105_v24 }
 0xba1   :  { %2114 = vadd.xlane.f32.xlu0 %v2113_v6  ;;  %v2107_v60 = vsel %vm273_vm1, %v10332_v30, 0.0  ;;  %10343 = vpow2.f32 %v2101_v1 }
 0xba3   :  { %v10334_v39 = vpop.eup %10333 }
 0xba4   :  { %v2116_v3 = vsel %vm273_vm1, %v10334_v39, 0.0  ;;  %v10336_v51 = vpop.eup %10335 }
 0xba5   :  { %2108 = vadd.xlane.f32.xlu0 %v2107_v60  ;;  %2117 = vadd.xlane.f32.xlu1 %v2116_v3  ;;  %v2110_v57 = vsel %vm273_vm1, %v10336_v51, 0.0 }
 0xba9   :  { %2111 = vadd.xlane.f32.xlu1 %v2110_v57 }
 0xbab   :  { %v12012_v33 = vpop.eup %10337 }
 0xbac   :  { %v2125_v7 = vsel %vm273_vm1, %v12012_v33, 0.0  ;;  %v12016_v4 = vpop.eup %10339 }
 0xbad   :  { %2126 = vadd.xlane.f32.xlu0 %v2125_v7  ;;  %v2119_v52 = vsel %vm273_vm1, %v12016_v4, 0.0  ;;  %v10342_v22 = vpop.eup %10341 }
 0xbae   :  { %v2128_v26 = vsel %vm273_vm1, %v10342_v22, 0.0  ;;  %v10344_v62 = vpop.eup %10343 }
 0xbaf   :  { %v2122_v36 = vsel %vm273_vm1, %v10344_v62, 0.0 }
 0xbb1   :  { %2120 = vadd.xlane.f32.xlu0 %v2119_v52 }
 0xbba   :  { %2240 = vrot.lane.b32.xlu1 %v11569_v15, %s10971_s5 }
 0xbbe   :  { %2238 = vrot.lane.b32.xlu1 %v11550_v50, %s10971_s5 }
 0xbc7   :  { %2242 = vrot.lane.b32.xlu0 %v11576_v53, %s10971_s5 }
 0xbcb   :  { %2228 = vrot.lane.b32.xlu0 %v11522_v20, %s10972_s24 }
 0xbcf   :  { %2232 = vrot.lane.b32.xlu0 %v11569_v15, %s10972_s24 }
 0xbe2   :  { %2129 = vadd.xlane.f32.xlu1 %v2128_v26 }
 0xbe6   :  { %2123 = vadd.xlane.f32.xlu1 %v2122_v36 }
 0xbf7   :  { %2236 = vrot.lane.b32.xlu1 %v11522_v20, %s10971_s5 }
 0xbfb   :  { %2230 = vrot.lane.b32.xlu1 %v11550_v50, %s10972_s24 }
 0xbff   :  { %2234 = vrot.lane.b32.xlu1 %v11576_v53, %s10972_s24 }
 0xc2a   :  { %v2115_v35 = vpop.xlane.xlu0 %2114 }
 0xc2e   :  { %v2109_v59 = vpop.xlane.xlu0 %2108  ;;  %v2118_v56 = vpop.xlane.xlu1 %2117 }
 0xc2f   :  { %10345 = vrcp.f32 %v2118_v56 }
 0xc30   :  { %10347 = vrcp.f32 %v2109_v59 }
 0xc31   :  { %10349 = vrcp.f32 %v2115_v35 }
 0xc32   :  { %v2112_v6 = vpop.xlane.xlu1 %2111 }
 0xc33   :  { %10351 = vrcp.f32 %v2112_v6 }
 0xc36   :  { %v2127_v60 = vpop.xlane.xlu0 %2126  ;;  %v2241_v59 = vpop.permute.xlu1 %2240 }
 0xc37   :  { %v2263_v56 = vsel %vm716_vm2, %v2241_v59, 0 }
 0xc3a   :  { %v2121_v3 = vpop.xlane.xlu0 %2120  ;;  %v2239_v6 = vpop.permute.xlu1 %2238 }
 0xc3c   :  { %v10346_v57 = vpop.eup %10345 }
 0xc3d   :  { %v10348_v7 = vpop.eup %10347  ;;  %v2142_v61 = vmul.f32 %v10346_v57, %v10334_v39 }
 0xc3e   :  { %v2243_v52 = vpop.permute.xlu0 %2242  ;;  %v10350_v5 = vpop.eup %10349  ;;  %v2139_v27 = vmul.f32 %v10348_v7, %v10332_v30 }
 0xc3f   :  { %9814 = vmatprep.subr.msk.bf16.mxu1 %vm716_vm2, %v2243_v52  ;;  %v2141_v1 = vmul.f32 %v10350_v5, %v10330_v42  ;;  %v2266_v35 = vsel %vm716_vm2, %v2243_v52, 0  ;;  %v2260_v42 = vsel %vm716_vm2, %v2239_v6, 0 }
 0xc40   :  { %v10352_v25 = vpop.eup %10351 }
 0xc41   :  { %v2140_v24 = vmul.f32 %v10352_v25, %v10336_v51  ;;  %v2148_v36 = vpack.c.bf16 %v2142_v61, %v2141_v1 }
 0xc43   :  { %v2147_v26 = vpack.c.bf16 %v2140_v24, %v2139_v27 }
 0xc45   :  { %9250 = vmatprep.mubr.msk.bf16.mxu1 %vm273_vm1, %v2147_v26  ;;  %v2229_v26 = vpop.permute.xlu0 %2228 }
 0xc46   :  { %9251 = vmatmul.mubr.msk.bf16.vlgmr.msra.gmra.mxu1 %vm273_vm1, %v2148_v36 }
 0xc47   :  { %9259 = vmatpush3.bf16.xpose.msra.mxu1 %v2266_v35 }
 0xc48   :  { %9815 = vmatprep.subr.msk.bf16.mxu1 %vm716_vm2, %v2241_v59 }
 0xc49   :  { %v2233_v35 = vpop.permute.xlu0 %2232 }
 0xc4f   :  { %9261 = vmatpush3.bf16.xpose.msra.mxu1 %v2263_v56 }
 0xc50   :  { %9816 = vmatprep.subr.msk.bf16.mxu1 %vm716_vm2, %v2239_v6 }
 0xc57   :  { %9263 = vmatpush3.bf16.xpose.msra.mxu1 %v2260_v42 }
 0xc6b   :  { %v2130_v30 = vpop.xlane.xlu1 %2129 }
 0xc6c   :  { %10353 = vrcp.f32 %v2130_v30 }
 0xc6d   :  { %10355 = vrcp.f32 %v2121_v3 }
 0xc6e   :  { %10357 = vrcp.f32 %v2127_v60 }
 0xc6f   :  { %v2124_v39 = vpop.xlane.xlu1 %2123 }
 0xc70   :  { %10359 = vrcp.f32 %v2124_v39 }
 0xc73   :  { %v2237_v51 = vpop.permute.xlu1 %2236 }
 0xc74   :  { %9817 = vmatprep.subr.msk.bf16.mxu1 %vm716_vm2, %v2237_v51  ;;  %v2257_v57 = vsel %vm716_vm2, %v2237_v51, 0 }
 0xc75   :  { %9265 = vmatpush3.bf16.xpose.msra.mxu1 %v2257_v57 }
 0xc77   :  { %v2231_v36 = vpop.permute.xlu1 %2230 }
 0xc79   :  { %v10354_v7 = vpop.eup %10353 }
 0xc7a   :  { %v10356_v52 = vpop.eup %10355  ;;  %v2146_v61 = vmul.f32 %v10354_v7, %v10342_v22 }
 0xc7b   :  { %v10358_v5 = vpop.eup %10357  ;;  %v2143_v27 = vmul.f32 %v10356_v52, %v12016_v4  ;;  %v2235_v22 = vpop.permute.xlu1 %2234 }
 0xc7c   :  { %v2145_v1 = vmul.f32 %v10358_v5, %v12012_v33 }
 0xc7d   :  { %v10360_v25 = vpop.eup %10359 }
 0xc7e   :  { %v2144_v24 = vmul.f32 %v10360_v25, %v10344_v62  ;;  %v2150_v60 = vpack.c.bf16 %v2146_v61, %v2145_v1 }
 0xc80   :  { %v2149_v3 = vpack.c.bf16 %v2144_v24, %v2143_v27 }
 0xc82   :  { %9254 = vmatprep.mubr.msk.bf16.mxu1 %vm273_vm1, %v2149_v3 }
 0xc83   :  { %9255 = vmatmul.mubr.msk.bf16.gmra.mxu1 %vm273_vm1, %v2150_v60 }
 0xc84   :  { %9266 = vmatprep.mubr.msk.bf16.mxu1 %vm716_vm2, %v2229_v26 }
 0xc8b   :  { %9267 = vmatmul.mubr.msk.bf16.vlgmr.msra.gmra.mxu1 %vm716_vm2, %v2231_v36 }
 0xc8c   :  { %9270 = vmatprep.mubr.msk.bf16.mxu1 %vm716_vm2, %v2233_v35 }
 0xc93   :  { %9271 = vmatmul.mubr.msk.bf16.gmra.mxu1 %vm716_vm2, %v2235_v22 }
 0xd06   :  { %v12056_v4 = vpop.f32.mrf.mxu1 }
 0xd07   :  { %14902 = vst [vmem:[#allocation25_spill] sm:$0xff] %v12056_v4 }
 0xd08   :  { %v12058_v33 = vpop.f32.mrf.mxu1 }
 0xd09   :  { %14903 = vst [vmem:[#allocation26_spill] sm:$0xff] %v12058_v33 }
 0xd0a   :  { %v12060_v62 = vpop.f32.mrf.mxu1 }
 0xd0b   :  { %14904 = vst [vmem:[#allocation27_spill] sm:$0xff] %v12060_v62 }
 0xd0c   :  { %v12062_v59 = vpop.f32.mrf.mxu1 }
 0xd0d   :  { %14905 = vst [vmem:[#allocation28_spill] sm:$0xff] %v12062_v59 }
 0xd43   :  { %v12064_v56 = vpop.f32.mrf.mxu1 }
 0xd44   :  { %14906 = vst [vmem:[#allocation29_spill] sm:$0xff] %v12064_v56 }
 0xd45   :  { %v12066_v6 = vpop.f32.mrf.mxu1 }
 0xd46   :  { %14907 = vst [vmem:[#allocation30_spill] sm:$0xff] %v12066_v6 }
 0xd47   :  { %v12068_v42 = vpop.f32.mrf.mxu1 }
 0xd48   :  { %14908 = vst [vmem:[#allocation31_spill] sm:$0xff] %v12068_v42 }
 0xd49   :  { %v12070_v30 = vpop.f32.mrf.mxu1 }
 0xd4a   :  { %14909 = vst [vmem:[#allocation32_spill] sm:$0xff] %v12070_v30 }
 0xd4b   :  { %v9268_v39 = vpop.f32.mrf.mxu1 }
 0xd4c   :  { %v2339_v5 = vsel %vm273_vm1, %v9268_v39, -inf }
 0xd4d   :  { %v2302_v51 = vpop.f32.mrf.mxu1 }
 0xd4e   :  { %v2333_v57 = vsel %vm273_vm1, %v2302_v51, -inf }
 0xd4f   :  { %2334 = vmax.xlane.f32.xlu0 %v2333_v57  ;;  %v9269_v7 = vpop.f32.mrf.mxu1 }
 0xd50   :  { %v2342_v24 = vsel %vm273_vm1, %v9269_v7, -inf }
 0xd51   :  { %v2305_v52 = vpop.f32.mrf.mxu1 }
 0xd52   :  { %v2336_v25 = vsel %vm273_vm1, %v2305_v52, -inf }
 0xd53   :  { %2340 = vmax.xlane.f32.xlu0 %v2339_v5  ;;  %2337 = vmax.xlane.f32.xlu1 %v2336_v25  ;;  %v9272_v61 = vpop.f32.mrf.mxu1 }
 0xd54   :  { %v2351_v26 = vsel %vm273_vm1, %v9272_v61, -inf }
 0xd55   :  { %v2318_v27 = vpop.f32.mrf.mxu1 }
 0xd56   :  { %v2345_v35 = vsel %vm273_vm1, %v2318_v27, -inf }
 0xd57   :  { %2343 = vmax.xlane.f32.xlu0 %v2342_v24  ;;  %v9273_v1 = vpop.f32.mrf.mxu1 }
 0xd58   :  { %v2354_v3 = vsel %vm273_vm1, %v9273_v1, -inf }
 0xd59   :  { %2355 = vmax.xlane.f32.xlu1 %v2354_v3  ;;  %v2321_v60 = vpop.f32.mrf.mxu1 }
 0xd5a   :  { %v2348_v36 = vsel %vm273_vm1, %v2321_v60, -inf }
 0xd5b   :  { %2352 = vmax.xlane.f32.xlu0 %v2351_v26 }
 0xd5d   :  { %2349 = vmax.xlane.f32.xlu1 %v2348_v36 }
 0xd5f   :  { %2346 = vmax.xlane.f32.xlu0 %v2345_v35 }
 0xd6e   :  { %2433 = vrot.lane.b32.xlu1 %v11882_v46, %s10972_s24 }
 0xd72   :  { %2431 = vrot.lane.b32.xlu1 %v11892_v54, %s10972_s24 }
 0xd75   :  { %2435 = vrot.lane.b32.xlu0 %v11872_v23, %s10972_s24 }
 0xd76   :  { %2429 = vrot.lane.b32.xlu1 %v11898_v10, %s10972_s24 }
 0xdd8   :  { %v2335_v22 = vpop.xlane.xlu0 %2334 }
 0xdd9   :  { %v2357_v57 = vsub.f32 %v2302_v51, %v2335_v22 }
 0xddb   :  { %v2365_v3 = vmul.f32 1.442695, %v2357_v57 }
 0xddc   :  { %v2341_v5 = vpop.xlane.xlu0 %2340  ;;  %v2338_v25 = vpop.xlane.xlu1 %2337 }
 0xddd   :  { %v2359_v24 = vsub.f32 %v9268_v39, %v2341_v5  ;;  %v2358_v36 = vsub.f32 %v2305_v52, %v2338_v25 }
 0xddf   :  { %v2369_v26 = vmul.f32 1.442695, %v2359_v24  ;;  %v2367_v56 = vmul.f32 1.442695, %v2358_v36 }
 0xde0   :  { %v2344_v35 = vpop.xlane.xlu0 %2343 }
 0xde1   :  { %10361 = vpow2.f32 %v2369_v26  ;;  %v2360_v6 = vsub.f32 %v9269_v7, %v2344_v35 }
 0xde2   :  { %v2356_v30 = vpop.xlane.xlu1 %2355  ;;  %10363 = vpow2.f32 %v2365_v3 }
 0xde3   :  { %v2371_v42 = vmul.f32 1.442695, %v2360_v6  ;;  %v2364_v4 = vsub.f32 %v9273_v1, %v2356_v30 }
 0xde4   :  { %v2353_v62 = vpop.xlane.xlu0 %2352 }
 0xde5   :  { %10365 = vpow2.f32 %v2371_v42  ;;  %v2363_v33 = vsub.f32 %v9272_v61, %v2353_v62  ;;  %v2379_v51 = vmul.f32 1.442695, %v2364_v4 }
 0xde6   :  { %v2350_v59 = vpop.xlane.xlu1 %2349  ;;  %10367 = vpow2.f32 %v2367_v56 }
 0xde7   :  { %v2377_v22 = vmul.f32 1.442695, %v2363_v33  ;;  %v2362_v41 = vsub.f32 %v2321_v60, %v2350_v59 }
 0xde8   :  { %v2347_v39 = vpop.xlane.xlu0 %2346 }
 0xde9   :  { %10369 = vpow2.f32 %v2377_v22  ;;  %v2361_v57 = vsub.f32 %v2318_v27, %v2347_v39  ;;  %v2375_v5 = vmul.f32 1.442695, %v2362_v41 }
 0xdea   :  { %v2434_v52 = vpop.permute.xlu1 %2433  ;;  %10371 = vpow2.f32 %v2379_v51 }
 0xdeb   :  { %v2373_v7 = vmul.f32 1.442695, %v2361_v57 }
 0xdec   :  { %v2436_v25 = vpop.permute.xlu0 %2435 }
 0xded   :  { %10373 = vpow2.f32 %v2373_v7  ;;  %9274 = vmatprep.subr.bf16.mxu0 %v2436_v25 }
 0xdee   :  { %v12088_v6 = vpop.eup %10361  ;;  %9275 = vmatpush3.bf16.msra.mxu0 %v2436_v25  ;;  %10375 = vpow2.f32 %v2375_v5  ;;  %v2432_v62 = vpop.permute.xlu1 %2431 }
 0xdef   :  { %9276 = vmatprep.subr.bf16.mxu0 %v2434_v52  ;;  %v2387_v4 = vsel %vm273_vm1, %v12088_v6, 0.0  ;;  %v10364_v33 = vpop.eup %10363 }
 0xdf0   :  { %2388 = vadd.xlane.f32.xlu0 %v2387_v4  ;;  %v2381_v41 = vsel %vm273_vm1, %v10364_v33, 0.0 }
 0xdf2   :  { %v10366_v59 = vpop.eup %10365  ;;  %9277 = vmatpush3.bf16.msra.mxu0 %v2434_v52  ;;  %v2430_v61 = vpop.permute.xlu1 %2429 }
 0xdf3   :  { %9278 = vmatprep.subr.bf16.mxu0 %v2432_v62  ;;  %v2390_v56 = vsel %vm273_vm1, %v10366_v59, 0.0  ;;  %v10368_v42 = vpop.eup %10367 }
 0xdf4   :  { %2382 = vadd.xlane.f32.xlu0 %v2381_v41  ;;  %2391 = vadd.xlane.f32.xlu1 %v2390_v56  ;;  %v2384_v1 = vsel %vm273_vm1, %v10368_v42, 0.0 }
 0xdf6   :  { %v12094_v30 = vpop.eup %10369  ;;  %9279 = vmatpush3.bf16.msra.mxu0 %v2432_v62 }
 0xdf7   :  { %9280 = vmatprep.subr.bf16.mxu0 %v2430_v61  ;;  %v2399_v27 = vsel %vm273_vm1, %v12094_v30, 0.0  ;;  %v10372_v60 = vpop.eup %10371 }
 0xdf8   :  { %2400 = vadd.xlane.f32.xlu0 %v2399_v27  ;;  %2385 = vadd.xlane.f32.xlu1 %v2384_v1  ;;  %v2402_v26 = vsel %vm273_vm1, %v10372_v60, 0.0 }
 0xdfa   :  { %v10374_v24 = vpop.eup %10373  ;;  %9281 = vmatpush3.bf16.msra.mxu0 %v2430_v61 }
 0xdfb   :  { %v2393_v3 = vsel %vm273_vm1, %v10374_v24, 0.0  ;;  %v10376_v36 = vpop.eup %10375 }
 0xdfc   :  { %2394 = vadd.xlane.f32.xlu1 %v2393_v3  ;;  %2403 = vadd.xlane.f32.xlu0 %v2402_v26  ;;  %v2396_v35 = vsel %vm273_vm1, %v10376_v36, 0.0 }
 0xe00   :  { %2397 = vadd.xlane.f32.xlu0 %v2396_v35 }
 0xe0d   :  { %2530 = vrot.lane.b32.xlu1 %v11569_v15, %s10973_s6 }
 0xe11   :  { %2528 = vrot.lane.b32.xlu1 %v11550_v50, %s10973_s6 }
 0xe15   :  { %2526 = vrot.lane.b32.xlu1 %v11522_v20, %s10973_s6 }
 0xe16   :  { %2532 = vrot.lane.b32.xlu0 %v11576_v53, %s10973_s6 }
 0xe19   :  { %2520 = vrot.lane.b32.xlu1 %v11550_v50, %s10974_s25 }
 0xe1a   :  { %2518 = vrot.lane.b32.xlu0 %v11522_v20, %s10974_s25 }
 0xe1d   :  { %2524 = vrot.lane.b32.xlu1 %v11576_v53, %s10974_s25 }
 0xe1e   :  { %2522 = vrot.lane.b32.xlu0 %v11569_v15, %s10974_s25 }
 0xe79   :  { %v2389_v51 = vpop.xlane.xlu0 %2388 }
 0xe7d   :  { %v2383_v22 = vpop.xlane.xlu0 %2382  ;;  %v2392_v39 = vpop.xlane.xlu1 %2391 }
 0xe7e   :  { %10377 = vrcp.f32 %v2392_v39 }
 0xe7f   :  { %10379 = vrcp.f32 %v2383_v22 }
 0xe80   :  { %10381 = vrcp.f32 %v2389_v51 }
 0xe81   :  { %v2401_v57 = vpop.xlane.xlu0 %2400  ;;  %v2386_v52 = vpop.xlane.xlu1 %2385 }
 0xe82   :  { %10383 = vrcp.f32 %v2386_v52 }
 0xe85   :  { %v2404_v5 = vpop.xlane.xlu0 %2403  ;;  %v2395_v7 = vpop.xlane.xlu1 %2394 }
 0xe86   :  { %10385 = vrcp.f32 %v2404_v5 }
 0xe87   :  { %10387 = vrcp.f32 %v2395_v7 }
 0xe88   :  { %10389 = vrcp.f32 %v2401_v57 }
 0xe89   :  { %v2398_v25 = vpop.xlane.xlu0 %2397  ;;  %v2531_v7 = vpop.permute.xlu1 %2530 }
 0xe8a   :  { %10391 = vrcp.f32 %v2398_v25 }
 0xe8b   :  { %v10378_v4 = vpop.eup %10377 }
 0xe8c   :  { %v10380_v41 = vpop.eup %10379  ;;  %v2416_v27 = vmul.f32 %v10378_v4, %v10366_v59 }
 0xe8d   :  { %v2533_v62 = vpop.permute.xlu0 %2532  ;;  %v10382_v56 = vpop.eup %10381  ;;  %v2413_v1 = vmul.f32 %v10380_v41, %v10364_v33 }
 0xe8e   :  { %9818 = vmatprep.subr.msk.bf16.mxu0 %vm716_vm2, %v2533_v62  ;;  %v2415_v26 = vmul.f32 %v10382_v56, %v12088_v6  ;;  %v2556_v52 = vsel %vm716_vm2, %v2533_v62, 0  ;;  %v2553_v56 = vsel %vm716_vm2, %v2531_v7, 0  ;;  %v2529_v62 = vpop.permute.xlu1 %2528 }
 0xe8f   :  { %v10384_v61 = vpop.eup %10383 }
 0xe90   :  { %v2414_v3 = vmul.f32 %v10384_v61, %v10368_v42  ;;  %v2422_v22 = vpack.c.bf16 %v2416_v27, %v2415_v26 }
 0xe91   :  { %v2519_v41 = vpop.permute.xlu0 %2518 }
 0xe92   :  { %v2421_v35 = vpack.c.bf16 %v2414_v3, %v2413_v1 }
 0xe93   :  { %v10386_v51 = vpop.eup %10385 }
 0xe94   :  { %v10388_v39 = vpop.eup %10387  ;;  %9282 = vmatprep.mubr.msk.bf16.mxu0 %vm273_vm1, %v2421_v35  ;;  %v2420_v42 = vmul.f32 %v10386_v51, %v10372_v60  ;;  %v2527_v60 = vpop.permute.xlu1 %2526 }
 0xe95   :  { %v10390_v57 = vpop.eup %10389  ;;  %9283 = vmatmul.mubr.msk.bf16.vlgmr.msra.gmra.mxu0 %vm273_vm1, %v2422_v22  ;;  %v2417_v33 = vmul.f32 %v10388_v39, %v10374_v24  ;;  %v2550_v24 = vsel %vm716_vm2, %v2529_v62, 0  ;;  %v2523_v61 = vpop.permute.xlu0 %2522 }
 0xe96   :  { %9291 = vmatpush3.bf16.xpose.msra.mxu0 %v2556_v52  ;;  %v2419_v25 = vmul.f32 %v10390_v57, %v12094_v30  ;;  %v2547_v30 = vsel %vm716_vm2, %v2527_v60, 0 }
 0xe97   :  { %v10392_v5 = vpop.eup %10391  ;;  %9819 = vmatprep.subr.msk.bf16.mxu0 %vm716_vm2, %v2531_v7 }
 0xe98   :  { %v2418_v59 = vmul.f32 %v10392_v5, %v10376_v36  ;;  %v2424_v4 = vpack.c.bf16 %v2420_v42, %v2419_v25  ;;  %v2521_v36 = vpop.permute.xlu1 %2520 }
 0xe9a   :  { %v2423_v6 = vpack.c.bf16 %v2418_v59, %v2417_v33 }
 0xe9c   :  { %9286 = vmatprep.mubr.msk.bf16.mxu0 %vm273_vm1, %v2423_v6  ;;  %v2525_v27 = vpop.permute.xlu1 %2524 }
 0xe9d   :  { %9287 = vmatmul.mubr.msk.bf16.gmra.mxu0 %vm273_vm1, %v2424_v4 }
 0xe9e   :  { %9293 = vmatpush3.bf16.xpose.msra.mxu0 %v2553_v56  ;;  %9298 = vmatprep.mubr.msk.bf16.mxu0 %vm716_vm2, %v2519_v41 }
 0xe9f   :  { %9820 = vmatprep.subr.msk.bf16.mxu0 %vm716_vm2, %v2529_v62 }
 0xea6   :  { %9295 = vmatpush3.bf16.xpose.msra.mxu0 %v2550_v24 }
 0xea7   :  { %9821 = vmatprep.subr.msk.bf16.mxu0 %vm716_vm2, %v2527_v60 }
 0xeae   :  { %9297 = vmatpush3.bf16.xpose.msra.mxu0 %v2547_v30 }
 0xeb5   :  { %9299 = vmatmul.mubr.msk.bf16.vlgmr.msra.gmra.mxu0 %vm716_vm2, %v2521_v36 }
 0xeb6   :  { %9302 = vmatprep.mubr.msk.bf16.mxu0 %vm716_vm2, %v2523_v61 }
 0xebd   :  { %9303 = vmatmul.mubr.msk.bf16.gmra.mxu0 %vm716_vm2, %v2525_v27 }
 0xf55   :  { %v12136_v1 = vpop.f32.mrf.mxu0 }
 0xf57   :  { %v12138_v3 = vpop.f32.mrf.mxu0 }
 0xf59   :  { %v12140_v26 = vpop.f32.mrf.mxu0 }
 0xf5b   :  { %v12144_v51 = vpop.f32.mrf.mxu0 }
 0xf5d   :  { %v12146_v22 = vpop.f32.mrf.mxu0 }
 0xf5e   :  { %14910 = vst [vmem:[#allocation33_spill] sm:$0xff] %v12146_v22 }
 0xf5f   :  { %v12148_v39 = vpop.f32.mrf.mxu0 }
 0xf60   :  { %14911 = vst [vmem:[#allocation34_spill] sm:$0xff] %v12148_v39 }
 0xf61   :  { %v12150_v57 = vpop.f32.mrf.mxu0 }
 0xf62   :  { %14912 = vst [vmem:[#allocation35_spill] sm:$0xff] %v12150_v57 }
 0xf63   :  { %v12154_v5 = vpop.f32.mrf.mxu0 }
 0xf64   :  { %14913 = vst [vmem:[#allocation36_spill] sm:$0xff] %v12154_v5 }
 0xf75   :  { %v9300_v7 = vpop.f32.mrf.mxu0 }
 0xf76   :  { %v2629_v25 = vsel %vm273_vm1, %v9300_v7, -inf }
 0xf77   :  { %v2592_v33 = vpop.f32.mrf.mxu0 }
 0xf78   :  { %v2623_v59 = vsel %vm273_vm1, %v2592_v33, -inf }
 0xf79   :  { %2624 = vmax.xlane.f32.xlu0 %v2623_v59  ;;  %v9301_v42 = vpop.f32.mrf.mxu0 }
 0xf7a   :  { %v2632_v62 = vsel %vm273_vm1, %v9301_v42, -inf }
 0xf7b   :  { %v2595_v6 = vpop.f32.mrf.mxu0 }
 0xf7c   :  { %v2626_v4 = vsel %vm273_vm1, %v2595_v6, -inf }
 0xf7d   :  { %2630 = vmax.xlane.f32.xlu0 %v2629_v25  ;;  %2627 = vmax.xlane.f32.xlu1 %v2626_v4  ;;  %v9304_v41 = vpop.f32.mrf.mxu0 }
 0xf7e   :  { %v2641_v36 = vsel %vm273_vm1, %v9304_v41, -inf }
 0xf7f   :  { %v2608_v56 = vpop.f32.mrf.mxu0 }
 0xf80   :  { %v2635_v27 = vsel %vm273_vm1, %v2608_v56, -inf }
 0xf81   :  { %2633 = vmax.xlane.f32.xlu0 %v2632_v62  ;;  %v9305_v24 = vpop.f32.mrf.mxu0 }
 0xf82   :  { %v2644_v60 = vsel %vm273_vm1, %v9305_v24, -inf }
 0xf83   :  { %2645 = vmax.xlane.f32.xlu1 %v2644_v60  ;;  %v2611_v30 = vpop.f32.mrf.mxu0 }
 0xf84   :  { %v2638_v61 = vsel %vm273_vm1, %v2611_v30, -inf }
 0xf85   :  { %2642 = vmax.xlane.f32.xlu0 %v2641_v36 }
 0xf87   :  { %2639 = vmax.xlane.f32.xlu1 %v2638_v61 }
 0xf89   :  { %2636 = vmax.xlane.f32.xlu0 %v2635_v27 }
 0xf98   :  { %2719 = vrot.lane.b32.xlu1 %v11882_v46, %s10974_s25 }
 0xf9c   :  { %2717 = vrot.lane.b32.xlu1 %v11892_v54, %s10974_s25 }
 0xf9f   :  { %2721 = vrot.lane.b32.xlu0 %v11872_v23, %s10974_s25 }
 0xfa0   :  { %2715 = vrot.lane.b32.xlu1 %v11898_v10, %s10974_s25 }
0x1002   :  { %v2625_v59 = vpop.xlane.xlu0 %2624 }
0x1003   :  { %v2647_v25 = vsub.f32 %v2592_v33, %v2625_v59 }
0x1005   :  { %v2655_v36 = vmul.f32 1.442695, %v2647_v25 }
0x1006   :  { %v2631_v4 = vpop.xlane.xlu0 %2630  ;;  %v2628_v62 = vpop.xlane.xlu1 %2627 }
0x1007   :  { %v2649_v60 = vsub.f32 %v9300_v7, %v2631_v4  ;;  %v2648_v27 = vsub.f32 %v2595_v6, %v2628_v62 }
0x1009   :  { %v2659_v61 = vmul.f32 1.442695, %v2649_v60  ;;  %v2657_v39 = vmul.f32 1.442695, %v2648_v27 }
0x100a   :  { %v2634_v52 = vpop.xlane.xlu0 %2633 }
0x100b   :  { %10393 = vpow2.f32 %v2659_v61  ;;  %v2650_v35 = vsub.f32 %v9301_v42, %v2634_v52 }
0x100c   :  { %v2646_v5 = vpop.xlane.xlu1 %2645  ;;  %10395 = vpow2.f32 %v2655_v36 }
0x100d   :  { %v2661_v22 = vmul.f32 1.442695, %v2650_v35  ;;  %v2654_v57 = vsub.f32 %v9305_v24, %v2646_v5 }
0x100e   :  { %v2643_v47 = vpop.xlane.xlu0 %2642 }
0x100f   :  { %10397 = vpow2.f32 %v2661_v22  ;;  %v2653_v48 = vsub.f32 %v9304_v41, %v2643_v47  ;;  %v2669_v33 = vmul.f32 1.442695, %v2654_v57 }
0x1010   :  { %v2640_v55 = vpop.xlane.xlu1 %2639  ;;  %10399 = vpow2.f32 %v2657_v39 }
0x1011   :  { %v2667_v59 = vmul.f32 1.442695, %v2653_v48  ;;  %v2652_v49 = vsub.f32 %v2611_v30, %v2640_v55 }
0x1012   :  { %v2637_v7 = vpop.xlane.xlu0 %2636 }
0x1013   :  { %10401 = vpow2.f32 %v2667_v59  ;;  %v2651_v25 = vsub.f32 %v2608_v56, %v2637_v7  ;;  %v2665_v4 = vmul.f32 1.442695, %v2652_v49 }
0x1014   :  { %v2720_v6 = vpop.permute.xlu1 %2719  ;;  %10403 = vpow2.f32 %v2669_v33 }
0x1015   :  { %v2663_v52 = vmul.f32 1.442695, %v2651_v25 }
0x1016   :  { %v2722_v42 = vpop.permute.xlu0 %2721 }
0x1017   :  { %10405 = vpow2.f32 %v2663_v52  ;;  %9306 = vmatprep.subr.bf16.mxu1 %v2722_v42 }
0x1018   :  { %v12172_v35 = vpop.eup %10393  ;;  %9307 = vmatpush3.bf16.msra.mxu1 %v2722_v42  ;;  %10407 = vpow2.f32 %v2665_v4  ;;  %v2718_v55 = vpop.permute.xlu1 %2717 }
0x1019   :  { %9308 = vmatprep.subr.bf16.mxu1 %v2720_v6  ;;  %v2677_v47 = vsel %vm273_vm1, %v12172_v35, 0.0  ;;  %v10396_v48 = vpop.eup %10395 }
0x101a   :  { %2678 = vadd.xlane.f32.xlu0 %v2677_v47  ;;  %v2671_v49 = vsel %vm273_vm1, %v10396_v48, 0.0 }
0x101c   :  { %v10398_v22 = vpop.eup %10397  ;;  %9309 = vmatpush3.bf16.msra.mxu1 %v2720_v6  ;;  %v2716_v41 = vpop.permute.xlu1 %2715 }
0x101d   :  { %9310 = vmatprep.subr.bf16.mxu1 %v2718_v55  ;;  %v2680_v39 = vsel %vm273_vm1, %v10398_v22, 0.0  ;;  %v10400_v57 = vpop.eup %10399 }
0x101e   :  { %2672 = vadd.xlane.f32.xlu0 %v2671_v49  ;;  %2681 = vadd.xlane.f32.xlu1 %v2680_v39  ;;  %v2674_v24 = vsel %vm273_vm1, %v10400_v57, 0.0 }
0x1020   :  { %v12178_v5 = vpop.eup %10401  ;;  %9311 = vmatpush3.bf16.msra.mxu1 %v2718_v55 }
0x1021   :  { %9312 = vmatprep.subr.bf16.mxu1 %v2716_v41  ;;  %v2689_v56 = vsel %vm273_vm1, %v12178_v5, 0.0  ;;  %v10404_v30 = vpop.eup %10403 }
0x1022   :  { %2690 = vadd.xlane.f32.xlu0 %v2689_v56  ;;  %2675 = vadd.xlane.f32.xlu1 %v2674_v24  ;;  %v2692_v36 = vsel %vm273_vm1, %v10404_v30, 0.0 }
0x1024   :  { %v10406_v62 = vpop.eup %10405  ;;  %9313 = vmatpush3.bf16.msra.mxu1 %v2716_v41 }
0x1025   :  { %v2683_v60 = vsel %vm273_vm1, %v10406_v62, 0.0  ;;  %v10408_v61 = vpop.eup %10407 }
0x1026   :  { %2684 = vadd.xlane.f32.xlu1 %v2683_v60  ;;  %2693 = vadd.xlane.f32.xlu0 %v2692_v36  ;;  %v2686_v27 = vsel %vm273_vm1, %v10408_v61, 0.0 }
0x102a   :  { %2687 = vadd.xlane.f32.xlu0 %v2686_v27 }
0x1037   :  { %2816 = vrot.lane.b32.xlu1 %v11569_v15, %s10975_s26 }
0x103b   :  { %2814 = vrot.lane.b32.xlu1 %v11550_v50, %s10975_s26 }
0x103f   :  { %2812 = vrot.lane.b32.xlu1 %v11522_v20, %s10975_s26 }
0x1040   :  { %2818 = vrot.lane.b32.xlu0 %v11576_v53, %s10975_s26 }
0x1043   :  { %2806 = vrot.lane.b32.xlu1 %v11550_v50, %s10976_s3 }
0x1044   :  { %2804 = vrot.lane.b32.xlu0 %v11522_v20, %s10976_s3 }
0x1047   :  { %2810 = vrot.lane.b32.xlu1 %v11576_v53, %s10976_s3 }
0x1048   :  { %2808 = vrot.lane.b32.xlu0 %v11569_v15, %s10976_s3 }
0x10a3   :  { %v2679_v33 = vpop.xlane.xlu0 %2678 }
0x10a7   :  { %v2673_v59 = vpop.xlane.xlu0 %2672  ;;  %v2682_v7 = vpop.xlane.xlu1 %2681 }
0x10a8   :  { %10409 = vrcp.f32 %v2682_v7 }
0x10a9   :  { %10411 = vrcp.f32 %v2673_v59 }
0x10aa   :  { %10413 = vrcp.f32 %v2679_v33 }
0x10ab   :  { %v2691_v25 = vpop.xlane.xlu0 %2690  ;;  %v2676_v6 = vpop.xlane.xlu1 %2675 }
0x10ac   :  { %10415 = vrcp.f32 %v2676_v6 }
0x10af   :  { %v2694_v4 = vpop.xlane.xlu0 %2693  ;;  %v2685_v50 = vpop.xlane.xlu1 %2684 }
0x10b0   :  { %10417 = vrcp.f32 %v2694_v4 }
0x10b1   :  { %10419 = vrcp.f32 %v2685_v50 }
0x10b2   :  { %10421 = vrcp.f32 %v2691_v25 }
0x10b3   :  { %v2688_v20 = vpop.xlane.xlu0 %2687  ;;  %v2817_v7 = vpop.permute.xlu1 %2816 }
0x10b4   :  { %10423 = vrcp.f32 %v2688_v20  ;;  %v2839_v50 = vsel %vm716_vm2, %v2817_v7, 0 }
0x10b5   :  { %v10410_v53 = vpop.eup %10409 }
0x10b6   :  { %v10412_v42 = vpop.eup %10411  ;;  %v2706_v55 = vmul.f32 %v10410_v53, %v10398_v22 }
0x10b7   :  { %v2819_v52 = vpop.permute.xlu0 %2818  ;;  %v10414_v15 = vpop.eup %10413  ;;  %v2703_v49 = vmul.f32 %v10412_v42, %v10396_v48 }
0x10b8   :  { %9822 = vmatprep.subr.msk.bf16.mxu1 %vm716_vm2, %v2819_v52  ;;  %v2705_v41 = vmul.f32 %v10414_v15, %v12172_v35  ;;  %v2842_v33 = vsel %vm716_vm2, %v2819_v52, 0  ;;  %v2815_v20 = vpop.permute.xlu1 %2814 }
0x10b9   :  { %v10416_v47 = vpop.eup %10415 }
0x10ba   :  { %v2704_v39 = vmul.f32 %v10416_v47, %v10400_v57  ;;  %v2712_v60 = vpack.c.bf16 %v2706_v55, %v2705_v41 }
0x10bb   :  { %v2805_v4 = vpop.permute.xlu0 %2804 }
0x10bc   :  { %v2711_v56 = vpack.c.bf16 %v2704_v39, %v2703_v49 }
0x10bd   :  { %v10418_v24 = vpop.eup %10417 }
0x10be   :  { %v10420_v36 = vpop.eup %10419  ;;  %9314 = vmatprep.mubr.msk.bf16.mxu1 %vm273_vm1, %v2711_v56  ;;  %v2710_v57 = vmul.f32 %v10418_v24, %v10404_v30  ;;  %v2813_v30 = vpop.permute.xlu1 %2812 }
0x10bf   :  { %v10422_v27 = vpop.eup %10421  ;;  %9315 = vmatmul.mubr.msk.bf16.vlgmr.msra.gmra.mxu1 %vm273_vm1, %v2712_v60  ;;  %v2707_v48 = vmul.f32 %v10420_v36, %v10406_v62  ;;  %v2836_v62 = vsel %vm716_vm2, %v2815_v20, 0  ;;  %v2809_v53 = vpop.permute.xlu0 %2808 }
0x10c0   :  { %9323 = vmatpush3.bf16.xpose.msra.mxu1 %v2842_v33  ;;  %v2709_v25 = vmul.f32 %v10422_v27, %v12178_v5  ;;  %v2833_v5 = vsel %vm716_vm2, %v2813_v30, 0 }
0x10c1   :  { %v10424_v59 = vpop.eup %10423  ;;  %9823 = vmatprep.subr.msk.bf16.mxu1 %vm716_vm2, %v2817_v7 }
0x10c2   :  { %v2708_v22 = vmul.f32 %v10424_v59, %v10408_v61  ;;  %v2714_v6 = vpack.c.bf16 %v2710_v57, %v2709_v25  ;;  %v2807_v61 = vpop.permute.xlu1 %2806 }
0x10c4   :  { %v2713_v35 = vpack.c.bf16 %v2708_v22, %v2707_v48 }
0x10c6   :  { %9318 = vmatprep.mubr.msk.bf16.mxu1 %vm273_vm1, %v2713_v35  ;;  %v2811_v52 = vpop.permute.xlu1 %2810 }
0x10c7   :  { %9319 = vmatmul.mubr.msk.bf16.gmra.mxu1 %vm273_vm1, %v2714_v6 }
0x10c8   :  { %9325 = vmatpush3.bf16.xpose.msra.mxu1 %v2839_v50  ;;  %9330 = vmatprep.mubr.msk.bf16.mxu1 %vm716_vm2, %v2805_v4  ;;  %v9866_v50 = vpack.i.bf16 %v11796_v45, %v11790_v58 }
0x10c9   :  { %9824 = vmatprep.subr.msk.bf16.mxu1 %vm716_vm2, %v2815_v20 }
0x10d0   :  { %9327 = vmatpush3.bf16.xpose.msra.mxu1 %v2836_v62 }
0x10d1   :  { %9825 = vmatprep.subr.msk.bf16.mxu1 %vm716_vm2, %v2813_v30 }
0x10d8   :  { %9329 = vmatpush3.bf16.xpose.msra.mxu1 %v2833_v5 }
0x10df   :  { %9331 = vmatmul.mubr.msk.bf16.vlgmr.msra.gmra.mxu1 %vm716_vm2, %v2807_v61 }
0x10e0   :  { %9334 = vmatprep.mubr.msk.bf16.mxu1 %vm716_vm2, %v2809_v53 }
0x10e7   :  { %9335 = vmatmul.mubr.msk.bf16.gmra.mxu1 %vm716_vm2, %v2811_v52 }
0x117f   :  { %v12220_v42 = vpop.f32.mrf.mxu1 }
0x1181   :  { %v12222_v15 = vpop.f32.mrf.mxu1 }
0x1183   :  { %v12224_v47 = vpop.f32.mrf.mxu1 }
0x1184   :  { %v9941_v55 = vpack.i.bf16 %v12224_v47, %v12220_v42 }
0x1185   :  { %v12228_v49 = vpop.f32.mrf.mxu1 }
0x1187   :  { %v12230_v39 = vpop.f32.mrf.mxu1 }
0x1189   :  { %v12232_v41 = vpop.f32.mrf.mxu1 }
0x118b   :  { %v12234_v56 = vpop.f32.mrf.mxu1 }
0x118c   :  { %v9971_v24 = vpack.i.bf16 %v12234_v56, %v12230_v39 }
0x118d   :  { %v12238_v60 = vpop.f32.mrf.mxu1 }
0x119f   :  { %v9332_v36 = vpop.f32.mrf.mxu1 }
0x11a0   :  { %v2915_v27 = vsel %vm273_vm1, %v9332_v36, -inf }
0x11a1   :  { %2916 = vmax.xlane.f32.xlu0 %v2915_v27  ;;  %v2878_v33 = vpop.f32.mrf.mxu1 }
0x11a2   :  { %v2909_v7 = vsel %vm273_vm1, %v2878_v33, -inf }
0x11a3   :  { %v9333_v59 = vpop.f32.mrf.mxu1 }
0x11a4   :  { %v2918_v35 = vsel %vm273_vm1, %v9333_v59, -inf }
0x11a5   :  { %2910 = vmax.xlane.f32.xlu0 %v2909_v7  ;;  %v2881_v48 = vpop.f32.mrf.mxu1 }
0x11a6   :  { %v2912_v22 = vsel %vm273_vm1, %v2881_v48, -inf }
0x11a7   :  { %2913 = vmax.xlane.f32.xlu1 %v2912_v22  ;;  %v9336_v57 = vpop.f32.mrf.mxu1 }
0x11a8   :  { %v2927_v4 = vsel %vm273_vm1, %v9336_v57, -inf }
0x11a9   :  { %2919 = vmax.xlane.f32.xlu0 %v2918_v35  ;;  %v2894_v25 = vpop.f32.mrf.mxu1 }
0x11aa   :  { %v2921_v6 = vsel %vm273_vm1, %v2894_v25, -inf }
0x11ab   :  { %v12257_v20 = vpop.f32.mrf.mxu1 }
0x11ac   :  { %v2930_v62 = vsel %vm273_vm1, %v12257_v20, -inf }
0x11ad   :  { %2922 = vmax.xlane.f32.xlu0 %v2921_v6 }
0x11b1   :  { %2928 = vmax.xlane.f32.xlu0 %v2927_v4 }
0x11b8   :  { %3005 = vrot.lane.b32.xlu1 %v11882_v46, %s10976_s3  ;;  %v12261_v46 = vpop.f32.mrf.mxu1 }
0x11bc   :  { %3003 = vrot.lane.b32.xlu1 %v11892_v54, %s10976_s3  ;;  %v2924_v54 = vsel %vm273_vm1, %v12261_v46, -inf }
0x11c0   :  { %3001 = vrot.lane.b32.xlu1 %v11898_v10, %s10976_s3 }
0x11c7   :  { %3007 = vrot.lane.b32.xlu0 %v11872_v23, %s10976_s3  ;;  %v14914_v23 = vpack.i.bf16 %v11792_v9, %v11788_v28 }
0x11cb   :  { %9867 = vrot.lane.b32.xlu0 %v9866_v50, %s10975_s26 }
0x11e4   :  { %2931 = vmax.xlane.f32.xlu1 %v2930_v62 }
0x11e8   :  { %2925 = vmax.xlane.f32.xlu1 %v2924_v54 }
0x11f9   :  { %9872 = vrot.lane.b32.xlu1 %v14914_v23, %s10975_s26 }
0x122a   :  { %v2917_v58 = vpop.xlane.xlu0 %2916 }
0x122b   :  { %v2935_v45 = vsub.f32 %v9332_v36, %v2917_v58 }
0x122d   :  { %v2945_v10 = vmul.f32 1.442695, %v2935_v45 }
0x122e   :  { %v2911_v30 = vpop.xlane.xlu0 %2910 }
0x122f   :  { %10425 = vpow2.f32 %v2945_v10  ;;  %v2933_v5 = vsub.f32 %v2878_v33, %v2911_v30 }
0x1230   :  { %v2914_v61 = vpop.xlane.xlu1 %2913 }
0x1231   :  { %v2941_v53 = vmul.f32 1.442695, %v2933_v5  ;;  %v2934_v52 = vsub.f32 %v2881_v48, %v2914_v61 }
0x1232   :  { %v2920_v27 = vpop.xlane.xlu0 %2919 }
0x1233   :  { %10427 = vpow2.f32 %v2941_v53  ;;  %v2936_v7 = vsub.f32 %v9333_v59, %v2920_v27  ;;  %v2943_v22 = vmul.f32 1.442695, %v2934_v52  ;;  %v14915_v27 = vpack.i.bf16 %v11908_v21, %v11904_v19 }
0x1234   :  { %v3006_v36 = vpop.permute.xlu1 %3005 }
0x1235   :  { %v2947_v35 = vmul.f32 1.442695, %v2936_v7  ;;  %v9876_v7 = vpack.i.bf16 %v11912_v2, %v11906_v32  ;;  %v9906_v32 = vpack.i.bf16 %v11922_v18, %v11916_v44 }
0x1236   :  { %v2923_v6 = vpop.xlane.xlu0 %2922 }
0x1237   :  { %10429 = vpow2.f32 %v2947_v35  ;;  %v2937_v4 = vsub.f32 %v2894_v25, %v2923_v6  ;;  %v9896_v6 = vpack.i.bf16 %v11806_v12, %v11800_v40  ;;  %v9926_v40 = vpack.i.bf16 %v12144_v51, %v12138_v3 }
0x1238   :  { %10431 = vpow2.f32 %v2943_v22  ;;  %v3004_v25 = vpop.permute.xlu1 %3003  ;;  %v9886_v22 = vpack.i.bf16 %v11988_v29, %v11982_v16  ;;  %v9916_v16 = vpack.i.bf16 %v11998_v17, %v11992_v14  ;;  %v14916_v14 = vpack.i.bf16 %v11984_v37, %v11980_v31  ;;  %v10121_v17 = vld [vmem:[%s14917_s28 + $0x18] sm:$0xff]  }
0x1239   :  { %v2949_v62 = vmul.f32 1.442695, %v2937_v4  ;;  %v14918_v3 = vpack.i.bf16 %v11802_v43, %v11798_v34  ;;  %v14919_v51 = vpack.i.bf16 %v11918_v13, %v11914_v8  ;;  %v14920_v31 = vpack.i.bf16 %v11994_v0, %v11990_v11 }
0x123a   :  { %v2929_v28 = vpop.xlane.xlu0 %2928  ;;  %v14921_v37 = vpack.i.bf16 %v12140_v26, %v12136_v1  ;;  %v9936_v34 = vpack.i.bf16 %v12228_v49, %v12222_v15 }
0x123b   :  { %v2939_v9 = vsub.f32 %v9336_v57, %v2929_v28 }
0x123c   :  { %v12269_v50 = vpop.eup %10425  ;;  %v3002_v10 = vpop.permute.xlu1 %3001 }
0x123d   :  { %v2953_v54 = vmul.f32 1.442695, %v2939_v9  ;;  %v2963_v33 = vsel %vm273_vm1, %v12269_v50, 0.0 }
0x123e   :  { %2964 = vadd.xlane.f32.xlu0 %v2963_v33  ;;  %v3008_v48 = vpop.permute.xlu0 %3007 }
0x123f   :  { %10433 = vpow2.f32 %v2953_v54  ;;  %9338 = vmatprep.subr.bf16.mxu0 %v3008_v48  ;;  %v10123_v54 = vld [vmem:[%s14917_s28 + $0x8] sm:$0xff]  }
0x1240   :  { %v12273_v59 = vpop.eup %10427  ;;  %9339 = vmatpush3.bf16.msra.mxu0 %v3008_v48  ;;  %10435 = vpow2.f32 %v2949_v62  ;;  %v10122_v62 = vld [vmem:[%s14917_s28 + $0x10] sm:$0xff]  }
0x1241   :  { %9340 = vmatprep.subr.bf16.mxu0 %v3006_v36  ;;  %v2957_v57 = vsel %vm273_vm1, %v12273_v59, 0.0 }
0x1242   :  { %2958 = vadd.xlane.f32.xlu0 %v2957_v57  ;;  %v9868_v43 = vpop.permute.xlu0 %9867 }
0x1244   :  { %v12277_v23 = vpop.eup %10429  ;;  %9341 = vmatpush3.bf16.msra.mxu0 %v3006_v36 }
0x1245   :  { %9342 = vmatprep.subr.bf16.mxu0 %v3004_v25  ;;  %v2966_v58 = vsel %vm273_vm1, %v12277_v23, 0.0  ;;  %v12281_v45 = vpop.eup %10431 }
0x1246   :  { %2967 = vadd.xlane.f32.xlu1 %v2966_v58  ;;  %v2960_v30 = vsel %vm273_vm1, %v12281_v45, 0.0 }
0x1248   :  { %9343 = vmatpush3.bf16.msra.mxu0 %v3004_v25 }
0x1249   :  { %9344 = vmatprep.subr.bf16.mxu0 %v3002_v10 }
0x124a   :  { %2961 = vadd.xlane.f32.xlu1 %v2960_v30  ;;  %v9870_v30 = vunpack.i.h.bf16 %v9868_v43 }
0x124c   :  { %v12285_v5 = vpop.eup %10433  ;;  %9345 = vmatpush3.bf16.msra.mxu0 %v3002_v10 }
0x124d   :  { %v2975_v61 = vsel %vm273_vm1, %v12285_v5, 0.0  ;;  %v12289_v53 = vpop.eup %10435  ;;  %9354 = vmatprep.subr.bf16.mxu0 %v10121_v17 }
0x124e   :  { %2976 = vadd.xlane.f32.xlu0 %v2975_v61  ;;  %v2969_v52 = vsel %vm273_vm1, %v12289_v53, 0.0  ;;  %v9869_v61 = vunpack.i.l.bf16 %v9868_v43 }
0x1252   :  { %2970 = vadd.xlane.f32.xlu0 %v2969_v52 }
0x125b   :  { %9882 = vrot.lane.b32.xlu1 %v14915_v27, %s10973_s6 }
0x1268   :  { %9877 = vrot.lane.b32.xlu0 %v9876_v7, %s10973_s6 }
0x126c   :  { %9887 = vrot.lane.b32.xlu0 %v9886_v22, %s10971_s5 }
0x126d   :  { %v2932_v35 = vpop.xlane.xlu1 %2931 }
0x126e   :  { %v2940_v4 = vsub.f32 %v12257_v20, %v2932_v35 }
0x1270   :  { %v2955_v28 = vmul.f32 1.442695, %v2940_v4  ;;  %9897 = vrot.lane.b32.xlu0 %v9896_v6, %s10975_s26 }
0x1271   :  { %v2926_v19 = vpop.xlane.xlu1 %2925 }
0x1272   :  { %10437 = vpow2.f32 %v2955_v28  ;;  %v2938_v21 = vsub.f32 %v12261_v46, %v2926_v19 }
0x1274   :  { %v2951_v2 = vmul.f32 1.442695, %v2938_v21  ;;  %9907 = vrot.lane.b32.xlu0 %v9906_v32, %s10973_s6  ;;  %v1934_v32 = vsel %vm716_vm2, %v11778_v38, %v9870_v30  ;;  %v1933_v21 = vsel %vm716_vm2, %v11774_v63, %v9869_v61 }
0x1275   :  { %v12355_v13 = vpop.permute.xlu1 %9872 }
0x1276   :  { %10439 = vpow2.f32 %v2951_v2  ;;  %v9875_v38 = vunpack.i.h.bf16 %v12355_v13 }
0x1278   :  { %9917 = vrot.lane.b32.xlu0 %v9916_v16, %s10971_s5 }
0x127c   :  { %9927 = vrot.lane.b32.xlu0 %v9926_v40, %s10975_s26 }
0x127f   :  { %v12317_v12 = vpop.eup %10437 }
0x1280   :  { %v2978_v44 = vsel %vm273_vm1, %v12317_v12, 0.0 }
0x1281   :  { %2979 = vadd.xlane.f32.xlu1 %v2978_v44 }
0x1283   :  { %v12321_v18 = vpop.eup %10439 }
0x1284   :  { %v2972_v29 = vsel %vm273_vm1, %v12321_v18, 0.0 }
0x1285   :  { %2973 = vadd.xlane.f32.xlu1 %v2972_v29 }
0x1296   :  { %9892 = vrot.lane.b32.xlu1 %v14916_v14, %s10971_s5 }
0x129a   :  { %9902 = vrot.lane.b32.xlu1 %v14918_v3, %s10975_s26 }
0x129e   :  { %9912 = vrot.lane.b32.xlu1 %v14919_v51, %s10973_s6  ;;  %v9874_v51 = vunpack.i.l.bf16 %v12355_v13 }
0x12a2   :  { %9922 = vrot.lane.b32.xlu1 %v14920_v31, %s10971_s5 }
0x12a6   :  { %9932 = vrot.lane.b32.xlu1 %v14921_v37, %s10975_s26 }
0x12aa   :  { %9937 = vrot.lane.b32.xlu1 %v9936_v34, %s10973_s6 }
0x12ae   :  { %9942 = vrot.lane.b32.xlu1 %v9941_v55, %s10973_s6 }
0x12c7   :  { %v2965_v8 = vpop.xlane.xlu0 %2964 }
0x12cb   :  { %v2959_v11 = vpop.xlane.xlu0 %2958 }
0x12cf   :  { %v2968_v0 = vpop.xlane.xlu1 %2967 }
0x12d0   :  { %10441 = vrcp.f32 %v2968_v0 }
0x12d1   :  { %10443 = vrcp.f32 %v2959_v11 }
0x12d2   :  { %10445 = vrcp.f32 %v2965_v8 }
0x12d3   :  { %v2962_v1 = vpop.xlane.xlu1 %2961 }
0x12d4   :  { %10447 = vrcp.f32 %v2962_v1 }
0x12d7   :  { %v2977_v33 = vpop.xlane.xlu0 %2976 }
0x12db   :  { %v2971_v48 = vpop.xlane.xlu0 %2970 }
0x12dd   :  { %v10442_v26 = vpop.eup %10441 }
0x12de   :  { %v10444_v15 = vpop.eup %10443  ;;  %v2992_v46 = vmul.f32 %v10442_v26, %v12277_v23 }
0x12df   :  { %v10446_v49 = vpop.eup %10445  ;;  %v2989_v42 = vmul.f32 %v10444_v15, %v12273_v59  ;;  %v9883_v59 = vpop.permute.xlu1 %9882 }
0x12e0   :  { %v2991_v55 = vmul.f32 %v10446_v49, %v12269_v50  ;;  %v10124_v50 = vld [vmem:[%s14917_s28] sm:$0xff]   ;;  %v9878_v57 = vpop.permute.xlu0 %9877  ;;  %v9885_v31 = vunpack.i.h.bf16 %v9883_v59  ;;  %v9884_v37 = vunpack.i.l.bf16 %v9883_v59 }
0x12e1   :  { %v10448_v20 = vpop.eup %10447  ;;  %v9880_v52 = vunpack.i.h.bf16 %v9878_v57  ;;  %v9879_v27 = vunpack.i.l.bf16 %v9878_v57 }
0x12e2   :  { %v2990_v47 = vmul.f32 %v10448_v20, %v12281_v45  ;;  %v2998_v36 = vpack.c.bf16 %v2992_v46, %v2991_v55  ;;  %v14923_v46 = vld [vmem:[#allocation19_spill] sm:$0xff] }
0x12e3   :  { %v1942_v16 = vsel %vm1941_vm3, %v1933_v21, %v9879_v27  ;;  %v1943_v40 = vsel %vm1941_vm3, %v1934_v32, %v9880_v52 }
0x12e4   :  { %v2997_v9 = vpack.c.bf16 %v2990_v47, %v2989_v42  ;;  %v9888_v23 = vpop.permute.xlu0 %9887  ;;  %v1935_v42 = vsel %vm716_vm2, %v14923_v46, %v9874_v51 }
0x12e5   :  { %v9890_v22 = vunpack.i.h.bf16 %v9888_v23  ;;  %v9889_v35 = vunpack.i.l.bf16 %v9888_v23  ;;  %v1944_v47 = vsel %vm1941_vm3, %v1935_v42, %v9884_v37  ;;  %v14933_v42 = vld [vmem:[#allocation4_spill] sm:$0xff] }
0x12e6   :  { %9346 = vmatprep.mubr.msk.bf16.mxu0 %vm273_vm1, %v2997_v9  ;;  %v14924_v9 = vld [vmem:[#allocation24_spill] sm:$0xff] }
0x12e7   :  { %9347 = vmatmul.mubr.msk.bf16.vlgmr.msra.gmra.mxu0 %vm273_vm1, %v2998_v36  ;;  %v1950_v29 = vsel %vm127_vm0, %v1942_v16, %v9889_v35  ;;  %v1951_v14 = vsel %vm127_vm0, %v1943_v40, %v9890_v22  ;;  %v14926_v22 = vld [vmem:[#allocation23_spill] sm:$0xff] }
0x12e8   :  { %9355 = vmatpush3.bf16.msra.mxu0 %v10121_v17  ;;  %v9898_v45 = vpop.permute.xlu0 %9897  ;;  %v3210_v1 = vpack.c.bf16 %v1951_v14, %v1950_v29 }
0x12e9   :  { %9356 = vmatprep.subr.bf16.mxu0 %v10122_v62  ;;  %v9900_v8 = vunpack.i.h.bf16 %v9898_v45 }
0x12eb   :  { %v1938_v36 = vsel %vm716_vm2, %v14924_v9, %v9900_v8  ;;  %v12435_v8 = vld [vmem:[%s14799_s7] ss:$0 sm:$0xff] }
0x12ec   :  { %9357 = vmatpush3.bf16.msra.mxu0 %v10122_v62  ;;  %v9908_v6 = vpop.permute.xlu0 %9907  ;;  %v14925_v62 = vld [vmem:[#allocation22_spill] sm:$0xff] }
0x12ed   :  { %9358 = vmatprep.subr.bf16.mxu0 %v10123_v54  ;;  %v9910_v26 = vunpack.i.h.bf16 %v9908_v6  ;;  %v9909_v15 = vunpack.i.l.bf16 %v9908_v6  ;;  %v14927_v6 = vld [vmem:[#allocation21_spill] sm:$0xff] }
0x12f0   :  { %9359 = vmatpush3.bf16.msra.mxu0 %v10123_v54  ;;  %v9918_v34 = vpop.permute.xlu0 %9917 }
0x12f1   :  { %9360 = vmatprep.subr.bf16.mxu0 %v10124_v50  ;;  %v9919_v20 = vunpack.i.l.bf16 %v9918_v34 }
0x12f4   :  { %9361 = vmatpush3.bf16.msra.mxu0 %v10124_v50 }
0x130a   :  { %v2980_v25 = vpop.xlane.xlu1 %2979 }
0x130b   :  { %10449 = vrcp.f32 %v2980_v25 }
0x130c   :  { %10451 = vrcp.f32 %v2971_v48 }
0x130d   :  { %10453 = vrcp.f32 %v2977_v33  ;;  %v1947_v33 = vsel %vm1941_vm3, %v1938_v36, %v9910_v26 }
0x130e   :  { %v2974_v58 = vpop.xlane.xlu1 %2973 }
0x130f   :  { %10455 = vrcp.f32 %v2974_v58 }
0x1312   :  { %v9893_v10 = vpop.permute.xlu1 %9892 }
0x1313   :  { %v9894_v49 = vunpack.i.l.bf16 %v9893_v10 }
0x1315   :  { %v1952_v48 = vsel %vm127_vm0, %v1944_v47, %v9894_v49  ;;  %v14932_v49 = vld [vmem:[#allocation3_spill] sm:$0xff] }
0x1316   :  { %v9903_v28 = vpop.permute.xlu1 %9902 }
0x1317   :  { %v9905_v58 = vunpack.i.h.bf16 %v9903_v28 }
0x1318   :  { %v10450_v7 = vpop.eup %10449 }
0x1319   :  { %v10452_v4 = vpop.eup %10451  ;;  %v2996_v44 = vmul.f32 %v10450_v7, %v12317_v12  ;;  %v9899_v12 = vunpack.i.l.bf16 %v9898_v45  ;;  %v9904_v45 = vunpack.i.l.bf16 %v9903_v28  ;;  %v1940_v35 = vsel %vm716_vm2, %v14926_v22, %v9905_v58 }
0x131a   :  { %v10454_v19 = vpop.eup %10453  ;;  %v2993_v17 = vmul.f32 %v10452_v4, %v12289_v53  ;;  %v9913_v11 = vpop.permute.xlu1 %9912  ;;  %v9895_v53 = vunpack.i.h.bf16 %v9893_v10 }
0x131b   :  { %v2995_v63 = vmul.f32 %v10454_v19, %v12285_v5  ;;  %v14922_v5 = vld [vmem:[#allocation20_spill] sm:$0xff]  ;;  %v1937_v54 = vsel %vm716_vm2, %v14925_v62, %v9899_v12  ;;  %v9915_v30 = vunpack.i.h.bf16 %v9913_v11  ;;  %v9914_v61 = vunpack.i.l.bf16 %v9913_v11 }
0x131c   :  { %v10456_v2 = vpop.eup %10455  ;;  %v1936_v13 = vsel %vm716_vm2, %v14922_v5, %v9875_v38  ;;  %v1946_v50 = vsel %vm1941_vm3, %v1937_v54, %v9909_v15  ;;  %v1939_v4 = vsel %vm716_vm2, %v14927_v6, %v9904_v45  ;;  %v14929_v38 = vld [vmem:[#allocation33_spill] sm:$0xff] }
0x131d   :  { %v2994_v3 = vmul.f32 %v10456_v2, %v12321_v18  ;;  %v3000_v0 = vpack.c.bf16 %v2996_v44, %v2995_v63  ;;  %v9920_v18 = vunpack.i.h.bf16 %v9918_v34  ;;  %v1945_v55 = vsel %vm1941_vm3, %v1936_v13, %v9885_v31 }
0x131e   :  { %v1953_v59 = vsel %vm127_vm0, %v1945_v55, %v9895_v53  ;;  %v1954_v57 = vsel %vm127_vm0, %v1946_v50, %v9919_v20  ;;  %v9923_v23 = vpop.permute.xlu1 %9922  ;;  %v1948_v19 = vsel %vm1941_vm3, %v1939_v4, %v9914_v61  ;;  %v1949_v28 = vsel %vm1941_vm3, %v1940_v35, %v9915_v30  ;;  %v14934_v55 = vld [vmem:[#allocation5_spill] sm:$0xff]  ;;  %v14935_v50 = vld [vmem:[#allocation34_spill] sm:$0xff]  ;;  %v14937_v35 = vld [vmem:[#allocation28_spill] sm:$0xff] }
0x131f   :  { %v2999_v43 = vpack.c.bf16 %v2994_v3, %v2993_v17  ;;  %v1955_v25 = vsel %vm127_vm0, %v1947_v33, %v9920_v18  ;;  %v3211_v10 = vpack.c.bf16 %v1953_v59, %v1952_v48  ;;  %v9925_v52 = vunpack.i.h.bf16 %v9923_v23  ;;  %v14928_v3 = vld [vmem:[#allocation35_spill] sm:$0xff]  ;;  %v14936_v33 = vld [vmem:[#allocation36_spill] sm:$0xff]  ;;  %v14938_v4 = vld [vmem:[#allocation26_spill] sm:$0xff] }
0x1320   :  { %v9924_v27 = vunpack.i.l.bf16 %v9923_v23  ;;  %v3212_v7 = vpack.c.bf16 %v1955_v25, %v1954_v57  ;;  %v14930_v63 = vpack.i.bf16 %v14928_v3, %v14929_v38  ;;  %v9956_v48 = vpack.i.bf16 %v14936_v33, %v14935_v50  ;;  %v9928_v23 = vpop.permute.xlu0 %9927 }
0x1321   :  { %9350 = vmatprep.mubr.msk.bf16.mxu0 %vm273_vm1, %v2999_v43  ;;  %v1957_v21 = vsel %vm127_vm0, %v1949_v28, %v9925_v52  ;;  %v9929_v30 = vunpack.i.l.bf16 %v9928_v23 }
0x1322   :  { %9351 = vmatmul.mubr.msk.bf16.gmra.mxu0 %vm273_vm1, %v3000_v0  ;;  %v1956_v32 = vsel %vm127_vm0, %v1948_v19, %v9924_v27  ;;  %v9933_v59 = vpop.permute.xlu1 %9932 }
0x1323   :  { %9362 = vmatprep.mubr.msk.bf16.mxu0 %vm273_vm1, %v3210_v1  ;;  %v3213_v2 = vpack.c.bf16 %v1957_v21, %v1956_v32  ;;  %v14931_v1 = vld [vmem:[#allocation2_spill] sm:$0xff]  ;;  %v9935_v61 = vunpack.i.h.bf16 %v9933_v59  ;;  %v9934_v52 = vunpack.i.l.bf16 %v9933_v59  ;;  %v3186_v19 = vsel %vm716_vm2, %v14938_v4, %v9929_v30  ;;  %v14939_v21 = vld [vmem:[#allocation27_spill] sm:$0xff] }
0x1326   :  { %v9938_v57 = vpop.permute.xlu1 %9937 }
0x1327   :  { %v9940_v27 = vunpack.i.h.bf16 %v9938_v57  ;;  %v9939_v56 = vunpack.i.l.bf16 %v9938_v57 }
0x132a   :  { %9363 = vmatmul.mubr.msk.bf16.vlgmr.msra.gmra.mxu0 %vm273_vm1, %v3211_v10  ;;  %v9943_v45 = vpop.permute.xlu1 %9942  ;;  %v9930_v10 = vunpack.i.h.bf16 %v9928_v23 }
0x132b   :  { %9366 = vmatprep.mubr.msk.bf16.mxu0 %vm273_vm1, %v3212_v7  ;;  %v9945_v7 = vunpack.i.h.bf16 %v9943_v45  ;;  %v9944_v22 = vunpack.i.l.bf16 %v9943_v45 }
0x132c   :  { %v3187_v6 = vsel %vm716_vm2, %v14937_v35, %v9930_v10 }
0x1332   :  { %9367 = vmatmul.mubr.msk.bf16.gmra.mxu0 %vm273_vm1, %v3213_v2  ;;  %v3189_v2 = vsel %vm716_vm2, %v14939_v21, %v9935_v61  ;;  %v10127_v21 = vld [vmem:[%s14800_s8 + $0x8] sm:$0xff]  }
0x1333   :  { %v3197_v3 = vsel %vm1941_vm3, %v3189_v2, %v9945_v7  ;;  %v10128_v2 = vld [vmem:[%s14800_s8] sm:$0xff]  }
0x13a7   :  { %v9348_v16 = vpop.f32.mrf.mxu0 }
0x13a9   :  { %v3059_v40 = vpop.f32.mrf.mxu0 }
0x13ab   :  { %v9349_v44 = vpop.f32.mrf.mxu0 }
0x13ac   :  { %v9946_v29 = vpack.i.bf16 %v9349_v44, %v9348_v16  ;;  %v14940_v16 = vld [vmem:[#allocation25_spill] sm:$0xff]  ;;  %v3195_v44 = vsel %vm1941_vm3, %v3187_v6, %v9940_v27 }
0x13ad   :  { %v3062_v14 = vpop.f32.mrf.mxu0 }
0x13ae   :  { %v9951_v17 = vpack.i.bf16 %v3062_v14, %v3059_v40  ;;  %9947 = vrot.lane.b32.xlu1 %v9946_v29, %s10971_s5  ;;  %v3188_v40 = vsel %vm716_vm2, %v14940_v16, %v9934_v52 }
0x13b0   :  { %9952 = vrot.lane.b32.xlu0 %v9951_v17, %s10971_s5  ;;  %v3196_v17 = vsel %vm1941_vm3, %v3188_v40, %v9944_v22 }
0x13b2   :  { %9962 = vrot.lane.b32.xlu1 %v14930_v63, %s10975_s26 }
0x13e2   :  { %v12422_v51 = vpop.f32.mrf.mxu0 }
0x13e4   :  { %v12424_v31 = vpop.f32.mrf.mxu0 }
0x13e6   :  { %v12426_v37 = vpop.f32.mrf.mxu0 }
0x13e7   :  { %v9981_v34 = vpack.i.bf16 %v12426_v37, %v12422_v51 }
0x13e8   :  { %v12430_v43 = vpop.f32.mrf.mxu0 }
0x13e9   :  { %v9976_v45 = vpack.i.bf16 %v12430_v43, %v12424_v31 }
0x13ea   :  { %v9364_v12 = vpop.f32.mrf.mxu0 }
0x13eb   :  { %v3324_v11 = vadd.f32 %v9364_v12, %v12435_v8 }
0x13ec   :  { %v3315_v0 = vpop.f32.mrf.mxu0 }
0x13ed   :  { %v12439_v26 = vadd.f32 %v3324_v11, %v14931_v1  ;;  %v3316_v15 = vadd.f32 %v12435_v8, %v3315_v0  ;;  %v3194_v11 = vsel %vm1941_vm3, %v3186_v19, %v9939_v56 }
0x13ee   :  { %v9365_v53 = vpop.f32.mrf.mxu0 }
0x13ef   :  { %v12443_v18 = vadd.f32 %v3316_v15, %v14932_v49  ;;  %v3327_v20 = vadd.f32 %v9365_v53, %v12435_v8  ;;  %v3400_v5 = vsel %vm273_vm1, %v12439_v26, 0.0 }
0x13f0   :  { %3401 = vadd.xlane.f32.xlu0 %v3400_v5  ;;  %v3318_v13 = vpop.f32.mrf.mxu0 }
0x13f1   :  { %v3319_v46 = vadd.f32 %v12435_v8, %v3318_v13  ;;  %v12450_v47 = vadd.f32 %v3327_v20, %v14933_v42  ;;  %v3394_v36 = vsel %vm273_vm1, %v12443_v18, 0.0  ;;  %v14941_v20 = vld [vmem:[#allocation9_spill] sm:$0xff] }
0x13f2   :  { %v9368_v25 = vpop.f32.mrf.mxu0 }
0x13f3   :  { %v12453_v9 = vadd.f32 %v3319_v46, %v14934_v55  ;;  %v3403_v54 = vsel %vm273_vm1, %v12450_v47, 0.0  ;;  %v3340_v0 = vadd.f32 %v9368_v25, %v12435_v8  ;;  %v14942_v55 = vld [vmem:[#allocation6_spill] sm:$0xff] }
0x13f4   :  { %3395 = vadd.xlane.f32.xlu0 %v3394_v36  ;;  %v3331_v58 = vpop.f32.mrf.mxu0 }
0x13f5   :  { %v3397_v62 = vsel %vm273_vm1, %v12453_v9, 0.0  ;;  %v12491_v36 = vadd.f32 %v3340_v0, %v14942_v55 }
0x13f6   :  { %3398 = vadd.xlane.f32.xlu1 %v3397_v62  ;;  %v9369_v39 = vpop.f32.mrf.mxu0  ;;  %v3332_v62 = vadd.f32 %v12435_v8, %v3331_v58  ;;  %v9966_v58 = vpack.i.bf16 %v12238_v60, %v12232_v41 }
0x13f7   :  { %v3343_v29 = vadd.f32 %v9369_v39, %v12435_v8  ;;  %v3412_v57 = vsel %vm273_vm1, %v12491_v36, 0.0 }
0x13f8   :  { %3404 = vadd.xlane.f32.xlu0 %v3403_v54  ;;  %v3334_v38 = vpop.f32.mrf.mxu0  ;;  %v14943_v54 = vld [vmem:[#allocation8_spill] sm:$0xff] }
0x13f9   :  { %v12487_v5 = vadd.f32 %v3343_v29, %v14941_v20  ;;  %v3335_v13 = vadd.f32 %v12435_v8, %v3334_v38 }
0x13fb   :  { %v12497_v50 = vadd.f32 %v3335_v13, %v14943_v54  ;;  %v3415_v33 = vsel %vm273_vm1, %v12487_v5, 0.0 }
0x13fd   :  { %v3409_v25 = vsel %vm273_vm1, %v12497_v50, 0.0 }
0x1407   :  { %9972 = vrot.lane.b32.xlu1 %v9971_v24, %s10973_s6 }
0x140e   :  { %9957 = vrot.lane.b32.xlu0 %v9956_v48, %s10975_s26  ;;  %v14944_v48 = vld [vmem:[#allocation7_spill] sm:$0xff] }
0x140f   :  { %v12502_v59 = vadd.f32 %v3332_v62, %v14944_v48 }
0x1411   :  { %v3406_v23 = vsel %vm273_vm1, %v12502_v59, 0.0 }
0x1420   :  { %v9948_v24 = vpop.permute.xlu1 %9947 }
0x1421   :  { %v9950_v28 = vunpack.i.h.bf16 %v9948_v24  ;;  %v9949_v32 = vunpack.i.l.bf16 %v9948_v24 }
0x1422   :  { %v9953_v14 = vpop.permute.xlu0 %9952 }
0x1423   :  { %v9955_v63 = vunpack.i.h.bf16 %v9953_v14  ;;  %v9954_v12 = vunpack.i.l.bf16 %v9953_v14  ;;  %v3204_v1 = vsel %vm127_vm0, %v3196_v17, %v9949_v32  ;;  %v3205_v15 = vsel %vm127_vm0, %v3197_v3, %v9950_v28  ;;  %v10125_v28 = vld [vmem:[%s14800_s8 + $0x18] sm:$0xff]   ;;  %v10126_v32 = vld [vmem:[%s14800_s8 + $0x10] sm:$0xff]  }
0x1424   :  { %v3215_v42 = vpack.c.bf16 %v3205_v15, %v3204_v1  ;;  %v12520_v30 = vpop.permute.xlu1 %9962  ;;  %9378 = vmatprep.subr.bf16.mxu1 %v10125_v28 }
0x1425   :  { %v3202_v53 = vsel %vm127_vm0, %v3194_v11, %v9954_v12  ;;  %v3203_v49 = vsel %vm127_vm0, %v3195_v44, %v9955_v63  ;;  %9379 = vmatpush3.bf16.msra.mxu1 %v10125_v28  ;;  %v9965_v38 = vunpack.i.h.bf16 %v12520_v30 }
0x1426   :  { %v3214_v46 = vpack.c.bf16 %v3203_v49, %v3202_v53  ;;  %9380 = vmatprep.subr.bf16.mxu1 %v10126_v32  ;;  %v9964_v53 = vunpack.i.l.bf16 %v12520_v30 }
0x1428   :  { %9370 = vmatprep.mubr.msk.bf16.mxu0 %vm273_vm1, %v3214_v46  ;;  %v14945_v46 = vld [vmem:[#allocation31_spill] sm:$0xff] }
0x1429   :  { %9371 = vmatmul.mubr.msk.bf16.gmra.mxu0 %vm273_vm1, %v3215_v42  ;;  %9381 = vmatpush3.bf16.msra.mxu1 %v10126_v32  ;;  %v3193_v42 = vsel %vm716_vm2, %v14945_v46, %v9965_v38 }
0x142a   :  { %9382 = vmatprep.subr.bf16.mxu1 %v10127_v21 }
0x142b   :  { %3416 = vadd.xlane.f32.xlu1 %v3415_v33 }
0x142d   :  { %3413 = vadd.xlane.f32.xlu0 %v3412_v57  ;;  %9383 = vmatpush3.bf16.msra.mxu1 %v10127_v21 }
0x142e   :  { %9384 = vmatprep.subr.bf16.mxu1 %v10128_v2 }
0x142f   :  { %3410 = vadd.xlane.f32.xlu1 %v3409_v25 }
0x1431   :  { %3407 = vadd.xlane.f32.xlu0 %v3406_v23  ;;  %9385 = vmatpush3.bf16.msra.mxu1 %v10128_v2 }
0x1440   :  { %9982 = vrot.lane.b32.xlu1 %v9981_v34, %s10971_s5 }
0x1447   :  { %9967 = vrot.lane.b32.xlu0 %v9966_v58, %s10973_s6 }
0x144b   :  { %9977 = vrot.lane.b32.xlu0 %v9976_v45, %s10971_s5 }
0x1479   :  { %v3402_v10 = vpop.xlane.xlu0 %3401 }
0x147a   :  { %v3444_v61 = vmul.f32 0.015625, %v3402_v10 }
0x147c   :  { %v12523_v51 = vsub.f32 %v12439_v26, %v3444_v61  ;;  %v14946_v61 = vld [vmem:[#allocation29_spill] sm:$0xff] }
0x147d   :  { %v3396_v52 = vpop.xlane.xlu0 %3395 }
0x147e   :  { %v3442_v27 = vmul.f32 0.015625, %v3396_v52  ;;  %v3476_v56 = vmul.f32 %v12523_v51, %v12523_v51  ;;  %v3192_v52 = vsel %vm716_vm2, %v14946_v61, %v9964_v53  ;;  %v14950_v53 = vld [vmem:[#allocation10_spill] sm:$0xff] }
0x147f   :  { %v3399_v7 = vpop.xlane.xlu1 %3398 }
0x1480   :  { %v12526_v37 = vsub.f32 %v12443_v18, %v3442_v27  ;;  %v3443_v41 = vmul.f32 0.015625, %v3399_v7  ;;  %v3496_v6 = vsel %vm273_vm1, %v3476_v56, 0.0  ;;  %v14948_v56 = vld [vmem:[#allocation30_spill] sm:$0xff] }
0x1481   :  { %v3405_v60 = vpop.xlane.xlu0 %3404 }
0x1482   :  { %v12529_v34 = vsub.f32 %v12453_v9, %v3443_v41  ;;  %v3445_v31 = vmul.f32 0.015625, %v3405_v60  ;;  %v3474_v43 = vmul.f32 %v12526_v37, %v12526_v37  ;;  %v14947_v41 = vld [vmem:[#allocation32_spill] sm:$0xff] }
0x1483   :  { %v9973_v16 = vpop.permute.xlu1 %9972 }
0x1484   :  { %v12534_v22 = vsub.f32 %v12450_v47, %v3445_v31  ;;  %v3490_v39 = vsel %vm273_vm1, %v3474_v43, 0.0  ;;  %v3475_v24 = vmul.f32 %v12529_v34, %v12529_v34  ;;  %v9975_v49 = vunpack.i.h.bf16 %v9973_v16 }
0x1485   :  { %3491 = vadd.xlane.f32.xlu0 %v3490_v39  ;;  %v9958_v40 = vpop.permute.xlu0 %9957  ;;  %v9974_v55 = vunpack.i.l.bf16 %v9973_v16 }
0x1486   :  { %v3493_v35 = vsel %vm273_vm1, %v3475_v24, 0.0  ;;  %v3477_v4 = vmul.f32 %v12534_v22, %v12534_v22  ;;  %v9960_v62 = vunpack.i.h.bf16 %v9958_v40  ;;  %v9959_v48 = vunpack.i.l.bf16 %v9958_v40 }
0x1487   :  { %3494 = vadd.xlane.f32.xlu1 %v3493_v35  ;;  %v3201_v27 = vsel %vm1941_vm3, %v3193_v42, %v9975_v49  ;;  %v3200_v7 = vsel %vm1941_vm3, %v3192_v52, %v9974_v55  ;;  %v14951_v55 = vld [vmem:[#allocation13_spill] sm:$0xff] }
0x1488   :  { %v3499_v19 = vsel %vm273_vm1, %v3477_v4, 0.0  ;;  %v3191_v60 = vsel %vm716_vm2, %v14947_v41, %v9960_v62  ;;  %v3190_v24 = vsel %vm716_vm2, %v14948_v56, %v9959_v48 }
0x1489   :  { %3497 = vadd.xlane.f32.xlu0 %v3496_v6 }
0x148d   :  { %3500 = vadd.xlane.f32.xlu0 %v3499_v19 }
0x14b4   :  { %v3417_v44 = vpop.xlane.xlu1 %3416 }
0x14b5   :  { %v3449_v14 = vmul.f32 0.015625, %v3417_v44 }
0x14b6   :  { %v3414_v29 = vpop.xlane.xlu0 %3413 }
0x14b7   :  { %v3448_v63 = vmul.f32 0.015625, %v3414_v29  ;;  %v12560_v11 = vsub.f32 %v12487_v5, %v3449_v14 }
0x14b8   :  { %v3411_v17 = vpop.xlane.xlu1 %3410 }
0x14b9   :  { %v3447_v3 = vmul.f32 0.015625, %v3411_v17  ;;  %v12574_v54 = vsub.f32 %v12491_v36, %v3448_v63  ;;  %v3481_v23 = vmul.f32 %v12560_v11, %v12560_v11 }
0x14ba   :  { %v3408_v12 = vpop.xlane.xlu0 %3407 }
0x14bb   :  { %v12563_v0 = vsub.f32 %v12497_v50, %v3447_v3  ;;  %v3446_v1 = vmul.f32 0.015625, %v3408_v12  ;;  %v3480_v39 = vmul.f32 %v12574_v54, %v12574_v54  ;;  %v3511_v4 = vsel %vm273_vm1, %v3481_v23, 0.0  ;;  %v14949_v12 = vld [vmem:[#allocation11_spill] sm:$0xff] }
0x14bc   :  { %v9983_v15 = vpop.permute.xlu1 %9982 }
0x14bd   :  { %v12567_v20 = vsub.f32 %v12502_v59, %v3446_v1  ;;  %v3479_v13 = vmul.f32 %v12563_v0, %v12563_v0  ;;  %v9985_v57 = vunpack.i.h.bf16 %v9983_v15  ;;  %v9984_v25 = vunpack.i.l.bf16 %v9983_v15 }
0x14be   :  { %v9968_v33 = vpop.permute.xlu0 %9967  ;;  %v3508_v40 = vsel %vm273_vm1, %v3480_v39, 0.0 }
0x14bf   :  { %v9970_v58 = vunpack.i.h.bf16 %v9968_v33  ;;  %v9969_v45 = vunpack.i.l.bf16 %v9968_v33  ;;  %v3505_v10 = vsel %vm273_vm1, %v3479_v13, 0.0  ;;  %v3478_v30 = vmul.f32 %v12567_v20, %v12567_v20  ;;  %v14952_v33 = vld [vmem:[#allocation12_spill] sm:$0xff] }
0x14c0   :  { %3506 = vadd.xlane.f32.xlu1 %v3505_v10  ;;  %v3208_v19 = vsel %vm127_vm0, %v3200_v7, %v9984_v25  ;;  %v3209_v28 = vsel %vm127_vm0, %v3201_v27, %v9985_v57 }
0x14c1   :  { %v3502_v31 = vsel %vm273_vm1, %v3478_v30, 0.0  ;;  %v3198_v32 = vsel %vm1941_vm3, %v3190_v24, %v9969_v45  ;;  %v3199_v21 = vsel %vm1941_vm3, %v3191_v60, %v9970_v58  ;;  %v3217_v29 = vpack.c.bf16 %v3209_v28, %v3208_v19 }
0x14c2   :  { %v9978_v43 = vpop.permute.xlu0 %9977  ;;  %3503 = vadd.xlane.f32.xlu0 %v3502_v31 }
0x14c3   :  { %v9980_v35 = vunpack.i.h.bf16 %v9978_v43  ;;  %v9979_v6 = vunpack.i.l.bf16 %v9978_v43 }
0x14c4   :  { %3512 = vadd.xlane.f32.xlu1 %v3511_v4 }
0x14c5   :  { %v3206_v2 = vsel %vm127_vm0, %v3198_v32, %v9979_v6  ;;  %v3207_v16 = vsel %vm127_vm0, %v3199_v21, %v9980_v35 }
0x14c6   :  { %v3216_v44 = vpack.c.bf16 %v3207_v16, %v3206_v2  ;;  %3509 = vadd.xlane.f32.xlu0 %v3508_v40 }
0x14c8   :  { %9374 = vmatprep.mubr.msk.bf16.mxu0 %vm273_vm1, %v3216_v44 }
0x14c9   :  { %9375 = vmatmul.mubr.msk.bf16.gmra.mxu0 %vm273_vm1, %v3217_v29 }
0x14e9   :  { %v9372_v14 = vpop.f32.mrf.mxu0 }
0x14ea   :  { %v3356_v3 = vadd.f32 %v9372_v14, %v12435_v8 }
0x14eb   :  { %v3347_v17 = vpop.f32.mrf.mxu0 }
0x14ec   :  { %v3348_v38 = vadd.f32 %v12435_v8, %v3347_v17  ;;  %v12608_v49 = vadd.f32 %v3356_v3, %v14950_v53 }
0x14ed   :  { %v9373_v63 = vpop.f32.mrf.mxu0 }
0x14ee   :  { %v12605_v1 = vadd.f32 %v3348_v38, %v14949_v12  ;;  %v3359_v13 = vadd.f32 %v9373_v63, %v12435_v8  ;;  %v3424_v25 = vsel %vm273_vm1, %v12608_v49, 0.0 }
0x14ef   :  { %v3350_v15 = vpop.f32.mrf.mxu0 }
0x14f0   :  { %v3351_v46 = vadd.f32 %v12435_v8, %v3350_v15  ;;  %v3418_v42 = vsel %vm273_vm1, %v12605_v1, 0.0  ;;  %v12618_v48 = vadd.f32 %v3359_v13, %v14952_v33 }
0x14f1   :  { %3419 = vadd.xlane.f32.xlu0 %v3418_v42 }
0x14f2   :  { %v12615_v62 = vadd.f32 %v3351_v46, %v14951_v55  ;;  %v3427_v23 = vsel %vm273_vm1, %v12618_v48, 0.0 }
0x14f4   :  { %v3421_v57 = vsel %vm273_vm1, %v12615_v62, 0.0 }
0x14f5   :  { %3422 = vadd.xlane.f32.xlu1 %v3421_v57  ;;  %3425 = vadd.xlane.f32.xlu0 %v3424_v25  ;;  %v10129_v57 = vld [vmem:[%s14801_s10 + $0x38] sm:$0xff]  }
0x14f6   :  { %9402 = vmatprep.subr.bf16.mxu0 %v10129_v57  ;;  %v10133_v25 = vld [vmem:[%s14801_s10 + $0x18] sm:$0xff]  }
0x14f7   :  { %9403 = vmatpush3.bf16.msra.mxu0 %v10129_v57 }
0x14f9   :  { %3428 = vadd.xlane.f32.xlu1 %v3427_v23 }
0x150e   :  { %v3492_v58 = vpop.xlane.xlu0 %3491 }
0x150f   :  { %v3538_v45 = vmul.f32 0.015625, %v3492_v58  ;;  %v10134_v58 = vld [vmem:[%s14801_s10 + $0x10] sm:$0xff]  }
0x1510   :  { %v3495_v30 = vpop.xlane.xlu1 %3494 }
0x1511   :  { %v3554_v10 = vadd.f32 1e-05, %v3538_v45  ;;  %v3539_v61 = vmul.f32 0.015625, %v3495_v30 }
0x1512   :  { %v3498_v52 = vpop.xlane.xlu0 %3497 }
0x1513   :  { %v3540_v27 = vmul.f32 0.015625, %v3498_v52  ;;  %10457 = vrsqrt.f32 %v3554_v10  ;;  %v3555_v7 = vadd.f32 1e-05, %v3539_v61 }
0x1515   :  { %v3556_v41 = vadd.f32 1e-05, %v3540_v27  ;;  %10459 = vrsqrt.f32 %v3555_v7 }
0x1516   :  { %v3501_v60 = vpop.xlane.xlu0 %3500 }
0x1517   :  { %v3541_v31 = vmul.f32 0.015625, %v3501_v60  ;;  %10461 = vrsqrt.f32 %v3556_v41  ;;  %v14953_v41 = vld [vmem:[#allocation15_spill] sm:$0xff] }
0x1519   :  { %v3557_v43 = vadd.f32 1e-05, %v3541_v31  ;;  %v10135_v31 = vld [vmem:[%s14801_s10 + $0x8] sm:$0xff]  }
0x151b   :  { %10463 = vrsqrt.f32 %v3557_v43 }
0x1520   :  { %v10458_v39 = vpop.eup %10457 }
0x1521   :  { %v3586_v24 = vmul.f32 %v10458_v39, %v12526_v37 }
0x1522   :  { %v10460_v56 = vpop.eup %10459 }
0x1523   :  { %v3587_v35 = vmul.f32 %v10460_v56, %v12529_v34 }
0x1524   :  { %v10462_v6 = vpop.eup %10461 }
0x1525   :  { %v3602_v4 = vpack.c.bf16 %v3587_v35, %v3586_v24  ;;  %v3588_v28 = vmul.f32 %v10462_v6, %v12523_v51  ;;  %v14954_v35 = vld [vmem:[#allocation14_spill] sm:$0xff] }
0x1527   :  { %9386 = vmatprep.mubr.msk.bf16.mxu1 %vm273_vm1, %v3602_v4 }
0x1528   :  { %v10464_v19 = vpop.eup %10463 }
0x1529   :  { %v3589_v32 = vmul.f32 %v10464_v19, %v12534_v22 }
0x152b   :  { %v3603_v21 = vpack.c.bf16 %v3589_v32, %v3588_v28 }
0x152d   :  { %9387 = vmatmul.mubr.msk.bf16.vlgmr.msra.gmra.mxu1 %vm273_vm1, %v3603_v21  ;;  %v14955_v21 = vld [vmem:[#allocation17_spill] sm:$0xff] }
0x1549   :  { %v3507_v2 = vpop.xlane.xlu1 %3506 }
0x154a   :  { %v3543_v16 = vmul.f32 0.015625, %v3507_v2 }
0x154b   :  { %v3504_v40 = vpop.xlane.xlu0 %3503 }
0x154c   :  { %v3559_v44 = vadd.f32 1e-05, %v3543_v16  ;;  %v3542_v29 = vmul.f32 0.015625, %v3504_v40  ;;  %v10136_v16 = vld [vmem:[%s14801_s10] sm:$0xff]  }
0x154d   :  { %v3513_v37 = vpop.xlane.xlu1 %3512 }
0x154e   :  { %10465 = vrsqrt.f32 %v3559_v44  ;;  %v3558_v34 = vadd.f32 1e-05, %v3542_v29  ;;  %v3545_v14 = vmul.f32 0.015625, %v3513_v37  ;;  %v14956_v37 = vld [vmem:[#allocation16_spill] sm:$0xff] }
0x154f   :  { %v3510_v17 = vpop.xlane.xlu0 %3509 }
0x1550   :  { %10467 = vrsqrt.f32 %v3558_v34  ;;  %v3561_v3 = vadd.f32 1e-05, %v3545_v14  ;;  %v3544_v38 = vmul.f32 0.015625, %v3510_v17 }
0x1552   :  { %10469 = vrsqrt.f32 %v3561_v3  ;;  %v3560_v51 = vadd.f32 1e-05, %v3544_v38 }
0x1554   :  { %10471 = vrsqrt.f32 %v3560_v51 }
0x155b   :  { %v10466_v22 = vpop.eup %10465 }
0x155c   :  { %v3591_v15 = vmul.f32 %v10466_v22, %v12563_v0  ;;  %v10130_v0 = vld [vmem:[%s14801_s10 + $0x30] sm:$0xff]  }
0x155d   :  { %v10468_v63 = vpop.eup %10467  ;;  %9404 = vmatprep.subr.bf16.mxu0 %v10130_v0 }
0x155e   :  { %v3590_v12 = vmul.f32 %v10468_v63, %v12567_v20  ;;  %9405 = vmatpush3.bf16.msra.mxu0 %v10130_v0  ;;  %v10131_v20 = vld [vmem:[%s14801_s10 + $0x28] sm:$0xff]  }
0x155f   :  { %v10470_v53 = vpop.eup %10469  ;;  %9406 = vmatprep.subr.bf16.mxu0 %v10131_v20 }
0x1560   :  { %v3604_v13 = vpack.c.bf16 %v3591_v15, %v3590_v12  ;;  %v3593_v55 = vmul.f32 %v10470_v53, %v12560_v11  ;;  %v10132_v11 = vld [vmem:[%s14801_s10 + $0x20] sm:$0xff]  }
0x1561   :  { %v10472_v46 = vpop.eup %10471 }
0x1562   :  { %9390 = vmatprep.mubr.msk.bf16.mxu1 %vm273_vm1, %v3604_v13  ;;  %v3592_v42 = vmul.f32 %v10472_v46, %v12574_v54  ;;  %9407 = vmatpush3.bf16.msra.mxu0 %v10131_v20  ;;  %v12713_v46 = vld [vmem:[%s14802_s9] ss:$0 sm:$0xff] }
0x1563   :  { %9408 = vmatprep.subr.bf16.mxu0 %v10132_v11 }
0x1564   :  { %v3605_v33 = vpack.c.bf16 %v3593_v55, %v3592_v42 }
0x1566   :  { %9391 = vmatmul.mubr.msk.bf16.gmra.mxu1 %vm273_vm1, %v3605_v33  ;;  %9409 = vmatpush3.bf16.msra.mxu0 %v10132_v11 }
0x1567   :  { %9410 = vmatprep.subr.bf16.mxu0 %v10133_v25 }
0x156a   :  { %9411 = vmatpush3.bf16.msra.mxu0 %v10133_v25 }
0x156b   :  { %9412 = vmatprep.subr.bf16.mxu0 %v10134_v58 }
0x156e   :  { %9413 = vmatpush3.bf16.msra.mxu0 %v10134_v58 }
0x156f   :  { %9414 = vmatprep.subr.bf16.mxu0 %v10135_v31 }
0x1572   :  { %9415 = vmatpush3.bf16.msra.mxu0 %v10135_v31 }
0x1573   :  { %9416 = vmatprep.subr.bf16.mxu0 %v10136_v16 }
0x1576   :  { %9417 = vmatpush3.bf16.msra.mxu0 %v10136_v16 }
0x157a   :  { %v3420_v54 = vpop.xlane.xlu0 %3419 }
0x157b   :  { %v3450_v45 = vmul.f32 0.015625, %v3420_v54 }
0x157d   :  { %v12665_v43 = vsub.f32 %v12605_v1, %v3450_v45 }
0x157e   :  { %v3423_v10 = vpop.xlane.xlu1 %3422  ;;  %v3426_v61 = vpop.xlane.xlu0 %3425 }
0x157f   :  { %v3451_v39 = vmul.f32 0.015625, %v3423_v10  ;;  %v3452_v56 = vmul.f32 0.015625, %v3426_v61 }
0x1581   :  { %v12681_v40 = vsub.f32 %v12615_v62, %v3451_v39  ;;  %v12684_v44 = vsub.f32 %v12608_v49, %v3452_v56 }
0x1582   :  { %v3429_v32 = vpop.xlane.xlu1 %3428 }
0x1583   :  { %v3453_v29 = vmul.f32 0.015625, %v3429_v32  ;;  %v3483_v22 = vmul.f32 %v12681_v40, %v12681_v40  ;;  %v3484_v63 = vmul.f32 %v12684_v44, %v12684_v44 }
0x1585   :  { %v12697_v38 = vsub.f32 %v12618_v48, %v3453_v29  ;;  %v3517_v12 = vsel %vm273_vm1, %v3483_v22, 0.0  ;;  %v3520_v15 = vsel %vm273_vm1, %v3484_v63, 0.0 }
0x1587   :  { %v3485_v53 = vmul.f32 %v12697_v38, %v12697_v38 }
0x1589   :  { %v9376_v23 = vpop.f32.mrf.mxu0  ;;  %v3523_v13 = vsel %vm273_vm1, %v3485_v53, 0.0 }
0x158a   :  { %v3372_v52 = vadd.f32 %v9376_v23, %v12435_v8 }
0x158b   :  { %v3363_v30 = vpop.f32.mrf.mxu0 }
0x158c   :  { %v3364_v27 = vadd.f32 %v12435_v8, %v3363_v30  ;;  %v12668_v6 = vadd.f32 %v3372_v52, %v14954_v35 }
0x158d   :  { %v9377_v7 = vpop.f32.mrf.mxu0 }
0x158e   :  { %v12659_v60 = vadd.f32 %v3364_v27, %v14953_v41  ;;  %v3375_v4 = vadd.f32 %v9377_v7, %v12435_v8  ;;  %v3436_v17 = vsel %vm273_vm1, %v12668_v6, 0.0 }
0x158f   :  { %v3366_v24 = vpop.f32.mrf.mxu0 }
0x1590   :  { %v3367_v19 = vadd.f32 %v12435_v8, %v3366_v24  ;;  %v3430_v28 = vsel %vm273_vm1, %v12659_v60, 0.0  ;;  %v3482_v8 = vmul.f32 %v12665_v43, %v12665_v43  ;;  %v12689_v34 = vadd.f32 %v3375_v4, %v14956_v37 }
0x1591   :  { %3431 = vadd.xlane.f32.xlu0 %v3430_v28 }
0x1592   :  { %v12675_v2 = vadd.f32 %v3367_v19, %v14955_v21  ;;  %v3514_v3 = vsel %vm273_vm1, %v3482_v8, 0.0  ;;  %v3439_v51 = vsel %vm273_vm1, %v12689_v34, 0.0 }
0x1594   :  { %v3433_v14 = vsel %vm273_vm1, %v12675_v2, 0.0 }
0x1595   :  { %3434 = vadd.xlane.f32.xlu1 %v3433_v14  ;;  %3437 = vadd.xlane.f32.xlu0 %v3436_v17 }
0x1599   :  { %3440 = vadd.xlane.f32.xlu1 %v3439_v51  ;;  %3515 = vadd.xlane.f32.xlu0 %v3514_v3 }
0x159d   :  { %3518 = vadd.xlane.f32.xlu1 %v3517_v12  ;;  %3521 = vadd.xlane.f32.xlu0 %v3520_v15 }
0x15a1   :  { %3524 = vadd.xlane.f32.xlu1 %v3523_v13 }
0x15ed   :  { %v9388_v42 = vpop.f32.mrf.mxu1 }
0x15ee   :  { %v3716_v55 = vadd.f32 %v9388_v42, %v12713_v46 }
0x15ef   :  { %v3707_v33 = vpop.f32.mrf.mxu1 }
0x15f0   :  { %v3772_v57 = vmul.f32 %v3716_v55, %v3716_v55  ;;  %v3708_v0 = vadd.f32 %v12713_v46, %v3707_v33 }
0x15f1   :  { %v9389_v20 = vpop.f32.mrf.mxu1 }
0x15f2   :  { %v3788_v11 = vmul.f32 %v3772_v57, %v3716_v55  ;;  %v3770_v54 = vmul.f32 %v3708_v0, %v3708_v0  ;;  %v3719_v25 = vadd.f32 %v9389_v20, %v12713_v46 }
0x15f3   :  { %v3710_v23 = vpop.f32.mrf.mxu1 }
0x15f4   :  { %v3804_v58 = vmul.f32 0.044715, %v3788_v11  ;;  %v3786_v45 = vmul.f32 %v3770_v54, %v3708_v0  ;;  %v3773_v10 = vmul.f32 %v3719_v25, %v3719_v25  ;;  %v3711_v30 = vadd.f32 %v12713_v46, %v3710_v23 }
0x15f6   :  { %v3820_v61 = vadd.f32 %v3804_v58, %v3716_v55  ;;  %v3802_v52 = vmul.f32 0.044715, %v3786_v45  ;;  %v3789_v27 = vmul.f32 %v3773_v10, %v3719_v25  ;;  %v3771_v7 = vmul.f32 %v3711_v30, %v3711_v30 }
0x15f8   :  { %v3836_v41 = vmul.f32 0.7978846, %v3820_v61  ;;  %v3818_v31 = vadd.f32 %v3802_v52, %v3708_v0  ;;  %v3805_v39 = vmul.f32 0.044715, %v3789_v27  ;;  %v3787_v56 = vmul.f32 %v3771_v7, %v3711_v30 }
0x15fa   :  { %v3834_v24 = vmul.f32 0.7978846, %v3818_v31  ;;  %v3821_v35 = vadd.f32 %v3805_v39, %v3719_v25  ;;  %v3803_v4 = vmul.f32 0.044715, %v3787_v56  ;;  %10473 = vtanh.f32 %v3836_v41 }
0x15fc   :  { %10475 = vtanh.f32 %v3834_v24  ;;  %v3837_v19 = vmul.f32 0.7978846, %v3821_v35  ;;  %v3819_v28 = vadd.f32 %v3803_v4, %v3711_v30 }
0x15fe   :  { %10477 = vtanh.f32 %v3837_v19  ;;  %v3835_v32 = vmul.f32 0.7978846, %v3819_v28 }
0x1600   :  { %10479 = vtanh.f32 %v3835_v32 }
0x1607   :  { %v10474_v21 = vpop.eup %10473 }
0x1608   :  { %v3868_v37 = vadd.f32 1.0, %v10474_v21 }
0x1609   :  { %v10476_v16 = vpop.eup %10475 }
0x160a   :  { %v3866_v8 = vadd.f32 1.0, %v10476_v16  ;;  %v3884_v63 = vmul.f32 0.5, %v3868_v37 }
0x160b   :  { %v10478_v29 = vpop.eup %10477 }
0x160c   :  { %v3869_v14 = vadd.f32 1.0, %v10478_v29  ;;  %v3882_v22 = vmul.f32 0.5, %v3866_v8  ;;  %v3900_v42 = vmul.f32 %v3884_v63, %v3716_v55 }
0x160d   :  { %v10480_v17 = vpop.eup %10479 }
0x160e   :  { %v3885_v3 = vmul.f32 0.5, %v3869_v14  ;;  %v3867_v51 = vadd.f32 1.0, %v10480_v17  ;;  %v3898_v53 = vmul.f32 %v3882_v22, %v3708_v0 }
0x1610   :  { %v3883_v12 = vmul.f32 0.5, %v3867_v51  ;;  %v3901_v15 = vmul.f32 %v3885_v3, %v3719_v25 }
0x1612   :  { %v3899_v13 = vmul.f32 %v3883_v12, %v3711_v30  ;;  %v3915_v57 = vpack.c.bf16 %v3901_v15, %v3900_v42 }
0x1614   :  { %v3914_v33 = vpack.c.bf16 %v3899_v13, %v3898_v53 }
0x1616   :  { %9418 = vmatprep.mubr.bf16.mxu0 %v3914_v33 }
0x1617   :  { %9419 = vmatmul.mubr.bf16.vlgmr.msra.gmra.mxu0 %v3915_v57 }
0x161a   :  { %v3432_v20 = vpop.xlane.xlu0 %3431 }
0x161b   :  { %v3454_v11 = vmul.f32 0.015625, %v3432_v20 }
0x161d   :  { %v12720_v54 = vsub.f32 %v12659_v60, %v3454_v11 }
0x161e   :  { %v3435_v23 = vpop.xlane.xlu1 %3434  ;;  %v3438_v58 = vpop.xlane.xlu0 %3437 }
0x161f   :  { %v3455_v45 = vmul.f32 0.015625, %v3435_v23  ;;  %v3456_v10 = vmul.f32 0.015625, %v3438_v58  ;;  %v3486_v61 = vmul.f32 %v12720_v54, %v12720_v54 }
0x1621   :  { %v12725_v0 = vsub.f32 %v12675_v2, %v3455_v45  ;;  %v12728_v55 = vsub.f32 %v12668_v6, %v3456_v10  ;;  %v3526_v25 = vsel %vm273_vm1, %v3486_v61, 0.0 }
0x1622   :  { %v3441_v30 = vpop.xlane.xlu1 %3440  ;;  %3527 = vadd.xlane.f32.xlu0 %v3526_v25  ;;  %v3516_v52 = vpop.xlane.xlu0 %3515 }
0x1623   :  { %v3457_v27 = vmul.f32 0.015625, %v3441_v30  ;;  %v3546_v7 = vmul.f32 0.015625, %v3516_v52  ;;  %v3487_v41 = vmul.f32 %v12725_v0, %v12725_v0  ;;  %v3488_v31 = vmul.f32 %v12728_v55, %v12728_v55 }
0x1625   :  { %v12736_v39 = vsub.f32 %v12689_v34, %v3457_v27  ;;  %v3562_v56 = vadd.f32 1e-05, %v3546_v7  ;;  %v3529_v24 = vsel %vm273_vm1, %v3487_v41, 0.0  ;;  %v3532_v35 = vsel %vm273_vm1, %v3488_v31, 0.0 }
0x1626   :  { %3530 = vadd.xlane.f32.xlu1 %v3529_v24  ;;  %v3519_v4 = vpop.xlane.xlu1 %3518  ;;  %3533 = vadd.xlane.f32.xlu0 %v3532_v35  ;;  %v3522_v19 = vpop.xlane.xlu0 %3521 }
0x1627   :  { %v9392_v28 = vpop.f32.mrf.mxu1  ;;  %v3547_v32 = vmul.f32 0.015625, %v3519_v4  ;;  %v3548_v21 = vmul.f32 0.015625, %v3522_v19  ;;  %v3489_v16 = vmul.f32 %v12736_v39, %v12736_v39  ;;  %10481 = vrsqrt.f32 %v3562_v56 }
0x1628   :  { %v12743_v8 = vadd.f32 %v9392_v28, %v12713_v46 }
0x1629   :  { %v3563_v29 = vadd.f32 1e-05, %v3547_v32  ;;  %v3564_v37 = vadd.f32 1e-05, %v3548_v21  ;;  %v3723_v14 = vpop.f32.mrf.mxu1  ;;  %v3535_v17 = vsel %vm273_vm1, %v3489_v16, 0.0 }
0x162a   :  { %v3776_v3 = vmul.f32 %v12743_v8, %v12743_v8  ;;  %v3724_v51 = vadd.f32 %v12713_v46, %v3723_v14  ;;  %3536 = vadd.xlane.f32.xlu1 %v3535_v17  ;;  %v3525_v22 = vpop.xlane.xlu1 %3524 }
0x162b   :  { %10483 = vrsqrt.f32 %v3563_v29  ;;  %v9393_v63 = vpop.f32.mrf.mxu1  ;;  %v3549_v12 = vmul.f32 0.015625, %v3525_v22 }
0x162c   :  { %v3792_v15 = vmul.f32 %v3776_v3, %v12743_v8  ;;  %v3774_v53 = vmul.f32 %v3724_v51, %v3724_v51  ;;  %v3735_v13 = vadd.f32 %v9393_v63, %v12713_v46  ;;  %10485 = vrsqrt.f32 %v3564_v37 }
0x162d   :  { %v3565_v42 = vadd.f32 1e-05, %v3549_v12  ;;  %v3726_v33 = vpop.f32.mrf.mxu1 }
0x162e   :  { %v3808_v57 = vmul.f32 0.044715, %v3792_v15  ;;  %v3790_v20 = vmul.f32 %v3774_v53, %v3724_v51  ;;  %v3777_v11 = vmul.f32 %v3735_v13, %v3735_v13  ;;  %v3727_v23 = vadd.f32 %v12713_v46, %v3726_v33 }
0x162f   :  { %10487 = vrsqrt.f32 %v3565_v42 }
0x1630   :  { %v3824_v58 = vadd.f32 %v3808_v57, %v12743_v8  ;;  %v3806_v45 = vmul.f32 0.044715, %v3790_v20  ;;  %v3793_v10 = vmul.f32 %v3777_v11, %v3735_v13  ;;  %v3775_v61 = vmul.f32 %v3727_v23, %v3727_v23 }
0x1632   :  { %v3840_v25 = vmul.f32 0.7978846, %v3824_v58  ;;  %v3822_v30 = vadd.f32 %v3806_v45, %v3724_v51  ;;  %v3809_v52 = vmul.f32 0.044715, %v3793_v10  ;;  %v3791_v27 = vmul.f32 %v3775_v61, %v3727_v23 }
0x1634   :  { %v3838_v7 = vmul.f32 0.7978846, %v3822_v30  ;;  %v3825_v41 = vadd.f32 %v3809_v52, %v3735_v13  ;;  %v3807_v31 = vmul.f32 0.044715, %v3791_v27  ;;  %10489 = vtanh.f32 %v3840_v25  ;;  %v10482_v56 = vpop.eup %10481 }
0x1635   :  { %v3594_v28 = vmul.f32 %v10482_v56, %v12665_v43 }
0x1636   :  { %10491 = vtanh.f32 %v3838_v7  ;;  %v3841_v24 = vmul.f32 0.7978846, %v3825_v41  ;;  %v3823_v35 = vadd.f32 %v3807_v31, %v3727_v23 }
0x1638   :  { %v10484_v4 = vpop.eup %10483  ;;  %10493 = vtanh.f32 %v3841_v24  ;;  %v3839_v19 = vmul.f32 0.7978846, %v3823_v35 }
0x1639   :  { %v3595_v32 = vmul.f32 %v10484_v4, %v12681_v40  ;;  %v10486_v21 = vpop.eup %10485 }
0x163a   :  { %10495 = vtanh.f32 %v3839_v19  ;;  %v3596_v37 = vmul.f32 %v10486_v21, %v12684_v44 }
0x163b   :  { %v3606_v16 = vpack.c.bf16 %v3595_v32, %v3594_v28 }
0x163c   :  { %v10488_v29 = vpop.eup %10487 }
0x163d   :  { %9394 = vmatprep.mubr.msk.bf16.mxu1 %vm273_vm1, %v3606_v16  ;;  %v3597_v14 = vmul.f32 %v10488_v29, %v12697_v38 }
0x163f   :  { %v3607_v17 = vpack.c.bf16 %v3597_v14, %v3596_v37  ;;  %v14957_v37 = vmov 0  }
0x1641   :  { %9395 = vmatmul.mubr.msk.bf16.gmra.mxu1 %vm273_vm1, %v3607_v17  ;;  %v10490_v3 = vpop.eup %10489 }
0x1642   :  { %v3872_v43 = vadd.f32 1.0, %v10490_v3 }
0x1643   :  { %v10492_v22 = vpop.eup %10491 }
0x1644   :  { %v3870_v63 = vadd.f32 1.0, %v10492_v22  ;;  %v3888_v57 = vmul.f32 0.5, %v3872_v43 }
0x1645   :  { %v10494_v12 = vpop.eup %10493 }
0x1646   :  { %v3873_v15 = vadd.f32 1.0, %v10494_v12  ;;  %v3886_v42 = vmul.f32 0.5, %v3870_v63  ;;  %v3904_v38 = vmul.f32 %v3888_v57, %v12743_v8 }
0x1647   :  { %v10496_v40 = vpop.eup %10495 }
0x1648   :  { %v3871_v53 = vadd.f32 1.0, %v10496_v40  ;;  %v3889_v33 = vmul.f32 0.5, %v3873_v15  ;;  %v3902_v58 = vmul.f32 %v3886_v42, %v3724_v51 }
0x164a   :  { %v3887_v20 = vmul.f32 0.5, %v3871_v53  ;;  %v3905_v11 = vmul.f32 %v3889_v33, %v3735_v13 }
0x164c   :  { %v3903_v44 = vmul.f32 %v3887_v20, %v3727_v23  ;;  %v3917_v10 = vpack.c.bf16 %v3905_v11, %v3904_v38 }
0x164e   :  { %v3916_v45 = vpack.c.bf16 %v3903_v44, %v3902_v58 }
0x1650   :  { %9422 = vmatprep.mubr.bf16.mxu0 %v3916_v45 }
0x1651   :  { %9423 = vmatmul.mubr.bf16.gmra.mxu0 %v3917_v10 }
0x16ab   :  { %v3528_v61 = vpop.xlane.xlu0 %3527 }
0x16ac   :  { %v3550_v25 = vmul.f32 0.015625, %v3528_v61 }
0x16ae   :  { %v3566_v30 = vadd.f32 1e-05, %v3550_v25 }
0x16af   :  { %v3531_v52 = vpop.xlane.xlu1 %3530  ;;  %v3534_v27 = vpop.xlane.xlu0 %3533 }
0x16b0   :  { %v3551_v7 = vmul.f32 0.015625, %v3531_v52  ;;  %v3552_v41 = vmul.f32 0.015625, %v3534_v27  ;;  %10497 = vrsqrt.f32 %v3566_v30 }
0x16b2   :  { %v3567_v31 = vadd.f32 1e-05, %v3551_v7  ;;  %v3568_v56 = vadd.f32 1e-05, %v3552_v41 }
0x16b3   :  { %v3537_v24 = vpop.xlane.xlu1 %3536 }
0x16b4   :  { %10499 = vrsqrt.f32 %v3567_v31  ;;  %v3553_v51 = vmul.f32 0.015625, %v3537_v24 }
0x16b5   :  { %10501 = vrsqrt.f32 %v3568_v56 }
0x16b6   :  { %v3569_v13 = vadd.f32 1e-05, %v3553_v51 }
0x16b8   :  { %10503 = vrsqrt.f32 %v3569_v13 }
0x16bd   :  { %v10498_v8 = vpop.eup %10497 }
0x16be   :  { %v3598_v35 = vmul.f32 %v10498_v8, %v12720_v54  ;;  %v12770_v54 = vld [vmem:[%s14803_s11] ss:$0 sm:$0xff] }
0x16c1   :  { %v10500_v23 = vpop.eup %10499 }
0x16c2   :  { %v3599_v4 = vmul.f32 %v10500_v23, %v12725_v0  ;;  %v10502_v19 = vpop.eup %10501 }
0x16c3   :  { %v3600_v21 = vmul.f32 %v10502_v19, %v12728_v55 }
0x16c4   :  { %v3608_v28 = vpack.c.bf16 %v3599_v4, %v3598_v35 }
0x16c5   :  { %v10504_v32 = vpop.eup %10503 }
0x16c6   :  { %9398 = vmatprep.mubr.msk.bf16.mxu1 %vm273_vm1, %v3608_v28  ;;  %v3601_v16 = vmul.f32 %v10504_v32, %v12736_v39 }
0x16c8   :  { %v3609_v29 = vpack.c.bf16 %v3601_v16, %v3600_v21 }
0x16ca   :  { %9399 = vmatmul.mubr.msk.bf16.gmra.mxu1 %vm273_vm1, %v3609_v29 }
0x16cb   :  { %4438 = vmatprep.mubr.bf16.mxu1 %v14957_v37 }
0x16d7   :  { %v9420_v14 = vpop.f32.mrf.mxu0 }
0x16d8   :  { %v4036_v17 = vadd.f32 %v9420_v14, %v12770_v54 }
0x16d9   :  { %v4027_v0 = vpop.f32.mrf.mxu0 }
0x16da   :  { %v4028_v3 = vadd.f32 %v12770_v54, %v4027_v0  ;;  %v12778_v63 = vadd.f32 %v4036_v17, %v12439_v26 }
0x16db   :  { %v9421_v22 = vpop.f32.mrf.mxu0 }
0x16dc   :  { %v12775_v55 = vadd.f32 %v4028_v3, %v12443_v18  ;;  %14959 = vst [vmem:[#allocation19_spill] sm:$0xff] %v12778_v63  ;;  %v4039_v12 = vadd.f32 %v9421_v22, %v12770_v54  ;;  %v4112_v26 = vsel %vm273_vm1, %v12778_v63, 0.0 }
0x16dd   :  { %v4030_v39 = vpop.f32.mrf.mxu0 }
0x16de   :  { %14958 = vst [vmem:[#allocation20_spill] sm:$0xff] %v12775_v55  ;;  %v4031_v43 = vadd.f32 %v12770_v54, %v4030_v39  ;;  %v4106_v15 = vsel %vm273_vm1, %v12775_v55, 0.0  ;;  %v12788_v53 = vadd.f32 %v4039_v12, %v12450_v47 }
0x16df   :  { %4107 = vadd.xlane.f32.xlu0 %v4106_v15 }
0x16e0   :  { %v12785_v40 = vadd.f32 %v4031_v43, %v12453_v9  ;;  %14961 = vst [vmem:[#allocation22_spill] sm:$0xff] %v12788_v53  ;;  %v4115_v42 = vsel %vm273_vm1, %v12788_v53, 0.0 }
0x16e2   :  { %14960 = vst [vmem:[#allocation24_spill] sm:$0xff] %v12785_v40  ;;  %v4109_v18 = vsel %vm273_vm1, %v12785_v40, 0.0 }
0x16e3   :  { %4110 = vadd.xlane.f32.xlu1 %v4109_v18  ;;  %4113 = vadd.xlane.f32.xlu0 %v4112_v26 }
0x16e7   :  { %4116 = vadd.xlane.f32.xlu1 %v4115_v42 }
0x1701   :  { %v9396_v33 = vpop.f32.mrf.mxu1 }
0x1702   :  { %v12797_v57 = vadd.f32 %v9396_v33, %v12713_v46 }
0x1703   :  { %v3739_v9 = vpop.f32.mrf.mxu1 }
0x1704   :  { %v3780_v47 = vmul.f32 %v12797_v57, %v12797_v57  ;;  %v3740_v20 = vadd.f32 %v12713_v46, %v3739_v9 }
0x1705   :  { %v9397_v11 = vpop.f32.mrf.mxu1 }
0x1706   :  { %v3796_v58 = vmul.f32 %v3780_v47, %v12797_v57  ;;  %v3778_v44 = vmul.f32 %v3740_v20, %v3740_v20  ;;  %v3751_v38 = vadd.f32 %v9397_v11, %v12713_v46 }
0x1707   :  { %v3742_v45 = vpop.f32.mrf.mxu1 }
0x1708   :  { %v3812_v10 = vmul.f32 0.044715, %v3796_v58  ;;  %v3794_v61 = vmul.f32 %v3778_v44, %v3740_v20  ;;  %v3781_v25 = vmul.f32 %v3751_v38, %v3751_v38  ;;  %v3743_v30 = vadd.f32 %v12713_v46, %v3742_v45 }
0x170a   :  { %v3828_v52 = vadd.f32 %v3812_v10, %v12797_v57  ;;  %v3810_v27 = vmul.f32 0.044715, %v3794_v61  ;;  %v3797_v7 = vmul.f32 %v3781_v25, %v3751_v38  ;;  %v3779_v41 = vmul.f32 %v3743_v30, %v3743_v30 }
0x170c   :  { %v3844_v31 = vmul.f32 0.7978846, %v3828_v52  ;;  %v3826_v56 = vadd.f32 %v3810_v27, %v3740_v20  ;;  %v3813_v24 = vmul.f32 0.044715, %v3797_v7  ;;  %v3795_v51 = vmul.f32 %v3779_v41, %v3743_v30 }
0x170e   :  { %v3842_v13 = vmul.f32 0.7978846, %v3826_v56  ;;  %v3829_v8 = vadd.f32 %v3813_v24, %v3751_v38  ;;  %v3811_v23 = vmul.f32 0.044715, %v3795_v51  ;;  %10505 = vtanh.f32 %v3844_v31 }
0x1710   :  { %10507 = vtanh.f32 %v3842_v13  ;;  %v3845_v35 = vmul.f32 0.7978846, %v3829_v8  ;;  %v3827_v4 = vadd.f32 %v3811_v23, %v3743_v30 }
0x1711   :  { %v9424_v19 = vpop.f32.mrf.mxu0 }
0x1712   :  { %10509 = vtanh.f32 %v3845_v35  ;;  %v3843_v28 = vmul.f32 0.7978846, %v3827_v4  ;;  %v4052_v21 = vadd.f32 %v9424_v19, %v12770_v54 }
0x1713   :  { %v4043_v32 = vpop.f32.mrf.mxu0 }
0x1714   :  { %10511 = vtanh.f32 %v3843_v28  ;;  %v4044_v16 = vadd.f32 %v12770_v54, %v4043_v32  ;;  %v12812_v17 = vadd.f32 %v4052_v21, %v12491_v36 }
0x1715   :  { %v9425_v29 = vpop.f32.mrf.mxu0 }
0x1716   :  { %v12809_v14 = vadd.f32 %v4044_v16, %v12502_v59  ;;  %14963 = vst [vmem:[#allocation21_spill] sm:$0xff] %v12812_v17  ;;  %v4055_v3 = vadd.f32 %v9425_v29, %v12770_v54  ;;  %v4124_v36 = vsel %vm273_vm1, %v12812_v17, 0.0 }
0x1717   :  { %v4046_v0 = vpop.f32.mrf.mxu0 }
0x1718   :  { %14962 = vst [vmem:[#allocation23_spill] sm:$0xff] %v12809_v14  ;;  %v4047_v22 = vadd.f32 %v12770_v54, %v4046_v0  ;;  %v4118_v39 = vsel %vm273_vm1, %v12809_v14, 0.0  ;;  %v12822_v15 = vadd.f32 %v4055_v3, %v12487_v5  ;;  %v10139_v0 = vld [vmem:[%s14804_s12 + $0x34] ss:$8 sps:$4 sm:$0xff]   ;;  %v10137_v3 = vld [vmem:[%s14804_s12 + $0x30] ss:$8 sps:$4 sm:$0xff]  }
0x1719   :  { %4119 = vadd.xlane.f32.xlu0 %v4118_v39  ;;  %4414 = vmatprep.subr.bf16.mxu1 %v10139_v0  ;;  %v10140_v39 = vld [vmem:[%s14804_s12 + $0x20] ss:$8 sps:$4 sm:$0xff]  }
0x171a   :  { %v12819_v12 = vadd.f32 %v4047_v22, %v12497_v50  ;;  %14965 = vst [vmem:[#allocation33_spill] sm:$0xff] %v12822_v15  ;;  %v4127_v50 = vsel %vm273_vm1, %v12822_v15, 0.0  ;;  %4415 = vmatpush1.bf16.msra.mxu1 %v10137_v3  ;;  %v10142_v22 = vld [vmem:[%s14804_s12 + $0x24] ss:$8 sps:$4 sm:$0xff]  }
0x171b   :  { %v10506_v43 = vpop.eup %10505  ;;  %4416 = vmatprep.subr.bf16.mxu1 %v10142_v22 }
0x171c   :  { %14964 = vst [vmem:[#allocation35_spill] sm:$0xff] %v12819_v12  ;;  %v4121_v59 = vsel %vm273_vm1, %v12819_v12, 0.0  ;;  %v3876_v33 = vadd.f32 1.0, %v10506_v43 }
0x171d   :  { %v10508_v18 = vpop.eup %10507  ;;  %4122 = vadd.xlane.f32.xlu1 %v4121_v59  ;;  %4125 = vadd.xlane.f32.xlu0 %v4124_v36 }
0x171e   :  { %v3874_v26 = vadd.f32 1.0, %v10508_v18  ;;  %v3892_v44 = vmul.f32 0.5, %v3876_v33  ;;  %4417 = vmatpush1.bf16.msra.mxu1 %v10140_v39  ;;  %v10145_v18 = vld [vmem:[%s14804_s12 + $0x14] ss:$8 sps:$4 sm:$0xff]   ;;  %v10143_v33 = vld [vmem:[%s14804_s12 + $0x10] ss:$8 sps:$4 sm:$0xff]  }
0x171f   :  { %v10510_v42 = vpop.eup %10509  ;;  %4418 = vmatprep.subr.bf16.mxu1 %v10145_v18 }
0x1720   :  { %v3877_v9 = vadd.f32 1.0, %v10510_v42  ;;  %v3890_v58 = vmul.f32 0.5, %v3874_v26  ;;  %v3908_v52 = vmul.f32 %v3892_v44, %v12797_v57  ;;  %v10148_v44 = vld [vmem:[%s14804_s12 + $0x4] ss:$8 sps:$4 sm:$0xff]  }
0x1721   :  { %v10512_v47 = vpop.eup %10511  ;;  %4128 = vadd.xlane.f32.xlu1 %v4127_v50 }
0x1722   :  { %v3893_v5 = vmul.f32 0.5, %v3877_v9  ;;  %v3875_v11 = vadd.f32 1.0, %v10512_v47  ;;  %v3906_v61 = vmul.f32 %v3890_v58, %v3740_v20  ;;  %4419 = vmatpush1.bf16.msra.mxu1 %v10143_v33  ;;  %v10146_v58 = vld [vmem:[%s14804_s12] ss:$8 sps:$4 sm:$0xff]  }
0x1723   :  { %4420 = vmatprep.subr.bf16.mxu1 %v10148_v44 }
0x1724   :  { %v3891_v45 = vmul.f32 0.5, %v3875_v11  ;;  %v3909_v10 = vmul.f32 %v3893_v5, %v3751_v38 }
0x1726   :  { %v3907_v25 = vmul.f32 %v3891_v45, %v3743_v30  ;;  %v3919_v7 = vpack.c.bf16 %v3909_v10, %v3908_v52  ;;  %4421 = vmatpush1.bf16.msra.mxu1 %v10146_v58 }
0x1728   :  { %v3918_v27 = vpack.c.bf16 %v3907_v25, %v3906_v61 }
0x172a   :  { %9426 = vmatprep.mubr.bf16.mxu0 %v3918_v27 }
0x172b   :  { %9427 = vmatmul.mubr.bf16.gmra.mxu0 %v3919_v7 }
0x1768   :  { %v4108_v41 = vpop.xlane.xlu0 %4107 }
0x1769   :  { %v4154_v31 = vmul.f32 0.015625, %v4108_v41 }
0x176b   :  { %v12832_v56 = vsub.f32 %v12775_v55, %v4154_v31 }
0x176c   :  { %v4111_v24 = vpop.xlane.xlu1 %4110  ;;  %v4114_v51 = vpop.xlane.xlu0 %4113 }
0x176d   :  { %v4155_v13 = vmul.f32 0.015625, %v4111_v24  ;;  %v4156_v8 = vmul.f32 0.015625, %v4114_v51  ;;  %v4186_v38 = vmul.f32 %v12832_v56, %v12832_v56 }
0x176f   :  { %v12837_v20 = vsub.f32 %v12785_v40, %v4155_v13  ;;  %v12840_v57 = vsub.f32 %v12778_v63, %v4156_v8  ;;  %v4202_v30 = vsel %vm273_vm1, %v4186_v38, 0.0 }
0x1770   :  { %v4117_v23 = vpop.xlane.xlu1 %4116  ;;  %4203 = vadd.xlane.f32.xlu0 %v4202_v30 }
0x1771   :  { %v4157_v35 = vmul.f32 0.015625, %v4117_v23  ;;  %v4187_v4 = vmul.f32 %v12837_v20, %v12837_v20  ;;  %v4188_v19 = vmul.f32 %v12840_v57, %v12840_v57 }
0x1773   :  { %v12848_v28 = vsub.f32 %v12788_v53, %v4157_v35  ;;  %v4205_v32 = vsel %vm273_vm1, %v4187_v4, 0.0  ;;  %v4208_v21 = vsel %vm273_vm1, %v4188_v19, 0.0 }
0x1774   :  { %4206 = vadd.xlane.f32.xlu1 %v4205_v32  ;;  %4209 = vadd.xlane.f32.xlu0 %v4208_v21 }
0x1775   :  { %v4189_v16 = vmul.f32 %v12848_v28, %v12848_v28 }
0x1777   :  { %v4211_v29 = vsel %vm273_vm1, %v4189_v16, 0.0 }
0x1778   :  { %4212 = vadd.xlane.f32.xlu1 %v4211_v29 }
0x178a   :  { %v9400_v43 = vpop.f32.mrf.mxu1 }
0x178b   :  { %v12868_v59 = vadd.f32 %v9400_v43, %v12713_v46 }
0x178c   :  { %v3755_v36 = vpop.f32.mrf.mxu1 }
0x178d   :  { %v3784_v26 = vmul.f32 %v12868_v59, %v12868_v59  ;;  %v12876_v42 = vadd.f32 %v12713_v46, %v3755_v36 }
0x178e   :  { %v9401_v9 = vpop.f32.mrf.mxu1 }
0x178f   :  { %v3800_v50 = vmul.f32 %v3784_v26, %v12868_v59  ;;  %v3782_v47 = vmul.f32 %v12876_v42, %v12876_v42  ;;  %v3767_v5 = vadd.f32 %v9401_v9, %v12713_v46 }
0x1790   :  { %v3758_v11 = vpop.f32.mrf.mxu1 }
0x1791   :  { %v3816_v45 = vmul.f32 0.044715, %v3800_v50  ;;  %v3798_v10 = vmul.f32 %v3782_v47, %v12876_v42  ;;  %v3785_v61 = vmul.f32 %v3767_v5, %v3767_v5  ;;  %v3759_v25 = vadd.f32 %v12713_v46, %v3758_v11 }
0x1793   :  { %v3832_v52 = vadd.f32 %v3816_v45, %v12868_v59  ;;  %v3814_v27 = vmul.f32 0.044715, %v3798_v10  ;;  %v3801_v7 = vmul.f32 %v3785_v61, %v3767_v5  ;;  %v3783_v41 = vmul.f32 %v3759_v25, %v3759_v25 }
0x1795   :  { %v3848_v31 = vmul.f32 0.7978846, %v3832_v52  ;;  %v3830_v24 = vadd.f32 %v3814_v27, %v12876_v42  ;;  %v3817_v51 = vmul.f32 0.044715, %v3801_v7  ;;  %v3799_v13 = vmul.f32 %v3783_v41, %v3759_v25 }
0x1797   :  { %v3846_v8 = vmul.f32 0.7978846, %v3830_v24  ;;  %v3833_v38 = vadd.f32 %v3817_v51, %v3767_v5  ;;  %v3815_v30 = vmul.f32 0.044715, %v3799_v13  ;;  %10513 = vtanh.f32 %v3848_v31 }
0x1799   :  { %10515 = vtanh.f32 %v3846_v8  ;;  %v3849_v23 = vmul.f32 0.7978846, %v3833_v38  ;;  %v3831_v35 = vadd.f32 %v3815_v30, %v3759_v25 }
0x179b   :  { %10517 = vtanh.f32 %v3849_v23  ;;  %v3847_v46 = vmul.f32 0.7978846, %v3831_v35 }
0x179d   :  { %10519 = vtanh.f32 %v3847_v46 }
0x17a2   :  { %v4120_v4 = vpop.xlane.xlu0 %4119 }
0x17a3   :  { %v4158_v19 = vmul.f32 0.015625, %v4120_v4 }
0x17a4   :  { %v10514_v32 = vpop.eup %10513 }
0x17a5   :  { %v12896_v21 = vsub.f32 %v12809_v14, %v4158_v19  ;;  %v3880_v18 = vadd.f32 1.0, %v10514_v32 }
0x17a6   :  { %v10516_v16 = vpop.eup %10515  ;;  %v4123_v29 = vpop.xlane.xlu1 %4122 }
0x17a7   :  { %v4126_v0 = vpop.xlane.xlu0 %4125  ;;  %v4159_v3 = vmul.f32 0.015625, %v4123_v29  ;;  %v4190_v39 = vmul.f32 %v12896_v21, %v12896_v21  ;;  %v3878_v36 = vadd.f32 1.0, %v10516_v16  ;;  %v3896_v27 = vmul.f32 0.5, %v3880_v18 }
0x17a8   :  { %v4160_v22 = vmul.f32 0.015625, %v4126_v0  ;;  %v10518_v43 = vpop.eup %10517 }
0x17a9   :  { %v3881_v26 = vadd.f32 1.0, %v10518_v43  ;;  %v12901_v33 = vsub.f32 %v12819_v12, %v4159_v3  ;;  %v4214_v11 = vsel %vm273_vm1, %v4190_v39, 0.0  ;;  %v3894_v52 = vmul.f32 0.5, %v3878_v36 }
0x17aa   :  { %v12904_v9 = vsub.f32 %v12812_v17, %v4160_v22  ;;  %v10520_v50 = vpop.eup %10519  ;;  %v4129_v47 = vpop.xlane.xlu1 %4128  ;;  %4215 = vadd.xlane.f32.xlu0 %v4214_v11  ;;  %v3912_v30 = vmul.f32 %v3896_v27, %v12868_v59 }
0x17ab   :  { %v3897_v58 = vmul.f32 0.5, %v3881_v26  ;;  %v4161_v44 = vmul.f32 0.015625, %v4129_v47  ;;  %v4191_v45 = vmul.f32 %v12901_v33, %v12901_v33  ;;  %v3879_v61 = vadd.f32 1.0, %v10520_v50 }
0x17ac   :  { %v4192_v10 = vmul.f32 %v12904_v9, %v12904_v9  ;;  %v3910_v8 = vmul.f32 %v3894_v52, %v12876_v42 }
0x17ad   :  { %v12912_v7 = vsub.f32 %v12822_v15, %v4161_v44  ;;  %v4217_v41 = vsel %vm273_vm1, %v4191_v45, 0.0  ;;  %v3895_v24 = vmul.f32 0.5, %v3879_v61  ;;  %v3913_v51 = vmul.f32 %v3897_v58, %v3767_v5 }
0x17ae   :  { %v4220_v31 = vsel %vm273_vm1, %v4192_v10, 0.0  ;;  %4218 = vadd.xlane.f32.xlu1 %v4217_v41 }
0x17af   :  { %4221 = vadd.xlane.f32.xlu0 %v4220_v31  ;;  %v4193_v13 = vmul.f32 %v12912_v7, %v12912_v7  ;;  %v3911_v38 = vmul.f32 %v3895_v24, %v3759_v25  ;;  %v3921_v46 = vpack.c.bf16 %v3913_v51, %v3912_v30 }
0x17b1   :  { %v4223_v23 = vsel %vm273_vm1, %v4193_v13, 0.0  ;;  %v3920_v35 = vpack.c.bf16 %v3911_v38, %v3910_v8 }
0x17b2   :  { %4224 = vadd.xlane.f32.xlu1 %v4223_v23 }
0x17b3   :  { %9430 = vmatprep.mubr.bf16.mxu0 %v3920_v35 }
0x17b4   :  { %9431 = vmatmul.mubr.bf16.gmra.mxu0 %v3921_v46 }
0x17eb   :  { %v9428_v4 = vpop.f32.mrf.mxu0 }
0x17ec   :  { %v4068_v5 = vadd.f32 %v9428_v4, %v12770_v54 }
0x17ed   :  { %v4059_v19 = vpop.f32.mrf.mxu0 }
0x17ee   :  { %v4060_v32 = vadd.f32 %v12770_v54, %v4059_v19  ;;  %v12927_v59 = vadd.f32 %v4068_v5, %v12608_v49 }
0x17ef   :  { %v9429_v16 = vpop.f32.mrf.mxu0 }
0x17f0   :  { %v12924_v29 = vadd.f32 %v4060_v32, %v12605_v1  ;;  %14967 = vst [vmem:[#allocation3_spill] sm:$0xff] %v12927_v59  ;;  %v4071_v25 = vadd.f32 %v9429_v16, %v12770_v54  ;;  %v4136_v49 = vsel %vm273_vm1, %v12927_v59, 0.0 }
0x17f1   :  { %v4062_v42 = vpop.f32.mrf.mxu0 }
0x17f2   :  { %14966 = vst [vmem:[#allocation2_spill] sm:$0xff] %v12924_v29  ;;  %v4063_v0 = vadd.f32 %v12770_v54, %v4062_v42  ;;  %v4130_v3 = vsel %vm273_vm1, %v12924_v29, 0.0  ;;  %v12937_v39 = vadd.f32 %v4071_v25, %v12618_v48 }
0x17f3   :  { %4131 = vadd.xlane.f32.xlu0 %v4130_v3 }
0x17f4   :  { %v12934_v22 = vadd.f32 %v4063_v0, %v12615_v62  ;;  %14969 = vst [vmem:[#allocation5_spill] sm:$0xff] %v12937_v39  ;;  %v4139_v18 = vsel %vm273_vm1, %v12937_v39, 0.0 }
0x17f6   :  { %14968 = vst [vmem:[#allocation4_spill] sm:$0xff] %v12934_v22  ;;  %v4133_v1 = vsel %vm273_vm1, %v12934_v22, 0.0 }
0x17f7   :  { %4134 = vadd.xlane.f32.xlu1 %v4133_v1  ;;  %4137 = vadd.xlane.f32.xlu0 %v4136_v49 }
0x17f9   :  { %v4204_v43 = vpop.xlane.xlu0 %4203 }
0x17fa   :  { %v4250_v36 = vmul.f32 0.015625, %v4204_v43 }
0x17fb   :  { %4140 = vadd.xlane.f32.xlu1 %v4139_v18 }
0x17fc   :  { %v4266_v26 = vadd.f32 1e-05, %v4250_v36 }
0x17fd   :  { %v4207_v62 = vpop.xlane.xlu1 %4206  ;;  %v4210_v50 = vpop.xlane.xlu0 %4209 }
0x17fe   :  { %v4251_v47 = vmul.f32 0.015625, %v4207_v62  ;;  %10521 = vrsqrt.f32 %v4266_v26  ;;  %v4252_v11 = vmul.f32 0.015625, %v4210_v50 }
0x1800   :  { %v4267_v48 = vadd.f32 1e-05, %v4251_v47  ;;  %v4268_v45 = vadd.f32 1e-05, %v4252_v11 }
0x1801   :  { %v4213_v58 = vpop.xlane.xlu1 %4212 }
0x1802   :  { %10523 = vrsqrt.f32 %v4267_v48  ;;  %v4253_v44 = vmul.f32 0.015625, %v4213_v58 }
0x1804   :  { %v4269_v10 = vadd.f32 1e-05, %v4253_v44 }
0x1806   :  { %10525 = vrsqrt.f32 %v4269_v10 }
0x1807   :  { %10527 = vrsqrt.f32 %v4268_v45 }
0x180b   :  { %v10522_v61 = vpop.eup %10521 }
0x180c   :  { %v4298_v27 = vmul.f32 %v10522_v61, %v12832_v56 }
0x180f   :  { %v10524_v52 = vpop.eup %10523 }
0x1810   :  { %v4299_v41 = vmul.f32 %v10524_v52, %v12837_v20 }
0x1812   :  { %v4314_v31 = vpack.c.bf16 %v4299_v41, %v4298_v27 }
0x1813   :  { %v10526_v24 = vpop.eup %10525 }
0x1814   :  { %8581 = vmatmul.mubr.msk.bf16.vlgmr.msra.gmra.mxu1 %vm273_vm1, %v4314_v31  ;;  %v10528_v51 = vpop.eup %10527  ;;  %v4301_v13 = vmul.f32 %v10526_v24, %v12848_v28 }
0x1815   :  { %4448 = vmatprep.mubr.bf16.mxu1 %v14957_v37  ;;  %v4300_v8 = vmul.f32 %v10528_v51, %v12840_v57 }
0x1817   :  { %v4315_v38 = vpack.c.bf16 %v4301_v13, %v4300_v8 }
0x181c   :  { %8582 = vmatmul.mubr.msk.bf16.gmra.mxu1 %vm273_vm1, %v4315_v38 }
0x181d   :  { %4458 = vmatprep.mubr.bf16.mxu1 %v14957_v37 }
0x1833   :  { %v4216_v30 = vpop.xlane.xlu0 %4215 }
0x1834   :  { %v4254_v56 = vmul.f32 0.015625, %v4216_v30 }
0x1836   :  { %v4270_v23 = vadd.f32 1e-05, %v4254_v56 }
0x1837   :  { %v4219_v20 = vpop.xlane.xlu1 %4218 }
0x1838   :  { %v4255_v35 = vmul.f32 0.015625, %v4219_v20  ;;  %v4222_v46 = vpop.xlane.xlu0 %4221  ;;  %10529 = vrsqrt.f32 %v4270_v23 }
0x1839   :  { %v4256_v19 = vmul.f32 0.015625, %v4222_v46 }
0x183a   :  { %v4271_v4 = vadd.f32 1e-05, %v4255_v35 }
0x183b   :  { %v4225_v5 = vpop.xlane.xlu1 %4224  ;;  %v4272_v28 = vadd.f32 1e-05, %v4256_v19  ;;  %v4330_v19 = vld [vmem:[%s14805_s13] sm:$0x3] }
0x183c   :  { %10531 = vrsqrt.f32 %v4271_v4  ;;  %v4257_v32 = vmul.f32 0.015625, %v4225_v5 }
0x183e   :  { %v4273_v16 = vadd.f32 1e-05, %v4257_v32  ;;  %v14974_v32 = vld [vmem:[#allocation18_spill] sm:$0xff] }
0x1840   :  { %10533 = vrsqrt.f32 %v4273_v16 }
0x1841   :  { %10535 = vrsqrt.f32 %v4272_v28  ;;  %v14975_v28 = vsub.s32 0, %v14974_v32 }
0x1843   :  { %v13014_v16 = vrot.slane %v4330_v19, %v14975_v28 }
0x1845   :  { %v10530_v57 = vpop.eup %10529 }
0x1846   :  { %v4302_v25 = vmul.f32 %v10530_v57, %v12896_v21 }
0x1849   :  { %v10532_v42 = vpop.eup %10531 }
0x184a   :  { %v4303_v0 = vmul.f32 %v10532_v42, %v12901_v33 }
0x184c   :  { %v4316_v3 = vpack.c.bf16 %v4303_v0, %v4302_v25 }
0x184d   :  { %v10534_v1 = vpop.eup %10533 }
0x184e   :  { %8583 = vmatmul.mubr.msk.bf16.gmra.mxu1 %vm273_vm1, %v4316_v3  ;;  %v10536_v49 = vpop.eup %10535  ;;  %v4305_v43 = vmul.f32 %v10534_v1, %v12912_v7 }
0x184f   :  { %4468 = vmatprep.mubr.bf16.mxu1 %v14957_v37  ;;  %v4304_v36 = vmul.f32 %v10536_v49, %v12904_v9 }
0x1851   :  { %v4317_v18 = vpack.c.bf16 %v4305_v43, %v4304_v36 }
0x1856   :  { %8584 = vmatmul.mubr.msk.bf16.gmra.mxu1 %vm273_vm1, %v4317_v18 }
0x1857   :  { %4478 = vmatprep.mubr.bf16.mxu1 %v14957_v37 }
0x1874   :  { %v9432_v26 = vpop.f32.mrf.mxu0 }
0x1875   :  { %v4084_v33 = vadd.f32 %v9432_v26, %v12770_v54 }
0x1876   :  { %v4075_v21 = vpop.f32.mrf.mxu0 }
0x1877   :  { %v4076_v62 = vadd.f32 %v12770_v54, %v4075_v21  ;;  %v12967_v7 = vadd.f32 %v4084_v33, %v12668_v6 }
0x1878   :  { %v9433_v50 = vpop.f32.mrf.mxu0 }
0x1879   :  { %v12964_v47 = vadd.f32 %v4076_v62, %v12659_v60  ;;  %14971 = vst [vmem:[#allocation36_spill] sm:$0xff] %v12967_v7  ;;  %v4087_v9 = vadd.f32 %v9433_v50, %v12770_v54  ;;  %v4148_v52 = vsel %vm273_vm1, %v12967_v7, 0.0 }
0x187a   :  { %v4078_v48 = vpop.f32.mrf.mxu0 }
0x187b   :  { %14970 = vst [vmem:[#allocation34_spill] sm:$0xff] %v12964_v47  ;;  %v4079_v11 = vadd.f32 %v12770_v54, %v4078_v48  ;;  %v4142_v58 = vsel %vm273_vm1, %v12964_v47, 0.0  ;;  %v12977_v60 = vadd.f32 %v4087_v9, %v12689_v34 }
0x187c   :  { %v4132_v44 = vpop.xlane.xlu0 %4131  ;;  %4143 = vadd.xlane.f32.xlu0 %v4142_v58 }
0x187d   :  { %v12974_v45 = vadd.f32 %v4079_v11, %v12675_v2  ;;  %v4162_v10 = vmul.f32 0.015625, %v4132_v44  ;;  %14973 = vst [vmem:[#allocation26_spill] sm:$0xff] %v12977_v60  ;;  %v4151_v24 = vsel %vm273_vm1, %v12977_v60, 0.0 }
0x187f   :  { %14972 = vst [vmem:[#allocation28_spill] sm:$0xff] %v12974_v45  ;;  %v4145_v6 = vsel %vm273_vm1, %v12974_v45, 0.0  ;;  %v12984_v41 = vsub.f32 %v12924_v29, %v4162_v10 }
0x1880   :  { %v4135_v61 = vpop.xlane.xlu1 %4134  ;;  %v4138_v54 = vpop.xlane.xlu0 %4137  ;;  %4146 = vadd.xlane.f32.xlu1 %v4145_v6  ;;  %4149 = vadd.xlane.f32.xlu0 %v4148_v52 }
0x1881   :  { %v4164_v27 = vmul.f32 0.015625, %v4138_v54  ;;  %v4163_v2 = vmul.f32 0.015625, %v4135_v61  ;;  %v4194_v56 = vmul.f32 %v12984_v41, %v12984_v41 }
0x1883   :  { %v12987_v31 = vsub.f32 %v12927_v59, %v4164_v27  ;;  %v12994_v8 = vsub.f32 %v12934_v22, %v4163_v2  ;;  %v4226_v35 = vsel %vm273_vm1, %v4194_v56, 0.0 }
0x1884   :  { %v4141_v34 = vpop.xlane.xlu1 %4140  ;;  %4152 = vadd.xlane.f32.xlu1 %v4151_v24 }
0x1885   :  { %v4165_v51 = vmul.f32 0.015625, %v4141_v34  ;;  %v4196_v13 = vmul.f32 %v12987_v31, %v12987_v31  ;;  %v4195_v46 = vmul.f32 %v12994_v8, %v12994_v8 }
0x1887   :  { %v12997_v38 = vsub.f32 %v12937_v39, %v4165_v51  ;;  %v4232_v30 = vsel %vm273_vm1, %v4196_v13, 0.0  ;;  %v4229_v4 = vsel %vm273_vm1, %v4195_v46, 0.0 }
0x1888   :  { %4233 = vadd.xlane.f32.xlu0 %v4232_v30  ;;  %v14976_v30 = vsub.s32 1, %v14974_v32 }
0x1889   :  { %v4197_v23 = vmul.f32 %v12997_v38, %v12997_v38 }
0x188a   :  { %v13052_v56 = vrot.slane %v4330_v19, %v14976_v30 }
0x188b   :  { %v4235_v20 = vsel %vm273_vm1, %v4197_v23, 0.0 }
0x188c   :  { %4236 = vadd.xlane.f32.xlu1 %v4235_v20  ;;  %4227 = vadd.xlane.f32.xlu0 %v4226_v35 }
0x1890   :  { %4230 = vadd.xlane.f32.xlu1 %v4229_v4 }
0x18d4   :  { %v4440_v5 = vpop.f32.mrf.mxu1 }
0x18d5   :  { %v4441_v25 = vadd.f32 %v4440_v5, %v13014_v16 }
0x18d6   :  { %v13016_v57 = vpop.f32.mrf.mxu1 }
0x18d8   :  { %v4444_v42 = vpop.f32.mrf.mxu1 }
0x18d9   :  { %v4445_v0 = vadd.f32 %v4444_v42, %v13014_v16 }
0x18da   :  { %v13024_v1 = vpop.f32.mrf.mxu1 }
0x18db   :  { %v13020_v3 = vpack.c.bf16 %v4445_v0, %v4441_v25 }
0x18dc   :  { %v4450_v49 = vpop.f32.mrf.mxu1 }
0x18dd   :  { %9442 = vmatprep.mubr.msk.bf16.mxu0 %vm716_vm2, %v13020_v3 }
0x18de   :  { %v13026_v43 = vpop.f32.mrf.mxu1 }
0x18e0   :  { %v4454_v26 = vpop.f32.mrf.mxu1 }
0x18e2   :  { %v13033_v11 = vpop.f32.mrf.mxu1 }
0x1905   :  { %v4144_v36 = vpop.xlane.xlu0 %4143 }
0x1906   :  { %v4166_v18 = vmul.f32 0.015625, %v4144_v36 }
0x1908   :  { %v13029_v21 = vsub.f32 %v12964_v47, %v4166_v18 }
0x1909   :  { %v4147_v33 = vpop.xlane.xlu1 %4146  ;;  %v4150_v62 = vpop.xlane.xlu0 %4149 }
0x190a   :  { %v4167_v50 = vmul.f32 0.015625, %v4147_v33  ;;  %v4168_v48 = vmul.f32 0.015625, %v4150_v62  ;;  %v4198_v9 = vmul.f32 %v13029_v21, %v13029_v21 }
0x190c   :  { %v13036_v58 = vsub.f32 %v12974_v45, %v4167_v50  ;;  %v13039_v44 = vsub.f32 %v12967_v7, %v4168_v48  ;;  %v4238_v10 = vsel %vm273_vm1, %v4198_v9, 0.0 }
0x190d   :  { %v4153_v61 = vpop.xlane.xlu1 %4152  ;;  %4239 = vadd.xlane.f32.xlu0 %v4238_v10 }
0x190e   :  { %v4460_v6 = vpop.f32.mrf.mxu1  ;;  %v4169_v52 = vmul.f32 0.015625, %v4153_v61  ;;  %v4199_v54 = vmul.f32 %v13036_v58, %v13036_v58  ;;  %v4200_v51 = vmul.f32 %v13039_v44, %v13039_v44 }
0x1910   :  { %v4462_v27 = vpop.f32.mrf.mxu1  ;;  %v13045_v2 = vsub.f32 %v12977_v60, %v4169_v52  ;;  %v4241_v34 = vsel %vm273_vm1, %v4199_v54, 0.0  ;;  %v4244_v4 = vsel %vm273_vm1, %v4200_v51, 0.0  ;;  %v4451_v51 = vadd.f32 %v4450_v49, %v13014_v16 }
0x1911   :  { %v4234_v24 = vpop.xlane.xlu0 %4233  ;;  %4242 = vadd.xlane.f32.xlu1 %v4241_v34  ;;  %v4463_v20 = vadd.f32 %v4462_v27, %v13052_v56  ;;  %v4455_v27 = vadd.f32 %v4454_v26, %v13014_v16 }
0x1912   :  { %v4464_v13 = vpop.f32.mrf.mxu1  ;;  %v4201_v28 = vmul.f32 %v13045_v2, %v13045_v2  ;;  %v4260_v48 = vmul.f32 0.015625, %v4234_v24 }
0x1913   :  { %v4465_v24 = vadd.f32 %v4464_v13, %v13014_v16  ;;  %v13073_v30 = vpack.c.bf16 %v4455_v27, %v4451_v51 }
0x1914   :  { %v4466_v23 = vpop.f32.mrf.mxu1  ;;  %v4247_v18 = vsel %vm273_vm1, %v4201_v28, 0.0  ;;  %v4276_v52 = vadd.f32 1e-05, %v4260_v48 }
0x1915   :  { %v4467_v35 = vadd.f32 %v4466_v23, %v13052_v56  ;;  %v4237_v46 = vpop.xlane.xlu1 %4236  ;;  %v4228_v5 = vpop.xlane.xlu0 %4227  ;;  %4245 = vadd.xlane.f32.xlu1 %v4244_v4  ;;  %v4461_v23 = vadd.f32 %v4460_v6, %v13014_v16 }
0x1916   :  { %v4470_v42 = vpop.f32.mrf.mxu1  ;;  %v4258_v25 = vmul.f32 0.015625, %v4228_v5  ;;  %v4261_v33 = vmul.f32 0.015625, %v4237_v46 }
0x1917   :  { %v13059_v0 = vpack.c.bf16 %v4467_v35, %v4463_v20  ;;  %v4471_v54 = vadd.f32 %v4470_v42, %v13014_v16  ;;  %v13078_v26 = vpack.c.bf16 %v4465_v24, %v4461_v23 }
0x1918   :  { %v4274_v32 = vadd.f32 1e-05, %v4258_v25  ;;  %v13061_v19 = vpop.f32.mrf.mxu1  ;;  %v4277_v10 = vadd.f32 1e-05, %v4261_v33 }
0x1919   :  { %v4231_v36 = vpop.xlane.xlu1 %4230  ;;  %4248 = vadd.xlane.f32.xlu1 %v4247_v18 }
0x191a   :  { %v4259_v62 = vmul.f32 0.015625, %v4231_v36  ;;  %v4474_v50 = vpop.f32.mrf.mxu1  ;;  %10537 = vrsqrt.f32 %v4274_v32 }
0x191b   :  { %v4475_v61 = vadd.f32 %v4474_v50, %v13014_v16 }
0x191c   :  { %v4275_v9 = vadd.f32 1e-05, %v4259_v62 }
0x191d   :  { %v13067_v34 = vpack.c.bf16 %v4475_v61, %v4471_v54 }
0x191e   :  { %10539 = vrsqrt.f32 %v4275_v9 }
0x191f   :  { %10541 = vrsqrt.f32 %v4277_v10 }
0x1920   :  { %10543 = vrsqrt.f32 %v4276_v52 }
0x1923   :  { %4545 = vrot.lane.b32.xlu0 %v13067_v34, %s10970_s23 }
0x1927   :  { %4541 = vrot.lane.b32.xlu0 %v13073_v30, %s10970_s23  ;;  %v10538_v20 = vpop.eup %10537 }
0x1928   :  { %v4306_v49 = vmul.f32 %v10538_v20, %v12984_v41 }
0x192a   :  { %4543 = vrot.lane.b32.xlu1 %v13078_v26, %s10970_s23 }
0x192b   :  { %v10540_v35 = vpop.eup %10539  ;;  %4539 = vrot.lane.b32.xlu0 %v13020_v3, %s10970_s23 }
0x192c   :  { %v4307_v13 = vmul.f32 %v10540_v35, %v12994_v8  ;;  %v10542_v4 = vpop.eup %10541 }
0x192d   :  { %v10544_v6 = vpop.eup %10543  ;;  %v4309_v5 = vmul.f32 %v10542_v4, %v12997_v38 }
0x192e   :  { %v4318_v46 = vpack.c.bf16 %v4307_v13, %v4306_v49  ;;  %4819 = vrot.lane.b32.xlu1 %v13067_v34, %s10971_s5  ;;  %v4308_v41 = vmul.f32 %v10544_v6, %v12987_v31  ;;  %v4476_v6 = vpop.f32.mrf.mxu1 }
0x192f   :  { %4815 = vrot.lane.b32.xlu0 %v13073_v30, %s10971_s5 }
0x1930   :  { %8585 = vmatmul.mubr.msk.bf16.gmra.mxu1 %vm273_vm1, %v4318_v46  ;;  %v4319_v8 = vpack.c.bf16 %v4309_v5, %v4308_v41  ;;  %v4477_v41 = vadd.f32 %v4476_v6, %v13052_v56 }
0x1931   :  { %4488 = vmatprep.mubr.bf16.mxu1 %v14957_v37 }
0x1932   :  { %4817 = vrot.lane.b32.xlu1 %v13078_v26, %s10971_s5 }
0x1933   :  { %4805 = vrot.lane.b32.xlu0 %v13020_v3, %s10972_s24 }
0x1936   :  { %4813 = vrot.lane.b32.xlu1 %v13020_v3, %s10971_s5 }
0x1937   :  { %4809 = vrot.lane.b32.xlu0 %v13078_v26, %s10972_s24 }
0x1938   :  { %8586 = vmatmul.mubr.msk.bf16.gmra.mxu1 %vm273_vm1, %v4319_v8 }
0x1939   :  { %4498 = vmatprep.mubr.bf16.mxu1 %v14957_v37 }
0x193a   :  { %4807 = vrot.lane.b32.xlu1 %v13073_v30, %s10972_s24 }
0x193e   :  { %4811 = vrot.lane.b32.xlu1 %v13067_v34, %s10972_s24 }
0x1996   :  { %v4240_v38 = vpop.xlane.xlu0 %4239 }
0x1997   :  { %v4262_v28 = vmul.f32 0.015625, %v4240_v38  ;;  %v4473_v38 = vadd.f32 %v13061_v19, %v13052_v56 }
0x1999   :  { %v4278_v31 = vadd.f32 1e-05, %v4262_v28 }
0x199a   :  { %v4243_v42 = vpop.xlane.xlu1 %4242  ;;  %v4546_v25 = vpop.permute.xlu0 %4545 }
0x199b   :  { %v4263_v32 = vmul.f32 0.015625, %v4243_v42  ;;  %9826 = vmatprep.subr.msk.bf16.mxu0 %vm716_vm2, %v4546_v25  ;;  %v4569_v36 = vsel %vm716_vm2, %v4546_v25, 0  ;;  %10545 = vrsqrt.f32 %v4278_v31  ;;  %v13129_v42 = vpack.c.bf16 %v4477_v41, %v4473_v38 }
0x199c   :  { %9435 = vmatpush3.bf16.xpose.msra.mxu0 %v4569_v36 }
0x199d   :  { %v4279_v18 = vadd.f32 1e-05, %v4263_v32 }
0x199e   :  { %v4246_v33 = vpop.xlane.xlu1 %4245  ;;  %v4542_v52 = vpop.permute.xlu0 %4541 }
0x199f   :  { %10547 = vrsqrt.f32 %v4279_v18  ;;  %v4264_v62 = vmul.f32 0.015625, %v4246_v33  ;;  %v4563_v46 = vsel %vm716_vm2, %v4542_v52, 0  ;;  %v4447_v18 = vadd.f32 %v13024_v1, %v13052_v56 }
0x19a1   :  { %v4280_v50 = vadd.f32 1e-05, %v4264_v62  ;;  %v4443_v62 = vadd.f32 %v13016_v57, %v13052_v56 }
0x19a2   :  { %v4249_v48 = vpop.xlane.xlu1 %4248  ;;  %v4540_v20 = vpop.permute.xlu0 %4539 }
0x19a3   :  { %v4265_v9 = vmul.f32 0.015625, %v4249_v48  ;;  %10549 = vrsqrt.f32 %v4280_v50  ;;  %v13156_v50 = vpack.c.bf16 %v4447_v18, %v4443_v62 }
0x19a5   :  { %v4281_v10 = vadd.f32 1e-05, %v4265_v9 }
0x19a6   :  { %v4544_v61 = vpop.permute.xlu1 %4543 }
0x19a7   :  { %10551 = vrsqrt.f32 %v4281_v10  ;;  %9827 = vmatprep.subr.msk.bf16.mxu0 %vm716_vm2, %v4544_v61  ;;  %v4566_v54 = vsel %vm716_vm2, %v4544_v61, 0 }
0x19a8   :  { %9437 = vmatpush3.bf16.xpose.msra.mxu0 %v4566_v54  ;;  %v10546_v27 = vpop.eup %10545 }
0x19a9   :  { %9828 = vmatprep.subr.msk.bf16.mxu0 %vm716_vm2, %v4542_v52  ;;  %v4310_v35 = vmul.f32 %v10546_v27, %v13029_v21  ;;  %v4816_v21 = vpop.permute.xlu0 %4815 }
0x19aa   :  { %v4820_v51 = vpop.permute.xlu1 %4819  ;;  %v4837_v19 = vsel %vm716_vm2, %v4816_v21, 0 }
0x19ab   :  { %9830 = vmatprep.subr.msk.bf16.mxu1 %vm716_vm2, %v4820_v51  ;;  %v4843_v24 = vsel %vm716_vm2, %v4820_v51, 0 }
0x19ac   :  { %v10548_v23 = vpop.eup %10547  ;;  %9467 = vmatpush3.bf16.xpose.msra.mxu1 %v4843_v24 }
0x19ad   :  { %v4311_v49 = vmul.f32 %v10548_v23, %v13036_v58  ;;  %v4806_v32 = vpop.permute.xlu0 %4805 }
0x19ae   :  { %v4818_v13 = vpop.permute.xlu1 %4817 }
0x19af   :  { %9831 = vmatprep.subr.msk.bf16.mxu1 %vm716_vm2, %v4818_v13  ;;  %v4320_v4 = vpack.c.bf16 %v4311_v49, %v4310_v35  ;;  %v4840_v58 = vsel %vm716_vm2, %v4818_v13, 0 }
0x19b0   :  { %9439 = vmatpush3.bf16.xpose.msra.mxu0 %v4563_v46  ;;  %v10550_v5 = vpop.eup %10549 }
0x19b1   :  { %8587 = vmatmul.mubr.msk.bf16.gmra.mxu1 %vm273_vm1, %v4320_v4  ;;  %9829 = vmatprep.subr.msk.bf16.mxu0 %vm716_vm2, %v4540_v20  ;;  %v4312_v28 = vmul.f32 %v10550_v5, %v13039_v44  ;;  %v4457_v44 = vadd.f32 %v13033_v11, %v13052_v56 }
0x19b2   :  { %4508 = vmatprep.mubr.bf16.mxu1 %v14957_v37  ;;  %v4560_v37 = vsel %vm716_vm2, %v4540_v20, 0  ;;  %v4814_v36 = vpop.permute.xlu1 %4813 }
0x19b3   :  { %v4834_v11 = vsel %vm716_vm2, %v4814_v36, 0 }
0x19b4   :  { %v10552_v8 = vpop.eup %10551  ;;  %9469 = vmatpush3.bf16.xpose.msra.mxu1 %v4840_v58 }
0x19b5   :  { %9832 = vmatprep.subr.msk.bf16.mxu1 %vm716_vm2, %v4816_v21  ;;  %v4313_v31 = vmul.f32 %v10552_v8, %v13045_v2  ;;  %v4453_v2 = vadd.f32 %v13026_v43, %v13052_v56  ;;  %v4810_v43 = vpop.permute.xlu0 %4809 }
0x19b6   :  { %v4808_v1 = vpop.permute.xlu1 %4807 }
0x19b7   :  { %v4321_v25 = vpack.c.bf16 %v4313_v31, %v4312_v28  ;;  %v13149_v33 = vpack.c.bf16 %v4457_v44, %v4453_v2 }
0x19b8   :  { %9441 = vmatpush3.bf16.xpose.msra.mxu0 %v4560_v37 }
0x19b9   :  { %8588 = vmatmul.mubr.msk.bf16.gmra.mxu1 %vm273_vm1, %v4321_v25  ;;  %9450 = vmatprep.subr.bf16.mxu0 %v13129_v42 }
0x19ba   :  { %9474 = vmatprep.mubr.msk.bf16.mxu1 %vm716_vm2, %v4806_v32  ;;  %v4812_v57 = vpop.permute.xlu1 %4811 }
0x19bc   :  { %9471 = vmatpush3.bf16.xpose.msra.mxu1 %v4837_v19 }
0x19bd   :  { %9833 = vmatprep.subr.msk.bf16.mxu1 %vm716_vm2, %v4814_v36 }
0x19bf   :  { %9443 = vmatmul.mubr.msk.bf16.vlgmr.msra.gmra.mxu0 %vm716_vm2, %v13073_v30 }
0x19c0   :  { %9446 = vmatprep.mubr.msk.bf16.mxu0 %vm716_vm2, %v13078_v26  ;;  %9451 = vmatpush3.bf16.msra.mxu0 %v13129_v42 }
0x19c1   :  { %9452 = vmatprep.subr.bf16.mxu0 %v13059_v0 }
0x19c4   :  { %9453 = vmatpush3.bf16.msra.mxu0 %v13059_v0  ;;  %9473 = vmatpush3.bf16.xpose.msra.mxu1 %v4834_v11 }
0x19c5   :  { %9454 = vmatprep.subr.bf16.mxu0 %v13149_v33 }
0x19c7   :  { %9447 = vmatmul.mubr.msk.bf16.gmra.mxu0 %vm716_vm2, %v13067_v34 }
0x19c8   :  { %9455 = vmatpush3.bf16.msra.mxu0 %v13149_v33 }
0x19c9   :  { %9456 = vmatprep.subr.bf16.mxu0 %v13156_v50 }
0x19cb   :  { %9475 = vmatmul.mubr.msk.bf16.vlgmr.msra.gmra.mxu1 %vm716_vm2, %v4808_v1 }
0x19cc   :  { %9457 = vmatpush3.bf16.msra.mxu0 %v13156_v50  ;;  %9478 = vmatprep.mubr.msk.bf16.mxu1 %vm716_vm2, %v4810_v43 }
0x19d3   :  { %9479 = vmatmul.mubr.msk.bf16.gmra.mxu1 %vm716_vm2, %v4812_v57 }
0x19f0   :  { %v4480_v48 = vpop.f32.mrf.mxu1 }
0x19f1   :  { %v4481_v61 = vadd.f32 %v4480_v48, %v13014_v16 }
0x19f2   :  { %v4482_v9 = vpop.f32.mrf.mxu1 }
0x19f3   :  { %v4483_v27 = vadd.f32 %v4482_v9, %v13052_v56 }
0x19f4   :  { %v4484_v10 = vpop.f32.mrf.mxu1 }
0x19f5   :  { %v4485_v52 = vadd.f32 %v4484_v10, %v13014_v16 }
0x19f6   :  { %v4486_v54 = vpop.f32.mrf.mxu1 }
0x19f7   :  { %v13169_v51 = vpack.c.bf16 %v4485_v52, %v4481_v61  ;;  %v4487_v24 = vadd.f32 %v4486_v54, %v13052_v56 }
0x19f8   :  { %v4490_v23 = vpop.f32.mrf.mxu1 }
0x19f9   :  { %v13172_v20 = vpack.c.bf16 %v4487_v24, %v4483_v27  ;;  %v4491_v13 = vadd.f32 %v4490_v23, %v13014_v16 }
0x19fa   :  { %v13174_v35 = vpop.f32.mrf.mxu1 }
0x19fc   :  { %v4494_v49 = vpop.f32.mrf.mxu1 }
0x19fd   :  { %v4495_v46 = vadd.f32 %v4494_v49, %v13014_v16 }
0x19fe   :  { %v13180_v6 = vpop.f32.mrf.mxu1 }
0x19ff   :  { %v13178_v4 = vpack.c.bf16 %v4495_v46, %v4491_v13 }
0x1a71   :  { %v4500_v5 = vpop.f32.mrf.mxu1 }
0x1a72   :  { %v4501_v58 = vadd.f32 %v4500_v5, %v13014_v16 }
0x1a73   :  { %v4502_v41 = vpop.f32.mrf.mxu1 }
0x1a74   :  { %v4503_v28 = vadd.f32 %v4502_v41, %v13052_v56 }
0x1a75   :  { %v4504_v21 = vpop.f32.mrf.mxu1 }
0x1a76   :  { %v4505_v8 = vadd.f32 %v4504_v21, %v13014_v16 }
0x1a77   :  { %v4506_v38 = vpop.f32.mrf.mxu1 }
0x1a78   :  { %v13185_v31 = vpack.c.bf16 %v4505_v8, %v4501_v58  ;;  %v4507_v37 = vadd.f32 %v4506_v38, %v13052_v56 }
0x1a79   :  { %v4510_v25 = vpop.f32.mrf.mxu1 }
0x1a7a   :  { %v13188_v32 = vpack.c.bf16 %v4507_v37, %v4503_v28  ;;  %v4511_v44 = vadd.f32 %v4510_v25, %v13014_v16 }
0x1a7b   :  { %v4512_v19 = vpop.f32.mrf.mxu1 }
0x1a7c   :  { %v4513_v62 = vadd.f32 %v4512_v19, %v13052_v56 }
0x1a7d   :  { %v4514_v36 = vpop.f32.mrf.mxu1 }
0x1a7e   :  { %v4515_v2 = vadd.f32 %v4514_v36, %v13014_v16 }
0x1a7f   :  { %v4516_v18 = vpop.f32.mrf.mxu1  ;;  %v9444_v11 = vpop.f32.mrf.mxu0 }
0x1a80   :  { %v13193_v1 = vpack.c.bf16 %v4515_v2, %v4511_v44  ;;  %v4517_v43 = vadd.f32 %v4516_v18, %v13052_v56  ;;  %v4642_v57 = vsel %vm273_vm1, %v9444_v11, -inf }
0x1a81   :  { %4643 = vmax.xlane.f32.xlu0 %v4642_v57  ;;  %v13197_v48 = vpop.f32.mrf.mxu0 }
0x1a82   :  { %v13199_v9 = vpack.c.bf16 %v4517_v43, %v4513_v62  ;;  %v4636_v61 = vsel %vm273_vm1, %v13197_v48, -inf }
0x1a83   :  { %v9445_v10 = vpop.f32.mrf.mxu0 }
0x1a84   :  { %v4645_v46 = vsel %vm273_vm1, %v9445_v10, -inf }
0x1a85   :  { %4637 = vmax.xlane.f32.xlu0 %v4636_v61  ;;  %v13203_v16 = vpop.f32.mrf.mxu0 }
0x1a86   :  { %v4639_v52 = vsel %vm273_vm1, %v13203_v16, -inf }
0x1a87   :  { %4640 = vmax.xlane.f32.xlu1 %v4639_v52  ;;  %v13213_v23 = vpop.f32.mrf.mxu0 }
0x1a88   :  { %v4654_v58 = vsel %vm273_vm1, %v13213_v23, -inf }
0x1a89   :  { %v13217_v41 = vpop.f32.mrf.mxu0 }
0x1a8a   :  { %v4648_v37 = vsel %vm273_vm1, %v13217_v41, -inf }
0x1a8b   :  { %v13207_v54 = vpop.f32.mrf.mxu1  ;;  %v13224_v38 = vpop.f32.mrf.mxu0 }
0x1a8c   :  { %v4657_v25 = vsel %vm273_vm1, %v13224_v38, -inf  ;;  %v4916_v36 = vsel %vm273_vm1, %v13207_v54, -inf }
0x1a8d   :  { %v13209_v27 = vpop.f32.mrf.mxu1  ;;  %v13238_v2 = vpop.f32.mrf.mxu0 }
0x1a8e   :  { %v4910_v24 = vsel %vm273_vm1, %v13209_v27, -inf  ;;  %v4651_v62 = vsel %vm273_vm1, %v13238_v2, -inf }
0x1a8f   :  { %4911 = vmax.xlane.f32.xlu0 %v4910_v24  ;;  %v9477_v49 = vpop.f32.mrf.mxu1 }
0x1a90   :  { %v4919_v8 = vsel %vm273_vm1, %v9477_v49, -inf }
0x1a91   :  { %v4882_v13 = vpop.f32.mrf.mxu1 }
0x1a92   :  { %v4913_v5 = vsel %vm273_vm1, %v4882_v13, -inf }
0x1a93   :  { %4646 = vmax.xlane.f32.xlu0 %v4645_v46  ;;  %4914 = vmax.xlane.f32.xlu1 %v4913_v5  ;;  %v13219_v21 = vpop.f32.mrf.mxu1 }
0x1a94   :  { %v4928_v18 = vsel %vm273_vm1, %v13219_v21, -inf }
0x1a95   :  { %v13226_v28 = vpop.f32.mrf.mxu1 }
0x1a96   :  { %v4922_v43 = vsel %vm273_vm1, %v13226_v28, -inf }
0x1a97   :  { %4655 = vmax.xlane.f32.xlu0 %v4654_v58  ;;  %4920 = vmax.xlane.f32.xlu1 %v4919_v8  ;;  %v13232_v19 = vpop.f32.mrf.mxu1 }
0x1a98   :  { %v4931_v44 = vsel %vm273_vm1, %v13232_v19, -inf }
0x1a99   :  { %v13250_v57 = vpop.f32.mrf.mxu1 }
0x1a9a   :  { %v4925_v61 = vsel %vm273_vm1, %v13250_v57, -inf }
0x1a9b   :  { %4649 = vmax.xlane.f32.xlu0 %v4648_v37  ;;  %4658 = vmax.xlane.f32.xlu1 %v4657_v25 }
0x1a9f   :  { %4917 = vmax.xlane.f32.xlu0 %v4916_v36  ;;  %4932 = vmax.xlane.f32.xlu1 %v4931_v44 }
0x1aa3   :  { %4929 = vmax.xlane.f32.xlu0 %v4928_v18  ;;  %4652 = vmax.xlane.f32.xlu1 %v4651_v62 }
0x1aa7   :  { %4923 = vmax.xlane.f32.xlu0 %v4922_v43 }
0x1ab4   :  { %5010 = vrot.lane.b32.xlu1 %v13059_v0, %s10972_s24 }
0x1abd   :  { %5012 = vrot.lane.b32.xlu0 %v13129_v42, %s10972_s24 }
0x1ad8   :  { %4926 = vmax.xlane.f32.xlu1 %v4925_v61 }
0x1ae9   :  { %5008 = vrot.lane.b32.xlu1 %v13149_v33, %s10972_s24 }
0x1b0a   :  { %v4644_v52 = vpop.xlane.xlu0 %4643 }
0x1b0b   :  { %v4662_v24 = vsub.f32 %v9444_v11, %v4644_v52 }
0x1b0d   :  { %v4672_v46 = vmul.f32 1.442695, %v4662_v24 }
0x1b0e   :  { %v4638_v5 = vpop.xlane.xlu0 %4637 }
0x1b0f   :  { %10553 = vpow2.f32 %v4672_v46  ;;  %v4660_v47 = vsub.f32 %v13197_v48, %v4638_v5 }
0x1b10   :  { %v4641_v58 = vpop.xlane.xlu1 %4640 }
0x1b11   :  { %v4661_v43 = vsub.f32 %v13203_v16, %v4641_v58  ;;  %v4668_v16 = vmul.f32 1.442695, %v4660_v47 }
0x1b13   :  { %v4670_v24 = vmul.f32 1.442695, %v4661_v43 }
0x1b18   :  { %v4912_v8 = vpop.xlane.xlu0 %4911 }
0x1b19   :  { %v4934_v58 = vsub.f32 %v13209_v27, %v4912_v8 }
0x1b1c   :  { %v13256_v37 = vpop.eup %10553  ;;  %v4915_v25 = vpop.xlane.xlu1 %4914 }
0x1b1d   :  { %v4647_v36 = vpop.xlane.xlu0 %4646  ;;  %v4690_v18 = vsel %vm273_vm1, %v13256_v37, 0.0  ;;  %v4935_v46 = vsub.f32 %v4882_v13, %v4915_v25  ;;  %v4942_v25 = vmul.f32 1.442695, %v4934_v58 }
0x1b1e   :  { %v4663_v44 = vsub.f32 %v9445_v10, %v4647_v36  ;;  %4691 = vadd.xlane.f32.xlu0 %v4690_v18 }
0x1b1f   :  { %v4944_v10 = vmul.f32 1.442695, %v4935_v46 }
0x1b20   :  { %v4674_v62 = vmul.f32 1.442695, %v4663_v44  ;;  %v4921_v61 = vpop.xlane.xlu1 %4920 }
0x1b21   :  { %v4656_v60 = vpop.xlane.xlu0 %4655  ;;  %v4937_v11 = vsub.f32 %v9477_v49, %v4921_v61 }
0x1b22   :  { %10555 = vpow2.f32 %v4674_v62  ;;  %v4666_v48 = vsub.f32 %v13213_v23, %v4656_v60 }
0x1b23   :  { %v4948_v52 = vmul.f32 1.442695, %v4937_v11 }
0x1b24   :  { %v4659_v45 = vpop.xlane.xlu1 %4658 }
0x1b25   :  { %v4650_v7 = vpop.xlane.xlu0 %4649  ;;  %10557 = vpow2.f32 %v4948_v52  ;;  %v4667_v13 = vsub.f32 %v13224_v38, %v4659_v45  ;;  %v4680_v38 = vmul.f32 1.442695, %v4666_v48 }
0x1b26   :  { %10559 = vpow2.f32 %v4670_v24 }
0x1b27   :  { %10561 = vpow2.f32 %v4944_v10  ;;  %v4682_v8 = vmul.f32 1.442695, %v4667_v13 }
0x1b28   :  { %v4933_v44 = vpop.xlane.xlu1 %4932 }
0x1b29   :  { %v4918_v36 = vpop.xlane.xlu0 %4917 }
0x1b2a   :  { %v4936_v18 = vsub.f32 %v13207_v54, %v4918_v36  ;;  %v4941_v36 = vsub.f32 %v13232_v19, %v4933_v44 }
0x1b2c   :  { %v4946_v39 = vmul.f32 1.442695, %v4936_v18  ;;  %v4653_v5 = vpop.xlane.xlu1 %4652 }
0x1b2d   :  { %v4930_v49 = vpop.xlane.xlu0 %4929 }
0x1b2e   :  { %10563 = vpow2.f32 %v4946_v39  ;;  %v4665_v39 = vsub.f32 %v13238_v2, %v4653_v5  ;;  %v4940_v60 = vsub.f32 %v13219_v21, %v4930_v49 }
0x1b2f   :  { %v13264_v62 = vpop.eup %10555  ;;  %10565 = vpow2.f32 %v4668_v16  ;;  %v4956_v16 = vmul.f32 1.442695, %v4941_v36 }
0x1b30   :  { %v4693_v54 = vsel %vm273_vm1, %v13264_v62, 0.0  ;;  %10567 = vpow2.f32 %v4942_v25  ;;  %v4678_v2 = vmul.f32 1.442695, %v4665_v39  ;;  %v4954_v52 = vmul.f32 1.442695, %v4940_v60 }
0x1b31   :  { %v4924_v43 = vpop.xlane.xlu0 %4923  ;;  %4694 = vadd.xlane.f32.xlu1 %v4693_v54 }
0x1b32   :  { %v4938_v47 = vsub.f32 %v13226_v28, %v4924_v43  ;;  %v13271_v27 = vpop.eup %10557  ;;  %v4664_v28 = vsub.f32 %v13217_v41, %v4650_v7 }
0x1b33   :  { %v4967_v45 = vsel %vm273_vm1, %v13271_v27, 0.0  ;;  %v13279_v11 = vpop.eup %10559 }
0x1b34   :  { %v4950_v61 = vmul.f32 1.442695, %v4938_v47  ;;  %v4687_v24 = vsel %vm273_vm1, %v13279_v11, 0.0  ;;  %v13285_v46 = vpop.eup %10561  ;;  %v4676_v10 = vmul.f32 1.442695, %v4664_v28  ;;  %v5011_v28 = vpop.permute.xlu1 %5010 }
0x1b35   :  { %v13277_v23 = vpop.permute.xlu0 %5012  ;;  %4968 = vadd.xlane.f32.xlu1 %v4967_v45  ;;  %v4961_v18 = vsel %vm273_vm1, %v13285_v46, 0.0 }
0x1b36   :  { %10569 = vpow2.f32 %v4950_v61  ;;  %9482 = vmatprep.subr.bf16.mxu0 %v13277_v23 }
0x1b37   :  { %10571 = vpow2.f32 %v4682_v8 }
0x1b38   :  { %10573 = vpow2.f32 %v4680_v38 }
0x1b39   :  { %4688 = vadd.xlane.f32.xlu1 %v4687_v24  ;;  %10575 = vpow2.f32 %v4678_v2 }
0x1b3a   :  { %10577 = vpow2.f32 %v4954_v52 }
0x1b3b   :  { %v13287_v21 = vpop.eup %10563  ;;  %10579 = vpow2.f32 %v4676_v10 }
0x1b3c   :  { %v4964_v7 = vsel %vm273_vm1, %v13287_v21, 0.0  ;;  %v13294_v41 = vpop.eup %10565  ;;  %10581 = vpow2.f32 %v4956_v16 }
0x1b3d   :  { %4962 = vadd.xlane.f32.xlu1 %v4961_v18  ;;  %4965 = vadd.xlane.f32.xlu0 %v4964_v7  ;;  %v4684_v58 = vsel %vm273_vm1, %v13294_v41, 0.0  ;;  %v13298_v49 = vpop.eup %10567 }
0x1b3e   :  { %v4958_v25 = vsel %vm273_vm1, %v13298_v49, 0.0 }
0x1b41   :  { %4685 = vadd.xlane.f32.xlu0 %v4684_v58 }
0x1b43   :  { %v13300_v19 = vpop.eup %10569 }
0x1b44   :  { %v4970_v44 = vsel %vm273_vm1, %v13300_v19, 0.0  ;;  %v13304_v13 = vpop.eup %10571 }
0x1b45   :  { %4971 = vadd.xlane.f32.xlu1 %v4970_v44  ;;  %v13308_v48 = vpop.eup %10573  ;;  %4959 = vadd.xlane.f32.xlu0 %v4958_v25  ;;  %v4705_v5 = vsel %vm273_vm1, %v13304_v13, 0.0 }
0x1b46   :  { %v13312_v54 = vpop.eup %10575  ;;  %v4702_v43 = vsel %vm273_vm1, %v13308_v48, 0.0 }
0x1b47   :  { %v13316_v47 = vpop.eup %10577  ;;  %v4699_v8 = vsel %vm273_vm1, %v13312_v54, 0.0 }
0x1b48   :  { %v4976_v39 = vsel %vm273_vm1, %v13316_v47, 0.0  ;;  %v13322_v61 = vpop.eup %10579 }
0x1b49   :  { %4706 = vadd.xlane.f32.xlu1 %v4705_v5  ;;  %4703 = vadd.xlane.f32.xlu0 %v4702_v43  ;;  %v4696_v45 = vsel %vm273_vm1, %v13322_v61, 0.0  ;;  %v13326_v38 = vpop.eup %10581 }
0x1b4a   :  { %v4979_v60 = vsel %vm273_vm1, %v13326_v38, 0.0 }
0x1b4d   :  { %4700 = vadd.xlane.f32.xlu1 %v4699_v8  ;;  %4977 = vadd.xlane.f32.xlu0 %v4976_v39 }
0x1b51   :  { %4697 = vadd.xlane.f32.xlu0 %v4696_v45 }
0x1b55   :  { %4980 = vadd.xlane.f32.xlu0 %v4979_v60 }
0x1b5e   :  { %5006 = vrot.lane.b32.xlu1 %v13156_v50, %s10972_s24 }
0x1b61   :  { %v4927_v2 = vpop.xlane.xlu1 %4926 }
0x1b62   :  { %5107 = vrot.lane.b32.xlu1 %v13078_v26, %s10973_s6  ;;  %v4939_v52 = vsub.f32 %v13250_v57, %v4927_v2 }
0x1b64   :  { %v4952_v24 = vmul.f32 1.442695, %v4939_v52 }
0x1b65   :  { %v5009_v57 = vpop.permute.xlu1 %5008 }
0x1b66   :  { %5105 = vrot.lane.b32.xlu1 %v13073_v30, %s10973_s6  ;;  %10583 = vpow2.f32 %v4952_v24 }
0x1b6a   :  { %5103 = vrot.lane.b32.xlu1 %v13020_v3, %s10973_s6 }
0x1b6e   :  { %5097 = vrot.lane.b32.xlu1 %v13073_v30, %s10974_s25 }
0x1b72   :  { %5101 = vrot.lane.b32.xlu1 %v13067_v34, %s10974_s25 }
0x1b73   :  { %v13343_v10 = vpop.eup %10583 }
0x1b74   :  { %v4973_v36 = vsel %vm273_vm1, %v13343_v10, 0.0 }
0x1b75   :  { %4974 = vadd.xlane.f32.xlu0 %v4973_v36 }
0x1b8b   :  { %5109 = vrot.lane.b32.xlu0 %v13067_v34, %s10973_s6 }
0x1b8f   :  { %5095 = vrot.lane.b32.xlu0 %v13020_v3, %s10974_s25 }
0x1b93   :  { %5099 = vrot.lane.b32.xlu0 %v13078_v26, %s10974_s25 }
0x1ba7   :  { %v4692_v16 = vpop.xlane.xlu0 %4691 }
0x1bba   :  { %v4695_v18 = vpop.xlane.xlu1 %4694 }
0x1bbb   :  { %10585 = vrcp.f32 %v4695_v18 }
0x1bbe   :  { %v4969_v7 = vpop.xlane.xlu1 %4968 }
0x1bc2   :  { %v4689_v58 = vpop.xlane.xlu1 %4688 }
0x1bc3   :  { %10587 = vrcp.f32 %v4689_v58 }
0x1bc4   :  { %10589 = vrcp.f32 %v4692_v16 }
0x1bc6   :  { %v4966_v44 = vpop.xlane.xlu0 %4965  ;;  %v4963_v25 = vpop.xlane.xlu1 %4962 }
0x1bc8   :  { %v10586_v60 = vpop.eup %10585 }
0x1bc9   :  { %v4719_v59 = vmul.f32 %v10586_v60, %v13264_v62 }
0x1bca   :  { %v4686_v5 = vpop.xlane.xlu0 %4685 }
0x1bcb   :  { %10591 = vrcp.f32 %v4686_v5 }
0x1bce   :  { %v4972_v43 = vpop.xlane.xlu1 %4971  ;;  %v4960_v8 = vpop.xlane.xlu0 %4959 }
0x1bcf   :  { %10593 = vrcp.f32 %v4960_v8 }
0x1bd0   :  { %v10588_v2 = vpop.eup %10587 }
0x1bd1   :  { %v10590_v36 = vpop.eup %10589  ;;  %v4717_v16 = vmul.f32 %v10588_v2, %v13279_v11 }
0x1bd2   :  { %v4707_v39 = vpop.xlane.xlu1 %4706  ;;  %v4704_v45 = vpop.xlane.xlu0 %4703  ;;  %v4718_v58 = vmul.f32 %v10590_v36, %v13256_v37 }
0x1bd3   :  { %10595 = vrcp.f32 %v4707_v39 }
0x1bd4   :  { %10597 = vrcp.f32 %v4704_v45  ;;  %v4725_v8 = vpack.c.bf16 %v4719_v59, %v4718_v58 }
0x1bd6   :  { %v4701_v52 = vpop.xlane.xlu1 %4700  ;;  %v4978_v24 = vpop.xlane.xlu0 %4977 }
0x1bd7   :  { %10599 = vrcp.f32 %v4701_v52 }
0x1bd8   :  { %v10592_v22 = vpop.eup %10591  ;;  %10601 = vrcp.f32 %v4963_v25 }
0x1bd9   :  { %v4716_v18 = vmul.f32 %v10592_v22, %v13294_v41 }
0x1bda   :  { %v4698_v5 = vpop.xlane.xlu0 %4697  ;;  %v5007_v25 = vpop.permute.xlu1 %5006 }
0x1bdb   :  { %10603 = vrcp.f32 %v4698_v5  ;;  %v4724_v29 = vpack.c.bf16 %v4717_v16, %v4716_v18 }
0x1bdc   :  { %10605 = vrcp.f32 %v4966_v44  ;;  %v10594_v62 = vpop.eup %10593 }
0x1bdd   :  { %9458 = vmatprep.mubr.msk.bf16.mxu0 %vm273_vm1, %v4724_v29  ;;  %10607 = vrcp.f32 %v4969_v7  ;;  %v4990_v7 = vmul.f32 %v10594_v62, %v13298_v49 }
0x1bde   :  { %9459 = vmatmul.mubr.msk.bf16.vlgmr.msra.gmra.mxu0 %vm273_vm1, %v4725_v8  ;;  %v4981_v49 = vpop.xlane.xlu0 %4980  ;;  %v5108_v18 = vpop.permute.xlu1 %5107 }
0x1bdf   :  { %9483 = vmatpush3.bf16.msra.mxu0 %v13277_v23  ;;  %10609 = vrcp.f32 %v4981_v49  ;;  %v5130_v58 = vsel %vm716_vm2, %v5108_v18, 0 }
0x1be0   :  { %9484 = vmatprep.subr.bf16.mxu0 %v5011_v28  ;;  %v10596_v22 = vpop.eup %10595  ;;  %10611 = vrcp.f32 %v4972_v43 }
0x1be1   :  { %v10598_v11 = vpop.eup %10597  ;;  %v4723_v59 = vmul.f32 %v10596_v22, %v13304_v13  ;;  %10613 = vrcp.f32 %v4978_v24 }
0x1be2   :  { %v4722_v29 = vmul.f32 %v10598_v11, %v13308_v48  ;;  %v5106_v8 = vpop.permute.xlu1 %5105 }
0x1be3   :  { %9485 = vmatpush3.bf16.msra.mxu0 %v5011_v28 }
0x1be4   :  { %9486 = vmatprep.subr.bf16.mxu0 %v5009_v57  ;;  %v10600_v37 = vpop.eup %10599  ;;  %v4727_v60 = vpack.c.bf16 %v4723_v59, %v4722_v29 }
0x1be5   :  { %v10602_v41 = vpop.eup %10601  ;;  %v4721_v44 = vmul.f32 %v10600_v37, %v13312_v54 }
0x1be6   :  { %v4991_v45 = vmul.f32 %v10602_v41, %v13285_v46 }
0x1be7   :  { %9487 = vmatpush3.bf16.msra.mxu0 %v5009_v57 }
0x1be8   :  { %v10604_v39 = vpop.eup %10603  ;;  %9488 = vmatprep.subr.bf16.mxu0 %v5007_v25  ;;  %v4998_v57 = vpack.c.bf16 %v4991_v45, %v4990_v7 }
0x1be9   :  { %v4720_v23 = vmul.f32 %v10604_v39, %v13322_v61  ;;  %v10606_v2 = vpop.eup %10605 }
0x1bea   :  { %v10608_v48 = vpop.eup %10607  ;;  %v4992_v13 = vmul.f32 %v10606_v2, %v13287_v21 }
0x1beb   :  { %9489 = vmatpush3.bf16.msra.mxu0 %v5007_v25  ;;  %v4726_v28 = vpack.c.bf16 %v4721_v44, %v4720_v23  ;;  %v4993_v54 = vmul.f32 %v10608_v48, %v13271_v27  ;;  %v5127_v25 = vsel %vm716_vm2, %v5106_v8, 0 }
0x1bec   :  { %v10610_v21 = vpop.eup %10609 }
0x1bed   :  { %9462 = vmatprep.mubr.msk.bf16.mxu0 %vm273_vm1, %v4726_v28  ;;  %v4999_v61 = vpack.c.bf16 %v4993_v54, %v4992_v13  ;;  %v10612_v27 = vpop.eup %10611  ;;  %v4997_v43 = vmul.f32 %v10610_v21, %v13326_v38  ;;  %v5104_v38 = vpop.permute.xlu1 %5103 }
0x1bee   :  { %9463 = vmatmul.mubr.msk.bf16.gmra.mxu0 %vm273_vm1, %v4727_v60  ;;  %v10614_v16 = vpop.eup %10613  ;;  %v4994_v24 = vmul.f32 %v10612_v27, %v13300_v19  ;;  %v5124_v19 = vsel %vm716_vm2, %v5104_v38, 0 }
0x1bef   :  { %9490 = vmatprep.mubr.msk.bf16.mxu0 %vm273_vm1, %v4998_v57  ;;  %v4996_v22 = vmul.f32 %v10614_v16, %v13316_v47 }
0x1bf1   :  { %v5001_v37 = vpack.c.bf16 %v4997_v43, %v4996_v22 }
0x1bf6   :  { %9491 = vmatmul.mubr.msk.bf16.vlgmr.msra.gmra.mxu0 %vm273_vm1, %v4999_v61 }
0x1bfe   :  { %v4975_v46 = vpop.xlane.xlu0 %4974 }
0x1bff   :  { %10615 = vrcp.f32 %v4975_v46 }
0x1c02   :  { %v5110_v52 = vpop.permute.xlu0 %5109 }
0x1c03   :  { %9834 = vmatprep.subr.msk.bf16.mxu0 %vm716_vm2, %v5110_v52  ;;  %v5133_v36 = vsel %vm716_vm2, %v5110_v52, 0 }
0x1c04   :  { %9499 = vmatpush3.bf16.xpose.msra.mxu0 %v5133_v36 }
0x1c05   :  { %9835 = vmatprep.subr.msk.bf16.mxu0 %vm716_vm2, %v5108_v18 }
0x1c06   :  { %v5096_v41 = vpop.permute.xlu0 %5095 }
0x1c0a   :  { %v5100_v47 = vpop.permute.xlu0 %5099 }
0x1c0c   :  { %v10616_v5 = vpop.eup %10615  ;;  %9501 = vmatpush3.bf16.xpose.msra.mxu0 %v5130_v58 }
0x1c0d   :  { %9836 = vmatprep.subr.msk.bf16.mxu0 %vm716_vm2, %v5106_v8  ;;  %v4995_v62 = vmul.f32 %v10616_v5, %v13343_v10  ;;  %v5098_v10 = vpop.permute.xlu1 %5097 }
0x1c0f   :  { %v5000_v11 = vpack.c.bf16 %v4995_v62, %v4994_v24 }
0x1c11   :  { %9494 = vmatprep.mubr.msk.bf16.mxu0 %vm273_vm1, %v5000_v11  ;;  %v5102_v39 = vpop.permute.xlu1 %5101 }
0x1c12   :  { %9495 = vmatmul.mubr.msk.bf16.gmra.mxu0 %vm273_vm1, %v5001_v37 }
0x1c13   :  { %9506 = vmatprep.mubr.msk.bf16.mxu0 %vm716_vm2, %v5096_v41 }
0x1c14   :  { %9503 = vmatpush3.bf16.xpose.msra.mxu0 %v5127_v25 }
0x1c15   :  { %9837 = vmatprep.subr.msk.bf16.mxu0 %vm716_vm2, %v5104_v38 }
0x1c1c   :  { %9505 = vmatpush3.bf16.xpose.msra.mxu0 %v5124_v19 }
0x1c23   :  { %9507 = vmatmul.mubr.msk.bf16.vlgmr.msra.gmra.mxu0 %vm716_vm2, %v5098_v10 }
0x1c24   :  { %9510 = vmatprep.mubr.msk.bf16.mxu0 %vm716_vm2, %v5100_v47 }
0x1c2b   :  { %9511 = vmatmul.mubr.msk.bf16.gmra.mxu0 %vm716_vm2, %v5102_v39 }
0x1c9e   :  { %v13390_v29 = vpop.f32.mrf.mxu0 }
0x1c9f   :  { %14977 = vst [vmem:[#allocation27_spill] sm:$0xff] %v13390_v29 }
0x1ca0   :  { %v13392_v59 = vpop.f32.mrf.mxu0 }
0x1ca1   :  { %14978 = vst [vmem:[#allocation25_spill] sm:$0xff] %v13392_v59 }
0x1ca2   :  { %v13394_v23 = vpop.f32.mrf.mxu0 }
0x1ca3   :  { %14979 = vst [vmem:[#allocation9_spill] sm:$0xff] %v13394_v23 }
0x1ca4   :  { %v13396_v44 = vpop.f32.mrf.mxu0 }
0x1ca5   :  { %14980 = vst [vmem:[#allocation6_spill] sm:$0xff] %v13396_v44 }
0x1cae   :  { %v13398_v7 = vpop.f32.mrf.mxu0 }
0x1caf   :  { %14981 = vst [vmem:[#allocation8_spill] sm:$0xff] %v13398_v7 }
0x1cb0   :  { %v13400_v28 = vpop.f32.mrf.mxu0 }
0x1cb1   :  { %14982 = vst [vmem:[#allocation7_spill] sm:$0xff] %v13400_v28 }
0x1cb2   :  { %v13402_v45 = vpop.f32.mrf.mxu0 }
0x1cb3   :  { %14983 = vst [vmem:[#allocation31_spill] sm:$0xff] %v13402_v45 }
0x1cb4   :  { %v13404_v60 = vpop.f32.mrf.mxu0 }
0x1cb5   :  { %14984 = vst [vmem:[#allocation29_spill] sm:$0xff] %v13404_v60 }
0x1cb6   :  { %v13406_v2 = vpop.f32.mrf.mxu0 }
0x1cb8   :  { %v13408_v57 = vpop.f32.mrf.mxu0 }
0x1cba   :  { %v13410_v48 = vpop.f32.mrf.mxu0 }
0x1cbc   :  { %v13414_v54 = vpop.f32.mrf.mxu0 }
0x1cd2   :  { %v13418_v49 = vpop.f32.mrf.mxu0 }
0x1cd4   :  { %v13420_v46 = vpop.f32.mrf.mxu0 }
0x1cd6   :  { %v13422_v52 = vpop.f32.mrf.mxu0 }
0x1cd8   :  { %v13426_v18 = vpop.f32.mrf.mxu0 }
0x1ce3   :  { %v9508_v27 = vpop.f32.mrf.mxu0 }
0x1ce4   :  { %v5206_v43 = vsel %vm273_vm1, %v9508_v27, -inf }
0x1ce5   :  { %v5169_v16 = vpop.f32.mrf.mxu0 }
0x1ce6   :  { %v5200_v58 = vsel %vm273_vm1, %v5169_v16, -inf }
0x1ce7   :  { %5201 = vmax.xlane.f32.xlu0 %v5200_v58  ;;  %v9509_v5 = vpop.f32.mrf.mxu0 }
0x1ce8   :  { %v5209_v11 = vsel %vm273_vm1, %v9509_v5, -inf }
0x1ce9   :  { %v5172_v8 = vpop.f32.mrf.mxu0 }
0x1cea   :  { %v5203_v24 = vsel %vm273_vm1, %v5172_v8, -inf }
0x1ceb   :  { %5207 = vmax.xlane.f32.xlu0 %v5206_v43  ;;  %5204 = vmax.xlane.f32.xlu1 %v5203_v24  ;;  %v9512_v62 = vpop.f32.mrf.mxu0 }
0x1cec   :  { %v5218_v38 = vsel %vm273_vm1, %v9512_v62, -inf }
0x1ced   :  { %v5185_v22 = vpop.f32.mrf.mxu0 }
0x1cee   :  { %v5212_v10 = vsel %vm273_vm1, %v5185_v22, -inf }
0x1cef   :  { %5210 = vmax.xlane.f32.xlu0 %v5209_v11  ;;  %v9513_v37 = vpop.f32.mrf.mxu0 }
0x1cf0   :  { %v5221_v41 = vsel %vm273_vm1, %v9513_v37, -inf }
0x1cf1   :  { %5222 = vmax.xlane.f32.xlu1 %v5221_v41  ;;  %v5188_v25 = vpop.f32.mrf.mxu0 }
0x1cf2   :  { %v5215_v19 = vsel %vm273_vm1, %v5188_v25, -inf }
0x1cf3   :  { %5219 = vmax.xlane.f32.xlu0 %v5218_v38 }
0x1cf5   :  { %5216 = vmax.xlane.f32.xlu1 %v5215_v19 }
0x1cf7   :  { %5213 = vmax.xlane.f32.xlu0 %v5212_v10 }
0x1d06   :  { %5296 = vrot.lane.b32.xlu1 %v13059_v0, %s10974_s25 }
0x1d0a   :  { %5294 = vrot.lane.b32.xlu1 %v13149_v33, %s10974_s25 }
0x1d0d   :  { %5298 = vrot.lane.b32.xlu0 %v13129_v42, %s10974_s25 }
0x1d0e   :  { %5292 = vrot.lane.b32.xlu1 %v13156_v50, %s10974_s25 }
0x1d70   :  { %v5202_v47 = vpop.xlane.xlu0 %5201 }
0x1d71   :  { %v5224_v39 = vsub.f32 %v5169_v16, %v5202_v47 }
0x1d73   :  { %v5232_v38 = vmul.f32 1.442695, %v5224_v39 }
0x1d74   :  { %v5205_v58 = vpop.xlane.xlu1 %5204  ;;  %v5208_v43 = vpop.xlane.xlu0 %5207 }
0x1d75   :  { %v5226_v24 = vsub.f32 %v9508_v27, %v5208_v43  ;;  %v5225_v11 = vsub.f32 %v5172_v8, %v5205_v58 }
0x1d77   :  { %v5236_v41 = vmul.f32 1.442695, %v5226_v24  ;;  %v5234_v13 = vmul.f32 1.442695, %v5225_v11 }
0x1d78   :  { %v5211_v19 = vpop.xlane.xlu0 %5210 }
0x1d79   :  { %v5227_v10 = vsub.f32 %v9509_v5, %v5211_v19  ;;  %10617 = vpow2.f32 %v5236_v41 }
0x1d7a   :  { %v5223_v36 = vpop.xlane.xlu1 %5222  ;;  %10619 = vpow2.f32 %v5232_v38 }
0x1d7b   :  { %v5238_v21 = vmul.f32 1.442695, %v5227_v10  ;;  %v5231_v61 = vsub.f32 %v9513_v37, %v5223_v36 }
0x1d7c   :  { %v5220_v17 = vpop.xlane.xlu0 %5219 }
0x1d7d   :  { %10621 = vpow2.f32 %v5238_v21  ;;  %v5230_v14 = vsub.f32 %v9512_v62, %v5220_v17  ;;  %v5246_v47 = vmul.f32 1.442695, %v5231_v61 }
0x1d7e   :  { %v5217_v15 = vpop.xlane.xlu1 %5216  ;;  %10623 = vpow2.f32 %v5234_v13 }
0x1d7f   :  { %v5244_v16 = vmul.f32 1.442695, %v5230_v14  ;;  %v5229_v53 = vsub.f32 %v5188_v25, %v5217_v15 }
0x1d80   :  { %v5214_v27 = vpop.xlane.xlu0 %5213 }
0x1d81   :  { %10625 = vpow2.f32 %v5244_v16  ;;  %v5228_v8 = vsub.f32 %v5185_v22, %v5214_v27  ;;  %v5242_v5 = vmul.f32 1.442695, %v5229_v53 }
0x1d82   :  { %v5297_v39 = vpop.permute.xlu1 %5296  ;;  %10627 = vpow2.f32 %v5246_v47 }
0x1d83   :  { %v5240_v58 = vmul.f32 1.442695, %v5228_v8 }
0x1d84   :  { %v5299_v43 = vpop.permute.xlu0 %5298 }
0x1d85   :  { %10629 = vpow2.f32 %v5240_v58  ;;  %9514 = vmatprep.subr.bf16.mxu1 %v5299_v43 }
0x1d86   :  { %9515 = vmatpush3.bf16.msra.mxu1 %v5299_v43  ;;  %v13446_v36 = vpop.eup %10617  ;;  %10631 = vpow2.f32 %v5242_v5  ;;  %v5295_v17 = vpop.permute.xlu1 %5294 }
0x1d87   :  { %9516 = vmatprep.subr.bf16.mxu1 %v5297_v39  ;;  %v5254_v14 = vsel %vm273_vm1, %v13446_v36, 0.0  ;;  %v10620_v15 = vpop.eup %10619 }
0x1d88   :  { %5255 = vadd.xlane.f32.xlu0 %v5254_v14  ;;  %v5248_v21 = vsel %vm273_vm1, %v10620_v15, 0.0 }
0x1d8a   :  { %v10622_v13 = vpop.eup %10621  ;;  %9517 = vmatpush3.bf16.msra.mxu1 %v5297_v39  ;;  %v5293_v22 = vpop.permute.xlu1 %5292 }
0x1d8b   :  { %9518 = vmatprep.subr.bf16.mxu1 %v5295_v17  ;;  %v5257_v61 = vsel %vm273_vm1, %v10622_v13, 0.0  ;;  %v10624_v53 = vpop.eup %10623 }
0x1d8c   :  { %5258 = vadd.xlane.f32.xlu1 %v5257_v61  ;;  %5249 = vadd.xlane.f32.xlu0 %v5248_v21  ;;  %v5251_v37 = vsel %vm273_vm1, %v10624_v53, 0.0 }
0x1d8e   :  { %v13452_v62 = vpop.eup %10625  ;;  %9519 = vmatpush3.bf16.msra.mxu1 %v5295_v17 }
0x1d8f   :  { %9520 = vmatprep.subr.bf16.mxu1 %v5293_v22  ;;  %v5266_v25 = vsel %vm273_vm1, %v13452_v62, 0.0  ;;  %v10628_v24 = vpop.eup %10627 }
0x1d90   :  { %5252 = vadd.xlane.f32.xlu1 %v5251_v37  ;;  %5267 = vadd.xlane.f32.xlu0 %v5266_v25  ;;  %v5269_v38 = vsel %vm273_vm1, %v10628_v24, 0.0 }
0x1d92   :  { %v10630_v11 = vpop.eup %10629  ;;  %9521 = vmatpush3.bf16.msra.mxu1 %v5293_v22 }
0x1d93   :  { %v5260_v41 = vsel %vm273_vm1, %v10630_v11, 0.0  ;;  %v10632_v19 = vpop.eup %10631 }
0x1d94   :  { %5261 = vadd.xlane.f32.xlu1 %v5260_v41  ;;  %5270 = vadd.xlane.f32.xlu0 %v5269_v38  ;;  %v5263_v10 = vsel %vm273_vm1, %v10632_v19, 0.0 }
0x1d98   :  { %5264 = vadd.xlane.f32.xlu0 %v5263_v10 }
0x1da5   :  { %5393 = vrot.lane.b32.xlu1 %v13078_v26, %s10975_s26 }
0x1da9   :  { %5391 = vrot.lane.b32.xlu1 %v13073_v30, %s10975_s26 }
0x1dad   :  { %5389 = vrot.lane.b32.xlu1 %v13020_v3, %s10975_s26 }
0x1dae   :  { %5395 = vrot.lane.b32.xlu0 %v13067_v34, %s10975_s26 }
0x1db1   :  { %5383 = vrot.lane.b32.xlu1 %v13073_v30, %s10976_s3 }
0x1db2   :  { %5381 = vrot.lane.b32.xlu0 %v13020_v3, %s10976_s3 }
0x1db5   :  { %5387 = vrot.lane.b32.xlu1 %v13067_v34, %s10976_s3 }
0x1db6   :  { %5385 = vrot.lane.b32.xlu0 %v13078_v26, %s10976_s3 }
0x1e11   :  { %v5256_v16 = vpop.xlane.xlu0 %5255 }
0x1e15   :  { %v5259_v47 = vpop.xlane.xlu1 %5258  ;;  %v5250_v27 = vpop.xlane.xlu0 %5249 }
0x1e16   :  { %10633 = vrcp.f32 %v5259_v47 }
0x1e17   :  { %10635 = vrcp.f32 %v5250_v27 }
0x1e18   :  { %10637 = vrcp.f32 %v5256_v16 }
0x1e19   :  { %v5253_v8 = vpop.xlane.xlu1 %5252  ;;  %v5268_v39 = vpop.xlane.xlu0 %5267 }
0x1e1a   :  { %10639 = vrcp.f32 %v5253_v8 }
0x1e1d   :  { %v5262_v58 = vpop.xlane.xlu1 %5261  ;;  %v5271_v30 = vpop.xlane.xlu0 %5270 }
0x1e1e   :  { %10641 = vrcp.f32 %v5271_v30 }
0x1e1f   :  { %10643 = vrcp.f32 %v5262_v58 }
0x1e20   :  { %10645 = vrcp.f32 %v5268_v39 }
0x1e21   :  { %v5265_v3 = vpop.xlane.xlu0 %5264  ;;  %v5394_v16 = vpop.permute.xlu1 %5393 }
0x1e22   :  { %10647 = vrcp.f32 %v5265_v3  ;;  %v5416_v30 = vsel %vm716_vm2, %v5394_v16, 0 }
0x1e23   :  { %v10634_v34 = vpop.eup %10633 }
0x1e24   :  { %v10636_v5 = vpop.eup %10635  ;;  %v5283_v14 = vmul.f32 %v10634_v34, %v10622_v13  ;;  %v4497_v34 = vadd.f32 %v13180_v6, %v13052_v56 }
0x1e25   :  { %v10638_v43 = vpop.eup %10637  ;;  %v5396_v26 = vpop.permute.xlu0 %5395  ;;  %v5280_v61 = vmul.f32 %v10636_v5, %v10620_v15 }
0x1e26   :  { %9838 = vmatprep.subr.msk.bf16.mxu1 %vm716_vm2, %v5396_v26  ;;  %v5282_v22 = vmul.f32 %v10638_v43, %v13446_v36  ;;  %v5419_v38 = vsel %vm716_vm2, %v5396_v26, 0  ;;  %v5392_v3 = vpop.permute.xlu1 %5391  ;;  %v4493_v43 = vadd.f32 %v13174_v35, %v13052_v56 }
0x1e27   :  { %v10640_v17 = vpop.eup %10639 }
0x1e28   :  { %v5281_v21 = vmul.f32 %v10640_v17, %v10624_v53  ;;  %v5289_v25 = vpack.c.bf16 %v5283_v14, %v5282_v22  ;;  %v13500_v26 = vpack.c.bf16 %v4497_v34, %v4493_v43 }
0x1e29   :  { %v5382_v58 = vpop.permute.xlu0 %5381 }
0x1e2a   :  { %v5288_v37 = vpack.c.bf16 %v5281_v21, %v5280_v61 }
0x1e2b   :  { %v10642_v41 = vpop.eup %10641 }
0x1e2c   :  { %9522 = vmatprep.mubr.msk.bf16.mxu1 %vm273_vm1, %v5288_v37  ;;  %v10644_v10 = vpop.eup %10643  ;;  %v5287_v15 = vmul.f32 %v10642_v41, %v10628_v24  ;;  %v5413_v24 = vsel %vm716_vm2, %v5392_v3, 0 }
0x1e2d   :  { %9523 = vmatmul.mubr.msk.bf16.vlgmr.msra.gmra.mxu1 %vm273_vm1, %v5289_v25  ;;  %v10646_v47 = vpop.eup %10645  ;;  %v5284_v53 = vmul.f32 %v10644_v10, %v10630_v11  ;;  %v5390_v11 = vpop.permute.xlu1 %5389 }
0x1e2e   :  { %9531 = vmatpush3.bf16.xpose.msra.mxu1 %v5419_v38  ;;  %v5286_v36 = vmul.f32 %v10646_v47, %v13452_v62  ;;  %v5410_v62 = vsel %vm716_vm2, %v5390_v11, 0  ;;  %v5386_v5 = vpop.permute.xlu0 %5385 }
0x1e2f   :  { %9839 = vmatprep.subr.msk.bf16.mxu1 %vm716_vm2, %v5394_v16  ;;  %v10648_v13 = vpop.eup %10647 }
0x1e30   :  { %v5285_v27 = vmul.f32 %v10648_v13, %v10632_v19  ;;  %v5291_v39 = vpack.c.bf16 %v5287_v15, %v5286_v36 }
0x1e31   :  { %v5384_v19 = vpop.permute.xlu1 %5383 }
0x1e32   :  { %v5290_v8 = vpack.c.bf16 %v5285_v27, %v5284_v53 }
0x1e34   :  { %9526 = vmatprep.mubr.msk.bf16.mxu1 %vm273_vm1, %v5290_v8 }
0x1e35   :  { %9527 = vmatmul.mubr.msk.bf16.gmra.mxu1 %vm273_vm1, %v5291_v39  ;;  %v5388_v17 = vpop.permute.xlu1 %5387 }
0x1e36   :  { %9533 = vmatpush3.bf16.xpose.msra.mxu1 %v5416_v30  ;;  %9538 = vmatprep.mubr.msk.bf16.mxu1 %vm716_vm2, %v5382_v58 }
0x1e37   :  { %9840 = vmatprep.subr.msk.bf16.mxu1 %vm716_vm2, %v5392_v3 }
0x1e3e   :  { %9535 = vmatpush3.bf16.xpose.msra.mxu1 %v5413_v24 }
0x1e3f   :  { %9841 = vmatprep.subr.msk.bf16.mxu1 %vm716_vm2, %v5390_v11 }
0x1e46   :  { %9537 = vmatpush3.bf16.xpose.msra.mxu1 %v5410_v62 }
0x1e47   :  { %9578 = vmatprep.subr.bf16.mxu1 %v13199_v9 }
0x1e4d   :  { %9539 = vmatmul.mubr.msk.bf16.vlgmr.msra.gmra.mxu1 %vm716_vm2, %v5384_v19 }
0x1e4e   :  { %9542 = vmatprep.mubr.msk.bf16.mxu1 %vm716_vm2, %v5386_v5  ;;  %9579 = vmatpush3.bf16.msra.mxu1 %v13199_v9 }
0x1e4f   :  { %9580 = vmatprep.subr.bf16.mxu1 %v13188_v32 }
0x1e52   :  { %9581 = vmatpush3.bf16.msra.mxu1 %v13188_v32 }
0x1e53   :  { %9582 = vmatprep.subr.bf16.mxu1 %v13500_v26 }
0x1e55   :  { %9543 = vmatmul.mubr.msk.bf16.gmra.mxu1 %vm716_vm2, %v5388_v17 }
0x1e56   :  { %9583 = vmatpush3.bf16.msra.mxu1 %v13500_v26 }
0x1e57   :  { %9584 = vmatprep.subr.bf16.mxu1 %v13172_v20 }
0x1e5a   :  { %9585 = vmatpush3.bf16.msra.mxu1 %v13172_v20 }
0x1eed   :  { %v13508_v6 = vpop.f32.mrf.mxu1 }
0x1eef   :  { %v13510_v56 = vpop.f32.mrf.mxu1 }
0x1ef1   :  { %v13512_v35 = vpop.f32.mrf.mxu1 }
0x1ef3   :  { %v13516_v61 = vpop.f32.mrf.mxu1 }
0x1ef5   :  { %v13520_v22 = vpop.f32.mrf.mxu1 }
0x1ef7   :  { %v13522_v37 = vpop.f32.mrf.mxu1 }
0x1ef9   :  { %v13524_v25 = vpop.f32.mrf.mxu1 }
0x1efb   :  { %v13528_v38 = vpop.f32.mrf.mxu1 }
0x1f0d   :  { %v9540_v16 = vpop.f32.mrf.mxu1 }
0x1f0e   :  { %v5492_v27 = vsel %vm273_vm1, %v9540_v16, -inf }
0x1f0f   :  { %v5455_v47 = vpop.f32.mrf.mxu1 }
0x1f10   :  { %v5486_v13 = vsel %vm273_vm1, %v5455_v47, -inf }
0x1f11   :  { %5487 = vmax.xlane.f32.xlu0 %v5486_v13  ;;  %v9541_v15 = vpop.f32.mrf.mxu1 }
0x1f12   :  { %v5495_v58 = vsel %vm273_vm1, %v9541_v15, -inf }
0x1f13   :  { %v5458_v53 = vpop.f32.mrf.mxu1 }
0x1f14   :  { %v5489_v36 = vsel %vm273_vm1, %v5458_v53, -inf }
0x1f15   :  { %5493 = vmax.xlane.f32.xlu0 %v5492_v27  ;;  %5490 = vmax.xlane.f32.xlu1 %v5489_v36  ;;  %v9544_v8 = vpop.f32.mrf.mxu1 }
0x1f16   :  { %v5504_v11 = vsel %vm273_vm1, %v9544_v8, -inf }
0x1f17   :  { %v5471_v39 = vpop.f32.mrf.mxu1 }
0x1f18   :  { %v5498_v19 = vsel %vm273_vm1, %v5471_v39, -inf }
0x1f19   :  { %5496 = vmax.xlane.f32.xlu0 %v5495_v58  ;;  %v9545_v30 = vpop.f32.mrf.mxu1 }
0x1f1a   :  { %v5507_v3 = vsel %vm273_vm1, %v9545_v30, -inf }
0x1f1b   :  { %5508 = vmax.xlane.f32.xlu1 %v5507_v3  ;;  %v5474_v24 = vpop.f32.mrf.mxu1 }
0x1f1c   :  { %v5501_v62 = vsel %vm273_vm1, %v5474_v24, -inf }
0x1f1d   :  { %5505 = vmax.xlane.f32.xlu0 %v5504_v11 }
0x1f1f   :  { %5502 = vmax.xlane.f32.xlu1 %v5501_v62 }
0x1f21   :  { %5499 = vmax.xlane.f32.xlu0 %v5498_v19 }
0x1f30   :  { %5582 = vrot.lane.b32.xlu1 %v13059_v0, %s10976_s3 }
0x1f34   :  { %5580 = vrot.lane.b32.xlu1 %v13149_v33, %s10976_s3 }
0x1f37   :  { %5584 = vrot.lane.b32.xlu0 %v13129_v42, %s10976_s3 }
0x1f38   :  { %5578 = vrot.lane.b32.xlu1 %v13156_v50, %s10976_s3 }
0x1f9a   :  { %v5488_v34 = vpop.xlane.xlu0 %5487 }
0x1f9b   :  { %v5510_v5 = vsub.f32 %v5455_v47, %v5488_v34 }
0x1f9d   :  { %v5518_v58 = vmul.f32 1.442695, %v5510_v5 }
0x1f9e   :  { %v5491_v43 = vpop.xlane.xlu1 %5490  ;;  %v5494_v17 = vpop.xlane.xlu0 %5493 }
0x1f9f   :  { %v5512_v13 = vsub.f32 %v9540_v16, %v5494_v17  ;;  %v5511_v27 = vsub.f32 %v5458_v53, %v5491_v43 }
0x1fa1   :  { %v5522_v36 = vmul.f32 1.442695, %v5512_v13  ;;  %v5520_v62 = vmul.f32 1.442695, %v5511_v27 }
0x1fa2   :  { %v5497_v3 = vpop.xlane.xlu0 %5496 }
0x1fa3   :  { %v5513_v11 = vsub.f32 %v9541_v15, %v5497_v3  ;;  %10649 = vpow2.f32 %v5522_v36 }
0x1fa4   :  { %v5509_v0 = vpop.xlane.xlu1 %5508  ;;  %10651 = vpow2.f32 %v5518_v58 }
0x1fa5   :  { %v5524_v33 = vmul.f32 1.442695, %v5513_v11  ;;  %v5517_v19 = vsub.f32 %v9545_v30, %v5509_v0 }
0x1fa6   :  { %v5506_v42 = vpop.xlane.xlu0 %5505 }
0x1fa7   :  { %10653 = vpow2.f32 %v5524_v33  ;;  %v5516_v41 = vsub.f32 %v9544_v8, %v5506_v42  ;;  %v5532_v34 = vmul.f32 1.442695, %v5517_v19 }
0x1fa8   :  { %v5503_v50 = vpop.xlane.xlu1 %5502  ;;  %10655 = vpow2.f32 %v5520_v62 }
0x1fa9   :  { %v5530_v47 = vmul.f32 1.442695, %v5516_v41  ;;  %v5515_v14 = vsub.f32 %v5474_v24, %v5503_v50 }
0x1faa   :  { %v5500_v16 = vpop.xlane.xlu0 %5499 }
0x1fab   :  { %10657 = vpow2.f32 %v5530_v47  ;;  %v5514_v53 = vsub.f32 %v5471_v39, %v5500_v16  ;;  %v5528_v15 = vmul.f32 1.442695, %v5515_v14 }
0x1fac   :  { %v5583_v5 = vpop.permute.xlu1 %5582  ;;  %10659 = vpow2.f32 %v5532_v34 }
0x1fad   :  { %v5526_v43 = vmul.f32 1.442695, %v5514_v53 }
0x1fae   :  { %v5585_v17 = vpop.permute.xlu0 %5584 }
0x1faf   :  { %10661 = vpow2.f32 %v5526_v43  ;;  %9546 = vmatprep.subr.bf16.mxu0 %v5585_v17 }
0x1fb0   :  { %9547 = vmatpush3.bf16.msra.mxu0 %v5585_v17  ;;  %v10650_v30 = vpop.eup %10649  ;;  %10663 = vpow2.f32 %v5528_v15  ;;  %v5581_v8 = vpop.permute.xlu1 %5580 }
0x1fb1   :  { %9548 = vmatprep.subr.bf16.mxu0 %v5583_v5  ;;  %v5540_v13 = vsel %vm273_vm1, %v10650_v30, 0.0  ;;  %v10652_v41 = vpop.eup %10651 }
0x1fb2   :  { %5541 = vadd.xlane.f32.xlu0 %v5540_v13  ;;  %v5534_v14 = vsel %vm273_vm1, %v10652_v41, 0.0 }
0x1fb4   :  { %v10654_v24 = vpop.eup %10653  ;;  %9549 = vmatpush3.bf16.msra.mxu0 %v5583_v5  ;;  %v5579_v58 = vpop.permute.xlu1 %5578 }
0x1fb5   :  { %9550 = vmatprep.subr.bf16.mxu0 %v5581_v8  ;;  %v5543_v39 = vsel %vm273_vm1, %v10654_v24, 0.0  ;;  %v10656_v27 = vpop.eup %10655 }
0x1fb6   :  { %5544 = vadd.xlane.f32.xlu1 %v5543_v39  ;;  %5535 = vadd.xlane.f32.xlu0 %v5534_v14  ;;  %v5537_v3 = vsel %vm273_vm1, %v10656_v27, 0.0 }
0x1fb8   :  { %v13551_v36 = vpop.eup %10657  ;;  %9551 = vmatpush3.bf16.msra.mxu0 %v5581_v8 }
0x1fb9   :  { %9552 = vmatprep.subr.bf16.mxu0 %v5579_v58  ;;  %v5552_v11 = vsel %vm273_vm1, %v13551_v36, 0.0  ;;  %v10660_v0 = vpop.eup %10659 }
0x1fba   :  { %5538 = vadd.xlane.f32.xlu1 %v5537_v3  ;;  %5553 = vadd.xlane.f32.xlu0 %v5552_v11  ;;  %v5555_v19 = vsel %vm273_vm1, %v10660_v0, 0.0 }
0x1fbc   :  { %v10662_v62 = vpop.eup %10661  ;;  %9553 = vmatpush3.bf16.msra.mxu0 %v5579_v58 }
0x1fbd   :  { %v5546_v33 = vsel %vm273_vm1, %v10662_v62, 0.0  ;;  %v10664_v42 = vpop.eup %10663 }
0x1fbe   :  { %5547 = vadd.xlane.f32.xlu1 %v5546_v33  ;;  %5556 = vadd.xlane.f32.xlu0 %v5555_v19  ;;  %v5549_v50 = vsel %vm273_vm1, %v10664_v42, 0.0 }
0x1fc2   :  { %5550 = vadd.xlane.f32.xlu0 %v5549_v50 }
0x1fcf   :  { %5795 = vrot.lane.b32.xlu1 %v13185_v31, %s10970_s23 }
0x1fd3   :  { %5793 = vrot.lane.b32.xlu1 %v13178_v4, %s10970_s23 }
0x1fd7   :  { %5791 = vrot.lane.b32.xlu1 %v13169_v51, %s10970_s23 }
0x1fd8   :  { %5797 = vrot.lane.b32.xlu0 %v13193_v1, %s10970_s23 }
0x203b   :  { %v5542_v47 = vpop.xlane.xlu0 %5541 }
0x203f   :  { %v5545_v34 = vpop.xlane.xlu1 %5544  ;;  %v5536_v16 = vpop.xlane.xlu0 %5535 }
0x2040   :  { %10665 = vrcp.f32 %v5545_v34 }
0x2041   :  { %10667 = vrcp.f32 %v5536_v16 }
0x2042   :  { %10669 = vrcp.f32 %v5542_v47 }
0x2043   :  { %v5539_v53 = vpop.xlane.xlu1 %5538  ;;  %v5554_v5 = vpop.xlane.xlu0 %5553 }
0x2044   :  { %10671 = vrcp.f32 %v5539_v53 }
0x2047   :  { %v5548_v43 = vpop.xlane.xlu1 %5547  ;;  %v5557_v15 = vpop.xlane.xlu0 %5556 }
0x2048   :  { %10673 = vrcp.f32 %v5557_v15 }
0x2049   :  { %10675 = vrcp.f32 %v5548_v43 }
0x204a   :  { %10677 = vrcp.f32 %v5554_v5 }
0x204b   :  { %v5551_v17 = vpop.xlane.xlu0 %5550  ;;  %v5796_v5 = vpop.permute.xlu1 %5795 }
0x204c   :  { %10679 = vrcp.f32 %v5551_v17 }
0x204d   :  { %v10666_v8 = vpop.eup %10665 }
0x204e   :  { %v10668_v13 = vpop.eup %10667  ;;  %v5569_v3 = vmul.f32 %v10666_v8, %v10654_v24 }
0x204f   :  { %v10670_v39 = vpop.eup %10669  ;;  %v5798_v14 = vpop.permute.xlu0 %5797  ;;  %v5566_v11 = vmul.f32 %v10668_v13, %v10652_v41  ;;  %v5818_v13 = vsel %vm716_vm2, %v5796_v5, 0 }
0x2050   :  { %9842 = vmatprep.subr.msk.bf16.mxu0 %vm716_vm2, %v5798_v14  ;;  %v5568_v19 = vmul.f32 %v10670_v39, %v10650_v30  ;;  %v5821_v16 = vsel %vm716_vm2, %v5798_v14, 0  ;;  %v5794_v39 = vpop.permute.xlu1 %5793 }
0x2051   :  { %v10672_v58 = vpop.eup %10671 }
0x2052   :  { %v5567_v33 = vmul.f32 %v10672_v58, %v10656_v27  ;;  %v5575_v47 = vpack.c.bf16 %v5569_v3, %v5568_v19 }
0x2054   :  { %v5574_v50 = vpack.c.bf16 %v5567_v33, %v5566_v11 }
0x2055   :  { %v10674_v34 = vpop.eup %10673 }
0x2056   :  { %9554 = vmatprep.mubr.msk.bf16.mxu0 %vm273_vm1, %v5574_v50  ;;  %v10676_v53 = vpop.eup %10675  ;;  %v5573_v15 = vmul.f32 %v10674_v34, %v10660_v0  ;;  %v5815_v0 = vsel %vm716_vm2, %v5794_v39, 0 }
0x2057   :  { %9555 = vmatmul.mubr.msk.bf16.vlgmr.msra.gmra.mxu0 %vm273_vm1, %v5575_v47  ;;  %v10678_v43 = vpop.eup %10677  ;;  %v5570_v41 = vmul.f32 %v10676_v53, %v10662_v62  ;;  %v5792_v62 = vpop.permute.xlu1 %5791 }
0x2058   :  { %9563 = vmatpush3.bf16.xpose.msra.mxu0 %v5821_v16  ;;  %v5572_v30 = vmul.f32 %v10678_v43, %v13551_v36  ;;  %v5812_v36 = vsel %vm716_vm2, %v5792_v62, 0 }
0x2059   :  { %9843 = vmatprep.subr.msk.bf16.mxu0 %vm716_vm2, %v5796_v5  ;;  %v10680_v24 = vpop.eup %10679 }
0x205a   :  { %v5571_v27 = vmul.f32 %v10680_v24, %v10664_v42  ;;  %v5577_v8 = vpack.c.bf16 %v5573_v15, %v5572_v30 }
0x205c   :  { %v5576_v17 = vpack.c.bf16 %v5571_v27, %v5570_v41 }
0x205e   :  { %9558 = vmatprep.mubr.msk.bf16.mxu0 %vm273_vm1, %v5576_v17 }
0x205f   :  { %9559 = vmatmul.mubr.msk.bf16.gmra.mxu0 %vm273_vm1, %v5577_v8 }
0x2060   :  { %9565 = vmatpush3.bf16.xpose.msra.mxu0 %v5818_v13  ;;  %9570 = vmatprep.mubr.msk.bf16.mxu0 %vm716_vm2, %v13169_v51 }
0x2061   :  { %9844 = vmatprep.subr.msk.bf16.mxu0 %vm716_vm2, %v5794_v39 }
0x2068   :  { %9567 = vmatpush3.bf16.xpose.msra.mxu0 %v5815_v0 }
0x2069   :  { %9845 = vmatprep.subr.msk.bf16.mxu0 %vm716_vm2, %v5792_v62 }
0x2070   :  { %9569 = vmatpush3.bf16.xpose.msra.mxu0 %v5812_v36 }
0x2077   :  { %9571 = vmatmul.mubr.msk.bf16.vlgmr.msra.gmra.mxu0 %vm716_vm2, %v13178_v4 }
0x2078   :  { %9574 = vmatprep.mubr.msk.bf16.mxu0 %vm716_vm2, %v13185_v31 }
0x207f   :  { %9575 = vmatmul.mubr.msk.bf16.gmra.mxu0 %vm716_vm2, %v13193_v1 }
0x2117   :  { %v13588_v42 = vpop.f32.mrf.mxu0 }
0x2119   :  { %v13590_v14 = vpop.f32.mrf.mxu0 }
0x211b   :  { %v13592_v58 = vpop.f32.mrf.mxu0 }
0x211d   :  { %v13596_v11 = vpop.f32.mrf.mxu0 }
0x211f   :  { %v13600_v19 = vpop.f32.mrf.mxu0 }
0x2121   :  { %v13602_v50 = vpop.f32.mrf.mxu0 }
0x2123   :  { %v13604_v47 = vpop.f32.mrf.mxu0 }
0x2125   :  { %v13608_v16 = vpop.f32.mrf.mxu0 }
0x2137   :  { %v9572_v5 = vpop.f32.mrf.mxu0 }
0x2138   :  { %v5894_v27 = vsel %vm273_vm1, %v9572_v5, -inf }
0x2139   :  { %v5857_v43 = vpop.f32.mrf.mxu0 }
0x213a   :  { %v5888_v24 = vsel %vm273_vm1, %v5857_v43, -inf }
0x213b   :  { %5889 = vmax.xlane.f32.xlu0 %v5888_v24  ;;  %v9573_v15 = vpop.f32.mrf.mxu0 }
0x213c   :  { %v5897_v13 = vsel %vm273_vm1, %v9573_v15, -inf }
0x213d   :  { %v5860_v41 = vpop.f32.mrf.mxu0 }
0x213e   :  { %v5891_v30 = vsel %vm273_vm1, %v5860_v41, -inf }
0x213f   :  { %5895 = vmax.xlane.f32.xlu0 %v5894_v27  ;;  %5892 = vmax.xlane.f32.xlu1 %v5891_v30  ;;  %v9576_v17 = vpop.f32.mrf.mxu0 }
0x2140   :  { %v5906_v24 = vsel %vm273_vm1, %v9576_v17, -inf }
0x2141   :  { %v5873_v8 = vpop.f32.mrf.mxu0 }
0x2142   :  { %v5900_v62 = vsel %vm273_vm1, %v5873_v8, -inf }
0x2143   :  { %5898 = vmax.xlane.f32.xlu0 %v5897_v13  ;;  %v9577_v39 = vpop.f32.mrf.mxu0 }
0x2144   :  { %v5909_v34 = vsel %vm273_vm1, %v9577_v39, -inf }
0x2145   :  { %v5876_v0 = vpop.f32.mrf.mxu0 }
0x2146   :  { %v5903_v36 = vsel %vm273_vm1, %v5876_v0, -inf }
0x2147   :  { %5901 = vmax.xlane.f32.xlu0 %v5900_v62  ;;  %5904 = vmax.xlane.f32.xlu1 %v5903_v36 }
0x214b   :  { %5907 = vmax.xlane.f32.xlu0 %v5906_v24  ;;  %5910 = vmax.xlane.f32.xlu1 %v5909_v34 }
0x21c4   :  { %v5890_v27 = vpop.xlane.xlu0 %5889 }
0x21c5   :  { %v5912_v30 = vsub.f32 %v5857_v43, %v5890_v27 }
0x21c7   :  { %v5920_v13 = vmul.f32 1.442695, %v5912_v30 }
0x21c8   :  { %v5896_v3 = vpop.xlane.xlu0 %5895  ;;  %v5893_v53 = vpop.xlane.xlu1 %5892 }
0x21c9   :  { %v5914_v10 = vsub.f32 %v9572_v5, %v5896_v3  ;;  %v5913_v21 = vsub.f32 %v5860_v41, %v5893_v53 }
0x21cb   :  { %v5924_v33 = vmul.f32 1.442695, %v5914_v10  ;;  %v5922_v62 = vmul.f32 1.442695, %v5913_v21 }
0x21cc   :  { %v5899_v12 = vpop.xlane.xlu0 %5898 }
0x21cd   :  { %10681 = vpow2.f32 %v5924_v33  ;;  %v5915_v63 = vsub.f32 %v9573_v15, %v5899_v12 }
0x21ce   :  { %10683 = vpow2.f32 %v5920_v13 }
0x21cf   :  { %v5926_v36 = vmul.f32 1.442695, %v5915_v63 }
0x21d0   :  { %v5902_v40 = vpop.xlane.xlu0 %5901  ;;  %v5905_v15 = vpop.xlane.xlu1 %5904 }
0x21d1   :  { %10685 = vpow2.f32 %v5926_v36  ;;  %v5916_v55 = vsub.f32 %v5873_v8, %v5902_v40  ;;  %v5917_v8 = vsub.f32 %v5876_v0, %v5905_v15 }
0x21d2   :  { %10687 = vpow2.f32 %v5922_v62 }
0x21d3   :  { %v5928_v7 = vmul.f32 1.442695, %v5916_v55  ;;  %v5930_v13 = vmul.f32 1.442695, %v5917_v8 }
0x21d4   :  { %v5908_v24 = vpop.xlane.xlu0 %5907  ;;  %v5911_v41 = vpop.xlane.xlu1 %5910 }
0x21d5   :  { %v5918_v34 = vsub.f32 %v9576_v17, %v5908_v24  ;;  %v5919_v17 = vsub.f32 %v9577_v39, %v5911_v41 }
0x21d7   :  { %v5932_v43 = vmul.f32 1.442695, %v5918_v34  ;;  %v5934_v30 = vmul.f32 1.442695, %v5919_v17 }
0x21d9   :  { %10689 = vpow2.f32 %v5932_v43 }
0x21da   :  { %v10682_v27 = vpop.eup %10681  ;;  %10691 = vpow2.f32 %v5928_v7 }
0x21db   :  { %v5942_v10 = vsel %vm273_vm1, %v10682_v27, 0.0  ;;  %v10684_v3 = vpop.eup %10683  ;;  %10693 = vpow2.f32 %v5934_v30 }
0x21dc   :  { %5943 = vadd.xlane.f32.xlu0 %v5942_v10  ;;  %v5936_v12 = vsel %vm273_vm1, %v10684_v3, 0.0  ;;  %10695 = vpow2.f32 %v5930_v13 }
0x21de   :  { %v10686_v33 = vpop.eup %10685 }
0x21df   :  { %v5945_v63 = vsel %vm273_vm1, %v10686_v33, 0.0  ;;  %v10688_v21 = vpop.eup %10687 }
0x21e0   :  { %5937 = vadd.xlane.f32.xlu0 %v5936_v12  ;;  %5946 = vadd.xlane.f32.xlu1 %v5945_v63  ;;  %v5939_v40 = vsel %vm273_vm1, %v10688_v21, 0.0 }
0x21e4   :  { %5940 = vadd.xlane.f32.xlu1 %v5939_v40 }
0x21e6   :  { %v13624_v55 = vpop.eup %10689 }
0x21e7   :  { %v5954_v7 = vsel %vm273_vm1, %v13624_v55, 0.0  ;;  %v13628_v53 = vpop.eup %10691 }
0x21e8   :  { %5955 = vadd.xlane.f32.xlu0 %v5954_v7  ;;  %v5948_v5 = vsel %vm273_vm1, %v13628_v53, 0.0  ;;  %v10694_v62 = vpop.eup %10693 }
0x21e9   :  { %v5957_v36 = vsel %vm273_vm1, %v10694_v62, 0.0  ;;  %v10696_v24 = vpop.eup %10695 }
0x21ea   :  { %v5951_v34 = vsel %vm273_vm1, %v10696_v24, 0.0 }
0x21ec   :  { %5949 = vadd.xlane.f32.xlu0 %v5948_v5 }
0x21f5   :  { %6069 = vrot.lane.b32.xlu1 %v13185_v31, %s10971_s5 }
0x21f9   :  { %6067 = vrot.lane.b32.xlu1 %v13178_v4, %s10971_s5 }
0x2202   :  { %6071 = vrot.lane.b32.xlu0 %v13193_v1, %s10971_s5 }
0x2206   :  { %6057 = vrot.lane.b32.xlu0 %v13169_v51, %s10972_s24 }
0x220a   :  { %6061 = vrot.lane.b32.xlu0 %v13185_v31, %s10972_s24 }
0x221d   :  { %5958 = vadd.xlane.f32.xlu1 %v5957_v36 }
0x2221   :  { %5952 = vadd.xlane.f32.xlu1 %v5951_v34 }
0x2232   :  { %6065 = vrot.lane.b32.xlu1 %v13169_v51, %s10971_s5 }
0x2236   :  { %6059 = vrot.lane.b32.xlu1 %v13178_v4, %s10972_s24 }
0x223a   :  { %6063 = vrot.lane.b32.xlu1 %v13193_v1, %s10972_s24 }
0x2265   :  { %v5944_v39 = vpop.xlane.xlu0 %5943 }
0x2269   :  { %v5938_v0 = vpop.xlane.xlu0 %5937  ;;  %v5947_v43 = vpop.xlane.xlu1 %5946 }
0x226a   :  { %10697 = vrcp.f32 %v5947_v43 }
0x226b   :  { %10699 = vrcp.f32 %v5938_v0 }
0x226c   :  { %10701 = vrcp.f32 %v5944_v39 }
0x226d   :  { %v5941_v10 = vpop.xlane.xlu1 %5940 }
0x226e   :  { %10703 = vrcp.f32 %v5941_v10 }
0x2271   :  { %v5956_v12 = vpop.xlane.xlu0 %5955  ;;  %v6070_v0 = vpop.permute.xlu1 %6069 }
0x2272   :  { %v6092_v43 = vsel %vm716_vm2, %v6070_v0, 0 }
0x2275   :  { %v5950_v63 = vpop.xlane.xlu0 %5949  ;;  %v6068_v10 = vpop.permute.xlu1 %6067 }
0x2277   :  { %v10698_v40 = vpop.eup %10697 }
0x2278   :  { %v10700_v7 = vpop.eup %10699  ;;  %v5971_v17 = vmul.f32 %v10698_v40, %v10686_v33 }
0x2279   :  { %v6072_v5 = vpop.permute.xlu0 %6071  ;;  %v10702_v15 = vpop.eup %10701  ;;  %v5968_v8 = vmul.f32 %v10700_v7, %v10684_v3 }
0x227a   :  { %9846 = vmatprep.subr.msk.bf16.mxu1 %vm716_vm2, %v6072_v5  ;;  %v5970_v13 = vmul.f32 %v10702_v15, %v10682_v27  ;;  %v6095_v39 = vsel %vm716_vm2, %v6072_v5, 0  ;;  %v6089_v27 = vsel %vm716_vm2, %v6068_v10, 0 }
0x227b   :  { %v10704_v41 = vpop.eup %10703 }
0x227c   :  { %v5969_v30 = vmul.f32 %v10704_v41, %v10688_v21  ;;  %v5977_v34 = vpack.c.bf16 %v5971_v17, %v5970_v13 }
0x227e   :  { %v5976_v36 = vpack.c.bf16 %v5969_v30, %v5968_v8 }
0x2280   :  { %9586 = vmatprep.mubr.msk.bf16.mxu1 %vm273_vm1, %v5976_v36  ;;  %v6058_v36 = vpop.permute.xlu0 %6057 }
0x2281   :  { %9587 = vmatmul.mubr.msk.bf16.vlgmr.msra.gmra.mxu1 %vm273_vm1, %v5977_v34 }
0x2282   :  { %9595 = vmatpush3.bf16.xpose.msra.mxu1 %v6095_v39 }
0x2283   :  { %9847 = vmatprep.subr.msk.bf16.mxu1 %vm716_vm2, %v6070_v0 }
0x2284   :  { %v6062_v39 = vpop.permute.xlu0 %6061 }
0x228a   :  { %9597 = vmatpush3.bf16.xpose.msra.mxu1 %v6092_v43 }
0x228b   :  { %9848 = vmatprep.subr.msk.bf16.mxu1 %vm716_vm2, %v6068_v10 }
0x2292   :  { %9599 = vmatpush3.bf16.xpose.msra.mxu1 %v6089_v27 }
0x22a6   :  { %v5959_v3 = vpop.xlane.xlu1 %5958 }
0x22a7   :  { %10705 = vrcp.f32 %v5959_v3 }
0x22a8   :  { %10707 = vrcp.f32 %v5950_v63 }
0x22a9   :  { %10709 = vrcp.f32 %v5956_v12 }
0x22aa   :  { %v5953_v33 = vpop.xlane.xlu1 %5952 }
0x22ab   :  { %10711 = vrcp.f32 %v5953_v33 }
0x22ae   :  { %v6066_v21 = vpop.permute.xlu1 %6065 }
0x22af   :  { %9849 = vmatprep.subr.msk.bf16.mxu1 %vm716_vm2, %v6066_v21  ;;  %v6086_v40 = vsel %vm716_vm2, %v6066_v21, 0 }
0x22b0   :  { %9601 = vmatpush3.bf16.xpose.msra.mxu1 %v6086_v40 }
0x22b2   :  { %v6060_v34 = vpop.permute.xlu1 %6059 }
0x22b4   :  { %v10706_v7 = vpop.eup %10705 }
0x22b5   :  { %v10708_v5 = vpop.eup %10707  ;;  %v5975_v17 = vmul.f32 %v10706_v7, %v10694_v62 }
0x22b6   :  { %v10710_v15 = vpop.eup %10709  ;;  %v5972_v8 = vmul.f32 %v10708_v5, %v13628_v53  ;;  %v6064_v62 = vpop.permute.xlu1 %6063 }
0x22b7   :  { %v5974_v13 = vmul.f32 %v10710_v15, %v13624_v55 }
0x22b8   :  { %v10712_v41 = vpop.eup %10711 }
0x22b9   :  { %v5973_v30 = vmul.f32 %v10712_v41, %v10696_v24  ;;  %v5979_v12 = vpack.c.bf16 %v5975_v17, %v5974_v13 }
0x22bb   :  { %v5978_v63 = vpack.c.bf16 %v5973_v30, %v5972_v8 }
0x22bd   :  { %9590 = vmatprep.mubr.msk.bf16.mxu1 %vm273_vm1, %v5978_v63 }
0x22be   :  { %9591 = vmatmul.mubr.msk.bf16.gmra.mxu1 %vm273_vm1, %v5979_v12 }
0x22bf   :  { %9602 = vmatprep.mubr.msk.bf16.mxu1 %vm716_vm2, %v6058_v36 }
0x22c6   :  { %9603 = vmatmul.mubr.msk.bf16.vlgmr.msra.gmra.mxu1 %vm716_vm2, %v6060_v34 }
0x22c7   :  { %9606 = vmatprep.mubr.msk.bf16.mxu1 %vm716_vm2, %v6062_v39 }
0x22ce   :  { %9607 = vmatmul.mubr.msk.bf16.gmra.mxu1 %vm716_vm2, %v6064_v62 }
0x2341   :  { %v13668_v53 = vpop.f32.mrf.mxu1 }
0x2342   :  { %14985 = vst [vmem:[#allocation32_spill] sm:$0xff] %v13668_v53 }
0x2343   :  { %v13670_v55 = vpop.f32.mrf.mxu1 }
0x2344   :  { %14986 = vst [vmem:[#allocation30_spill] sm:$0xff] %v13670_v55 }
0x2345   :  { %v13672_v24 = vpop.f32.mrf.mxu1 }
0x2346   :  { %14987 = vst [vmem:[#allocation11_spill] sm:$0xff] %v13672_v24 }
0x2347   :  { %v13674_v0 = vpop.f32.mrf.mxu1 }
0x2348   :  { %14988 = vst [vmem:[#allocation10_spill] sm:$0xff] %v13674_v0 }
0x237e   :  { %v13676_v43 = vpop.f32.mrf.mxu1 }
0x237f   :  { %14989 = vst [vmem:[#allocation13_spill] sm:$0xff] %v13676_v43 }
0x2380   :  { %v13678_v10 = vpop.f32.mrf.mxu1 }
0x2381   :  { %14990 = vst [vmem:[#allocation12_spill] sm:$0xff] %v13678_v10 }
0x2382   :  { %v13680_v27 = vpop.f32.mrf.mxu1 }
0x2383   :  { %14991 = vst [vmem:[#allocation15_spill] sm:$0xff] %v13680_v27 }
0x2384   :  { %v13682_v3 = vpop.f32.mrf.mxu1 }
0x2385   :  { %14992 = vst [vmem:[#allocation14_spill] sm:$0xff] %v13682_v3 }
0x2386   :  { %v9604_v33 = vpop.f32.mrf.mxu1 }
0x2387   :  { %v6168_v15 = vsel %vm273_vm1, %v9604_v33, -inf }
0x2388   :  { %v6131_v21 = vpop.f32.mrf.mxu1 }
0x2389   :  { %v6162_v40 = vsel %vm273_vm1, %v6131_v21, -inf }
0x238a   :  { %6163 = vmax.xlane.f32.xlu0 %v6162_v40  ;;  %v9605_v7 = vpop.f32.mrf.mxu1 }
0x238b   :  { %v6171_v30 = vsel %vm273_vm1, %v9605_v7, -inf }
0x238c   :  { %v6134_v5 = vpop.f32.mrf.mxu1 }
0x238d   :  { %v6165_v41 = vsel %vm273_vm1, %v6134_v5, -inf }
0x238e   :  { %6169 = vmax.xlane.f32.xlu0 %v6168_v15  ;;  %6166 = vmax.xlane.f32.xlu1 %v6165_v41  ;;  %v9608_v17 = vpop.f32.mrf.mxu1 }
0x238f   :  { %v6180_v36 = vsel %vm273_vm1, %v9608_v17, -inf }
0x2390   :  { %v6147_v8 = vpop.f32.mrf.mxu1 }
0x2391   :  { %v6174_v39 = vsel %vm273_vm1, %v6147_v8, -inf }
0x2392   :  { %6172 = vmax.xlane.f32.xlu0 %v6171_v30  ;;  %v9609_v13 = vpop.f32.mrf.mxu1 }
0x2393   :  { %v6183_v63 = vsel %vm273_vm1, %v9609_v13, -inf }
0x2394   :  { %6184 = vmax.xlane.f32.xlu1 %v6183_v63  ;;  %v6150_v12 = vpop.f32.mrf.mxu1 }
0x2395   :  { %v6177_v34 = vsel %vm273_vm1, %v6150_v12, -inf }
0x2396   :  { %6181 = vmax.xlane.f32.xlu0 %v6180_v36 }
0x2398   :  { %6178 = vmax.xlane.f32.xlu1 %v6177_v34 }
0x239a   :  { %6175 = vmax.xlane.f32.xlu0 %v6174_v39 }
0x23a9   :  { %6262 = vrot.lane.b32.xlu1 %v13188_v32, %s10972_s24 }
0x23ad   :  { %6260 = vrot.lane.b32.xlu1 %v13500_v26, %s10972_s24 }
0x23b0   :  { %6264 = vrot.lane.b32.xlu0 %v13199_v9, %s10972_s24 }
0x23b1   :  { %6258 = vrot.lane.b32.xlu1 %v13172_v20, %s10972_s24 }
0x2413   :  { %v6164_v62 = vpop.xlane.xlu0 %6163 }
0x2414   :  { %v6186_v40 = vsub.f32 %v6131_v21, %v6164_v62 }
0x2416   :  { %v6194_v63 = vmul.f32 1.442695, %v6186_v40 }
0x2417   :  { %v6170_v15 = vpop.xlane.xlu0 %6169  ;;  %v6167_v41 = vpop.xlane.xlu1 %6166 }
0x2418   :  { %v6188_v30 = vsub.f32 %v9604_v33, %v6170_v15  ;;  %v6187_v34 = vsub.f32 %v6134_v5, %v6167_v41 }
0x241a   :  { %v6198_v36 = vmul.f32 1.442695, %v6188_v30  ;;  %v6196_v10 = vmul.f32 1.442695, %v6187_v34 }
0x241b   :  { %v6173_v39 = vpop.xlane.xlu0 %6172 }
0x241c   :  { %10713 = vpow2.f32 %v6198_v36  ;;  %v6189_v43 = vsub.f32 %v9605_v7, %v6173_v39 }
0x241d   :  { %v6185_v27 = vpop.xlane.xlu1 %6184  ;;  %10715 = vpow2.f32 %v6194_v63 }
0x241e   :  { %v6200_v3 = vmul.f32 1.442695, %v6189_v43  ;;  %v6193_v53 = vsub.f32 %v9609_v13, %v6185_v27 }
0x241f   :  { %v6182_v24 = vpop.xlane.xlu0 %6181 }
0x2420   :  { %10717 = vpow2.f32 %v6200_v3  ;;  %v6192_v55 = vsub.f32 %v9608_v17, %v6182_v24  ;;  %v6208_v21 = vmul.f32 1.442695, %v6193_v53 }
0x2421   :  { %v6179_v0 = vpop.xlane.xlu1 %6178  ;;  %10719 = vpow2.f32 %v6196_v10 }
0x2422   :  { %v6206_v62 = vmul.f32 1.442695, %v6192_v55  ;;  %v6191_v45 = vsub.f32 %v6150_v12, %v6179_v0 }
0x2423   :  { %v6176_v33 = vpop.xlane.xlu0 %6175 }
0x2424   :  { %10721 = vpow2.f32 %v6206_v62  ;;  %v6190_v40 = vsub.f32 %v6147_v8, %v6176_v33  ;;  %v6204_v15 = vmul.f32 1.442695, %v6191_v45 }
0x2425   :  { %v6263_v5 = vpop.permute.xlu1 %6262  ;;  %10723 = vpow2.f32 %v6208_v21 }
0x2426   :  { %v6202_v7 = vmul.f32 1.442695, %v6190_v40 }
0x2427   :  { %v6265_v41 = vpop.permute.xlu0 %6264 }
0x2428   :  { %10725 = vpow2.f32 %v6202_v7  ;;  %9610 = vmatprep.subr.bf16.mxu0 %v6265_v41 }
0x2429   :  { %v13700_v43 = vpop.eup %10713  ;;  %9611 = vmatpush3.bf16.msra.mxu0 %v6265_v41  ;;  %10727 = vpow2.f32 %v6204_v15  ;;  %v6261_v24 = vpop.permute.xlu1 %6260 }
0x242a   :  { %9612 = vmatprep.subr.bf16.mxu0 %v6263_v5  ;;  %v6216_v53 = vsel %vm273_vm1, %v13700_v43, 0.0  ;;  %v10716_v55 = vpop.eup %10715 }
0x242b   :  { %6217 = vadd.xlane.f32.xlu0 %v6216_v53  ;;  %v6210_v45 = vsel %vm273_vm1, %v10716_v55, 0.0 }
0x242d   :  { %v10718_v0 = vpop.eup %10717  ;;  %9613 = vmatpush3.bf16.msra.mxu0 %v6263_v5  ;;  %v6259_v17 = vpop.permute.xlu1 %6258 }
0x242e   :  { %9614 = vmatprep.subr.bf16.mxu0 %v6261_v24  ;;  %v6219_v10 = vsel %vm273_vm1, %v10718_v0, 0.0  ;;  %v10720_v27 = vpop.eup %10719 }
0x242f   :  { %6211 = vadd.xlane.f32.xlu0 %v6210_v45  ;;  %6220 = vadd.xlane.f32.xlu1 %v6219_v10  ;;  %v6213_v13 = vsel %vm273_vm1, %v10720_v27, 0.0 }
0x2431   :  { %v13706_v3 = vpop.eup %10721  ;;  %9615 = vmatpush3.bf16.msra.mxu0 %v6261_v24 }
0x2432   :  { %9616 = vmatprep.subr.bf16.mxu0 %v6259_v17  ;;  %v6228_v8 = vsel %vm273_vm1, %v13706_v3, 0.0  ;;  %v10724_v12 = vpop.eup %10723 }
0x2433   :  { %6229 = vadd.xlane.f32.xlu0 %v6228_v8  ;;  %6214 = vadd.xlane.f32.xlu1 %v6213_v13  ;;  %v6231_v36 = vsel %vm273_vm1, %v10724_v12, 0.0 }
0x2435   :  { %v10726_v30 = vpop.eup %10725  ;;  %9617 = vmatpush3.bf16.msra.mxu0 %v6259_v17 }
0x2436   :  { %v6222_v63 = vsel %vm273_vm1, %v10726_v30, 0.0  ;;  %v10728_v34 = vpop.eup %10727 }
0x2437   :  { %6223 = vadd.xlane.f32.xlu1 %v6222_v63  ;;  %6232 = vadd.xlane.f32.xlu0 %v6231_v36  ;;  %v6225_v39 = vsel %vm273_vm1, %v10728_v34, 0.0 }
0x243b   :  { %6226 = vadd.xlane.f32.xlu0 %v6225_v39 }
0x2448   :  { %6359 = vrot.lane.b32.xlu1 %v13185_v31, %s10973_s6 }
0x244c   :  { %6357 = vrot.lane.b32.xlu1 %v13178_v4, %s10973_s6 }
0x2450   :  { %6355 = vrot.lane.b32.xlu1 %v13169_v51, %s10973_s6 }
0x2451   :  { %6361 = vrot.lane.b32.xlu0 %v13193_v1, %s10973_s6 }
0x2454   :  { %6349 = vrot.lane.b32.xlu1 %v13178_v4, %s10974_s25 }
0x2455   :  { %6347 = vrot.lane.b32.xlu0 %v13169_v51, %s10974_s25 }
0x2458   :  { %6353 = vrot.lane.b32.xlu1 %v13193_v1, %s10974_s25 }
0x2459   :  { %6351 = vrot.lane.b32.xlu0 %v13185_v31, %s10974_s25 }
0x24b4   :  { %v6218_v21 = vpop.xlane.xlu0 %6217 }
0x24b8   :  { %v6212_v62 = vpop.xlane.xlu0 %6211  ;;  %v6221_v33 = vpop.xlane.xlu1 %6220 }
0x24b9   :  { %10729 = vrcp.f32 %v6221_v33 }
0x24ba   :  { %10731 = vrcp.f32 %v6212_v62 }
0x24bb   :  { %10733 = vrcp.f32 %v6218_v21 }
0x24bc   :  { %v6230_v40 = vpop.xlane.xlu0 %6229  ;;  %v6215_v5 = vpop.xlane.xlu1 %6214 }
0x24bd   :  { %10735 = vrcp.f32 %v6215_v5 }
0x24c0   :  { %v6233_v15 = vpop.xlane.xlu0 %6232  ;;  %v6224_v7 = vpop.xlane.xlu1 %6223 }
0x24c1   :  { %10737 = vrcp.f32 %v6233_v15 }
0x24c2   :  { %10739 = vrcp.f32 %v6224_v7 }
0x24c3   :  { %10741 = vrcp.f32 %v6230_v40 }
0x24c4   :  { %v6227_v41 = vpop.xlane.xlu0 %6226  ;;  %v6360_v7 = vpop.permute.xlu1 %6359 }
0x24c5   :  { %10743 = vrcp.f32 %v6227_v41 }
0x24c6   :  { %v10730_v53 = vpop.eup %10729 }
0x24c7   :  { %v10732_v45 = vpop.eup %10731  ;;  %v6245_v8 = vmul.f32 %v10730_v53, %v10718_v0 }
0x24c8   :  { %v6362_v24 = vpop.permute.xlu0 %6361  ;;  %v10734_v10 = vpop.eup %10733  ;;  %v6242_v13 = vmul.f32 %v10732_v45, %v10716_v55 }
0x24c9   :  { %9850 = vmatprep.subr.msk.bf16.mxu0 %vm716_vm2, %v6362_v24  ;;  %v6244_v36 = vmul.f32 %v10734_v10, %v13700_v43  ;;  %v6385_v5 = vsel %vm716_vm2, %v6362_v24, 0  ;;  %v6382_v10 = vsel %vm716_vm2, %v6360_v7, 0  ;;  %v6358_v24 = vpop.permute.xlu1 %6357 }
0x24ca   :  { %v10736_v17 = vpop.eup %10735 }
0x24cb   :  { %v6243_v63 = vmul.f32 %v10736_v17, %v10720_v27  ;;  %v6251_v62 = vpack.c.bf16 %v6245_v8, %v6244_v36 }
0x24cc   :  { %v6348_v45 = vpop.permute.xlu0 %6347 }
0x24cd   :  { %v6250_v39 = vpack.c.bf16 %v6243_v63, %v6242_v13 }
0x24ce   :  { %v10738_v21 = vpop.eup %10737 }
0x24cf   :  { %v10740_v33 = vpop.eup %10739  ;;  %9618 = vmatprep.mubr.msk.bf16.mxu0 %vm273_vm1, %v6250_v39  ;;  %v6249_v27 = vmul.f32 %v10738_v21, %v10724_v12  ;;  %v6356_v12 = vpop.permute.xlu1 %6355 }
0x24d0   :  { %v10742_v40 = vpop.eup %10741  ;;  %9619 = vmatmul.mubr.msk.bf16.vlgmr.msra.gmra.mxu0 %vm273_vm1, %v6251_v62  ;;  %v6246_v55 = vmul.f32 %v10740_v33, %v10726_v30  ;;  %v6379_v30 = vsel %vm716_vm2, %v6358_v24, 0  ;;  %v6352_v17 = vpop.permute.xlu0 %6351 }
0x24d1   :  { %9627 = vmatpush3.bf16.xpose.msra.mxu0 %v6385_v5  ;;  %v6248_v41 = vmul.f32 %v10742_v40, %v13706_v3  ;;  %v6376_v3 = vsel %vm716_vm2, %v6356_v12, 0 }
0x24d2   :  { %v10744_v15 = vpop.eup %10743  ;;  %9851 = vmatprep.subr.msk.bf16.mxu0 %vm716_vm2, %v6360_v7 }
0x24d3   :  { %v6247_v0 = vmul.f32 %v10744_v15, %v10728_v34  ;;  %v6253_v53 = vpack.c.bf16 %v6249_v27, %v6248_v41  ;;  %v6350_v34 = vpop.permute.xlu1 %6349 }
0x24d5   :  { %v6252_v43 = vpack.c.bf16 %v6247_v0, %v6246_v55 }
0x24d7   :  { %9622 = vmatprep.mubr.msk.bf16.mxu0 %vm273_vm1, %v6252_v43  ;;  %v6354_v8 = vpop.permute.xlu1 %6353 }
0x24d8   :  { %9623 = vmatmul.mubr.msk.bf16.gmra.mxu0 %vm273_vm1, %v6253_v53 }
0x24d9   :  { %9629 = vmatpush3.bf16.xpose.msra.mxu0 %v6382_v10  ;;  %9634 = vmatprep.mubr.msk.bf16.mxu0 %vm716_vm2, %v6348_v45 }
0x24da   :  { %9852 = vmatprep.subr.msk.bf16.mxu0 %vm716_vm2, %v6358_v24 }
0x24e1   :  { %9631 = vmatpush3.bf16.xpose.msra.mxu0 %v6379_v30 }
0x24e2   :  { %9853 = vmatprep.subr.msk.bf16.mxu0 %vm716_vm2, %v6356_v12 }
0x24e9   :  { %9633 = vmatpush3.bf16.xpose.msra.mxu0 %v6376_v3 }
0x24f0   :  { %9635 = vmatmul.mubr.msk.bf16.vlgmr.msra.gmra.mxu0 %vm716_vm2, %v6350_v34 }
0x24f1   :  { %9638 = vmatprep.mubr.msk.bf16.mxu0 %vm716_vm2, %v6352_v17 }
0x24f8   :  { %9639 = vmatmul.mubr.msk.bf16.gmra.mxu0 %vm716_vm2, %v6354_v8 }
0x2590   :  { %v13748_v13 = vpop.f32.mrf.mxu0 }
0x2592   :  { %v13750_v63 = vpop.f32.mrf.mxu0 }
0x2594   :  { %v13752_v36 = vpop.f32.mrf.mxu0 }
0x2596   :  { %v13756_v21 = vpop.f32.mrf.mxu0 }
0x2598   :  { %v13760_v33 = vpop.f32.mrf.mxu0 }
0x2599   :  { %14993 = vst [vmem:[#allocation17_spill] sm:$0xff] %v13760_v33 }
0x259a   :  { %v13762_v40 = vpop.f32.mrf.mxu0 }
0x259c   :  { %v13764_v5 = vpop.f32.mrf.mxu0 }
0x259d   :  { %14994 = vst [vmem:[#allocation16_spill] sm:$0xff] %v13764_v5 }
0x259e   :  { %v13768_v7 = vpop.f32.mrf.mxu0 }
0x25b0   :  { %v9636_v0 = vpop.f32.mrf.mxu0 }
0x25b1   :  { %v6458_v45 = vsel %vm273_vm1, %v9636_v0, -inf }
0x25b2   :  { %v6421_v27 = vpop.f32.mrf.mxu0 }
0x25b3   :  { %v6452_v43 = vsel %vm273_vm1, %v6421_v27, -inf }
0x25b4   :  { %6453 = vmax.xlane.f32.xlu0 %v6452_v43  ;;  %v9637_v41 = vpop.f32.mrf.mxu0 }
0x25b5   :  { %v6461_v12 = vsel %vm273_vm1, %v9637_v41, -inf }
0x25b6   :  { %v6424_v53 = vpop.f32.mrf.mxu0 }
0x25b7   :  { %v6455_v10 = vsel %vm273_vm1, %v6424_v53, -inf }
0x25b8   :  { %6459 = vmax.xlane.f32.xlu0 %v6458_v45  ;;  %6456 = vmax.xlane.f32.xlu1 %v6455_v10  ;;  %v9640_v24 = vpop.f32.mrf.mxu0 }
0x25b9   :  { %v6470_v8 = vsel %vm273_vm1, %v9640_v24, -inf }
0x25ba   :  { %v6437_v30 = vpop.f32.mrf.mxu0 }
0x25bb   :  { %v6464_v15 = vsel %vm273_vm1, %v6437_v30, -inf }
0x25bc   :  { %6462 = vmax.xlane.f32.xlu0 %v6461_v12  ;;  %v9641_v3 = vpop.f32.mrf.mxu0 }
0x25bd   :  { %v6473_v34 = vsel %vm273_vm1, %v9641_v3, -inf }
0x25be   :  { %6474 = vmax.xlane.f32.xlu1 %v6473_v34  ;;  %v6440_v17 = vpop.f32.mrf.mxu0 }
0x25bf   :  { %v6467_v43 = vsel %vm273_vm1, %v6440_v17, -inf }
0x25c0   :  { %6471 = vmax.xlane.f32.xlu0 %v6470_v8 }
0x25c2   :  { %6468 = vmax.xlane.f32.xlu1 %v6467_v43 }
0x25c4   :  { %6465 = vmax.xlane.f32.xlu0 %v6464_v15 }
0x25d3   :  { %6548 = vrot.lane.b32.xlu1 %v13188_v32, %s10974_s25 }
0x25d7   :  { %6546 = vrot.lane.b32.xlu1 %v13500_v26, %s10974_s25 }
0x25da   :  { %6550 = vrot.lane.b32.xlu0 %v13199_v9, %s10974_s25 }
0x25db   :  { %6544 = vrot.lane.b32.xlu1 %v13172_v20, %s10974_s25 }
0x263d   :  { %v6454_v45 = vpop.xlane.xlu0 %6453 }
0x263e   :  { %v6476_v10 = vsub.f32 %v6421_v27, %v6454_v45 }
0x2640   :  { %v6484_v43 = vmul.f32 1.442695, %v6476_v10 }
0x2641   :  { %v6460_v12 = vpop.xlane.xlu0 %6459  ;;  %v6457_v34 = vpop.xlane.xlu1 %6456 }
0x2642   :  { %v6478_v8 = vsub.f32 %v9636_v0, %v6460_v12  ;;  %v6477_v15 = vsub.f32 %v6424_v53, %v6457_v34 }
0x2644   :  { %v6488_v39 = vmul.f32 1.442695, %v6478_v8  ;;  %v6486_v60 = vmul.f32 1.442695, %v6477_v15 }
0x2645   :  { %v6463_v55 = vpop.xlane.xlu0 %6462 }
0x2646   :  { %10745 = vpow2.f32 %v6488_v39  ;;  %v6479_v62 = vsub.f32 %v9637_v41, %v6463_v55 }
0x2647   :  { %v6475_v28 = vpop.xlane.xlu1 %6474  ;;  %10747 = vpow2.f32 %v6484_v43 }
0x2648   :  { %v6490_v29 = vmul.f32 1.442695, %v6479_v62  ;;  %v6483_v23 = vsub.f32 %v9641_v3, %v6475_v28 }
0x2649   :  { %v6472_v59 = vpop.xlane.xlu0 %6471 }
0x264a   :  { %10749 = vpow2.f32 %v6490_v29  ;;  %v6482_v44 = vsub.f32 %v9640_v24, %v6472_v59  ;;  %v6498_v27 = vmul.f32 1.442695, %v6483_v23 }
0x264b   :  { %v6469_v33 = vpop.xlane.xlu1 %6468  ;;  %10751 = vpow2.f32 %v6486_v60 }
0x264c   :  { %v6496_v45 = vmul.f32 1.442695, %v6482_v44  ;;  %v6481_v5 = vsub.f32 %v6440_v17, %v6469_v33 }
0x264d   :  { %v6466_v0 = vpop.xlane.xlu0 %6465 }
0x264e   :  { %10753 = vpow2.f32 %v6496_v45  ;;  %v6480_v10 = vsub.f32 %v6437_v30, %v6466_v0  ;;  %v6494_v39 = vmul.f32 1.442695, %v6481_v5 }
0x264f   :  { %v6549_v53 = vpop.permute.xlu1 %6548  ;;  %10755 = vpow2.f32 %v6498_v27 }
0x2650   :  { %v6492_v55 = vmul.f32 1.442695, %v6480_v10 }
0x2651   :  { %v6551_v41 = vpop.permute.xlu0 %6550 }
0x2652   :  { %10757 = vpow2.f32 %v6492_v55  ;;  %9642 = vmatprep.subr.bf16.mxu1 %v6551_v41 }
0x2653   :  { %v13788_v62 = vpop.eup %10745  ;;  %9643 = vmatpush3.bf16.msra.mxu1 %v6551_v41  ;;  %10759 = vpow2.f32 %v6494_v39  ;;  %v6547_v23 = vpop.permute.xlu1 %6546 }
0x2654   :  { %9644 = vmatprep.subr.bf16.mxu1 %v6549_v53  ;;  %v6506_v29 = vsel %vm273_vm1, %v13788_v62, 0.0  ;;  %v10748_v59 = vpop.eup %10747 }
0x2655   :  { %6507 = vadd.xlane.f32.xlu0 %v6506_v29  ;;  %v6500_v28 = vsel %vm273_vm1, %v10748_v59, 0.0 }
0x2657   :  { %v10750_v44 = vpop.eup %10749  ;;  %9645 = vmatpush3.bf16.msra.mxu1 %v6549_v53  ;;  %v6545_v24 = vpop.permute.xlu1 %6544 }
0x2658   :  { %9646 = vmatprep.subr.bf16.mxu1 %v6547_v23  ;;  %v6509_v60 = vsel %vm273_vm1, %v10750_v44, 0.0  ;;  %v10752_v33 = vpop.eup %10751 }
0x2659   :  { %6501 = vadd.xlane.f32.xlu0 %v6500_v28  ;;  %6510 = vadd.xlane.f32.xlu1 %v6509_v60  ;;  %v6503_v3 = vsel %vm273_vm1, %v10752_v33, 0.0 }
0x265b   :  { %v13794_v5 = vpop.eup %10753  ;;  %9647 = vmatpush3.bf16.msra.mxu1 %v6547_v23 }
0x265c   :  { %9648 = vmatprep.subr.bf16.mxu1 %v6545_v24  ;;  %v6518_v30 = vsel %vm273_vm1, %v13794_v5, 0.0  ;;  %v10756_v17 = vpop.eup %10755 }
0x265d   :  { %6519 = vadd.xlane.f32.xlu0 %v6518_v30  ;;  %6504 = vadd.xlane.f32.xlu1 %v6503_v3  ;;  %v6521_v8 = vsel %vm273_vm1, %v10756_v17, 0.0 }
0x265f   :  { %v10758_v12 = vpop.eup %10757  ;;  %9649 = vmatpush3.bf16.msra.mxu1 %v6545_v24 }
0x2660   :  { %v6512_v34 = vsel %vm273_vm1, %v10758_v12, 0.0  ;;  %v10760_v43 = vpop.eup %10759 }
0x2661   :  { %6513 = vadd.xlane.f32.xlu1 %v6512_v34  ;;  %6522 = vadd.xlane.f32.xlu0 %v6521_v8  ;;  %v6515_v15 = vsel %vm273_vm1, %v10760_v43, 0.0 }
0x2665   :  { %6516 = vadd.xlane.f32.xlu0 %v6515_v15 }
0x2672   :  { %6645 = vrot.lane.b32.xlu1 %v13185_v31, %s10975_s26 }
0x2676   :  { %6643 = vrot.lane.b32.xlu1 %v13178_v4, %s10975_s26 }
0x267a   :  { %6641 = vrot.lane.b32.xlu1 %v13169_v51, %s10975_s26 }
0x267b   :  { %6647 = vrot.lane.b32.xlu0 %v13193_v1, %s10975_s26 }
0x267e   :  { %6635 = vrot.lane.b32.xlu1 %v13178_v4, %s10976_s3 }
0x267f   :  { %6633 = vrot.lane.b32.xlu0 %v13169_v51, %s10976_s3 }
0x2682   :  { %6639 = vrot.lane.b32.xlu1 %v13193_v1, %s10976_s3 }
0x2683   :  { %6637 = vrot.lane.b32.xlu0 %v13185_v31, %s10976_s3 }
0x26de   :  { %v6508_v27 = vpop.xlane.xlu0 %6507 }
0x26e2   :  { %v6502_v45 = vpop.xlane.xlu0 %6501  ;;  %v6511_v0 = vpop.xlane.xlu1 %6510 }
0x26e3   :  { %10761 = vrcp.f32 %v6511_v0 }
0x26e4   :  { %10763 = vrcp.f32 %v6502_v45 }
0x26e5   :  { %10765 = vrcp.f32 %v6508_v27 }
0x26e6   :  { %v6520_v10 = vpop.xlane.xlu0 %6519  ;;  %v6505_v53 = vpop.xlane.xlu1 %6504 }
0x26e7   :  { %10767 = vrcp.f32 %v6505_v53 }
0x26ea   :  { %v6523_v39 = vpop.xlane.xlu0 %6522  ;;  %v6514_v4 = vpop.xlane.xlu1 %6513 }
0x26eb   :  { %10769 = vrcp.f32 %v6523_v39 }
0x26ec   :  { %10771 = vrcp.f32 %v6514_v4 }
0x26ed   :  { %10773 = vrcp.f32 %v6520_v10 }
0x26ee   :  { %v6517_v51 = vpop.xlane.xlu0 %6516  ;;  %v6646_v0 = vpop.permute.xlu1 %6645 }
0x26ef   :  { %10775 = vrcp.f32 %v6517_v51  ;;  %v6668_v4 = vsel %vm716_vm2, %v6646_v0, 0 }
0x26f0   :  { %v10762_v1 = vpop.eup %10761 }
0x26f1   :  { %v10764_v41 = vpop.eup %10763  ;;  %v6535_v23 = vmul.f32 %v10762_v1, %v10750_v44 }
0x26f2   :  { %v6648_v55 = vpop.permute.xlu0 %6647  ;;  %v10766_v31 = vpop.eup %10765  ;;  %v6532_v28 = vmul.f32 %v10764_v41, %v10748_v59 }
0x26f3   :  { %9854 = vmatprep.subr.msk.bf16.mxu1 %vm716_vm2, %v6648_v55  ;;  %v6534_v24 = vmul.f32 %v10766_v31, %v13788_v62  ;;  %v6671_v27 = vsel %vm716_vm2, %v6648_v55, 0  ;;  %v6644_v51 = vpop.permute.xlu1 %6643 }
0x26f4   :  { %v10768_v29 = vpop.eup %10767 }
0x26f5   :  { %v6533_v60 = vmul.f32 %v10768_v29, %v10752_v33  ;;  %v6541_v34 = vpack.c.bf16 %v6535_v23, %v6534_v24 }
0x26f6   :  { %v6634_v39 = vpop.permute.xlu0 %6633 }
0x26f7   :  { %v6540_v30 = vpack.c.bf16 %v6533_v60, %v6532_v28 }
0x26f8   :  { %v10770_v3 = vpop.eup %10769 }
0x26f9   :  { %v10772_v8 = vpop.eup %10771  ;;  %9650 = vmatprep.mubr.msk.bf16.mxu1 %vm273_vm1, %v6540_v30  ;;  %v6539_v33 = vmul.f32 %v10770_v3, %v10756_v17  ;;  %v6642_v17 = vpop.permute.xlu1 %6641 }
0x26fa   :  { %v10774_v15 = vpop.eup %10773  ;;  %9651 = vmatmul.mubr.msk.bf16.vlgmr.msra.gmra.mxu1 %vm273_vm1, %v6541_v34  ;;  %v6536_v59 = vmul.f32 %v10772_v8, %v10758_v12  ;;  %v6665_v12 = vsel %vm716_vm2, %v6644_v51, 0  ;;  %v6638_v1 = vpop.permute.xlu0 %6637 }
0x26fb   :  { %9659 = vmatpush3.bf16.xpose.msra.mxu1 %v6671_v27  ;;  %v6538_v10 = vmul.f32 %v10774_v15, %v13794_v5  ;;  %v6662_v5 = vsel %vm716_vm2, %v6642_v17, 0 }
0x26fc   :  { %v10776_v45 = vpop.eup %10775  ;;  %9855 = vmatprep.subr.msk.bf16.mxu1 %vm716_vm2, %v6646_v0 }
0x26fd   :  { %v6537_v44 = vmul.f32 %v10776_v45, %v10760_v43  ;;  %v6543_v53 = vpack.c.bf16 %v6539_v33, %v6538_v10  ;;  %v6636_v43 = vpop.permute.xlu1 %6635 }
0x26ff   :  { %v6542_v62 = vpack.c.bf16 %v6537_v44, %v6536_v59 }
0x2701   :  { %9654 = vmatprep.mubr.msk.bf16.mxu1 %vm273_vm1, %v6542_v62  ;;  %v6640_v55 = vpop.permute.xlu1 %6639 }
0x2702   :  { %9655 = vmatmul.mubr.msk.bf16.gmra.mxu1 %vm273_vm1, %v6543_v53 }
0x2703   :  { %9661 = vmatpush3.bf16.xpose.msra.mxu1 %v6668_v4  ;;  %9666 = vmatprep.mubr.msk.bf16.mxu1 %vm716_vm2, %v6634_v39 }
0x2704   :  { %9856 = vmatprep.subr.msk.bf16.mxu1 %vm716_vm2, %v6644_v51 }
0x270b   :  { %9663 = vmatpush3.bf16.xpose.msra.mxu1 %v6665_v12 }
0x270c   :  { %9857 = vmatprep.subr.msk.bf16.mxu1 %vm716_vm2, %v6642_v17 }
0x2713   :  { %9665 = vmatpush3.bf16.xpose.msra.mxu1 %v6662_v5 }
0x271a   :  { %9667 = vmatmul.mubr.msk.bf16.vlgmr.msra.gmra.mxu1 %vm716_vm2, %v6636_v43 }
0x271b   :  { %9670 = vmatprep.mubr.msk.bf16.mxu1 %vm716_vm2, %v6638_v1 }
0x2722   :  { %9671 = vmatmul.mubr.msk.bf16.gmra.mxu1 %vm716_vm2, %v6640_v55 }
0x27ba   :  { %v13836_v41 = vpop.f32.mrf.mxu1 }
0x27bc   :  { %v13838_v31 = vpop.f32.mrf.mxu1 }
0x27be   :  { %v13840_v29 = vpop.f32.mrf.mxu1 }
0x27c0   :  { %v13844_v28 = vpop.f32.mrf.mxu1 }
0x27c2   :  { %v13848_v24 = vpop.f32.mrf.mxu1 }
0x27c3   :  { %14995 = vst [vmem:[#allocation18_spill] sm:$0xff] %v13848_v24 }
0x27c4   :  { %v13850_v30 = vpop.f32.mrf.mxu1 }
0x27c5   :  { %14996 = vst [vmem:[#allocation37_spill] sm:$0xff] %v13850_v30 }
0x27c6   :  { %v13852_v3 = vpop.f32.mrf.mxu1 }
0x27c8   :  { %v13856_v8 = vpop.f32.mrf.mxu1 }
0x27c9   :  { %14997 = vst [vmem:[#allocation38_spill] sm:$0xff] %v13856_v8 }
0x27da   :  { %v9668_v27 = vpop.f32.mrf.mxu1 }
0x27db   :  { %v6744_v33 = vsel %vm273_vm1, %v9668_v27, -inf }
0x27dc   :  { %v6707_v45 = vpop.f32.mrf.mxu1 }
0x27dd   :  { %v6738_v0 = vsel %vm273_vm1, %v6707_v45, -inf }
0x27de   :  { %6739 = vmax.xlane.f32.xlu0 %v6738_v0  ;;  %v9669_v59 = vpop.f32.mrf.mxu1 }
0x27df   :  { %v6747_v39 = vsel %vm273_vm1, %v9669_v59, -inf }
0x27e0   :  { %v6710_v44 = vpop.f32.mrf.mxu1 }
0x27e1   :  { %v6741_v62 = vsel %vm273_vm1, %v6710_v44, -inf }
0x27e2   :  { %6745 = vmax.xlane.f32.xlu0 %v6744_v33  ;;  %6742 = vmax.xlane.f32.xlu1 %v6741_v62  ;;  %v9672_v10 = vpop.f32.mrf.mxu1 }
0x27e3   :  { %v6756_v5 = vsel %vm273_vm1, %v9672_v10, -inf }
0x27e4   :  { %v6723_v53 = vpop.f32.mrf.mxu1 }
0x27e5   :  { %v6750_v12 = vsel %vm273_vm1, %v6723_v53, -inf }
0x27e6   :  { %6748 = vmax.xlane.f32.xlu0 %v6747_v39  ;;  %v9673_v4 = vpop.f32.mrf.mxu1 }
0x27e7   :  { %v6759_v43 = vsel %vm273_vm1, %v9673_v4, -inf }
0x27e8   :  { %v6726_v51 = vpop.f32.mrf.mxu1 }
0x27e9   :  { %v6753_v17 = vsel %vm273_vm1, %v6726_v51, -inf }
0x27ea   :  { %6751 = vmax.xlane.f32.xlu0 %v6750_v12  ;;  %6754 = vmax.xlane.f32.xlu1 %v6753_v17 }
0x27ee   :  { %6757 = vmax.xlane.f32.xlu0 %v6756_v5  ;;  %6760 = vmax.xlane.f32.xlu1 %v6759_v43 }
0x2867   :  { %v6740_v1 = vpop.xlane.xlu0 %6739 }
0x2868   :  { %v6762_v55 = vsub.f32 %v6707_v45, %v6740_v1 }
0x286a   :  { %v6770_v39 = vmul.f32 1.442695, %v6762_v55 }
0x286b   :  { %v6746_v0 = vpop.xlane.xlu0 %6745  ;;  %v6743_v33 = vpop.xlane.xlu1 %6742 }
0x286c   :  { %v6764_v62 = vsub.f32 %v9668_v27, %v6746_v0  ;;  %v6763_v34 = vsub.f32 %v6710_v44, %v6743_v33  ;;  %v14998_v33 = vpack.i.bf16 %v13414_v54, %v13408_v57  ;;  %v15002_v57 = vpack.i.bf16 %v13528_v38, %v13522_v37 }
0x286d   :  { %v15005_v37 = vpack.i.bf16 %v13844_v28, %v13838_v31  ;;  %v15006_v38 = vpack.i.bf16 %v13768_v7, %v13762_v40 }
0x286e   :  { %v6774_v15 = vmul.f32 1.442695, %v6764_v62  ;;  %v6772_v12 = vmul.f32 1.442695, %v6763_v34 }
0x286f   :  { %v6749_v23 = vpop.xlane.xlu0 %6748 }
0x2870   :  { %10777 = vpow2.f32 %v6774_v15  ;;  %v6765_v60 = vsub.f32 %v9669_v59, %v6749_v23 }
0x2871   :  { %10779 = vpow2.f32 %v6770_v39 }
0x2872   :  { %v6776_v17 = vmul.f32 1.442695, %v6765_v60 }
0x2873   :  { %v6752_v30 = vpop.xlane.xlu0 %6751 }
0x2874   :  { %10781 = vpow2.f32 %v6776_v17  ;;  %v6766_v8 = vsub.f32 %v6723_v53, %v6752_v30  ;;  %v6755_v53 = vpop.xlane.xlu1 %6754 }
0x2875   :  { %10783 = vpow2.f32 %v6772_v12  ;;  %v6767_v62 = vsub.f32 %v6726_v51, %v6755_v53  ;;  %v10150_v53 = vld [vmem:[%s14806_s14 + $0x10] sm:$0xff]  }
0x2876   :  { %v6778_v24 = vmul.f32 1.442695, %v6766_v8 }
0x2877   :  { %v6758_v5 = vpop.xlane.xlu0 %6757  ;;  %v6780_v12 = vmul.f32 1.442695, %v6767_v62 }
0x2878   :  { %v6768_v43 = vsub.f32 %v9672_v10, %v6758_v5  ;;  %v6761_v55 = vpop.xlane.xlu1 %6760 }
0x2879   :  { %v6769_v0 = vsub.f32 %v9673_v4, %v6761_v55 }
0x287a   :  { %v6782_v45 = vmul.f32 1.442695, %v6768_v43 }
0x287b   :  { %v6784_v39 = vmul.f32 1.442695, %v6769_v0 }
0x287c   :  { %10785 = vpow2.f32 %v6782_v45 }
0x287d   :  { %v13868_v1 = vpop.eup %10777  ;;  %10787 = vpow2.f32 %v6778_v24 }
0x287e   :  { %v6792_v27 = vsel %vm273_vm1, %v13868_v1, 0.0  ;;  %v13872_v15 = vpop.eup %10779  ;;  %10789 = vpow2.f32 %v6784_v39  ;;  %v15018_v39 = vld [vmem:[#allocation6_spill] sm:$0xff] }
0x287f   :  { %6793 = vadd.xlane.f32.xlu0 %v6792_v27  ;;  %v6786_v60 = vsel %vm273_vm1, %v13872_v15, 0.0  ;;  %10791 = vpow2.f32 %v6780_v12  ;;  %v15019_v12 = vld [vmem:[#allocation25_spill] sm:$0xff] }
0x2881   :  { %v13874_v23 = vpop.eup %10781 }
0x2882   :  { %v6795_v30 = vsel %vm273_vm1, %v13874_v23, 0.0  ;;  %v13880_v34 = vpop.eup %10783 }
0x2883   :  { %6787 = vadd.xlane.f32.xlu0 %v6786_v60  ;;  %6796 = vadd.xlane.f32.xlu1 %v6795_v30  ;;  %v6789_v24 = vsel %vm273_vm1, %v13880_v34, 0.0 }
0x2887   :  { %6790 = vadd.xlane.f32.xlu1 %v6789_v24 }
0x2889   :  { %v13884_v8 = vpop.eup %10785 }
0x288a   :  { %v6804_v59 = vsel %vm273_vm1, %v13884_v8, 0.0  ;;  %v13888_v44 = vpop.eup %10787 }
0x288b   :  { %6805 = vadd.xlane.f32.xlu0 %v6804_v59  ;;  %v6798_v10 = vsel %vm273_vm1, %v13888_v44, 0.0  ;;  %v13918_v54 = vpop.eup %10789 }
0x288f   :  { %6799 = vadd.xlane.f32.xlu0 %v6798_v10 }
0x2898   :  { %6834 = vrot.lane.b32.xlu1 %v13188_v32, %s10976_s3  ;;  %v14999_v32 = vpack.i.bf16 %v13516_v61, %v13510_v56  ;;  %v15003_v56 = vpack.i.bf16 %v13608_v16, %v13602_v50  ;;  %v6807_v61 = vsel %vm273_vm1, %v13918_v54, 0.0  ;;  %v15008_v50 = vpack.i.bf16 %v13512_v35, %v13508_v6  ;;  %v15016_v6 = vld [vmem:[#allocation17_spill] sm:$0xff] }
0x2899   :  { %v15009_v16 = vpack.i.bf16 %v13592_v58, %v13588_v42 }
0x289c   :  { %6832 = vrot.lane.b32.xlu1 %v13500_v26, %s10976_s3  ;;  %v15000_v26 = vpack.i.bf16 %v13596_v11, %v13590_v14  ;;  %v13926_v14 = vpop.eup %10791  ;;  %v15007_v11 = vpack.i.bf16 %v13410_v48, %v13406_v2  ;;  %v15012_v2 = vpack.i.bf16 %v13604_v47, %v13600_v19  ;;  %v15013_v48 = vpack.i.bf16 %v13752_v36, %v13748_v13 }
0x28a5   :  { %6836 = vrot.lane.b32.xlu0 %v13199_v9, %s10976_s3  ;;  %v15001_v9 = vpack.i.bf16 %v13426_v18, %v13420_v46  ;;  %v15004_v46 = vpack.i.bf16 %v13756_v21, %v13750_v63  ;;  %v6801_v18 = vsel %vm273_vm1, %v13926_v14, 0.0  ;;  %v15010_v63 = vpack.i.bf16 %v13422_v52, %v13418_v49  ;;  %v15015_v52 = vld [vmem:[#allocation16_spill] sm:$0xff] }
0x28a6   :  { %v15014_v49 = vpack.i.bf16 %v13840_v29, %v13836_v41  ;;  %v15017_v35 = vpack.i.bf16 %v15015_v52, %v15016_v6 }
0x28a9   :  { %9987 = vrot.lane.b32.xlu0 %v14998_v33, %s10975_s26 }
0x28ad   :  { %9997 = vrot.lane.b32.xlu0 %v14999_v32, %s10973_s6 }
0x28b1   :  { %10007 = vrot.lane.b32.xlu0 %v15000_v26, %s10971_s5 }
0x28b5   :  { %10017 = vrot.lane.b32.xlu0 %v15001_v9, %s10975_s26 }
0x28b9   :  { %10027 = vrot.lane.b32.xlu0 %v15002_v57, %s10973_s6  ;;  %v10151_v57 = vld [vmem:[%s14806_s14 + $0x8] sm:$0xff]  }
0x28bd   :  { %10037 = vrot.lane.b32.xlu0 %v15003_v56, %s10971_s5 }
0x28c0   :  { %6808 = vadd.xlane.f32.xlu1 %v6807_v61 }
0x28c1   :  { %10047 = vrot.lane.b32.xlu0 %v15004_v46, %s10975_s26 }
0x28c4   :  { %6802 = vadd.xlane.f32.xlu1 %v6801_v18 }
0x28c5   :  { %10057 = vrot.lane.b32.xlu0 %v15005_v37, %s10973_s6 }
0x28c9   :  { %10067 = vrot.lane.b32.xlu0 %v15006_v38, %s10975_s26 }
0x28d5   :  { %6830 = vrot.lane.b32.xlu1 %v13172_v20, %s10976_s3  ;;  %v15011_v20 = vpack.i.bf16 %v13524_v25, %v13520_v22 }
0x28d9   :  { %9992 = vrot.lane.b32.xlu1 %v15007_v11, %s10975_s26 }
0x28dd   :  { %10002 = vrot.lane.b32.xlu1 %v15008_v50, %s10973_s6 }
0x28e1   :  { %10012 = vrot.lane.b32.xlu1 %v15009_v16, %s10971_s5 }
0x28e5   :  { %10022 = vrot.lane.b32.xlu1 %v15010_v63, %s10975_s26 }
0x28e9   :  { %10032 = vrot.lane.b32.xlu1 %v15011_v20, %s10973_s6 }
0x28ed   :  { %10042 = vrot.lane.b32.xlu1 %v15012_v2, %s10971_s5  ;;  %v10152_v2 = vld [vmem:[%s14806_s14] sm:$0xff]  }
0x28f1   :  { %10052 = vrot.lane.b32.xlu1 %v15013_v48, %s10975_s26 }
0x28f5   :  { %10062 = vrot.lane.b32.xlu1 %v15014_v49, %s10973_s6 }
0x28f9   :  { %10072 = vrot.lane.b32.xlu1 %v15017_v35, %s10975_s26 }
0x2908   :  { %v6794_v22 = vpop.xlane.xlu0 %6793 }
0x290c   :  { %v6788_v25 = vpop.xlane.xlu0 %6787  ;;  %v6797_v42 = vpop.xlane.xlu1 %6796 }
0x290d   :  { %10793 = vrcp.f32 %v6788_v25 }
0x2910   :  { %v6791_v58 = vpop.xlane.xlu1 %6790 }
0x2911   :  { %10795 = vrcp.f32 %v6791_v58 }
0x2912   :  { %10797 = vrcp.f32 %v6797_v42 }
0x2913   :  { %10799 = vrcp.f32 %v6794_v22 }
0x2914   :  { %v6806_v19 = vpop.xlane.xlu0 %6805  ;;  %v6835_v36 = vpop.permute.xlu1 %6834 }
0x2918   :  { %v6800_v47 = vpop.xlane.xlu0 %6799  ;;  %v6833_v29 = vpop.permute.xlu1 %6832 }
0x291a   :  { %v10794_v13 = vpop.eup %10793 }
0x291b   :  { %v6818_v7 = vmul.f32 %v10794_v13, %v13872_v15  ;;  %v10149_v15 = vld [vmem:[%s14806_s14 + $0x18] sm:$0xff]  }
0x291c   :  { %v6837_v21 = vpop.permute.xlu0 %6836 }
0x291d   :  { %9674 = vmatprep.subr.bf16.mxu0 %v6837_v21 }
0x291e   :  { %v10796_v40 = vpop.eup %10795  ;;  %9675 = vmatpush3.bf16.msra.mxu0 %v6837_v21 }
0x291f   :  { %9676 = vmatprep.subr.bf16.mxu0 %v6835_v36  ;;  %v6819_v41 = vmul.f32 %v10796_v40, %v13880_v34  ;;  %v10798_v5 = vpop.eup %10797 }
0x2920   :  { %v9988_v28 = vpop.permute.xlu0 %9987  ;;  %v10800_v45 = vpop.eup %10799  ;;  %v6821_v27 = vmul.f32 %v10798_v5, %v13874_v23 }
0x2921   :  { %v6826_v31 = vpack.c.bf16 %v6819_v41, %v6818_v7  ;;  %v6820_v30 = vmul.f32 %v10800_v45, %v13868_v1  ;;  %v9990_v59 = vunpack.i.h.bf16 %v9988_v28  ;;  %v9989_v10 = vunpack.i.l.bf16 %v9988_v28  ;;  %v15020_v7 = vld [vmem:[#allocation9_spill] sm:$0xff] }
0x2922   :  { %9677 = vmatpush3.bf16.msra.mxu0 %v6835_v36  ;;  %v15022_v28 = vld [vmem:[#allocation29_spill] sm:$0xff] }
0x2923   :  { %9678 = vmatprep.subr.bf16.mxu0 %v6833_v29  ;;  %9682 = vmatprep.mubr.msk.bf16.mxu0 %vm273_vm1, %v6826_v31  ;;  %v6827_v24 = vpack.c.bf16 %v6821_v27, %v6820_v30  ;;  %v5764_v32 = vsel %vm716_vm2, %v15018_v39, %v9990_v59  ;;  %v5763_v26 = vsel %vm716_vm2, %v15019_v12, %v9989_v10  ;;  %v15021_v31 = vld [vmem:[#allocation27_spill] sm:$0xff]  ;;  %v15025_v39 = vld [vmem:[#allocation8_spill] sm:$0xff] }
0x2924   :  { %v9998_v4 = vpop.permute.xlu0 %9997 }
0x2925   :  { %v10000_v23 = vunpack.i.h.bf16 %v9998_v4  ;;  %v9999_v55 = vunpack.i.l.bf16 %v9998_v4 }
0x2926   :  { %9679 = vmatpush3.bf16.msra.mxu0 %v6833_v29 }
0x2927   :  { %v5771_v61 = vsel %vm1941_vm3, %v5763_v26, %v9999_v55  ;;  %v5772_v46 = vsel %vm1941_vm3, %v5764_v32, %v10000_v23 }
0x2928   :  { %v10008_v17 = vpop.permute.xlu0 %10007 }
0x2929   :  { %v10010_v33 = vunpack.i.h.bf16 %v10008_v17  ;;  %v10009_v62 = vunpack.i.l.bf16 %v10008_v17 }
0x292b   :  { %v5779_v38 = vsel %vm127_vm0, %v5771_v61, %v10009_v62  ;;  %v5780_v11 = vsel %vm127_vm0, %v5772_v46, %v10010_v33  ;;  %v15024_v62 = vld [vmem:[#allocation31_spill] sm:$0xff] }
0x292c   :  { %v13988_v34 = vpop.permute.xlu0 %10017  ;;  %v7039_v48 = vpack.c.bf16 %v5780_v11, %v5779_v38 }
0x292d   :  { %v10020_v6 = vunpack.i.h.bf16 %v13988_v34 }
0x292f   :  { %v5768_v4 = vsel %vm716_vm2, %v15022_v28, %v10020_v6 }
0x2930   :  { %v10028_v9 = vpop.permute.xlu0 %10027 }
0x2934   :  { %v10038_v35 = vpop.permute.xlu0 %10037 }
0x2935   :  { %v10039_v21 = vunpack.i.l.bf16 %v10038_v35 }
0x2949   :  { %v6809_v51 = vpop.xlane.xlu1 %6808 }
0x294a   :  { %10801 = vrcp.f32 %v6809_v51  ;;  %v15023_v51 = vld [vmem:[#allocation7_spill] sm:$0xff] }
0x294b   :  { %10803 = vrcp.f32 %v6800_v47  ;;  %v10029_v47 = vunpack.i.l.bf16 %v10028_v9 }
0x294c   :  { %10805 = vrcp.f32 %v6806_v19  ;;  %v10030_v19 = vunpack.i.h.bf16 %v10028_v9 }
0x294d   :  { %v6803_v43 = vpop.xlane.xlu1 %6802 }
0x294e   :  { %10807 = vrcp.f32 %v6803_v43  ;;  %v5776_v27 = vsel %vm1941_vm3, %v5768_v4, %v10030_v19  ;;  %v15033_v4 = vld [vmem:[#allocation19_spill] sm:$0xff] }
0x2951   :  { %v6831_v60 = vpop.permute.xlu1 %6830 }
0x2952   :  { %9680 = vmatprep.subr.bf16.mxu0 %v6831_v60 }
0x2953   :  { %9681 = vmatpush3.bf16.msra.mxu0 %v6831_v60 }
0x2954   :  { %9690 = vmatprep.subr.bf16.mxu0 %v10149_v15 }
0x2955   :  { %v9993_v0 = vpop.permute.xlu1 %9992 }
0x2956   :  { %9683 = vmatmul.mubr.msk.bf16.vlgmr.msra.gmra.mxu0 %vm273_vm1, %v6827_v24  ;;  %v9995_v22 = vunpack.i.h.bf16 %v9993_v0  ;;  %v9994_v25 = vunpack.i.l.bf16 %v9993_v0 }
0x2957   :  { %9691 = vmatpush3.bf16.msra.mxu0 %v10149_v15  ;;  %v10802_v1 = vpop.eup %10801 }
0x2958   :  { %9692 = vmatprep.subr.bf16.mxu0 %v10150_v53  ;;  %v10804_v56 = vpop.eup %10803  ;;  %v6825_v16 = vmul.f32 %v10802_v1, %v13918_v54  ;;  %v10019_v54 = vunpack.i.l.bf16 %v13988_v34  ;;  %v5766_v41 = vsel %vm716_vm2, %v15020_v7, %v9995_v22  ;;  %v5765_v29 = vsel %vm716_vm2, %v15021_v31, %v9994_v25  ;;  %v15032_v31 = vld [vmem:[#allocation24_spill] sm:$0xff] }
0x2959   :  { %v10003_v18 = vpop.permute.xlu1 %10002  ;;  %v10806_v37 = vpop.eup %10805  ;;  %v6822_v63 = vmul.f32 %v10804_v56, %v13888_v44 }
0x295a   :  { %v6824_v52 = vmul.f32 %v10806_v37, %v13884_v8  ;;  %v10005_v44 = vunpack.i.h.bf16 %v10003_v18  ;;  %v10004_v58 = vunpack.i.l.bf16 %v10003_v18  ;;  %v10040_v8 = vunpack.i.h.bf16 %v10038_v35 }
0x295b   :  { %v10808_v50 = vpop.eup %10807  ;;  %9693 = vmatpush3.bf16.msra.mxu0 %v10150_v53  ;;  %v5767_v17 = vsel %vm716_vm2, %v15023_v51, %v10019_v54 }
0x295c   :  { %v6823_v20 = vmul.f32 %v10808_v50, %v13926_v14  ;;  %9694 = vmatprep.subr.bf16.mxu0 %v10151_v57  ;;  %v6829_v14 = vpack.c.bf16 %v6825_v16, %v6824_v52  ;;  %v5773_v5 = vsel %vm1941_vm3, %v5765_v29, %v10004_v58  ;;  %v5774_v43 = vsel %vm1941_vm3, %v5766_v41, %v10005_v44 }
0x295d   :  { %v10013_v49 = vpop.permute.xlu1 %10012  ;;  %v5775_v45 = vsel %vm1941_vm3, %v5767_v17, %v10029_v47  ;;  %v5784_v34 = vsel %vm127_vm0, %v5776_v27, %v10040_v8  ;;  %v14059_v47 = vld [vmem:[%s14807_s15] ss:$0 sm:$0xff] }
0x295e   :  { %v6828_v42 = vpack.c.bf16 %v6823_v20, %v6822_v63  ;;  %v10015_v13 = vunpack.i.h.bf16 %v10013_v49  ;;  %v10014_v36 = vunpack.i.l.bf16 %v10013_v49  ;;  %v5783_v30 = vsel %vm127_vm0, %v5775_v45, %v10039_v21  ;;  %v15026_v63 = vld [vmem:[#allocation18_spill] sm:$0xff]  ;;  %v15029_v49 = vld [vmem:[#allocation37_spill] sm:$0xff]  ;;  %v15034_v45 = vld [vmem:[#allocation35_spill] sm:$0xff] }
0x295f   :  { %9695 = vmatpush3.bf16.msra.mxu0 %v10151_v57  ;;  %v7041_v0 = vpack.c.bf16 %v5784_v34, %v5783_v30  ;;  %v15027_v20 = vpack.i.bf16 %v13852_v3, %v15026_v63 }
0x2960   :  { %9686 = vmatprep.mubr.msk.bf16.mxu0 %vm273_vm1, %v6828_v42  ;;  %9696 = vmatprep.subr.bf16.mxu0 %v10152_v2  ;;  %v5781_v15 = vsel %vm127_vm0, %v5773_v5, %v10014_v36  ;;  %v5782_v60 = vsel %vm127_vm0, %v5774_v43, %v10015_v13 }
0x2961   :  { %9687 = vmatmul.mubr.msk.bf16.gmra.mxu0 %vm273_vm1, %v6829_v14  ;;  %v10023_v40 = vpop.permute.xlu1 %10022  ;;  %v7040_v53 = vpack.c.bf16 %v5782_v60, %v5781_v15  ;;  %v15035_v60 = vld [vmem:[#allocation22_spill] sm:$0xff] }
0x2962   :  { %9698 = vmatprep.mubr.msk.bf16.mxu0 %vm273_vm1, %v7039_v48  ;;  %v10025_v59 = vunpack.i.h.bf16 %v10023_v40  ;;  %v10024_v10 = vunpack.i.l.bf16 %v10023_v40  ;;  %v15028_v48 = vld [vmem:[#allocation38_spill] sm:$0xff]  ;;  %v15031_v40 = vld [vmem:[#allocation20_spill] sm:$0xff] }
0x2963   :  { %9697 = vmatpush3.bf16.msra.mxu0 %v10152_v2  ;;  %v15030_v52 = vpack.i.bf16 %v15028_v48, %v15029_v49 }
0x2964   :  { %v5770_v1 = vsel %vm716_vm2, %v15024_v62, %v10025_v59  ;;  %v5769_v32 = vsel %vm716_vm2, %v15025_v39, %v10024_v10  ;;  %v15036_v59 = vld [vmem:[#allocation33_spill] sm:$0xff] }
0x2965   :  { %v10033_v24 = vpop.permute.xlu1 %10032 }
0x2966   :  { %v10035_v23 = vunpack.i.h.bf16 %v10033_v24  ;;  %v10034_v55 = vunpack.i.l.bf16 %v10033_v24 }
0x2968   :  { %v5777_v9 = vsel %vm1941_vm3, %v5769_v32, %v10034_v55  ;;  %v5778_v57 = vsel %vm1941_vm3, %v5770_v1, %v10035_v23  ;;  %v15037_v55 = vld [vmem:[#allocation23_spill] sm:$0xff]  ;;  %v15038_v1 = vld [vmem:[#allocation21_spill] sm:$0xff] }
0x2969   :  { %v10043_v33 = vpop.permute.xlu1 %10042  ;;  %9699 = vmatmul.mubr.msk.bf16.vlgmr.msra.gmra.mxu0 %vm273_vm1, %v7040_v53 }
0x296a   :  { %v10045_v12 = vunpack.i.h.bf16 %v10043_v33  ;;  %v10044_v26 = vunpack.i.l.bf16 %v10043_v33  ;;  %9702 = vmatprep.mubr.msk.bf16.mxu0 %vm273_vm1, %v7041_v0 }
0x296c   :  { %v5785_v56 = vsel %vm127_vm0, %v5777_v9, %v10044_v26  ;;  %v5786_v61 = vsel %vm127_vm0, %v5778_v57, %v10045_v12  ;;  %v10048_v9 = vpop.permute.xlu0 %10047 }
0x296d   :  { %v7042_v46 = vpack.c.bf16 %v5786_v61, %v5785_v56  ;;  %v10053_v26 = vpop.permute.xlu1 %10052 }
0x2970   :  { %v10058_v56 = vpop.permute.xlu0 %10057 }
0x2971   :  { %9703 = vmatmul.mubr.msk.bf16.gmra.mxu0 %vm273_vm1, %v7042_v46  ;;  %v10063_v57 = vpop.permute.xlu1 %10062  ;;  %v10050_v46 = vunpack.i.h.bf16 %v10048_v9  ;;  %v10060_v63 = vunpack.i.h.bf16 %v10058_v56 }
0x2975   :  { %v10073_v61 = vpop.permute.xlu1 %10072 }
0x2a16   :  { %v9684_v18 = vpop.f32.mrf.mxu0 }
0x2a18   :  { %v6888_v37 = vpop.f32.mrf.mxu0 }
0x2a1a   :  { %v9685_v38 = vpop.f32.mrf.mxu0 }
0x2a1b   :  { %v10076_v11 = vpack.i.bf16 %v9685_v38, %v9684_v18  ;;  %v10049_v18 = vunpack.i.l.bf16 %v10048_v9  ;;  %v10055_v38 = vunpack.i.h.bf16 %v10053_v26 }
0x2a1c   :  { %v6891_v50 = vpop.f32.mrf.mxu0 }
0x2a1d   :  { %v10081_v16 = vpack.i.bf16 %v6891_v50, %v6888_v37  ;;  %10077 = vrot.lane.b32.xlu1 %v10076_v11, %s10971_s5  ;;  %v10068_v37 = vpop.permute.xlu0 %10067  ;;  %v10054_v11 = vunpack.i.l.bf16 %v10053_v26  ;;  %v10065_v50 = vunpack.i.h.bf16 %v10063_v57  ;;  %v15045_v26 = vld [vmem:[#allocation15_spill] sm:$0xff] }
0x2a1f   :  { %10082 = vrot.lane.b32.xlu0 %v10081_v16, %s10971_s5  ;;  %v10064_v16 = vunpack.i.l.bf16 %v10063_v57  ;;  %v15046_v57 = vld [vmem:[#allocation13_spill] sm:$0xff] }
0x2a21   :  { %10092 = vrot.lane.b32.xlu1 %v15027_v20, %s10973_s6  ;;  %v9688_v2 = vpop.f32.mrf.mxu0  ;;  %v10059_v20 = vunpack.i.l.bf16 %v10058_v56 }
0x2a23   :  { %10087 = vrot.lane.b32.xlu0 %v15030_v52, %s10973_s6  ;;  %v6904_v6 = vpop.f32.mrf.mxu0  ;;  %v15039_v52 = vld [vmem:[#allocation10_spill] sm:$0xff] }
0x2a25   :  { %v9689_v35 = vpop.f32.mrf.mxu0 }
0x2a26   :  { %v10101_v22 = vpack.i.bf16 %v9689_v35, %v9688_v2  ;;  %v15040_v35 = vld [vmem:[#allocation30_spill] sm:$0xff] }
0x2a27   :  { %v6907_v25 = vpop.f32.mrf.mxu0 }
0x2a28   :  { %v10096_v42 = vpack.i.bf16 %v6907_v25, %v6904_v6  ;;  %10102 = vrot.lane.b32.xlu1 %v10101_v22, %s10971_s5  ;;  %v7016_v6 = vsel %vm716_vm2, %v15039_v52, %v10050_v46  ;;  %v7015_v22 = vsel %vm716_vm2, %v15040_v35, %v10049_v18  ;;  %v15041_v25 = vld [vmem:[#allocation11_spill] sm:$0xff] }
0x2a29   :  { %v9700_v54 = vpop.f32.mrf.mxu0 }
0x2a2a   :  { %10097 = vrot.lane.b32.xlu0 %v10096_v42, %s10971_s5  ;;  %v7153_v21 = vadd.f32 %v9700_v54, %v14059_v47  ;;  %v7018_v42 = vsel %vm716_vm2, %v15041_v25, %v10055_v38  ;;  %v15042_v54 = vld [vmem:[#allocation32_spill] sm:$0xff] }
0x2a2b   :  { %v7144_v44 = vpop.f32.mrf.mxu0 }
0x2a2c   :  { %v7145_v13 = vadd.f32 %v14059_v47, %v7144_v44  ;;  %v14072_v51 = vadd.f32 %v7153_v21, %v15033_v4  ;;  %v7017_v44 = vsel %vm716_vm2, %v15042_v54, %v10054_v11 }
0x2a2d   :  { %v9701_v58 = vpop.f32.mrf.mxu0 }
0x2a2e   :  { %v14065_v7 = vadd.f32 %v7145_v13, %v15031_v40  ;;  %v7156_v17 = vadd.f32 %v9701_v58, %v14059_v47  ;;  %v7229_v24 = vsel %vm273_vm1, %v14072_v51, 0.0 }
0x2a2f   :  { %v7147_v3 = vpop.f32.mrf.mxu0 }
0x2a30   :  { %v7148_v8 = vadd.f32 %v14059_v47, %v7147_v3  ;;  %v7223_v5 = vsel %vm273_vm1, %v14065_v7, 0.0  ;;  %v14084_v30 = vadd.f32 %v7156_v17, %v15035_v60  ;;  %v7025_v3 = vsel %vm1941_vm3, %v7017_v44, %v10064_v16  ;;  %v15047_v44 = vld [vmem:[#allocation2_spill] sm:$0xff] }
0x2a31   :  { %v9704_v14 = vpop.f32.mrf.mxu0  ;;  %v10074_v60 = vunpack.i.l.bf16 %v10073_v61 }
0x2a32   :  { %v14068_v29 = vadd.f32 %v7148_v8, %v15032_v31  ;;  %v7169_v23 = vadd.f32 %v9704_v14, %v14059_v47  ;;  %v7232_v33 = vsel %vm273_vm1, %v14084_v30, 0.0  ;;  %v7026_v14 = vsel %vm1941_vm3, %v7018_v42, %v10065_v50 }
0x2a33   :  { %v7160_v19 = vpop.f32.mrf.mxu0  ;;  %v7024_v8 = vsel %vm1941_vm3, %v7016_v6, %v10060_v63  ;;  %v7021_v56 = vsel %vm716_vm2, %v15046_v57, %v10074_v60 }
0x2a34   :  { %v7226_v15 = vsel %vm273_vm1, %v14068_v29, 0.0  ;;  %v7161_v34 = vadd.f32 %v14059_v47, %v7160_v19  ;;  %v14103_v39 = vadd.f32 %v7169_v23, %v15038_v1 }
0x2a35   :  { %v9705_v36 = vpop.f32.mrf.mxu0 }
0x2a36   :  { %v7172_v43 = vadd.f32 %v9705_v36, %v14059_v47  ;;  %v14096_v0 = vadd.f32 %v7161_v34, %v15037_v55  ;;  %v7241_v12 = vsel %vm273_vm1, %v14103_v39, 0.0  ;;  %v7023_v36 = vsel %vm1941_vm3, %v7015_v22, %v10059_v20 }
0x2a37   :  { %v7163_v41 = vpop.f32.mrf.mxu0 }
0x2a38   :  { %v7164_v28 = vadd.f32 %v14059_v47, %v7163_v41  ;;  %v14090_v10 = vadd.f32 %v7172_v43, %v15036_v59  ;;  %v7235_v32 = vsel %vm273_vm1, %v14096_v0, 0.0  ;;  %v10070_v43 = vunpack.i.h.bf16 %v10068_v37 }
0x2a3a   :  { %v14079_v27 = vadd.f32 %v7164_v28, %v15034_v45  ;;  %v7244_v62 = vsel %vm273_vm1, %v14090_v10, 0.0  ;;  %v10069_v45 = vunpack.i.l.bf16 %v10068_v37 }
0x2a3c   :  { %v7238_v53 = vsel %vm273_vm1, %v14079_v27, 0.0 }
0x2a49   :  { %7224 = vadd.xlane.f32.xlu0 %v7223_v5 }
0x2a4c   :  { %7227 = vadd.xlane.f32.xlu1 %v7226_v15  ;;  %v10075_v15 = vunpack.i.h.bf16 %v10073_v61 }
0x2a4d   :  { %7230 = vadd.xlane.f32.xlu0 %v7229_v24 }
0x2a4e   :  { %v7022_v9 = vsel %vm716_vm2, %v15045_v26, %v10075_v15 }
0x2a50   :  { %7239 = vadd.xlane.f32.xlu1 %v7238_v53 }
0x2a51   :  { %7233 = vadd.xlane.f32.xlu0 %v7232_v33 }
0x2a54   :  { %7245 = vadd.xlane.f32.xlu1 %v7244_v62  ;;  %v15043_v62 = vld [vmem:[#allocation14_spill] sm:$0xff] }
0x2a55   :  { %7236 = vadd.xlane.f32.xlu0 %v7235_v32  ;;  %v7020_v1 = vsel %vm716_vm2, %v15043_v62, %v10070_v43  ;;  %v15044_v32 = vld [vmem:[#allocation12_spill] sm:$0xff] }
0x2a59   :  { %7242 = vadd.xlane.f32.xlu0 %v7241_v12  ;;  %v7019_v12 = vsel %vm716_vm2, %v15044_v32, %v10069_v45 }
0x2a8f   :  { %v10078_v2 = vpop.permute.xlu1 %10077 }
0x2a90   :  { %v10080_v48 = vunpack.i.h.bf16 %v10078_v2  ;;  %v10079_v49 = vunpack.i.l.bf16 %v10078_v2 }
0x2a91   :  { %v10083_v58 = vpop.permute.xlu0 %10082 }
0x2a92   :  { %v10085_v19 = vunpack.i.h.bf16 %v10083_v58  ;;  %v10084_v13 = vunpack.i.l.bf16 %v10083_v58  ;;  %v7033_v21 = vsel %vm127_vm0, %v7025_v3, %v10079_v49  ;;  %v7034_v40 = vsel %vm127_vm0, %v7026_v14, %v10080_v48  ;;  %v15048_v14 = vld [vmem:[#allocation3_spill] sm:$0xff] }
0x2a93   :  { %v7044_v4 = vpack.c.bf16 %v7034_v40, %v7033_v21  ;;  %v10093_v17 = vpop.permute.xlu1 %10092  ;;  %v15049_v21 = vld [vmem:[#allocation4_spill] sm:$0xff] }
0x2a94   :  { %v7032_v41 = vsel %vm127_vm0, %v7024_v8, %v10085_v19  ;;  %v7031_v31 = vsel %vm127_vm0, %v7023_v36, %v10084_v13  ;;  %v10095_v34 = vunpack.i.h.bf16 %v10093_v17  ;;  %v10094_v24 = vunpack.i.l.bf16 %v10093_v17 }
0x2a95   :  { %v7043_v28 = vpack.c.bf16 %v7032_v41, %v7031_v31  ;;  %v10088_v5 = vpop.permute.xlu0 %10087  ;;  %v15050_v31 = vld [vmem:[#allocation5_spill] sm:$0xff] }
0x2a96   :  { %v10090_v59 = vunpack.i.h.bf16 %v10088_v5  ;;  %v10089_v53 = vunpack.i.l.bf16 %v10088_v5  ;;  %v7029_v46 = vsel %vm1941_vm3, %v7021_v56, %v10094_v24  ;;  %v7030_v18 = vsel %vm1941_vm3, %v7022_v9, %v10095_v34 }
0x2a97   :  { %9706 = vmatprep.mubr.msk.bf16.mxu0 %vm273_vm1, %v7043_v28 }
0x2a98   :  { %9707 = vmatmul.mubr.msk.bf16.gmra.mxu0 %vm273_vm1, %v7044_v4  ;;  %v7028_v11 = vsel %vm1941_vm3, %v7020_v1, %v10090_v59  ;;  %v7027_v50 = vsel %vm1941_vm3, %v7019_v12, %v10089_v53  ;;  %v15051_v53 = vld [vmem:[#allocation34_spill] sm:$0xff]  ;;  %v15052_v12 = vld [vmem:[#allocation36_spill] sm:$0xff] }
0x2a9a   :  { %v10103_v23 = vpop.permute.xlu1 %10102 }
0x2a9b   :  { %v10105_v55 = vunpack.i.h.bf16 %v10103_v23  ;;  %v10104_v33 = vunpack.i.l.bf16 %v10103_v23 }
0x2a9c   :  { %v10098_v61 = vpop.permute.xlu0 %10097 }
0x2a9d   :  { %v10100_v37 = vunpack.i.h.bf16 %v10098_v61  ;;  %v10099_v38 = vunpack.i.l.bf16 %v10098_v61  ;;  %v7037_v16 = vsel %vm127_vm0, %v7029_v46, %v10104_v33  ;;  %v7038_v63 = vsel %vm127_vm0, %v7030_v18, %v10105_v55  ;;  %v15053_v61 = vld [vmem:[#allocation28_spill] sm:$0xff] }
0x2a9e   :  { %v7046_v49 = vpack.c.bf16 %v7038_v63, %v7037_v16 }
0x2a9f   :  { %v7036_v20 = vsel %vm127_vm0, %v7028_v11, %v10100_v37  ;;  %v7035_v2 = vsel %vm127_vm0, %v7027_v50, %v10099_v38 }
0x2aa0   :  { %v7045_v48 = vpack.c.bf16 %v7036_v20, %v7035_v2 }
0x2aa2   :  { %9710 = vmatprep.mubr.msk.bf16.mxu0 %vm273_vm1, %v7045_v48 }
0x2aa3   :  { %9711 = vmatmul.mubr.msk.bf16.gmra.mxu0 %vm273_vm1, %v7046_v49 }
0x2ad2   :  { %v7225_v52 = vpop.xlane.xlu0 %7224 }
0x2ad3   :  { %v7271_v43 = vmul.f32 0.015625, %v7225_v52 }
0x2ad5   :  { %v7228_v15 = vpop.xlane.xlu1 %7227  ;;  %v14175_v55 = vsub.f32 %v14065_v7, %v7271_v43 }
0x2ad6   :  { %v7231_v54 = vpop.xlane.xlu0 %7230  ;;  %v7272_v33 = vmul.f32 0.015625, %v7228_v15 }
0x2ad7   :  { %v7273_v62 = vmul.f32 0.015625, %v7231_v54  ;;  %v7303_v50 = vmul.f32 %v14175_v55, %v14175_v55 }
0x2ad8   :  { %v14188_v18 = vsub.f32 %v14068_v29, %v7272_v33  ;;  %v10156_v33 = vld [vmem:[%s14808_s16] sm:$0xff]  }
0x2ad9   :  { %v14191_v37 = vsub.f32 %v14072_v51, %v7273_v62  ;;  %v7240_v38 = vpop.xlane.xlu1 %7239  ;;  %v7319_v52 = vsel %vm273_vm1, %v7303_v50, 0.0 }
0x2ada   :  { %v7234_v41 = vpop.xlane.xlu0 %7233  ;;  %v7276_v49 = vmul.f32 0.015625, %v7240_v38 }
0x2adb   :  { %v7274_v11 = vmul.f32 0.015625, %v7234_v41 }
0x2ade   :  { %v7237_v1 = vpop.xlane.xlu0 %7236 }
0x2adf   :  { %v7275_v16 = vmul.f32 0.015625, %v7237_v1 }
0x2ae2   :  { %v7243_v48 = vpop.xlane.xlu0 %7242 }
0x2b58   :  { %v9708_v6 = vpop.f32.mrf.mxu0 }
0x2b59   :  { %v7185_v22 = vadd.f32 %v9708_v6, %v14059_v47  ;;  %v7304_v6 = vmul.f32 %v14188_v18, %v14188_v18 }
0x2b5a   :  { %v7176_v35 = vpop.f32.mrf.mxu0 }
0x2b5b   :  { %v7177_v25 = vadd.f32 %v14059_v47, %v7176_v35  ;;  %v14151_v19 = vadd.f32 %v7185_v22, %v15048_v14  ;;  %v7305_v35 = vmul.f32 %v14191_v37, %v14191_v37  ;;  %v14208_v22 = vsub.f32 %v14084_v30, %v7274_v11 }
0x2b5c   :  { %v9709_v42 = vpop.f32.mrf.mxu0  ;;  %v7322_v14 = vsel %vm273_vm1, %v7304_v6, 0.0 }
0x2b5d   :  { %v14148_v58 = vadd.f32 %v7177_v25, %v15047_v44  ;;  %v7188_v13 = vadd.f32 %v9709_v42, %v14059_v47  ;;  %v7253_v5 = vsel %vm273_vm1, %v14151_v19, 0.0  ;;  %v14211_v25 = vsub.f32 %v14096_v0, %v7275_v16  ;;  %v7246_v44 = vpop.xlane.xlu1 %7245 }
0x2b5e   :  { %v7179_v3 = vpop.f32.mrf.mxu0  ;;  %v7277_v42 = vmul.f32 0.015625, %v7243_v48 }
0x2b5f   :  { %v7180_v36 = vadd.f32 %v14059_v47, %v7179_v3  ;;  %v7247_v8 = vsel %vm273_vm1, %v14148_v58, 0.0  ;;  %v14161_v28 = vadd.f32 %v7188_v13, %v15050_v31  ;;  %v14216_v3 = vsub.f32 %v14079_v27, %v7276_v49 }
0x2b60   :  { %7248 = vadd.xlane.f32.xlu0 %v7247_v8  ;;  %v7325_v13 = vsel %vm273_vm1, %v7305_v35, 0.0  ;;  %v14221_v8 = vsub.f32 %v14103_v39, %v7277_v42  ;;  %v7307_v41 = vmul.f32 %v14211_v25, %v14211_v25 }
0x2b61   :  { %v14158_v40 = vadd.f32 %v7180_v36, %v15049_v21  ;;  %v7256_v59 = vsel %vm273_vm1, %v14161_v28, 0.0  ;;  %v7278_v36 = vmul.f32 0.015625, %v7246_v44  ;;  %v7306_v21 = vmul.f32 %v14208_v22, %v14208_v22 }
0x2b62   :  { %v7308_v31 = vmul.f32 %v14216_v3, %v14216_v3  ;;  %v7309_v43 = vmul.f32 %v14221_v8, %v14221_v8 }
0x2b63   :  { %v9712_v4 = vpop.f32.mrf.mxu0  ;;  %v7250_v17 = vsel %vm273_vm1, %v14158_v40, 0.0 }
0x2b64   :  { %7251 = vadd.xlane.f32.xlu1 %v7250_v17  ;;  %7254 = vadd.xlane.f32.xlu0 %v7253_v5  ;;  %v7201_v60 = vadd.f32 %v9712_v4, %v14059_v47  ;;  %v14230_v4 = vsub.f32 %v14090_v10, %v7278_v36  ;;  %v7328_v17 = vsel %vm273_vm1, %v7306_v21, 0.0  ;;  %v7331_v5 = vsel %vm273_vm1, %v7307_v41, 0.0 }
0x2b65   :  { %v7192_v45 = vpop.f32.mrf.mxu0  ;;  %v7337_v15 = vsel %vm273_vm1, %v7309_v43, 0.0 }
0x2b66   :  { %v7193_v34 = vadd.f32 %v14059_v47, %v7192_v45  ;;  %v14178_v26 = vadd.f32 %v7201_v60, %v15052_v12  ;;  %v7334_v45 = vsel %vm273_vm1, %v7308_v31, 0.0  ;;  %v7310_v60 = vmul.f32 %v14230_v4, %v14230_v4 }
0x2b67   :  { %v9713_v24 = vpop.f32.mrf.mxu0 }
0x2b68   :  { %v14172_v23 = vadd.f32 %v7193_v34, %v15051_v53  ;;  %7257 = vadd.xlane.f32.xlu1 %v7256_v59  ;;  %v7204_v9 = vadd.f32 %v9713_v24, %v14059_v47  ;;  %v7265_v2 = vsel %vm273_vm1, %v14178_v26, 0.0  ;;  %v7340_v34 = vsel %vm273_vm1, %v7310_v60, 0.0  ;;  %v10153_v24 = vld [vmem:[%s14808_s16 + $0x18] sm:$0xff]   ;;  %v10154_v59 = vld [vmem:[%s14808_s16 + $0x10] sm:$0xff]   ;;  %v10155_v53 = vld [vmem:[%s14808_s16 + $0x8] sm:$0xff]  }
0x2b69   :  { %v7195_v32 = vpop.f32.mrf.mxu0  ;;  %9714 = vmatprep.subr.bf16.mxu1 %v10153_v24 }
0x2b6a   :  { %v7196_v57 = vadd.f32 %v14059_v47, %v7195_v32  ;;  %v7259_v56 = vsel %vm273_vm1, %v14172_v23, 0.0  ;;  %v15054_v47 = vld [vmem:[#allocation26_spill] sm:$0xff]  ;;  %9715 = vmatpush3.bf16.msra.mxu1 %v10153_v24 }
0x2b6b   :  { %7260 = vadd.xlane.f32.xlu0 %v7259_v56  ;;  %v14196_v63 = vadd.f32 %v7204_v9, %v15054_v47  ;;  %9716 = vmatprep.subr.bf16.mxu1 %v10154_v59 }
0x2b6c   :  { %v14185_v46 = vadd.f32 %v7196_v57, %v15053_v61 }
0x2b6d   :  { %v7268_v54 = vsel %vm273_vm1, %v14196_v63, 0.0 }
0x2b6e   :  { %v7262_v20 = vsel %vm273_vm1, %v14185_v46, 0.0  ;;  %9717 = vmatpush3.bf16.msra.mxu1 %v10154_v59 }
0x2b6f   :  { %7263 = vadd.xlane.f32.xlu1 %v7262_v20  ;;  %7266 = vadd.xlane.f32.xlu0 %v7265_v2 }
0x2b70   :  { %9718 = vmatprep.subr.bf16.mxu1 %v10155_v53 }
0x2b72   :  { %9719 = vmatpush3.bf16.msra.mxu1 %v10155_v53 }
0x2b73   :  { %7269 = vadd.xlane.f32.xlu1 %v7268_v54  ;;  %7320 = vadd.xlane.f32.xlu0 %v7319_v52 }
0x2b74   :  { %9720 = vmatprep.subr.bf16.mxu1 %v10156_v33 }
0x2b76   :  { %9721 = vmatpush3.bf16.msra.mxu1 %v10156_v33 }
0x2b77   :  { %7323 = vadd.xlane.f32.xlu1 %v7322_v14  ;;  %7326 = vadd.xlane.f32.xlu0 %v7325_v13 }
0x2b7b   :  { %7329 = vadd.xlane.f32.xlu1 %v7328_v17  ;;  %7332 = vadd.xlane.f32.xlu0 %v7331_v5 }
0x2b7f   :  { %7335 = vadd.xlane.f32.xlu1 %v7334_v45  ;;  %7338 = vadd.xlane.f32.xlu0 %v7337_v15 }
0x2b83   :  { %7341 = vadd.xlane.f32.xlu1 %v7340_v34 }
0x2be9   :  { %v7249_v62 = vpop.xlane.xlu0 %7248 }
0x2bea   :  { %v7279_v1 = vmul.f32 0.015625, %v7249_v62 }
0x2bec   :  { %v14254_v32 = vsub.f32 %v14148_v58, %v7279_v1 }
0x2bed   :  { %v7252_v12 = vpop.xlane.xlu1 %7251  ;;  %v7255_v9 = vpop.xlane.xlu0 %7254 }
0x2bee   :  { %v7280_v57 = vmul.f32 0.015625, %v7252_v12  ;;  %v7281_v56 = vmul.f32 0.015625, %v7255_v9  ;;  %v7311_v61 = vmul.f32 %v14254_v32, %v14254_v32 }
0x2bf0   :  { %v14259_v38 = vsub.f32 %v14158_v40, %v7280_v57  ;;  %v14262_v11 = vsub.f32 %v14151_v19, %v7281_v56  ;;  %v7343_v50 = vsel %vm273_vm1, %v7311_v61, 0.0 }
0x2bf1   :  { %v7258_v16 = vpop.xlane.xlu1 %7257  ;;  %7344 = vadd.xlane.f32.xlu0 %v7343_v50 }
0x2bf2   :  { %v7282_v47 = vmul.f32 0.015625, %v7258_v16  ;;  %v7312_v20 = vmul.f32 %v14259_v38, %v14259_v38  ;;  %v7313_v2 = vmul.f32 %v14262_v11, %v14262_v11 }
0x2bf4   :  { %v14270_v48 = vsub.f32 %v14161_v28, %v7282_v47  ;;  %v7261_v49 = vpop.xlane.xlu0 %7260  ;;  %v7346_v52 = vsel %vm273_vm1, %v7312_v20, 0.0  ;;  %v7349_v6 = vsel %vm273_vm1, %v7313_v2, 0.0 }
0x2bf5   :  { %v7283_v35 = vmul.f32 0.015625, %v7261_v49  ;;  %7347 = vadd.xlane.f32.xlu1 %v7346_v52  ;;  %7350 = vadd.xlane.f32.xlu0 %v7349_v6 }
0x2bf6   :  { %v7314_v42 = vmul.f32 %v14270_v48, %v14270_v48 }
0x2bf7   :  { %v14277_v54 = vsub.f32 %v14172_v23, %v7283_v35 }
0x2bf8   :  { %v7264_v44 = vpop.xlane.xlu1 %7263  ;;  %v7267_v14 = vpop.xlane.xlu0 %7266  ;;  %v7352_v13 = vsel %vm273_vm1, %v7314_v42, 0.0 }
0x2bf9   :  { %v7284_v36 = vmul.f32 0.015625, %v7264_v44  ;;  %v7285_v21 = vmul.f32 0.015625, %v7267_v14  ;;  %7353 = vadd.xlane.f32.xlu1 %v7352_v13  ;;  %v7315_v41 = vmul.f32 %v14277_v54, %v14277_v54 }
0x2bfb   :  { %v14283_v31 = vsub.f32 %v14185_v46, %v7284_v36  ;;  %v14286_v17 = vsub.f32 %v14178_v26, %v7285_v21  ;;  %v7355_v5 = vsel %vm273_vm1, %v7315_v41, 0.0 }
0x2bfc   :  { %v7270_v43 = vpop.xlane.xlu1 %7269  ;;  %7356 = vadd.xlane.f32.xlu0 %v7355_v5  ;;  %v7321_v45 = vpop.xlane.xlu0 %7320 }
0x2bfd   :  { %v7286_v15 = vmul.f32 0.015625, %v7270_v43  ;;  %v7367_v60 = vmul.f32 0.015625, %v7321_v45  ;;  %v7316_v34 = vmul.f32 %v14283_v31, %v14283_v31  ;;  %v7317_v24 = vmul.f32 %v14286_v17, %v14286_v17 }
0x2bff   :  { %v14294_v59 = vsub.f32 %v14196_v63, %v7286_v15  ;;  %v7383_v53 = vadd.f32 1e-05, %v7367_v60  ;;  %v7358_v33 = vsel %vm273_vm1, %v7316_v34, 0.0  ;;  %v7361_v62 = vsel %vm273_vm1, %v7317_v24, 0.0 }
0x2c00   :  { %v7324_v1 = vpop.xlane.xlu1 %7323  ;;  %7359 = vadd.xlane.f32.xlu1 %v7358_v33  ;;  %7362 = vadd.xlane.f32.xlu0 %v7361_v62  ;;  %v7327_v12 = vpop.xlane.xlu0 %7326 }
0x2c01   :  { %v7368_v9 = vmul.f32 0.015625, %v7324_v1  ;;  %v7369_v57 = vmul.f32 0.015625, %v7327_v12  ;;  %v7318_v56 = vmul.f32 %v14294_v59, %v14294_v59  ;;  %10809 = vrsqrt.f32 %v7383_v53 }
0x2c03   :  { %v7384_v61 = vadd.f32 1e-05, %v7368_v9  ;;  %v7385_v50 = vadd.f32 1e-05, %v7369_v57  ;;  %v7364_v16 = vsel %vm273_vm1, %v7318_v56, 0.0 }
0x2c04   :  { %7365 = vadd.xlane.f32.xlu1 %v7364_v16  ;;  %v7330_v47 = vpop.xlane.xlu1 %7329  ;;  %v7333_v20 = vpop.xlane.xlu0 %7332  ;;  %v10157_v16 = vld [vmem:[%s14809_s18 + $0x38] sm:$0xff]  }
0x2c05   :  { %10811 = vrsqrt.f32 %v7384_v61  ;;  %v7370_v2 = vmul.f32 0.015625, %v7330_v47  ;;  %v7371_v49 = vmul.f32 0.015625, %v7333_v20  ;;  %9738 = vmatprep.subr.bf16.mxu0 %v10157_v16  ;;  %v10162_v47 = vld [vmem:[%s14809_s18 + $0x10] sm:$0xff]  }
0x2c06   :  { %10813 = vrsqrt.f32 %v7385_v50  ;;  %9739 = vmatpush3.bf16.msra.mxu0 %v10157_v16 }
0x2c07   :  { %v7386_v52 = vadd.f32 1e-05, %v7370_v2  ;;  %v7387_v6 = vadd.f32 1e-05, %v7371_v49  ;;  %v10163_v49 = vld [vmem:[%s14809_s18 + $0x8] sm:$0xff]  }
0x2c08   :  { %v7336_v35 = vpop.xlane.xlu1 %7335  ;;  %v7339_v42 = vpop.xlane.xlu0 %7338 }
0x2c09   :  { %10815 = vrsqrt.f32 %v7386_v52  ;;  %v7372_v44 = vmul.f32 0.015625, %v7336_v35  ;;  %v7373_v14 = vmul.f32 0.015625, %v7339_v42 }
0x2c0a   :  { %10817 = vrsqrt.f32 %v7387_v6 }
0x2c0b   :  { %v7388_v13 = vadd.f32 1e-05, %v7372_v44  ;;  %v7389_v36 = vadd.f32 1e-05, %v7373_v14  ;;  %v10164_v14 = vld [vmem:[%s14809_s18] sm:$0xff]  }
0x2c0c   :  { %v7342_v21 = vpop.xlane.xlu1 %7341 }
0x2c0d   :  { %10819 = vrsqrt.f32 %v7388_v13  ;;  %v7374_v41 = vmul.f32 0.015625, %v7342_v21 }
0x2c0e   :  { %10821 = vrsqrt.f32 %v7389_v36  ;;  %v10810_v43 = vpop.eup %10809 }
0x2c0f   :  { %v7390_v5 = vadd.f32 1e-05, %v7374_v41  ;;  %v7415_v15 = vmul.f32 %v10810_v43, %v14175_v55 }
0x2c11   :  { %10823 = vrsqrt.f32 %v7390_v5 }
0x2c12   :  { %v10812_v45 = vpop.eup %10811 }
0x2c13   :  { %v7416_v60 = vmul.f32 %v10812_v45, %v14188_v18  ;;  %v10814_v34 = vpop.eup %10813 }
0x2c14   :  { %v7417_v33 = vmul.f32 %v10814_v34, %v14191_v37 }
0x2c15   :  { %v7431_v24 = vpack.c.bf16 %v7416_v60, %v7415_v15 }
0x2c16   :  { %v10816_v53 = vpop.eup %10815 }
0x2c17   :  { %v7418_v62 = vmul.f32 %v10816_v53, %v14208_v22  ;;  %9722 = vmatprep.mubr.msk.bf16.mxu1 %vm273_vm1, %v7431_v24  ;;  %v10818_v1 = vpop.eup %10817 }
0x2c18   :  { %v7419_v57 = vmul.f32 %v10818_v1, %v14211_v25  ;;  %v10158_v25 = vld [vmem:[%s14809_s18 + $0x30] sm:$0xff]  }
0x2c19   :  { %v7432_v12 = vpack.c.bf16 %v7418_v62, %v7417_v33  ;;  %9740 = vmatprep.subr.bf16.mxu0 %v10158_v25 }
0x2c1a   :  { %v10820_v9 = vpop.eup %10819  ;;  %9741 = vmatpush3.bf16.msra.mxu0 %v10158_v25 }
0x2c1b   :  { %9723 = vmatmul.mubr.msk.bf16.vlgmr.msra.gmra.mxu1 %vm273_vm1, %v7432_v12  ;;  %v7420_v55 = vmul.f32 %v10820_v9, %v14216_v3  ;;  %v10822_v56 = vpop.eup %10821  ;;  %v10159_v3 = vld [vmem:[%s14809_s18 + $0x28] sm:$0xff]  }
0x2c1c   :  { %v7421_v37 = vmul.f32 %v10822_v56, %v14221_v8  ;;  %9742 = vmatprep.subr.bf16.mxu0 %v10159_v3  ;;  %v10160_v8 = vld [vmem:[%s14809_s18 + $0x20] sm:$0xff]  }
0x2c1d   :  { %v7433_v18 = vpack.c.bf16 %v7420_v55, %v7419_v57 }
0x2c1e   :  { %v10824_v61 = vpop.eup %10823  ;;  %9743 = vmatpush3.bf16.msra.mxu0 %v10159_v3 }
0x2c1f   :  { %9726 = vmatprep.mubr.msk.bf16.mxu1 %vm273_vm1, %v7433_v18  ;;  %v7422_v22 = vmul.f32 %v10824_v61, %v14230_v4  ;;  %9744 = vmatprep.subr.bf16.mxu0 %v10160_v8  ;;  %v10161_v4 = vld [vmem:[%s14809_s18 + $0x18] sm:$0xff]  }
0x2c21   :  { %v7434_v50 = vpack.c.bf16 %v7422_v22, %v7421_v37 }
0x2c22   :  { %9745 = vmatpush3.bf16.msra.mxu0 %v10160_v8 }
0x2c23   :  { %9727 = vmatmul.mubr.msk.bf16.gmra.mxu1 %vm273_vm1, %v7434_v50  ;;  %9746 = vmatprep.subr.bf16.mxu0 %v10161_v4 }
0x2c26   :  { %9747 = vmatpush3.bf16.msra.mxu0 %v10161_v4 }
0x2c27   :  { %9748 = vmatprep.subr.bf16.mxu0 %v10162_v47 }
0x2c2a   :  { %9749 = vmatpush3.bf16.msra.mxu0 %v10162_v47 }
0x2c2b   :  { %9750 = vmatprep.subr.bf16.mxu0 %v10163_v49 }
0x2c2e   :  { %9751 = vmatpush3.bf16.msra.mxu0 %v10163_v49 }
0x2c2f   :  { %9752 = vmatprep.subr.bf16.mxu0 %v10164_v14 }
0x2c32   :  { %9753 = vmatpush3.bf16.msra.mxu0 %v10164_v14 }
0x2c7a   :  { %v7345_v20 = vpop.xlane.xlu0 %7344 }
0x2c7b   :  { %v7375_v2 = vmul.f32 0.015625, %v7345_v20 }
0x2c7d   :  { %v7391_v52 = vadd.f32 1e-05, %v7375_v2 }
0x2c7e   :  { %v7348_v6 = vpop.xlane.xlu1 %7347  ;;  %v7351_v35 = vpop.xlane.xlu0 %7350 }
0x2c7f   :  { %v7376_v42 = vmul.f32 0.015625, %v7348_v6  ;;  %v7377_v44 = vmul.f32 0.015625, %v7351_v35  ;;  %10825 = vrsqrt.f32 %v7391_v52 }
0x2c81   :  { %v7392_v13 = vadd.f32 1e-05, %v7376_v42  ;;  %v7393_v36 = vadd.f32 1e-05, %v7377_v44 }
0x2c82   :  { %v7354_v21 = vpop.xlane.xlu1 %7353 }
0x2c83   :  { %10827 = vrsqrt.f32 %v7392_v13  ;;  %v7378_v41 = vmul.f32 0.015625, %v7354_v21 }
0x2c84   :  { %10829 = vrsqrt.f32 %v7393_v36 }
0x2c85   :  { %v7394_v5 = vadd.f32 1e-05, %v7378_v41  ;;  %v7357_v43 = vpop.xlane.xlu0 %7356 }
0x2c86   :  { %v7379_v45 = vmul.f32 0.015625, %v7357_v43 }
0x2c87   :  { %10831 = vrsqrt.f32 %v7394_v5 }
0x2c88   :  { %v7395_v15 = vadd.f32 1e-05, %v7379_v45 }
0x2c89   :  { %v7360_v60 = vpop.xlane.xlu1 %7359  ;;  %v7363_v34 = vpop.xlane.xlu0 %7362 }
0x2c8a   :  { %v7380_v24 = vmul.f32 0.015625, %v7360_v60  ;;  %v7381_v53 = vmul.f32 0.015625, %v7363_v34  ;;  %10833 = vrsqrt.f32 %v7395_v15 }
0x2c8c   :  { %v7396_v33 = vadd.f32 1e-05, %v7380_v24  ;;  %v7397_v62 = vadd.f32 1e-05, %v7381_v53  ;;  %v10826_v12 = vpop.eup %10825 }
0x2c8d   :  { %v7366_v1 = vpop.xlane.xlu1 %7365  ;;  %v7423_v56 = vmul.f32 %v10826_v12, %v14254_v32 }
0x2c8e   :  { %10835 = vrsqrt.f32 %v7396_v33  ;;  %v7382_v9 = vmul.f32 0.015625, %v7366_v1 }
0x2c8f   :  { %10837 = vrsqrt.f32 %v7397_v62 }
0x2c90   :  { %v10828_v57 = vpop.eup %10827  ;;  %v7398_v55 = vadd.f32 1e-05, %v7382_v9 }
0x2c91   :  { %v7424_v18 = vmul.f32 %v10828_v57, %v14259_v38  ;;  %v10830_v61 = vpop.eup %10829 }
0x2c92   :  { %10839 = vrsqrt.f32 %v7398_v55  ;;  %v7425_v50 = vmul.f32 %v10830_v61, %v14262_v11 }
0x2c93   :  { %v7435_v37 = vpack.c.bf16 %v7424_v18, %v7423_v56 }
0x2c94   :  { %v10832_v22 = vpop.eup %10831 }
0x2c95   :  { %9730 = vmatprep.mubr.msk.bf16.mxu1 %vm273_vm1, %v7435_v37  ;;  %v7426_v16 = vmul.f32 %v10832_v22, %v14270_v48  ;;  %v14352_v48 = vld [vmem:[%s14810_s17] ss:$0 sm:$0xff] }
0x2c97   :  { %v7436_v25 = vpack.c.bf16 %v7426_v16, %v7425_v50  ;;  %v10834_v3 = vpop.eup %10833 }
0x2c98   :  { %v7427_v4 = vmul.f32 %v10834_v3, %v14277_v54 }
0x2c99   :  { %9731 = vmatmul.mubr.msk.bf16.gmra.mxu1 %vm273_vm1, %v7436_v25 }
0x2c9b   :  { %v10836_v8 = vpop.eup %10835 }
0x2c9c   :  { %v7428_v32 = vmul.f32 %v10836_v8, %v14283_v31  ;;  %v10838_v38 = vpop.eup %10837 }
0x2c9d   :  { %v7429_v2 = vmul.f32 %v10838_v38, %v14286_v17 }
0x2c9e   :  { %v7437_v47 = vpack.c.bf16 %v7428_v32, %v7427_v4 }
0x2c9f   :  { %v10840_v20 = vpop.eup %10839 }
0x2ca0   :  { %9734 = vmatprep.mubr.msk.bf16.mxu1 %vm273_vm1, %v7437_v47  ;;  %v7430_v11 = vmul.f32 %v10840_v20, %v14294_v59 }
0x2ca2   :  { %v7438_v49 = vpack.c.bf16 %v7430_v11, %v7429_v2 }
0x2ca4   :  { %9735 = vmatmul.mubr.msk.bf16.gmra.mxu1 %vm273_vm1, %v7438_v49 }
0x2cdb   :  { %v9724_v54 = vpop.f32.mrf.mxu1 }
0x2cdc   :  { %v14355_v31 = vadd.f32 %v9724_v54, %v14352_v48 }
0x2cdd   :  { %v7536_v52 = vpop.f32.mrf.mxu1 }
0x2cde   :  { %v7601_v6 = vmul.f32 %v14355_v31, %v14355_v31  ;;  %v14360_v17 = vadd.f32 %v14352_v48, %v7536_v52 }
0x2cdf   :  { %v9725_v59 = vpop.f32.mrf.mxu1 }
0x2ce0   :  { %v7617_v35 = vmul.f32 %v7601_v6, %v14355_v31  ;;  %v7599_v42 = vmul.f32 %v14360_v17, %v14360_v17  ;;  %v14366_v44 = vadd.f32 %v9725_v59, %v14352_v48 }
0x2ce1   :  { %v7539_v14 = vpop.f32.mrf.mxu1 }
0x2ce2   :  { %v7633_v13 = vmul.f32 0.044715, %v7617_v35  ;;  %v7615_v36 = vmul.f32 %v7599_v42, %v14360_v17  ;;  %v7602_v21 = vmul.f32 %v14366_v44, %v14366_v44  ;;  %v14372_v41 = vadd.f32 %v14352_v48, %v7539_v14 }
0x2ce3   :  { %v9728_v5 = vpop.f32.mrf.mxu1 }
0x2ce4   :  { %v7649_v43 = vadd.f32 %v7633_v13, %v14355_v31  ;;  %v7631_v45 = vmul.f32 0.044715, %v7615_v36  ;;  %v7618_v15 = vmul.f32 %v7602_v21, %v14366_v44  ;;  %v7600_v60 = vmul.f32 %v14372_v41, %v14372_v41 }
0x2ce5   :  { %v14379_v34 = vadd.f32 %v9728_v5, %v14352_v48  ;;  %v7552_v24 = vpop.f32.mrf.mxu1 }
0x2ce6   :  { %v7665_v53 = vmul.f32 0.7978846, %v7649_v43  ;;  %v7647_v33 = vadd.f32 %v7631_v45, %v14360_v17  ;;  %v7634_v62 = vmul.f32 0.044715, %v7618_v15  ;;  %v7616_v1 = vmul.f32 %v7600_v60, %v14372_v41 }
0x2ce7   :  { %v7605_v12 = vmul.f32 %v14379_v34, %v14379_v34  ;;  %v14386_v9 = vadd.f32 %v14352_v48, %v7552_v24  ;;  %v9729_v57 = vpop.f32.mrf.mxu1 }
0x2ce8   :  { %v7663_v55 = vmul.f32 0.7978846, %v7647_v33  ;;  %v7650_v56 = vadd.f32 %v7634_v62, %v14366_v44  ;;  %v7632_v18 = vmul.f32 0.044715, %v7616_v1  ;;  %10841 = vtanh.f32 %v7665_v53 }
0x2ce9   :  { %v7621_v61 = vmul.f32 %v7605_v12, %v14379_v34  ;;  %v7603_v37 = vmul.f32 %v14386_v9, %v14386_v9  ;;  %v7564_v22 = vadd.f32 %v9729_v57, %v14352_v48  ;;  %v7555_v50 = vpop.f32.mrf.mxu1 }
0x2cea   :  { %10843 = vtanh.f32 %v7663_v55  ;;  %v7666_v16 = vmul.f32 0.7978846, %v7650_v56  ;;  %v7648_v25 = vadd.f32 %v7632_v18, %v14372_v41  ;;  %v7556_v3 = vadd.f32 %v14352_v48, %v7555_v50 }
0x2ceb   :  { %v7637_v8 = vmul.f32 0.044715, %v7621_v61  ;;  %v7619_v4 = vmul.f32 %v7603_v37, %v14386_v9  ;;  %v7606_v32 = vmul.f32 %v7564_v22, %v7564_v22 }
0x2cec   :  { %10845 = vtanh.f32 %v7666_v16  ;;  %v7664_v38 = vmul.f32 0.7978846, %v7648_v25  ;;  %v7604_v47 = vmul.f32 %v7556_v3, %v7556_v3 }
0x2ced   :  { %v7653_v20 = vadd.f32 %v7637_v8, %v14379_v34  ;;  %v7635_v2 = vmul.f32 0.044715, %v7619_v4  ;;  %v7622_v11 = vmul.f32 %v7606_v32, %v7564_v22 }
0x2cee   :  { %10847 = vtanh.f32 %v7664_v38  ;;  %v7620_v49 = vmul.f32 %v7604_v47, %v7556_v3 }
0x2cef   :  { %v7669_v54 = vmul.f32 0.7978846, %v7653_v20  ;;  %v7651_v52 = vadd.f32 %v7635_v2, %v14386_v9  ;;  %v7638_v6 = vmul.f32 0.044715, %v7622_v11 }
0x2cf0   :  { %v7636_v59 = vmul.f32 0.044715, %v7620_v49 }
0x2cf1   :  { %10849 = vtanh.f32 %v7669_v54  ;;  %v7667_v35 = vmul.f32 0.7978846, %v7651_v52  ;;  %v7654_v42 = vadd.f32 %v7638_v6, %v7564_v22 }
0x2cf2   :  { %v7652_v14 = vadd.f32 %v7636_v59, %v7556_v3 }
0x2cf3   :  { %10851 = vtanh.f32 %v7667_v35  ;;  %v7670_v13 = vmul.f32 0.7978846, %v7654_v42 }
0x2cf4   :  { %v7668_v36 = vmul.f32 0.7978846, %v7652_v14 }
0x2cf5   :  { %10853 = vtanh.f32 %v7670_v13  ;;  %v10842_v21 = vpop.eup %10841 }
0x2cf6   :  { %10855 = vtanh.f32 %v7668_v36  ;;  %v7697_v15 = vadd.f32 1.0, %v10842_v21 }
0x2cf7   :  { %v10844_v5 = vpop.eup %10843 }
0x2cf8   :  { %v7695_v43 = vadd.f32 1.0, %v10844_v5  ;;  %v7713_v1 = vmul.f32 0.5, %v7697_v15 }
0x2cf9   :  { %v10846_v45 = vpop.eup %10845 }
0x2cfa   :  { %v7698_v60 = vadd.f32 1.0, %v10846_v45  ;;  %v7711_v62 = vmul.f32 0.5, %v7695_v43  ;;  %v7729_v37 = vmul.f32 %v7713_v1, %v14355_v31 }
0x2cfb   :  { %v10848_v24 = vpop.eup %10847 }
0x2cfc   :  { %v7714_v53 = vmul.f32 0.5, %v7698_v60  ;;  %v7696_v33 = vadd.f32 1.0, %v10848_v24  ;;  %v7727_v18 = vmul.f32 %v7711_v62, %v14360_v17 }
0x2cfe   :  { %v10850_v12 = vpop.eup %10849  ;;  %v7712_v57 = vmul.f32 0.5, %v7696_v33  ;;  %v7730_v55 = vmul.f32 %v7714_v53, %v14366_v44 }
0x2cff   :  { %v7701_v50 = vadd.f32 1.0, %v10850_v12 }
0x2d00   :  { %v10852_v56 = vpop.eup %10851  ;;  %v7728_v61 = vmul.f32 %v7712_v57, %v14372_v41  ;;  %v7744_v32 = vpack.c.bf16 %v7730_v55, %v7729_v37 }
0x2d01   :  { %v7699_v16 = vadd.f32 1.0, %v10852_v56  ;;  %v7717_v2 = vmul.f32 0.5, %v7701_v50 }
0x2d02   :  { %v10854_v25 = vpop.eup %10853  ;;  %v7743_v8 = vpack.c.bf16 %v7728_v61, %v7727_v18 }
0x2d03   :  { %v10856_v4 = vpop.eup %10855  ;;  %v7702_v38 = vadd.f32 1.0, %v10854_v25  ;;  %v7715_v20 = vmul.f32 0.5, %v7699_v16  ;;  %v7733_v31 = vmul.f32 %v7717_v2, %v14379_v34 }
0x2d04   :  { %9754 = vmatprep.mubr.bf16.mxu0 %v7743_v8  ;;  %v7700_v47 = vadd.f32 1.0, %v10856_v4 }
0x2d05   :  { %v7718_v11 = vmul.f32 0.5, %v7702_v38  ;;  %9755 = vmatmul.mubr.bf16.vlgmr.msra.gmra.mxu0 %v7744_v32  ;;  %v7731_v17 = vmul.f32 %v7715_v20, %v14386_v9 }
0x2d06   :  { %v7716_v44 = vmul.f32 0.5, %v7700_v47 }
0x2d07   :  { %v7734_v49 = vmul.f32 %v7718_v11, %v7564_v22 }
0x2d08   :  { %v7732_v41 = vmul.f32 %v7716_v44, %v7556_v3 }
0x2d09   :  { %v7746_v52 = vpack.c.bf16 %v7734_v49, %v7733_v31 }
0x2d0a   :  { %v7745_v54 = vpack.c.bf16 %v7732_v41, %v7731_v17 }
0x2d0c   :  { %9758 = vmatprep.mubr.bf16.mxu0 %v7745_v54 }
0x2d0d   :  { %9759 = vmatmul.mubr.bf16.gmra.mxu0 %v7746_v52 }
0x2d59   :  { %v9732_v6 = vpop.f32.mrf.mxu1 }
0x2d5a   :  { %v14405_v59 = vadd.f32 %v9732_v6, %v14352_v48 }
0x2d5b   :  { %v7568_v35 = vpop.f32.mrf.mxu1 }
0x2d5c   :  { %v7609_v42 = vmul.f32 %v14405_v59, %v14405_v59  ;;  %v14410_v14 = vadd.f32 %v14352_v48, %v7568_v35 }
0x2d5d   :  { %v9733_v22 = vpop.f32.mrf.mxu1 }
0x2d5e   :  { %v7625_v9 = vmul.f32 %v7609_v42, %v14405_v59  ;;  %v7607_v34 = vmul.f32 %v14410_v14, %v14410_v14  ;;  %v14416_v3 = vadd.f32 %v9733_v22, %v14352_v48 }
0x2d5f   :  { %v7571_v13 = vpop.f32.mrf.mxu1 }
0x2d60   :  { %v7641_v36 = vmul.f32 0.044715, %v7625_v9  ;;  %v7623_v21 = vmul.f32 %v7607_v34, %v14410_v14  ;;  %v7610_v5 = vmul.f32 %v14416_v3, %v14416_v3  ;;  %v14422_v43 = vadd.f32 %v14352_v48, %v7571_v13 }
0x2d62   :  { %v7657_v45 = vadd.f32 %v7641_v36, %v14405_v59  ;;  %v7639_v15 = vmul.f32 0.044715, %v7623_v21  ;;  %v7626_v60 = vmul.f32 %v7610_v5, %v14416_v3  ;;  %v7608_v24 = vmul.f32 %v14422_v43, %v14422_v43 }
0x2d64   :  { %v7673_v53 = vmul.f32 0.7978846, %v7657_v45  ;;  %v7655_v33 = vadd.f32 %v7639_v15, %v14410_v14  ;;  %v7642_v62 = vmul.f32 0.044715, %v7626_v60  ;;  %v7624_v1 = vmul.f32 %v7608_v24, %v14422_v43  ;;  %v9736_v12 = vpop.f32.mrf.mxu1 }
0x2d65   :  { %v14431_v57 = vadd.f32 %v9736_v12, %v14352_v48 }
0x2d66   :  { %v7671_v55 = vmul.f32 0.7978846, %v7655_v33  ;;  %v7658_v56 = vadd.f32 %v7642_v62, %v14416_v3  ;;  %v7640_v18 = vmul.f32 0.044715, %v7624_v1  ;;  %v7584_v61 = vpop.f32.mrf.mxu1  ;;  %10857 = vtanh.f32 %v7673_v53 }
0x2d67   :  { %v7613_v37 = vmul.f32 %v14431_v57, %v14431_v57  ;;  %v14437_v50 = vadd.f32 %v14352_v48, %v7584_v61 }
0x2d68   :  { %10859 = vtanh.f32 %v7671_v55  ;;  %v7674_v16 = vmul.f32 0.7978846, %v7658_v56  ;;  %v7656_v25 = vadd.f32 %v7640_v18, %v14422_v43  ;;  %v9737_v8 = vpop.f32.mrf.mxu1 }
0x2d69   :  { %v7629_v4 = vmul.f32 %v7613_v37, %v14431_v57  ;;  %v7611_v32 = vmul.f32 %v14437_v50, %v14437_v50  ;;  %v7596_v38 = vadd.f32 %v9737_v8, %v14352_v48 }
0x2d6a   :  { %10861 = vtanh.f32 %v7674_v16  ;;  %v7672_v47 = vmul.f32 0.7978846, %v7656_v25  ;;  %v7587_v20 = vpop.f32.mrf.mxu1 }
0x2d6b   :  { %v7645_v2 = vmul.f32 0.044715, %v7629_v4  ;;  %v7627_v11 = vmul.f32 %v7611_v32, %v14437_v50  ;;  %v7614_v44 = vmul.f32 %v7596_v38, %v7596_v38  ;;  %v7588_v49 = vadd.f32 %v14352_v48, %v7587_v20 }
0x2d6c   :  { %10863 = vtanh.f32 %v7672_v47 }
0x2d6d   :  { %v7661_v17 = vadd.f32 %v7645_v2, %v14431_v57  ;;  %v7643_v41 = vmul.f32 0.044715, %v7627_v11  ;;  %v7630_v31 = vmul.f32 %v7614_v44, %v7596_v38  ;;  %v7612_v54 = vmul.f32 %v7588_v49, %v7588_v49 }
0x2d6f   :  { %v7677_v52 = vmul.f32 0.7978846, %v7661_v17  ;;  %v7659_v6 = vadd.f32 %v7643_v41, %v14437_v50  ;;  %v7646_v35 = vmul.f32 0.044715, %v7630_v31  ;;  %v7628_v42 = vmul.f32 %v7612_v54, %v7588_v49 }
0x2d71   :  { %v7675_v22 = vmul.f32 0.7978846, %v7659_v6  ;;  %v7662_v9 = vadd.f32 %v7646_v35, %v7596_v38  ;;  %v7644_v34 = vmul.f32 0.044715, %v7628_v42  ;;  %10865 = vtanh.f32 %v7677_v52  ;;  %v14457_v42 = vld [vmem:[%s14811_s19] ss:$0 sm:$0xff] }
0x2d73   :  { %10867 = vtanh.f32 %v7675_v22  ;;  %v7678_v13 = vmul.f32 0.7978846, %v7662_v9  ;;  %v7660_v36 = vadd.f32 %v7644_v34, %v7588_v49  ;;  %v10858_v21 = vpop.eup %10857 }
0x2d74   :  { %v7705_v60 = vadd.f32 1.0, %v10858_v21 }
0x2d75   :  { %v10860_v48 = vpop.eup %10859  ;;  %10869 = vtanh.f32 %v7678_v13  ;;  %v7676_v5 = vmul.f32 0.7978846, %v7660_v36 }
0x2d76   :  { %v7703_v45 = vadd.f32 1.0, %v10860_v48  ;;  %v7721_v12 = vmul.f32 0.5, %v7705_v60 }
0x2d77   :  { %v10862_v15 = vpop.eup %10861  ;;  %10871 = vtanh.f32 %v7676_v5 }
0x2d78   :  { %v7706_v24 = vadd.f32 1.0, %v10862_v15  ;;  %v7719_v1 = vmul.f32 0.5, %v7703_v45  ;;  %v7737_v16 = vmul.f32 %v7721_v12, %v14405_v59 }
0x2d79   :  { %v10864_v53 = vpop.eup %10863 }
0x2d7a   :  { %v7722_v33 = vmul.f32 0.5, %v7706_v24  ;;  %v7704_v62 = vadd.f32 1.0, %v10864_v53  ;;  %v7735_v18 = vmul.f32 %v7719_v1, %v14410_v14 }
0x2d7c   :  { %v7720_v55 = vmul.f32 0.5, %v7704_v62  ;;  %v7738_v56 = vmul.f32 %v7722_v33, %v14416_v3 }
0x2d7e   :  { %v7736_v61 = vmul.f32 %v7720_v55, %v14422_v43  ;;  %v10866_v37 = vpop.eup %10865  ;;  %v7748_v4 = vpack.c.bf16 %v7738_v56, %v7737_v16 }
0x2d7f   :  { %v7709_v20 = vadd.f32 1.0, %v10866_v37 }
0x2d80   :  { %v10868_v25 = vpop.eup %10867  ;;  %v7747_v8 = vpack.c.bf16 %v7736_v61, %v7735_v18 }
0x2d81   :  { %v7707_v32 = vadd.f32 1.0, %v10868_v25  ;;  %v7725_v41 = vmul.f32 0.5, %v7709_v20 }
0x2d82   :  { %v10870_v47 = vpop.eup %10869  ;;  %9762 = vmatprep.mubr.bf16.mxu0 %v7747_v8 }
0x2d83   :  { %v7710_v2 = vadd.f32 1.0, %v10870_v47  ;;  %9763 = vmatmul.mubr.bf16.gmra.mxu0 %v7748_v4  ;;  %v7723_v3 = vmul.f32 0.5, %v7707_v32  ;;  %v7741_v59 = vmul.f32 %v7725_v41, %v14431_v57 }
0x2d84   :  { %v10872_v11 = vpop.eup %10871 }
0x2d85   :  { %v7726_v44 = vmul.f32 0.5, %v7710_v2  ;;  %v7708_v17 = vadd.f32 1.0, %v10872_v11  ;;  %v7739_v43 = vmul.f32 %v7723_v3, %v14437_v50 }
0x2d87   :  { %v7724_v14 = vmul.f32 0.5, %v7708_v17  ;;  %v7742_v31 = vmul.f32 %v7726_v44, %v7596_v38 }
0x2d89   :  { %v7740_v54 = vmul.f32 %v7724_v14, %v7588_v49  ;;  %v7750_v6 = vpack.c.bf16 %v7742_v31, %v7741_v59 }
0x2d8b   :  { %v7749_v52 = vpack.c.bf16 %v7740_v54, %v7739_v43 }
0x2d8d   :  { %9766 = vmatprep.mubr.bf16.mxu0 %v7749_v52 }
0x2d8e   :  { %9767 = vmatmul.mubr.bf16.gmra.mxu0 %v7750_v6 }
0x2dc5   :  { %v9756_v35 = vpop.f32.mrf.mxu0 }
0x2dc6   :  { %v7865_v9 = vadd.f32 %v9756_v35, %v14457_v42 }
0x2dc7   :  { %v7856_v22 = vpop.f32.mrf.mxu0 }
0x2dc8   :  { %v7857_v38 = vadd.f32 %v14457_v42, %v7856_v22  ;;  %v14466_v13 = vadd.f32 %v7865_v9, %v14072_v51 }
0x2dc9   :  { %v9757_v34 = vpop.f32.mrf.mxu0 }
0x2dca   :  { %v14462_v50 = vadd.f32 %v7857_v38, %v14065_v7  ;;  %v7868_v57 = vadd.f32 %v9757_v34, %v14457_v42  ;;  %v7941_v24 = vsel %vm273_vm1, %v14466_v13, 0.0 }
0x2dcb   :  { %v7859_v49 = vpop.f32.mrf.mxu0 }
0x2dcc   :  { %v7860_v36 = vadd.f32 %v14457_v42, %v7859_v49  ;;  %v7935_v21 = vsel %vm273_vm1, %v14462_v50, 0.0  ;;  %v14475_v45 = vadd.f32 %v7868_v57, %v14084_v30 }
0x2dcd   :  { %7936 = vadd.xlane.f32.xlu0 %v7935_v21  ;;  %v9760_v48 = vpop.f32.mrf.mxu0 }
0x2dce   :  { %v14472_v5 = vadd.f32 %v7860_v36, %v14068_v29  ;;  %v7881_v15 = vadd.f32 %v9760_v48, %v14457_v42  ;;  %v7944_v30 = vsel %vm273_vm1, %v14475_v45, 0.0 }
0x2dcf   :  { %v7872_v7 = vpop.f32.mrf.mxu0 }
0x2dd0   :  { %v7873_v60 = vadd.f32 %v14457_v42, %v7872_v7  ;;  %v7938_v51 = vsel %vm273_vm1, %v14472_v5, 0.0  ;;  %v14489_v62 = vadd.f32 %v7881_v15, %v14103_v39 }
0x2dd1   :  { %7939 = vadd.xlane.f32.xlu1 %v7938_v51  ;;  %7942 = vadd.xlane.f32.xlu0 %v7941_v24  ;;  %v9761_v53 = vpop.f32.mrf.mxu0 }
0x2dd2   :  { %v14484_v29 = vadd.f32 %v7873_v60, %v14096_v0  ;;  %v7884_v1 = vadd.f32 %v9761_v53, %v14457_v42  ;;  %v7953_v39 = vsel %vm273_vm1, %v14489_v62, 0.0 }
0x2dd3   :  { %v7875_v33 = vpop.f32.mrf.mxu0 }
0x2dd4   :  { %v7876_v12 = vadd.f32 %v14457_v42, %v7875_v33  ;;  %v7947_v55 = vsel %vm273_vm1, %v14484_v29, 0.0  ;;  %v14499_v0 = vadd.f32 %v7884_v1, %v14090_v10 }
0x2dd5   :  { %7945 = vadd.xlane.f32.xlu1 %v7944_v30  ;;  %7948 = vadd.xlane.f32.xlu0 %v7947_v55 }
0x2dd6   :  { %v14496_v56 = vadd.f32 %v7876_v12, %v14079_v27  ;;  %v7956_v61 = vsel %vm273_vm1, %v14499_v0, 0.0 }
0x2dd8   :  { %v7950_v18 = vsel %vm273_vm1, %v14496_v56, 0.0 }
0x2dd9   :  { %7951 = vadd.xlane.f32.xlu1 %v7950_v18  ;;  %7954 = vadd.xlane.f32.xlu0 %v7953_v39 }
0x2ddd   :  { %7957 = vadd.xlane.f32.xlu1 %v7956_v61 }
0x2e43   :  { %v9764_v37 = vpop.f32.mrf.mxu0 }
0x2e44   :  { %v7897_v27 = vadd.f32 %v9764_v37, %v14457_v42 }
0x2e45   :  { %v7888_v16 = vpop.f32.mrf.mxu0 }
0x2e46   :  { %v7889_v25 = vadd.f32 %v14457_v42, %v7888_v16  ;;  %v14513_v32 = vadd.f32 %v7897_v27, %v14151_v19 }
0x2e47   :  { %v9765_v10 = vpop.f32.mrf.mxu0 }
0x2e48   :  { %v14510_v8 = vadd.f32 %v7889_v25, %v14148_v58  ;;  %v7900_v47 = vadd.f32 %v9765_v10, %v14457_v42  ;;  %v7965_v19 = vsel %vm273_vm1, %v14513_v32, 0.0 }
0x2e49   :  { %v7891_v4 = vpop.f32.mrf.mxu0 }
0x2e4a   :  { %v7892_v20 = vadd.f32 %v14457_v42, %v7891_v4  ;;  %v7959_v2 = vsel %vm273_vm1, %v14510_v8, 0.0  ;;  %v14523_v44 = vadd.f32 %v7900_v47, %v14161_v28 }
0x2e4b   :  { %7960 = vadd.xlane.f32.xlu0 %v7959_v2 }
0x2e4c   :  { %v14520_v11 = vadd.f32 %v7892_v20, %v14158_v40  ;;  %v7968_v40 = vsel %vm273_vm1, %v14523_v44, 0.0 }
0x2e4e   :  { %v9768_v58 = vpop.f32.mrf.mxu0  ;;  %v7962_v17 = vsel %vm273_vm1, %v14520_v11, 0.0 }
0x2e4f   :  { %7963 = vadd.xlane.f32.xlu1 %v7962_v17  ;;  %7966 = vadd.xlane.f32.xlu0 %v7965_v19  ;;  %v7913_v41 = vadd.f32 %v9768_v58, %v14457_v42  ;;  %v10165_v58 = vld [vmem:[%s14812_s20 + $0x18] sm:$0xff]   ;;  %v10167_v17 = vld [vmem:[%s14812_s20 + $0x8] sm:$0xff]   ;;  %v10168_v19 = vld [vmem:[%s14812_s20] sm:$0xff]  }
0x2e50   :  { %v7904_v3 = vpop.f32.mrf.mxu0  ;;  %9770 = vmatprep.subr.bf16.mxu1 %v10165_v58 }
0x2e51   :  { %v7905_v14 = vadd.f32 %v14457_v42, %v7904_v3  ;;  %v14537_v54 = vadd.f32 %v7913_v41, %v14178_v26  ;;  %9771 = vmatpush3.bf16.msra.mxu1 %v10165_v58 }
0x2e52   :  { %v9769_v31 = vpop.f32.mrf.mxu0 }
0x2e53   :  { %v14534_v28 = vadd.f32 %v7905_v14, %v14172_v23  ;;  %7969 = vadd.xlane.f32.xlu1 %v7968_v40  ;;  %v7916_v59 = vadd.f32 %v9769_v31, %v14457_v42 }
0x2e54   :  { %v7907_v43 = vpop.f32.mrf.mxu0 }
0x2e55   :  { %v7908_v52 = vadd.f32 %v14457_v42, %v7907_v43  ;;  %v7971_v6 = vsel %vm273_vm1, %v14534_v28, 0.0  ;;  %v14547_v23 = vadd.f32 %v7916_v59, %v14196_v63  ;;  %v7977_v42 = vsel %vm273_vm1, %v14537_v54, 0.0 }
0x2e56   :  { %7972 = vadd.xlane.f32.xlu0 %v7971_v6  ;;  %v7937_v35 = vpop.xlane.xlu0 %7936 }
0x2e57   :  { %v14544_v22 = vadd.f32 %v7908_v52, %v14185_v46  ;;  %v7983_v9 = vmul.f32 0.015625, %v7937_v35  ;;  %v7980_v21 = vsel %vm273_vm1, %v14547_v23, 0.0 }
0x2e59   :  { %v14550_v38 = vsub.f32 %v14462_v50, %v7983_v9  ;;  %v7974_v26 = vsel %vm273_vm1, %v14544_v22, 0.0 }
0x2e5a   :  { %v7940_v34 = vpop.xlane.xlu1 %7939  ;;  %7975 = vadd.xlane.f32.xlu1 %v7974_v26  ;;  %7978 = vadd.xlane.f32.xlu0 %v7977_v42  ;;  %v7943_v57 = vpop.xlane.xlu0 %7942 }
0x2e5b   :  { %v7984_v49 = vmul.f32 0.015625, %v7940_v34  ;;  %v7985_v46 = vmul.f32 0.015625, %v7943_v57  ;;  %v8015_v36 = vmul.f32 %v14550_v38, %v14550_v38 }
0x2e5d   :  { %v14559_v63 = vsub.f32 %v14472_v5, %v7984_v49  ;;  %v14562_v50 = vsub.f32 %v14466_v13, %v7985_v46  ;;  %v8031_v48 = vsel %vm273_vm1, %v8015_v36, 0.0 }
0x2e5e   :  { %v7946_v7 = vpop.xlane.xlu1 %7945  ;;  %7981 = vadd.xlane.f32.xlu1 %v7980_v21  ;;  %8032 = vadd.xlane.f32.xlu0 %v8031_v48  ;;  %v7949_v15 = vpop.xlane.xlu0 %7948 }
0x2e5f   :  { %v7986_v60 = vmul.f32 0.015625, %v7946_v7  ;;  %v7987_v51 = vmul.f32 0.015625, %v7949_v15  ;;  %v8016_v24 = vmul.f32 %v14559_v63, %v14559_v63  ;;  %v8017_v5 = vmul.f32 %v14562_v50, %v14562_v50 }
0x2e61   :  { %v14572_v13 = vsub.f32 %v14475_v45, %v7986_v60  ;;  %v14575_v53 = vsub.f32 %v14484_v29, %v7987_v51  ;;  %v8034_v33 = vsel %vm273_vm1, %v8016_v24, 0.0  ;;  %v8037_v30 = vsel %vm273_vm1, %v8017_v5, 0.0 }
0x2e62   :  { %v7952_v1 = vpop.xlane.xlu1 %7951  ;;  %8035 = vadd.xlane.f32.xlu1 %v8034_v33  ;;  %8038 = vadd.xlane.f32.xlu0 %v8037_v30  ;;  %v7955_v12 = vpop.xlane.xlu0 %7954 }
0x2e63   :  { %v7988_v55 = vmul.f32 0.015625, %v7952_v1  ;;  %v7989_v18 = vmul.f32 0.015625, %v7955_v12  ;;  %v8018_v39 = vmul.f32 %v14572_v13, %v14572_v13  ;;  %v8019_v45 = vmul.f32 %v14575_v53, %v14575_v53 }
0x2e65   :  { %v14584_v61 = vsub.f32 %v14496_v56, %v7988_v55  ;;  %v14587_v29 = vsub.f32 %v14489_v62, %v7989_v18  ;;  %v8040_v37 = vsel %vm273_vm1, %v8018_v39, 0.0  ;;  %v8043_v16 = vsel %vm273_vm1, %v8019_v45, 0.0 }
0x2e66   :  { %v7958_v27 = vpop.xlane.xlu1 %7957  ;;  %8041 = vadd.xlane.f32.xlu1 %v8040_v37  ;;  %8044 = vadd.xlane.f32.xlu0 %v8043_v16 }
0x2e67   :  { %v7990_v25 = vmul.f32 0.015625, %v7958_v27  ;;  %v8020_v10 = vmul.f32 %v14584_v61, %v14584_v61  ;;  %v8021_v4 = vmul.f32 %v14587_v29, %v14587_v29 }
0x2e69   :  { %v14596_v56 = vsub.f32 %v14499_v0, %v7990_v25  ;;  %v8046_v62 = vsel %vm273_vm1, %v8020_v10, 0.0  ;;  %v8049_v47 = vsel %vm273_vm1, %v8021_v4, 0.0  ;;  %v10166_v0 = vld [vmem:[%s14812_s20 + $0x10] sm:$0xff]  }
0x2e6a   :  { %8047 = vadd.xlane.f32.xlu1 %v8046_v62  ;;  %8050 = vadd.xlane.f32.xlu0 %v8049_v47 }
0x2e6b   :  { %v8022_v20 = vmul.f32 %v14596_v56, %v14596_v56  ;;  %9772 = vmatprep.subr.bf16.mxu1 %v10166_v0 }
0x2e6c   :  { %9773 = vmatpush3.bf16.msra.mxu1 %v10166_v0 }
0x2e6d   :  { %v8052_v2 = vsel %vm273_vm1, %v8022_v20, 0.0  ;;  %9774 = vmatprep.subr.bf16.mxu1 %v10167_v17 }
0x2e6e   :  { %8053 = vadd.xlane.f32.xlu1 %v8052_v2 }
0x2e70   :  { %9775 = vmatpush3.bf16.msra.mxu1 %v10167_v17 }
0x2e71   :  { %9776 = vmatprep.subr.bf16.mxu1 %v10168_v19 }
0x2e74   :  { %9777 = vmatpush3.bf16.msra.mxu1 %v10168_v19 }
0x2ed4   :  { %v7961_v3 = vpop.xlane.xlu0 %7960 }
0x2ed5   :  { %v7991_v41 = vmul.f32 0.015625, %v7961_v3 }
0x2ed7   :  { %v14616_v14 = vsub.f32 %v14510_v8, %v7991_v41 }
0x2ed8   :  { %v7964_v31 = vpop.xlane.xlu1 %7963  ;;  %v7967_v40 = vpop.xlane.xlu0 %7966 }
0x2ed9   :  { %v7992_v43 = vmul.f32 0.015625, %v7964_v31  ;;  %v7993_v59 = vmul.f32 0.015625, %v7967_v40  ;;  %v8023_v52 = vmul.f32 %v14616_v14, %v14616_v14 }
0x2edb   :  { %v14621_v6 = vsub.f32 %v14520_v11, %v7992_v43  ;;  %v14624_v35 = vsub.f32 %v14513_v32, %v7993_v59  ;;  %v8055_v9 = vsel %vm273_vm1, %v8023_v52, 0.0 }
0x2edc   :  { %v7970_v26 = vpop.xlane.xlu1 %7969  ;;  %8056 = vadd.xlane.f32.xlu0 %v8055_v9 }
0x2edd   :  { %v7994_v42 = vmul.f32 0.015625, %v7970_v26  ;;  %v8024_v8 = vmul.f32 %v14621_v6, %v14621_v6  ;;  %v8025_v34 = vmul.f32 %v14624_v35, %v14624_v35 }
0x2edf   :  { %v14632_v57 = vsub.f32 %v14523_v44, %v7994_v42  ;;  %v7973_v49 = vpop.xlane.xlu0 %7972  ;;  %v8058_v11 = vsel %vm273_vm1, %v8024_v8, 0.0  ;;  %v8061_v32 = vsel %vm273_vm1, %v8025_v34, 0.0 }
0x2ee0   :  { %v7995_v46 = vmul.f32 0.015625, %v7973_v49  ;;  %8059 = vadd.xlane.f32.xlu1 %v8058_v11  ;;  %8062 = vadd.xlane.f32.xlu0 %v8061_v32 }
0x2ee1   :  { %v8026_v36 = vmul.f32 %v14632_v57, %v14632_v57 }
0x2ee2   :  { %v14639_v21 = vsub.f32 %v14534_v28, %v7995_v46 }
0x2ee3   :  { %v7976_v48 = vpop.xlane.xlu1 %7975  ;;  %v7979_v7 = vpop.xlane.xlu0 %7978  ;;  %v8064_v15 = vsel %vm273_vm1, %v8026_v36, 0.0 }
0x2ee4   :  { %v7996_v44 = vmul.f32 0.015625, %v7976_v48  ;;  %v7997_v60 = vmul.f32 0.015625, %v7979_v7  ;;  %8065 = vadd.xlane.f32.xlu1 %v8064_v15  ;;  %v8027_v51 = vmul.f32 %v14639_v21, %v14639_v21 }
0x2ee6   :  { %v14645_v24 = vsub.f32 %v14544_v22, %v7996_v44  ;;  %v14648_v5 = vsub.f32 %v14537_v54, %v7997_v60  ;;  %v8067_v33 = vsel %vm273_vm1, %v8027_v51, 0.0 }
0x2ee7   :  { %v7982_v28 = vpop.xlane.xlu1 %7981  ;;  %8068 = vadd.xlane.f32.xlu0 %v8067_v33  ;;  %v8033_v30 = vpop.xlane.xlu0 %8032 }
0x2ee8   :  { %v7998_v1 = vmul.f32 0.015625, %v7982_v28  ;;  %v8079_v12 = vmul.f32 0.015625, %v8033_v30  ;;  %v8028_v55 = vmul.f32 %v14645_v24, %v14645_v24  ;;  %v8029_v18 = vmul.f32 %v14648_v5, %v14648_v5 }
0x2eea   :  { %v14656_v39 = vsub.f32 %v14547_v23, %v7998_v1  ;;  %v8095_v22 = vadd.f32 1e-05, %v8079_v12  ;;  %v8070_v54 = vsel %vm273_vm1, %v8028_v55, 0.0  ;;  %v8073_v45 = vsel %vm273_vm1, %v8029_v18, 0.0 }
0x2eeb   :  { %8071 = vadd.xlane.f32.xlu1 %v8070_v54  ;;  %v8036_v37 = vpop.xlane.xlu1 %8035  ;;  %8074 = vadd.xlane.f32.xlu0 %v8073_v45  ;;  %v8039_v16 = vpop.xlane.xlu0 %8038 }
0x2eec   :  { %v8080_v27 = vmul.f32 0.015625, %v8036_v37  ;;  %v8081_v25 = vmul.f32 0.015625, %v8039_v16  ;;  %v8030_v10 = vmul.f32 %v14656_v39, %v14656_v39  ;;  %10873 = vrsqrt.f32 %v8095_v22 }
0x2eee   :  { %v8096_v4 = vadd.f32 1e-05, %v8080_v27  ;;  %v8097_v62 = vadd.f32 1e-05, %v8081_v25  ;;  %v8076_v23 = vsel %vm273_vm1, %v8030_v10, 0.0 }
0x2eef   :  { %8077 = vadd.xlane.f32.xlu1 %v8076_v23  ;;  %v8042_v47 = vpop.xlane.xlu1 %8041  ;;  %v8045_v20 = vpop.xlane.xlu0 %8044 }
0x2ef0   :  { %10875 = vrsqrt.f32 %v8096_v4  ;;  %v8082_v2 = vmul.f32 0.015625, %v8042_v47  ;;  %v8083_v58 = vmul.f32 0.015625, %v8045_v20 }
0x2ef1   :  { %10877 = vrsqrt.f32 %v8097_v62 }
0x2ef2   :  { %v8098_v0 = vadd.f32 1e-05, %v8082_v2  ;;  %v8099_v17 = vadd.f32 1e-05, %v8083_v58 }
0x2ef3   :  { %v8048_v19 = vpop.xlane.xlu1 %8047  ;;  %v8051_v3 = vpop.xlane.xlu0 %8050 }
0x2ef4   :  { %10879 = vrsqrt.f32 %v8098_v0  ;;  %v8084_v41 = vmul.f32 0.015625, %v8048_v19  ;;  %v8085_v31 = vmul.f32 0.015625, %v8051_v3 }
0x2ef5   :  { %10881 = vrsqrt.f32 %v8099_v17 }
0x2ef6   :  { %v8100_v40 = vadd.f32 1e-05, %v8084_v41  ;;  %v8101_v43 = vadd.f32 1e-05, %v8085_v31 }
0x2ef7   :  { %v8054_v59 = vpop.xlane.xlu1 %8053 }
0x2ef8   :  { %10883 = vrsqrt.f32 %v8100_v40  ;;  %v8086_v52 = vmul.f32 0.015625, %v8054_v59 }
0x2ef9   :  { %10885 = vrsqrt.f32 %v8101_v43  ;;  %v10874_v26 = vpop.eup %10873 }
0x2efa   :  { %v8102_v9 = vadd.f32 1e-05, %v8086_v52  ;;  %v8127_v8 = vmul.f32 %v10874_v26, %v14550_v38 }
0x2efc   :  { %10887 = vrsqrt.f32 %v8102_v9 }
0x2efd   :  { %v10876_v42 = vpop.eup %10875 }
0x2efe   :  { %v8128_v34 = vmul.f32 %v10876_v42, %v14559_v63  ;;  %v10878_v49 = vpop.eup %10877 }
0x2eff   :  { %v8129_v46 = vmul.f32 %v10878_v49, %v14562_v50 }
0x2f00   :  { %v8143_v11 = vpack.c.bf16 %v8128_v34, %v8127_v8 }
0x2f01   :  { %v10880_v32 = vpop.eup %10879 }
0x2f02   :  { %v8130_v36 = vmul.f32 %v10880_v32, %v14572_v13  ;;  %9778 = vmatprep.mubr.msk.bf16.mxu1 %vm273_vm1, %v8143_v11  ;;  %v10882_v48 = vpop.eup %10881 }
0x2f03   :  { %v8131_v44 = vmul.f32 %v10882_v48, %v14575_v53 }
0x2f04   :  { %v8144_v7 = vpack.c.bf16 %v8130_v36, %v8129_v46 }
0x2f05   :  { %v10884_v15 = vpop.eup %10883 }
0x2f06   :  { %9779 = vmatmul.mubr.msk.bf16.vlgmr.msra.gmra.mxu1 %vm273_vm1, %v8144_v7  ;;  %v8132_v38 = vmul.f32 %v10884_v15, %v14584_v61  ;;  %v10886_v60 = vpop.eup %10885 }
0x2f07   :  { %v8133_v50 = vmul.f32 %v10886_v60, %v14587_v29 }
0x2f08   :  { %v8145_v63 = vpack.c.bf16 %v8132_v38, %v8131_v44 }
0x2f09   :  { %v10888_v51 = vpop.eup %10887 }
0x2f0a   :  { %9782 = vmatprep.mubr.msk.bf16.mxu1 %vm273_vm1, %v8145_v63  ;;  %v8134_v13 = vmul.f32 %v10888_v51, %v14596_v56 }
0x2f0c   :  { %v8146_v33 = vpack.c.bf16 %v8134_v13, %v8133_v50 }
0x2f0e   :  { %9783 = vmatmul.mubr.msk.bf16.gmra.mxu1 %vm273_vm1, %v8146_v33 }
0x2f65   :  { %v8057_v28 = vpop.xlane.xlu0 %8056 }
0x2f66   :  { %v8087_v30 = vmul.f32 0.015625, %v8057_v28 }
0x2f68   :  { %v8103_v1 = vadd.f32 1e-05, %v8087_v30 }
0x2f69   :  { %v8060_v12 = vpop.xlane.xlu1 %8059  ;;  %v8063_v55 = vpop.xlane.xlu0 %8062 }
0x2f6a   :  { %v8088_v53 = vmul.f32 0.015625, %v8060_v12  ;;  %v8089_v18 = vmul.f32 0.015625, %v8063_v55  ;;  %10889 = vrsqrt.f32 %v8103_v1 }
0x2f6c   :  { %v8104_v61 = vadd.f32 1e-05, %v8088_v53  ;;  %v8105_v22 = vadd.f32 1e-05, %v8089_v18 }
0x2f6d   :  { %v8066_v54 = vpop.xlane.xlu1 %8065 }
0x2f6e   :  { %10891 = vrsqrt.f32 %v8104_v61  ;;  %v8090_v45 = vmul.f32 0.015625, %v8066_v54 }
0x2f6f   :  { %10893 = vrsqrt.f32 %v8105_v22 }
0x2f70   :  { %v8106_v29 = vadd.f32 1e-05, %v8090_v45  ;;  %v8069_v37 = vpop.xlane.xlu0 %8068 }
0x2f71   :  { %v8091_v56 = vmul.f32 0.015625, %v8069_v37 }
0x2f72   :  { %10895 = vrsqrt.f32 %v8106_v29 }
0x2f73   :  { %v8107_v16 = vadd.f32 1e-05, %v8091_v56 }
0x2f74   :  { %v8072_v27 = vpop.xlane.xlu1 %8071  ;;  %v8075_v25 = vpop.xlane.xlu0 %8074 }
0x2f75   :  { %v8092_v10 = vmul.f32 0.015625, %v8072_v27  ;;  %v8093_v4 = vmul.f32 0.015625, %v8075_v25  ;;  %10897 = vrsqrt.f32 %v8107_v16  ;;  %v15055_v25 = vlaneseq }
0x2f77   :  { %v8108_v62 = vadd.f32 1e-05, %v8092_v10  ;;  %v8109_v23 = vadd.f32 1e-05, %v8093_v4  ;;  %v10890_v20 = vpop.eup %10889  ;;  %v14701_v10 = vand.u32 127, %v15055_v25 }
0x2f78   :  { %v8078_v47 = vpop.xlane.xlu1 %8077  ;;  %v8135_v17 = vmul.f32 %v10890_v20, %v14616_v14 }
0x2f79   :  { %10899 = vrsqrt.f32 %v8108_v62  ;;  %v8094_v2 = vmul.f32 0.015625, %v8078_v47  ;;  %vm8313_vm4 = vcmp.lt.s32.totalorder %v14701_v10, 32 }
0x2f7a   :  { %10901 = vrsqrt.f32 %v8109_v23 }
0x2f7b   :  { %v10892_v58 = vpop.eup %10891  ;;  %v8110_v0 = vadd.f32 1e-05, %v8094_v2 }
0x2f7c   :  { %v8136_v19 = vmul.f32 %v10892_v58, %v14621_v6  ;;  %v10894_v3 = vpop.eup %10893 }
0x2f7d   :  { %10903 = vrsqrt.f32 %v8110_v0  ;;  %v8137_v40 = vmul.f32 %v10894_v3, %v14624_v35 }
0x2f7e   :  { %v8147_v41 = vpack.c.bf16 %v8136_v19, %v8135_v17 }
0x2f7f   :  { %v10896_v31 = vpop.eup %10895 }
0x2f80   :  { %9786 = vmatprep.mubr.msk.bf16.mxu1 %vm273_vm1, %v8147_v41  ;;  %v8138_v43 = vmul.f32 %v10896_v31, %v14632_v57  ;;  %v14690_v57 = vld [vmem:[%s14813_s21] ss:$0 sm:$0xff] }
0x2f82   :  { %v8148_v59 = vpack.c.bf16 %v8138_v43, %v8137_v40  ;;  %v10898_v52 = vpop.eup %10897 }
0x2f83   :  { %v8139_v26 = vmul.f32 %v10898_v52, %v14639_v21 }
0x2f84   :  { %9787 = vmatmul.mubr.msk.bf16.gmra.mxu1 %vm273_vm1, %v8148_v59 }
0x2f86   :  { %v10900_v9 = vpop.eup %10899 }
0x2f87   :  { %v8140_v14 = vmul.f32 %v10900_v9, %v14645_v24  ;;  %v10902_v6 = vpop.eup %10901 }
0x2f88   :  { %v8141_v34 = vmul.f32 %v10902_v6, %v14648_v5 }
0x2f89   :  { %v8149_v42 = vpack.c.bf16 %v8140_v14, %v8139_v26 }
0x2f8a   :  { %v10904_v8 = vpop.eup %10903 }
0x2f8b   :  { %9790 = vmatprep.mubr.msk.bf16.mxu1 %vm273_vm1, %v8149_v42  ;;  %v8142_v35 = vmul.f32 %v10904_v8, %v14656_v39 }
0x2f8d   :  { %v8150_v49 = vpack.c.bf16 %v8142_v35, %v8141_v34 }
0x2f8f   :  { %9791 = vmatmul.mubr.msk.bf16.gmra.mxu1 %vm273_vm1, %v8150_v49 }
0x2fc6   :  { %v9780_v21 = vpop.f32.mrf.mxu1 }
0x2fc7   :  { %v8257_v24 = vadd.f32 %v9780_v21, %v14690_v57 }
0x2fc8   :  { %v8248_v11 = vpop.f32.mrf.mxu1 }
0x2fc9   :  { %v8703_v32 = vmul.f32 -1.442695, %v8257_v24  ;;  %v8249_v46 = vadd.f32 %v14690_v57, %v8248_v11 }
0x2fca   :  { %v9781_v36 = vpop.f32.mrf.mxu1 }
0x2fcb   :  { %10905 = vpow2.f32 %v8703_v32  ;;  %v8701_v5 = vmul.f32 -1.442695, %v8249_v46  ;;  %v8260_v39 = vadd.f32 %v9781_v36, %v14690_v57 }
0x2fcc   :  { %v8251_v48 = vpop.f32.mrf.mxu1 }
0x2fcd   :  { %10907 = vpow2.f32 %v8701_v5  ;;  %v8704_v7 = vmul.f32 -1.442695, %v8260_v39  ;;  %v8252_v15 = vadd.f32 %v14690_v57, %v8251_v48 }
0x2fce   :  { %v9784_v44 = vpop.f32.mrf.mxu1 }
0x2fcf   :  { %10909 = vpow2.f32 %v8704_v7  ;;  %v8702_v38 = vmul.f32 -1.442695, %v8252_v15  ;;  %v8273_v60 = vadd.f32 %v9784_v44, %v14690_v57 }
0x2fd0   :  { %v8264_v63 = vpop.f32.mrf.mxu1 }
0x2fd1   :  { %10911 = vpow2.f32 %v8702_v38  ;;  %v8707_v51 = vmul.f32 -1.442695, %v8273_v60  ;;  %v8265_v50 = vadd.f32 %v14690_v57, %v8264_v63 }
0x2fd2   :  { %v9785_v13 = vpop.f32.mrf.mxu1 }
0x2fd3   :  { %10913 = vpow2.f32 %v8707_v51  ;;  %v8705_v33 = vmul.f32 -1.442695, %v8265_v50  ;;  %v8276_v28 = vadd.f32 %v9785_v13, %v14690_v57 }
0x2fd4   :  { %v8267_v30 = vpop.f32.mrf.mxu1 }
0x2fd5   :  { %10915 = vpow2.f32 %v8705_v33  ;;  %v8708_v1 = vmul.f32 -1.442695, %v8276_v28  ;;  %v8268_v12 = vadd.f32 %v14690_v57, %v8267_v30 }
0x2fd7   :  { %10917 = vpow2.f32 %v8708_v1  ;;  %v8706_v55 = vmul.f32 -1.442695, %v8268_v12 }
0x2fd8   :  { %v10906_v53 = vpop.eup %10905 }
0x2fd9   :  { %v8364_v18 = vadd.f32 1.0, %v10906_v53  ;;  %10919 = vpow2.f32 %v8706_v55 }
0x2fda   :  { %v10908_v61 = vpop.eup %10907 }
0x2fdb   :  { %10921 = vrcp.f32 %v8364_v18  ;;  %v8362_v22 = vadd.f32 1.0, %v10908_v61 }
0x2fdc   :  { %v10910_v54 = vpop.eup %10909 }
0x2fdd   :  { %10923 = vrcp.f32 %v8362_v22  ;;  %v8365_v45 = vadd.f32 1.0, %v10910_v54 }
0x2fde   :  { %v10912_v29 = vpop.eup %10911 }
0x2fdf   :  { %10925 = vrcp.f32 %v8365_v45  ;;  %v8363_v37 = vadd.f32 1.0, %v10912_v29 }
0x2fe0   :  { %v10914_v56 = vpop.eup %10913 }
0x2fe1   :  { %10927 = vrcp.f32 %v8363_v37  ;;  %v8368_v16 = vadd.f32 1.0, %v10914_v56 }
0x2fe2   :  { %v10916_v27 = vpop.eup %10915 }
0x2fe3   :  { %10929 = vrcp.f32 %v8368_v16  ;;  %v8366_v4 = vadd.f32 1.0, %v10916_v27 }
0x2fe4   :  { %v10918_v62 = vpop.eup %10917 }
0x2fe5   :  { %10931 = vrcp.f32 %v8366_v4  ;;  %v8369_v23 = vadd.f32 1.0, %v10918_v62 }
0x2fe6   :  { %v10920_v47 = vpop.eup %10919 }
0x2fe7   :  { %10933 = vrcp.f32 %v8369_v23  ;;  %v8367_v20 = vadd.f32 1.0, %v10920_v47 }
0x2fe8   :  { %v10922_v2 = vpop.eup %10921 }
0x2fe9   :  { %v8412_v58 = vsel %vm8313_vm4, %v10922_v2, %v8257_v24  ;;  %10935 = vrcp.f32 %v8367_v20 }
0x2fea   :  { %v10924_v0 = vpop.eup %10923  ;;  %8428 = vst [vmem:[%s14814_s22 + $0x10] sm:$0xff] %v8412_v58 }
0x2feb   :  { %v8410_v17 = vsel %vm8313_vm4, %v10924_v0, %v8249_v46 }
0x2fec   :  { %v10926_v19 = vpop.eup %10925  ;;  %8426 = vst [vmem:[%s14814_s22] sm:$0xff] %v8410_v17 }
0x2fed   :  { %v8413_v3 = vsel %vm8313_vm4, %v10926_v19, %v8260_v39 }
0x2fee   :  { %v10928_v41 = vpop.eup %10927  ;;  %8429 = vst [vmem:[%s14814_s22 + $0x18] sm:$0xff] %v8413_v3 }
0x2fef   :  { %v8411_v31 = vsel %vm8313_vm4, %v10928_v41, %v8252_v15 }
0x2ff0   :  { %v10930_v40 = vpop.eup %10929  ;;  %8427 = vst [vmem:[%s14814_s22 + $0x8] sm:$0xff] %v8411_v31 }
0x2ff1   :  { %v8416_v43 = vsel %vm8313_vm4, %v10930_v40, %v8273_v60 }
0x2ff2   :  { %v10932_v59 = vpop.eup %10931  ;;  %8432 = vst [vmem:[%s14814_s22 + $0x30] sm:$0xff] %v8416_v43 }
0x2ff3   :  { %v8414_v52 = vsel %vm8313_vm4, %v10932_v59, %v8265_v50 }
0x2ff4   :  { %v10934_v9 = vpop.eup %10933  ;;  %8430 = vst [vmem:[%s14814_s22 + $0x20] sm:$0xff] %v8414_v52 }
0x2ff5   :  { %v8417_v26 = vsel %vm8313_vm4, %v10934_v9, %v8276_v28 }
0x2ff6   :  { %v10936_v14 = vpop.eup %10935  ;;  %8433 = vst [vmem:[%s14814_s22 + $0x38] sm:$0xff] %v8417_v26 }
0x2ff7   :  { %v8415_v6 = vsel %vm8313_vm4, %v10936_v14, %v8268_v12 }
0x2ff8   :  { %8431 = vst [vmem:[%s14814_s22 + $0x28] sm:$0xff] %v8415_v6 }
0x3044   :  { %v9788_v42 = vpop.f32.mrf.mxu1 }
0x3045   :  { %v8289_v8 = vadd.f32 %v9788_v42, %v14690_v57 }
0x3046   :  { %v8280_v34 = vpop.f32.mrf.mxu1 }
0x3047   :  { %v8711_v35 = vmul.f32 -1.442695, %v8289_v8  ;;  %v8281_v49 = vadd.f32 %v14690_v57, %v8280_v34 }
0x3048   :  { %v9789_v21 = vpop.f32.mrf.mxu1 }
0x3049   :  { %10937 = vpow2.f32 %v8711_v35  ;;  %v8709_v24 = vmul.f32 -1.442695, %v8281_v49  ;;  %v8292_v11 = vadd.f32 %v9789_v21, %v14690_v57 }
0x304a   :  { %v8283_v32 = vpop.f32.mrf.mxu1 }
0x304b   :  { %10939 = vpow2.f32 %v8709_v24  ;;  %v8712_v46 = vmul.f32 -1.442695, %v8292_v11  ;;  %v8284_v36 = vadd.f32 %v14690_v57, %v8283_v32 }
0x304d   :  { %10941 = vpow2.f32 %v8712_v46  ;;  %v8710_v5 = vmul.f32 -1.442695, %v8284_v36 }
0x304f   :  { %10943 = vpow2.f32 %v8710_v5  ;;  %v9792_v39 = vpop.f32.mrf.mxu1 }
0x3050   :  { %v8305_v48 = vadd.f32 %v9792_v39, %v14690_v57 }
0x3051   :  { %v8296_v7 = vpop.f32.mrf.mxu1 }
0x3052   :  { %v8715_v15 = vmul.f32 -1.442695, %v8305_v48  ;;  %v8297_v44 = vadd.f32 %v14690_v57, %v8296_v7 }
0x3053   :  { %v9793_v38 = vpop.f32.mrf.mxu1 }
0x3054   :  { %10945 = vpow2.f32 %v8715_v15  ;;  %v8713_v60 = vmul.f32 -1.442695, %v8297_v44  ;;  %v8308_v63 = vadd.f32 %v9793_v38, %v14690_v57 }
0x3055   :  { %v8299_v51 = vpop.f32.mrf.mxu1 }
0x3056   :  { %v10938_v50 = vpop.eup %10937  ;;  %10947 = vpow2.f32 %v8713_v60  ;;  %v8716_v13 = vmul.f32 -1.442695, %v8308_v63  ;;  %v8300_v33 = vadd.f32 %v14690_v57, %v8299_v51 }
0x3057   :  { %v8372_v28 = vadd.f32 1.0, %v10938_v50 }
0x3058   :  { %v10940_v30 = vpop.eup %10939  ;;  %10949 = vpow2.f32 %v8716_v13  ;;  %v8714_v1 = vmul.f32 -1.442695, %v8300_v33 }
0x3059   :  { %10951 = vrcp.f32 %v8372_v28  ;;  %v8370_v12 = vadd.f32 1.0, %v10940_v30 }
0x305a   :  { %v10942_v55 = vpop.eup %10941  ;;  %10953 = vpow2.f32 %v8714_v1 }
0x305b   :  { %10955 = vrcp.f32 %v8370_v12  ;;  %v8373_v53 = vadd.f32 1.0, %v10942_v55 }
0x305c   :  { %v10944_v18 = vpop.eup %10943 }
0x305d   :  { %10957 = vrcp.f32 %v8373_v53  ;;  %v8371_v61 = vadd.f32 1.0, %v10944_v18 }
0x305f   :  { %10959 = vrcp.f32 %v8371_v61 }
0x3061   :  { %v10946_v22 = vpop.eup %10945 }
0x3062   :  { %v8376_v54 = vadd.f32 1.0, %v10946_v22 }
0x3063   :  { %v10948_v45 = vpop.eup %10947 }
0x3064   :  { %10961 = vrcp.f32 %v8376_v54  ;;  %v8374_v29 = vadd.f32 1.0, %v10948_v45 }
0x3065   :  { %v10950_v57 = vpop.eup %10949 }
0x3066   :  { %v10952_v37 = vpop.eup %10951  ;;  %10963 = vrcp.f32 %v8374_v29  ;;  %v8377_v56 = vadd.f32 1.0, %v10950_v57 }
0x3067   :  { %v10954_v16 = vpop.eup %10953  ;;  %v8420_v27 = vsel %vm8313_vm4, %v10952_v37, %v8289_v8 }
0x3068   :  { %v10956_v25 = vpop.eup %10955  ;;  %8436 = vst [vmem:[%s14814_s22 + $0x50] sm:$0xff] %v8420_v27  ;;  %10965 = vrcp.f32 %v8377_v56  ;;  %v8375_v4 = vadd.f32 1.0, %v10954_v16 }
0x3069   :  { %v8418_v62 = vsel %vm8313_vm4, %v10956_v25, %v8281_v49 }
0x306a   :  { %v10958_v23 = vpop.eup %10957  ;;  %8434 = vst [vmem:[%s14814_s22 + $0x40] sm:$0xff] %v8418_v62  ;;  %10967 = vrcp.f32 %v8375_v4 }
0x306b   :  { %v8421_v47 = vsel %vm8313_vm4, %v10958_v23, %v8292_v11 }
0x306c   :  { %v10960_v20 = vpop.eup %10959  ;;  %8437 = vst [vmem:[%s14814_s22 + $0x58] sm:$0xff] %v8421_v47 }
0x306d   :  { %v8419_v2 = vsel %vm8313_vm4, %v10960_v20, %v8284_v36 }
0x306e   :  { %8435 = vst [vmem:[%s14814_s22 + $0x48] sm:$0xff] %v8419_v2 }
0x3071   :  { %v10962_v58 = vpop.eup %10961 }
0x3072   :  { %v8424_v0 = vsel %vm8313_vm4, %v10962_v58, %v8305_v48 }
0x3073   :  { %v10964_v17 = vpop.eup %10963  ;;  %8440 = vst [vmem:[%s14814_s22 + $0x70] sm:$0xff] %v8424_v0 }
0x3074   :  { %v8422_v19 = vsel %vm8313_vm4, %v10964_v17, %v8297_v44 }
0x3075   :  { %v10966_v3 = vpop.eup %10965  ;;  %8438 = vst [vmem:[%s14814_s22 + $0x60] sm:$0xff] %v8422_v19 }
0x3076   :  { %v8425_v41 = vsel %vm8313_vm4, %v10966_v3, %v8308_v63 }
0x3077   :  { %v10968_v31 = vpop.eup %10967  ;;  %8441 = vst [vmem:[%s14814_s22 + $0x78] sm:$0xff] %v8425_v41 }
0x3078   :  { %v8423_v40 = vsel %vm8313_vm4, %v10968_v31, %v8300_v33 }
0x3079   :  { %8439 = vst [vmem:[%s14814_s22 + $0x68] sm:$0xff] %v8423_v40 }

</bundles_post_ra>
